<compile_context>
chip_gen: v7x
topology: tpu7x:2x2x1
jax: 0.10.0
libtpu: 0.0.40
codegen_flags: <defaults>
</compile_context>

<pallas_src>
import functools

import jax
import jax.numpy as jnp
from jax.experimental import pallas as pl
from jax.experimental.pallas import tpu as pltpu

CHANNEL_NUMS = [32, 32]
LANE_GROUP = 4            # images packed on the lane dim: 4 * 32 ch = 128 lanes
MAX_GROUPS_PER_STEP = 4   # 4 groups * 4 images = 16 images per grid step


def _round_up(x, m):
    return (x + m - 1) // m * m


# ----------------------------- Pallas kernels ------------------------------ #
def _conv3x3_relu_pool_kernel(x_ref, w_ref, b_ref, o_ref, acc_ref, row_ref, *,
                              Ng, H, W, rows_in, rows_out, Cin, pf_out):
    """Fused 3x3 SAME conv + bias + ReLU + 2x2 max-pool for Ng packed groups.

    x_ref  : (Ng*rows_in, Cin) bf16 zero-padded images in flat PF layout,
             pixel (h, w) of group j at row j*rows_in + (h+1)*(W+2) + (w+1).
    w_ref  : (9*Cin, C) bf16 block-diagonal per-tap weights (tap-major rows).
    b_ref  : (1, C) f32 (bias tiled over the 4 lane groups).
    o_ref  : pf_out -> (Ng*rows_out, C): pooled output re-emitted in the next
             conv layer's PF layout (padding rows zeroed here, so no XLA pad
             pass between the conv layers).
             else   -> (Ng, Ho*Wo, C): compact pooled output for the MLP.
    acc_ref: (L, C) f32 scratch holding the conv output rows (junk rows
             between stacked groups are computed but never pooled).
    row_ref: (W, C) f32 scratch: one vertically-maxed conv row pair.
    """
    Wp = W + 2
    M = H * Wp
    L = (Ng - 1) * rows_in + M
    Ho, Wo = H // 2, W // 2
    Wpo = Wo + 2

    # ---- 3x3 conv over all Ng stacked groups: lazy im2col + MXU matmul ----
    # Each tap is a contiguous row-shifted slice of the flat padded image.
    taps = [x_ref[pl.ds(kh * Wp + kw, L), :] for kh in range(3) for kw in range(3)]
    if Cin % 128 == 0:
        # Lane-aligned consolidation: one (L, 9*Cin) x (9*Cin, C) matmul.
        patches = jnp.concatenate(taps, axis=-1)
        acc_ref[...] = jnp.dot(patches, w_ref[...],
                               preferred_element_type=jnp.float32)
    else:
        # Packed Cin is tiny (conv1: 4): 9 small-K MXU dots over the large,
        # batch-stacked M dimension.
        acc = None
        for t, patch in enumerate(taps):
            part = jnp.dot(patch, w_ref[t * Cin:(t + 1) * Cin, :],
                           preferred_element_type=jnp.float32)
            acc = part if acc is None else acc + part
        acc_ref[...] = acc

    # ---- fused bias + ReLU + 2x2 max-pool epilogue ------------------------
    # (per-channel bias + ReLU commute with max-pool, so apply them on the
    #  4x smaller pooled tile)
    if pf_out:
        o_ref[...] = jnp.zeros_like(o_ref)   # zero padding rows of next layer
    bias = b_ref[...]                         # (1, C)
    for j in range(Ng):
        for hp in range(Ho):
            r0 = j * rows_in + 2 * hp * Wp
            # vertical max of the two conv rows: two contiguous loads
            row_ref[...] = jnp.maximum(acc_ref[pl.ds(r0, W), :],
                                       acc_ref[pl.ds(r0 + Wp, W), :])
            # horizontal pair max: two stride-2 reads of the small row scratch
            pooled = jnp.maximum(row_ref[pl.ds(0, Wo, stride=2), :],
                                 row_ref[pl.ds(1, Wo, stride=2), :])
            pooled = jnp.maximum(pooled + bias, 0.0).astype(o_ref.dtype)
            if pf_out:
                o_ref[pl.ds(j * rows_out + (hp + 1) * Wpo + 1, Wo), :] = pooled
            else:
                o_ref[j, pl.ds(hp * Wo, Wo), :] = pooled


def _mlp_kernel(x_ref, w1_ref, b1_ref, w2_ref, b2_ref, o_ref):
    """Fused fc1 + ReLU + fc2; the 64-wide intermediate stays in VMEM."""
    h = jnp.dot(x_ref[...], w1_ref[...], preferred_element_type=jnp.float32)
    h = jnp.maximum(h + b1_ref[...], 0.0)
    o = jnp.dot(h.astype(jnp.bfloat16), w2_ref[...],
                preferred_element_type=jnp.float32)
    o_ref[...] = (o + b2_ref[...]).astype(o_ref.dtype)


# ------------------------------ Pallas wrappers ---------------------------- #
def conv3x3_relu_pool(x_pf, w, b, *, H, W, pf_out):
    """Conv(3x3, pad=1) + bias + ReLU + 2x2 max-pool on lane-packed PF input.

    x_pf: (NG*rows_in, Cin) bf16, Cin = 4*cin (4 images per lane group).
    Returns pooled output, either in the next conv's PF layout (pf_out=True,
    shape (NG*rows_out, 128)) or compact (NG, Ho*Wo, 128).
    """
    Wp = W + 2
    rows_in = _round_up((H + 3) * Wp, 8)
    NG = x_pf.shape[0] // rows_in
    Cin = w.shape[0] // 9
    C = w.shape[1]
    Ho, Wo = H // 2, W // 2
    rows_out = _round_up((Ho + 3) * (Wo + 2), 8)

    # Groups per grid step (16 images/step when the batch allows it).  rows_in
    # is a multiple of 8, so any divisor of NG satisfies the (8,128) rule.
    Ng = 1
    for cand in range(min(MAX_GROUPS_PER_STEP, NG), 0, -1):
        if NG % cand == 0:
            Ng = cand
            break
    L = (Ng - 1) * rows_in + H * Wp

    if pf_out:
        out_shape = jax.ShapeDtypeStruct((NG * rows_out, C), jnp.bfloat16)
        out_spec = pl.BlockSpec((Ng * rows_out, C), lambda i: (i, 0))
    else:
        out_shape = jax.ShapeDtypeStruct((NG, Ho * Wo, C), jnp.bfloat16)
        out_spec = pl.BlockSpec((Ng, Ho * Wo, C), lambda i: (i, 0, 0))

    kern = functools.partial(_conv3x3_relu_pool_kernel, Ng=Ng, H=H, W=W,
                             rows_in=rows_in, rows_out=rows_out, Cin=Cin,
                             pf_out=pf_out)
    cost = pl.CostEstimate(
        flops=int(2 * NG * H * Wp * 9 * Cin * C),
        transcendentals=0,
        bytes_accessed=int(x_pf.size * 2 + w.size * 2 + b.size * 4
                           + out_shape.size * 2),
    )
    return pl.pallas_call(
        kern,
        out_shape=out_shape,
        grid_spec=pltpu.PrefetchScalarGridSpec(
            num_scalar_prefetch=0,
            grid=(NG // Ng,),
            in_specs=[
                pl.BlockSpec((Ng * rows_in, Cin), lambda i: (i, 0)),
                pl.BlockSpec((9 * Cin, C), lambda i: (0, 0)),
                pl.BlockSpec((1, C), lambda i: (0, 0)),
            ],
            out_specs=out_spec,
            scratch_shapes=[pltpu.VMEM((L, C), jnp.float32),
                            pltpu.VMEM((W, C), jnp.float32)],
        ),
        compiler_params=pltpu.CompilerParams(
            dimension_semantics=("parallel",),   # v7x: shard batch blocks over TCs
            vmem_limit_bytes=32 * 1024 * 1024,   # peak use ~8 MiB -> safe on v7x's 64 MiB
        ),
        cost_estimate=cost,
    )(x_pf, w, b)


def mlp_head(x, w1, b1, w2, b2):
    """x: (N, K) bf16 -> (N, P) f32 logits (P = lane-padded fc2 width)."""
    N, K = x.shape
    Hmid = w1.shape[1]
    P = w2.shape[1]
    # Row tile: largest candidate dividing N (big tiles amortise step overhead).
    tm = N
    for cand in (1024, 512, 256, 128, 64, 32, 16, 8):
        if N % cand == 0:
            tm = cand
            break
    cost = pl.CostEstimate(
        flops=int(2 * N * (K * Hmid + Hmid * P)),
        transcendentals=0,
        bytes_accessed=int(N * K * 2 + w1.size * 2 + w2.size * 2 + N * P * 4),
    )
    return pl.pallas_call(
        _mlp_kernel,
        out_shape=jax.ShapeDtypeStruct((N, P), jnp.float32),
        grid_spec=pltpu.PrefetchScalarGridSpec(
            num_scalar_prefetch=0,
            grid=(N // tm,),
            in_specs=[
                pl.BlockSpec((tm, K), lambda i: (i, 0)),
                pl.BlockSpec((K, Hmid), lambda i: (0, 0)),
                pl.BlockSpec((1, Hmid), lambda i: (0, 0)),
                pl.BlockSpec((Hmid, P), lambda i: (0, 0)),
                pl.BlockSpec((1, P), lambda i: (0, 0)),
            ],
            out_specs=pl.BlockSpec((tm, P), lambda i: (i, 0)),
        ),
        compiler_params=pltpu.CompilerParams(
            dimension_semantics=("parallel",),
            vmem_limit_bytes=32 * 1024 * 1024,
        ),
        cost_estimate=cost,
    )(x, w1, b1, w2, b2)


# ------------------------------- parameters -------------------------------- #
def _block_diag_taps(w_taps, groups):
    """(9, cin, cout) taps -> (9*groups*cin, groups*cout) block-diag, tap-major."""
    taps, cin, cout = w_taps.shape
    wb = jnp.zeros((taps, groups * cin, groups * cout), w_taps.dtype)
    for g in range(groups):
        wb = wb.at[:, g * cin:(g + 1) * cin, g * cout:(g + 1) * cout].set(w_taps)
    return wb.reshape(taps * groups * cin, groups * cout)


def init_params(key):
    c1, c2 = CHANNEL_NUMS
    G = LANE_GROUP
    ks = jax.random.split(key, 8)

    def u(k, shape, fan_in):
        bound = 1.0 / jnp.sqrt(jnp.float32(fan_in))
        return jax.random.uniform(k, shape, jnp.float32, -bound, bound)

    fc1_in = c2 * 7 * 7
    num_classes = 10
    fc2_pad = 128  # lane-pad fc2's 10-wide output to a full vreg width

    # Conv taps stored (t = kh*3+kw, cin, cout); from torch OIHW weights:
    #   w.permute(2, 3, 1, 0).reshape(9, cin, cout)
    conv1_taps = u(ks[0], (9, 1, c1), 9.0)
    conv2_taps = u(ks[2], (9, c1, c2), 9.0 * c1)

    return {
        # Block-diagonal packing: 4 images per lane group (4*32 = 128 lanes).
        "conv1_w": _block_diag_taps(conv1_taps, G).astype(jnp.bfloat16),  # (36, 128)
        "conv1_b": jnp.tile(u(ks[1], (1, c1), 9.0), (1, G)),              # (1, 128) f32
        "conv2_w": _block_diag_taps(conv2_taps, G).astype(jnp.bfloat16),  # (1152, 128)
        "conv2_b": jnp.tile(u(ks[3], (1, c2), 9.0 * c1), (1, G)),         # (1, 128) f32
        # fc1 rows in (h, w, c) order to match the NHWC flatten; from torch:
        #   fc1.weight.T.reshape(c2, 7, 7, 64).transpose(1, 2, 0, 3).reshape(-1, 64)
        "fc1_w": u(ks[4], (fc1_in, 64), float(fc1_in)).astype(jnp.bfloat16),
        "fc1_b": u(ks[5], (1, 64), float(fc1_in)),
        # fc2 zero-padded from 10 -> 128 output lanes (sliced in the wrapper).
        "fc2_w": jnp.zeros((64, fc2_pad), jnp.bfloat16)
                    .at[:, :num_classes].set(
                        u(ks[6], (64, num_classes), 64.0).astype(jnp.bfloat16)),
        "fc2_b": jnp.zeros((1, fc2_pad), jnp.float32)
                    .at[:, :num_classes].set(u(ks[7], (1, num_classes), 64.0)),
    }


# -------------------------------- forward ---------------------------------- #
@jax.jit
def cnn_forward(x_nchw, params):
    G = LANE_GROUP
    c2 = CHANNEL_NUMS[1]
    N, _, H, W = x_nchw.shape
    Ho1, Wo1 = H // 2, W // 2
    Ho2, Wo2 = H // 4, W // 4
    rows1 = _round_up((H + 3) * (W + 2), 8)

    # --- pack 4 images per lane group and lay out in zero-padded flat form ---
    n_pad = _round_up(N, G)
    x = jnp.pad(x_nchw, ((0, n_pad - N), (0, 0), (0, 0), (0, 0)))
    ng = n_pad // G
    x = x.reshape(ng, G, H, W).transpose(0, 2, 3, 1)            # (NG, H, W, 4)
    x = jnp.pad(x, ((0, 0), (1, 2), (1, 1), (0, 0)))            # SAME-conv halo
    x = x.reshape(ng, (H + 3) * (W + 2), G)
    x = jnp.pad(x, ((0, 0), (0, rows1 - (H + 3) * (W + 2)), (0, 0)))
    x = x.reshape(ng * rows1, G).astype(jnp.bfloat16)           # bf16, cast once

    # conv1 emits its pooled output already in conv2's padded-flat layout:
    # no XLA pad / re-layout pass between the conv layers.
    h1 = conv3x3_relu_pool(x, params["conv1_w"], params["conv1_b"],
                           H=H, W=W, pf_out=True)               # (NG*272, 128) bf16
    h2 = conv3x3_relu_pool(h1, params["conv2_w"], params["conv2_b"],
                           H=Ho1, W=Wo1, pf_out=False)          # (NG, 49, 128) bf16

    # unpack lane groups -> per-image (h, w, c) feature rows for the MLP head
    feats = h2.reshape(ng, Ho2 * Wo2, G, c2)
    feats = feats.transpose(0, 2, 1, 3).reshape(n_pad, Ho2 * Wo2 * c2)

    logits = mlp_head(feats, params["fc1_w"], params["fc1_b"],
                      params["fc2_w"], params["fc2_b"])          # (n_pad, 128) f32
    return logits[:N, :10]                      # drop batch + lane padding


if __name__ == "__main__":
    key = jax.random.PRNGKey(0)
    kx, kp = jax.random.split(key)
    # MNIST-shaped input: two 2x2 pools of 28 -> 7 matches fc1's 32*7*7 fan-in.
    x = jax.random.normal(kx, (2, 1, 28, 28), jnp.float32)
    params = init_params(kp)
    out = jax.block_until_ready(cnn_forward(x, params))
    assert out.shape == (2, 10) and out.dtype == jnp.float32
    assert bool(jnp.isfinite(out).all())
    print("KERNEL_OK")
</pallas_src>

<mosaic_0001>
module attributes {stable_mosaic.version = 11 : i64} {
  func.func @_conv3x3_relu_pool_kernel(%arg0: i32, %arg1: memref<936x4xbf16, #tpu.memory_space<vmem>>, %arg2: memref<36x128xbf16, #tpu.memory_space<vmem>>, %arg3: memref<1x128xf32, #tpu.memory_space<vmem>>, %arg4: memref<272x128xbf16, #tpu.memory_space<vmem>>, %arg5: memref<840x128xf32, #tpu.memory_space<vmem>>, %arg6: memref<28x128xf32, #tpu.memory_space<vmem>>) attributes {dimension_semantics = [#tpu.dimension_semantics<parallel>], iteration_bounds = array<i64: 1>, scalar_prefetch = 0 : i64, scratch_operands = 2 : i64, tpu.core_type = #tpu.core_type<tc>, window_params = [{transform_indices = @transform_0, window_bounds = array<i64: 936, 4>}, {pipeline_mode = #tpu.pipeline_mode<synchronous>, transform_indices = @transform_1, window_bounds = array<i64: 36, 128>}, {pipeline_mode = #tpu.pipeline_mode<synchronous>, transform_indices = @transform_2, window_bounds = array<i64: 1, 128>}, {transform_indices = @transform_3, window_bounds = array<i64: 272, 128>}]} {
    %c0 = arith.constant 0 : index
    %c0_0 = arith.constant 0 : index
    %0 = vector.load %arg1[%c0, %c0_0] : memref<936x4xbf16, #tpu.memory_space<vmem>>, vector<840x4xbf16>
    %c1 = arith.constant 1 : index
    %c0_1 = arith.constant 0 : index
    %1 = vector.load %arg1[%c1, %c0_1] : memref<936x4xbf16, #tpu.memory_space<vmem>>, vector<840x4xbf16>
    %c2 = arith.constant 2 : index
    %c0_2 = arith.constant 0 : index
    %2 = vector.load %arg1[%c2, %c0_2] : memref<936x4xbf16, #tpu.memory_space<vmem>>, vector<840x4xbf16>
    %c30 = arith.constant 30 : index
    %c0_3 = arith.constant 0 : index
    %3 = vector.load %arg1[%c30, %c0_3] : memref<936x4xbf16, #tpu.memory_space<vmem>>, vector<840x4xbf16>
    %c31 = arith.constant 31 : index
    %c0_4 = arith.constant 0 : index
    %4 = vector.load %arg1[%c31, %c0_4] : memref<936x4xbf16, #tpu.memory_space<vmem>>, vector<840x4xbf16>
    %c32 = arith.constant 32 : index
    %c0_5 = arith.constant 0 : index
    %5 = vector.load %arg1[%c32, %c0_5] : memref<936x4xbf16, #tpu.memory_space<vmem>>, vector<840x4xbf16>
    %c60 = arith.constant 60 : index
    %c0_6 = arith.constant 0 : index
    %6 = vector.load %arg1[%c60, %c0_6] : memref<936x4xbf16, #tpu.memory_space<vmem>>, vector<840x4xbf16>
    %c61 = arith.constant 61 : index
    %c0_7 = arith.constant 0 : index
    %7 = vector.load %arg1[%c61, %c0_7] : memref<936x4xbf16, #tpu.memory_space<vmem>>, vector<840x4xbf16>
    %c62 = arith.constant 62 : index
    %c0_8 = arith.constant 0 : index
    %8 = vector.load %arg1[%c62, %c0_8] : memref<936x4xbf16, #tpu.memory_space<vmem>>, vector<840x4xbf16>
    %c0_9 = arith.constant 0 : index
    %c0_10 = arith.constant 0 : index
    %9 = vector.load %arg2[%c0_9, %c0_10] : memref<36x128xbf16, #tpu.memory_space<vmem>>, vector<4x128xbf16>
    %cst = arith.constant dense<0.000000e+00> : vector<840x128xf32>
    %10 = tpu.matmul %0, %9, %cst {dimension_numbers = #tpu.dot_dimension_numbers<[1], [0], [0], [1], [0, 0, 1, 1], [], []>} : vector<840x4xbf16>, vector<4x128xbf16>, vector<840x128xf32> -> vector<840x128xf32>
    %c4 = arith.constant 4 : index
    %c0_11 = arith.constant 0 : index
    %11 = vector.load %arg2[%c4, %c0_11] : memref<36x128xbf16, #tpu.memory_space<vmem>>, vector<4x128xbf16>
    %cst_12 = arith.constant dense<0.000000e+00> : vector<840x128xf32>
    %12 = tpu.matmul %1, %11, %cst_12 {dimension_numbers = #tpu.dot_dimension_numbers<[1], [0], [0], [1], [0, 0, 1, 1], [], []>} : vector<840x4xbf16>, vector<4x128xbf16>, vector<840x128xf32> -> vector<840x128xf32>
    %13 = arith.addf %10, %12 : vector<840x128xf32>
    %c8 = arith.constant 8 : index
    %c0_13 = arith.constant 0 : index
    %14 = vector.load %arg2[%c8, %c0_13] : memref<36x128xbf16, #tpu.memory_space<vmem>>, vector<4x128xbf16>
    %cst_14 = arith.constant dense<0.000000e+00> : vector<840x128xf32>
    %15 = tpu.matmul %2, %14, %cst_14 {dimension_numbers = #tpu.dot_dimension_numbers<[1], [0], [0], [1], [0, 0, 1, 1], [], []>} : vector<840x4xbf16>, vector<4x128xbf16>, vector<840x128xf32> -> vector<840x128xf32>
    %16 = arith.addf %13, %15 : vector<840x128xf32>
    %c12 = arith.constant 12 : index
    %c0_15 = arith.constant 0 : index
    %17 = vector.load %arg2[%c12, %c0_15] : memref<36x128xbf16, #tpu.memory_space<vmem>>, vector<4x128xbf16>
    %cst_16 = arith.constant dense<0.000000e+00> : vector<840x128xf32>
    %18 = tpu.matmul %3, %17, %cst_16 {dimension_numbers = #tpu.dot_dimension_numbers<[1], [0], [0], [1], [0, 0, 1, 1], [], []>} : vector<840x4xbf16>, vector<4x128xbf16>, vector<840x128xf32> -> vector<840x128xf32>
    %19 = arith.addf %16, %18 : vector<840x128xf32>
    %c16 = arith.constant 16 : index
    %c0_17 = arith.constant 0 : index
    %20 = vector.load %arg2[%c16, %c0_17] : memref<36x128xbf16, #tpu.memory_space<vmem>>, vector<4x128xbf16>
    %cst_18 = arith.constant dense<0.000000e+00> : vector<840x128xf32>
    %21 = tpu.matmul %4, %20, %cst_18 {dimension_numbers = #tpu.dot_dimension_numbers<[1], [0], [0], [1], [0, 0, 1, 1], [], []>} : vector<840x4xbf16>, vector<4x128xbf16>, vector<840x128xf32> -> vector<840x128xf32>
    %22 = arith.addf %19, %21 : vector<840x128xf32>
    %c20 = arith.constant 20 : index
    %c0_19 = arith.constant 0 : index
    %23 = vector.load %arg2[%c20, %c0_19] : memref<36x128xbf16, #tpu.memory_space<vmem>>, vector<4x128xbf16>
    %cst_20 = arith.constant dense<0.000000e+00> : vector<840x128xf32>
    %24 = tpu.matmul %5, %23, %cst_20 {dimension_numbers = #tpu.dot_dimension_numbers<[1], [0], [0], [1], [0, 0, 1, 1], [], []>} : vector<840x4xbf16>, vector<4x128xbf16>, vector<840x128xf32> -> vector<840x128xf32>
    %25 = arith.addf %22, %24 : vector<840x128xf32>
    %c24 = arith.constant 24 : index
    %c0_21 = arith.constant 0 : index
    %26 = vector.load %arg2[%c24, %c0_21] : memref<36x128xbf16, #tpu.memory_space<vmem>>, vector<4x128xbf16>
    %cst_22 = arith.constant dense<0.000000e+00> : vector<840x128xf32>
    %27 = tpu.matmul %6, %26, %cst_22 {dimension_numbers = #tpu.dot_dimension_numbers<[1], [0], [0], [1], [0, 0, 1, 1], [], []>} : vector<840x4xbf16>, vector<4x128xbf16>, vector<840x128xf32> -> vector<840x128xf32>
    %28 = arith.addf %25, %27 : vector<840x128xf32>
    %c28 = arith.constant 28 : index
    %c0_23 = arith.constant 0 : index
    %29 = vector.load %arg2[%c28, %c0_23] : memref<36x128xbf16, #tpu.memory_space<vmem>>, vector<4x128xbf16>
    %cst_24 = arith.constant dense<0.000000e+00> : vector<840x128xf32>
    %30 = tpu.matmul %7, %29, %cst_24 {dimension_numbers = #tpu.dot_dimension_numbers<[1], [0], [0], [1], [0, 0, 1, 1], [], []>} : vector<840x4xbf16>, vector<4x128xbf16>, vector<840x128xf32> -> vector<840x128xf32>
    %31 = arith.addf %28, %30 : vector<840x128xf32>
    %c32_25 = arith.constant 32 : index
    %c0_26 = arith.constant 0 : index
    %32 = vector.load %arg2[%c32_25, %c0_26] : memref<36x128xbf16, #tpu.memory_space<vmem>>, vector<4x128xbf16>
    %cst_27 = arith.constant dense<0.000000e+00> : vector<840x128xf32>
    %33 = tpu.matmul %8, %32, %cst_27 {dimension_numbers = #tpu.dot_dimension_numbers<[1], [0], [0], [1], [0, 0, 1, 1], [], []>} : vector<840x4xbf16>, vector<4x128xbf16>, vector<840x128xf32> -> vector<840x128xf32>
    %34 = arith.addf %31, %33 : vector<840x128xf32>
    %c0_28 = arith.constant 0 : index
    %c0_29 = arith.constant 0 : index
    %35 = vector.load %arg5[%c0_28, %c0_29] : memref<840x128xf32, #tpu.memory_space<vmem>>, vector<840x128xf32>
    tpu.vector_store %arg5[%c0_28, %c0_29], %34 {strides = array<i32>} : memref<840x128xf32, #tpu.memory_space<vmem>>, vector<840x128xf32>,
    %cst_30 = arith.constant 0.000000e+00 : bf16
    %36 = vector.broadcast %cst_30 : bf16 to vector<272x128xbf16>
    %c0_31 = arith.constant 0 : index
    %c0_32 = arith.constant 0 : index
    %37 = vector.load %arg4[%c0_31, %c0_32] : memref<272x128xbf16, #tpu.memory_space<vmem>>, vector<272x128xbf16>
    tpu.vector_store %arg4[%c0_31, %c0_32], %36 {strides = array<i32>} : memref<272x128xbf16, #tpu.memory_space<vmem>>, vector<272x128xbf16>,
    %c0_33 = arith.constant 0 : index
    %c0_34 = arith.constant 0 : index
    %38 = vector.load %arg3[%c0_33, %c0_34] : memref<1x128xf32, #tpu.memory_space<vmem>>, vector<1x128xf32>
    %c0_35 = arith.constant 0 : index
    %c0_36 = arith.constant 0 : index
    %39 = vector.load %arg5[%c0_35, %c0_36] : memref<840x128xf32, #tpu.memory_space<vmem>>, vector<28x128xf32>
    %c30_37 = arith.constant 30 : index
    %c0_38 = arith.constant 0 : index
    %40 = vector.load %arg5[%c30_37, %c0_38] : memref<840x128xf32, #tpu.memory_space<vmem>>, vector<28x128xf32>
    %41 = arith.maximumf %39, %40 : vector<28x128xf32>
    %c0_39 = arith.constant 0 : index
    %c0_40 = arith.constant 0 : index
    %42 = vector.load %arg6[%c0_39, %c0_40] : memref<28x128xf32, #tpu.memory_space<vmem>>, vector<28x128xf32>
    tpu.vector_store %arg6[%c0_39, %c0_40], %41 {strides = array<i32>} : memref<28x128xf32, #tpu.memory_space<vmem>>, vector<28x128xf32>,
    %c0_41 = arith.constant 0 : index
    %c0_42 = arith.constant 0 : index
    %43 = tpu.strided_load %arg6[%c0_41, %c0_42] {strides = array<i32: 2, 1>} : memref<28x128xf32, #tpu.memory_space<vmem>>, vector<14x128xf32>
    %c1_43 = arith.constant 1 : index
    %c0_44 = arith.constant 0 : index
    %44 = tpu.strided_load %arg6[%c1_43, %c0_44] {strides = array<i32: 2, 1>} : memref<28x128xf32, #tpu.memory_space<vmem>>, vector<14x128xf32>
    %45 = arith.maximumf %43, %44 : vector<14x128xf32>
    %46 = vector.broadcast %38 : vector<1x128xf32> to vector<14x128xf32>
    %47 = arith.addf %45, %46 : vector<14x128xf32>
    %cst_45 = arith.constant 0.000000e+00 : f32
    %48 = vector.broadcast %cst_45 : f32 to vector<14x128xf32>
    %49 = arith.maximumf %47, %48 : vector<14x128xf32>
    %50 = arith.truncf %49 : vector<14x128xf32> to vector<14x128xbf16>
    %c17 = arith.constant 17 : index
    %c0_46 = arith.constant 0 : index
    %51 = vector.load %arg4[%c17, %c0_46] : memref<272x128xbf16, #tpu.memory_space<vmem>>, vector<14x128xbf16>
    tpu.vector_store %arg4[%c17, %c0_46], %50 {strides = array<i32>} : memref<272x128xbf16, #tpu.memory_space<vmem>>, vector<14x128xbf16>,
    %c60_47 = arith.constant 60 : index
    %c0_48 = arith.constant 0 : index
    %52 = vector.load %arg5[%c60_47, %c0_48] : memref<840x128xf32, #tpu.memory_space<vmem>>, vector<28x128xf32>
    %c90 = arith.constant 90 : index
    %c0_49 = arith.constant 0 : index
    %53 = vector.load %arg5[%c90, %c0_49] : memref<840x128xf32, #tpu.memory_space<vmem>>, vector<28x128xf32>
    %54 = arith.maximumf %52, %53 : vector<28x128xf32>
    %c0_50 = arith.constant 0 : index
    %c0_51 = arith.constant 0 : index
    %55 = vector.load %arg6[%c0_50, %c0_51] : memref<28x128xf32, #tpu.memory_space<vmem>>, vector<28x128xf32>
    tpu.vector_store %arg6[%c0_50, %c0_51], %54 {strides = array<i32>} : memref<28x128xf32, #tpu.memory_space<vmem>>, vector<28x128xf32>,
    %c0_52 = arith.constant 0 : index
    %c0_53 = arith.constant 0 : index
    %56 = tpu.strided_load %arg6[%c0_52, %c0_53] {strides = array<i32: 2, 1>} : memref<28x128xf32, #tpu.memory_space<vmem>>, vector<14x128xf32>
    %c1_54 = arith.constant 1 : index
    %c0_55 = arith.constant 0 : index
    %57 = tpu.strided_load %arg6[%c1_54, %c0_55] {strides = array<i32: 2, 1>} : memref<28x128xf32, #tpu.memory_space<vmem>>, vector<14x128xf32>
    %58 = arith.maximumf %56, %57 : vector<14x128xf32>
    %59 = vector.broadcast %38 : vector<1x128xf32> to vector<14x128xf32>
    %60 = arith.addf %58, %59 : vector<14x128xf32>
    %cst_56 = arith.constant 0.000000e+00 : f32
    %61 = vector.broadcast %cst_56 : f32 to vector<14x128xf32>
    %62 = arith.maximumf %60, %61 : vector<14x128xf32>
    %63 = arith.truncf %62 : vector<14x128xf32> to vector<14x128xbf16>
    %c33 = arith.constant 33 : index
    %c0_57 = arith.constant 0 : index
    %64 = vector.load %arg4[%c33, %c0_57] : memref<272x128xbf16, #tpu.memory_space<vmem>>, vector<14x128xbf16>
    tpu.vector_store %arg4[%c33, %c0_57], %63 {strides = array<i32>} : memref<272x128xbf16, #tpu.memory_space<vmem>>, vector<14x128xbf16>,
    %c120 = arith.constant 120 : index
    %c0_58 = arith.constant 0 : index
    %65 = vector.load %arg5[%c120, %c0_58] : memref<840x128xf32, #tpu.memory_space<vmem>>, vector<28x128xf32>
    %c150 = arith.constant 150 : index
    %c0_59 = arith.constant 0 : index
    %66 = vector.load %arg5[%c150, %c0_59] : memref<840x128xf32, #tpu.memory_space<vmem>>, vector<28x128xf32>
    %67 = arith.maximumf %65, %66 : vector<28x128xf32>
    %c0_60 = arith.constant 0 : index
    %c0_61 = arith.constant 0 : index
    %68 = vector.load %arg6[%c0_60, %c0_61] : memref<28x128xf32, #tpu.memory_space<vmem>>, vector<28x128xf32>
    tpu.vector_store %arg6[%c0_60, %c0_61], %67 {strides = array<i32>} : memref<28x128xf32, #tpu.memory_space<vmem>>, vector<28x128xf32>,
    %c0_62 = arith.constant 0 : index
    %c0_63 = arith.constant 0 : index
    %69 = tpu.strided_load %arg6[%c0_62, %c0_63] {strides = array<i32: 2, 1>} : memref<28x128xf32, #tpu.memory_space<vmem>>, vector<14x128xf32>
    %c1_64 = arith.constant 1 : index
    %c0_65 = arith.constant 0 : index
    %70 = tpu.strided_load %arg6[%c1_64, %c0_65] {strides = array<i32: 2, 1>} : memref<28x128xf32, #tpu.memory_space<vmem>>, vector<14x128xf32>
    %71 = arith.maximumf %69, %70 : vector<14x128xf32>
    %72 = vector.broadcast %38 : vector<1x128xf32> to vector<14x128xf32>
    %73 = arith.addf %71, %72 : vector<14x128xf32>
    %cst_66 = arith.constant 0.000000e+00 : f32
    %74 = vector.broadcast %cst_66 : f32 to vector<14x128xf32>
    %75 = arith.maximumf %73, %74 : vector<14x128xf32>
    %76 = arith.truncf %75 : vector<14x128xf32> to vector<14x128xbf16>
    %c49 = arith.constant 49 : index
    %c0_67 = arith.constant 0 : index
    %77 = vector.load %arg4[%c49, %c0_67] : memref<272x128xbf16, #tpu.memory_space<vmem>>, vector<14x128xbf16>
    tpu.vector_store %arg4[%c49, %c0_67], %76 {strides = array<i32>} : memref<272x128xbf16, #tpu.memory_space<vmem>>, vector<14x128xbf16>,
    %c180 = arith.constant 180 : index
    %c0_68 = arith.constant 0 : index
    %78 = vector.load %arg5[%c180, %c0_68] : memref<840x128xf32, #tpu.memory_space<vmem>>, vector<28x128xf32>
    %c210 = arith.constant 210 : index
    %c0_69 = arith.constant 0 : index
    %79 = vector.load %arg5[%c210, %c0_69] : memref<840x128xf32, #tpu.memory_space<vmem>>, vector<28x128xf32>
    %80 = arith.maximumf %78, %79 : vector<28x128xf32>
    %c0_70 = arith.constant 0 : index
    %c0_71 = arith.constant 0 : index
    %81 = vector.load %arg6[%c0_70, %c0_71] : memref<28x128xf32, #tpu.memory_space<vmem>>, vector<28x128xf32>
    tpu.vector_store %arg6[%c0_70, %c0_71], %80 {strides = array<i32>} : memref<28x128xf32, #tpu.memory_space<vmem>>, vector<28x128xf32>,
    %c0_72 = arith.constant 0 : index
    %c0_73 = arith.constant 0 : index
    %82 = tpu.strided_load %arg6[%c0_72, %c0_73] {strides = array<i32: 2, 1>} : memref<28x128xf32, #tpu.memory_space<vmem>>, vector<14x128xf32>
    %c1_74 = arith.constant 1 : index
    %c0_75 = arith.constant 0 : index
    %83 = tpu.strided_load %arg6[%c1_74, %c0_75] {strides = array<i32: 2, 1>} : memref<28x128xf32, #tpu.memory_space<vmem>>, vector<14x128xf32>
    %84 = arith.maximumf %82, %83 : vector<14x128xf32>
    %85 = vector.broadcast %38 : vector<1x128xf32> to vector<14x128xf32>
    %86 = arith.addf %84, %85 : vector<14x128xf32>
    %cst_76 = arith.constant 0.000000e+00 : f32
    %87 = vector.broadcast %cst_76 : f32 to vector<14x128xf32>
    %88 = arith.maximumf %86, %87 : vector<14x128xf32>
    %89 = arith.truncf %88 : vector<14x128xf32> to vector<14x128xbf16>
    %c65 = arith.constant 65 : index
    %c0_77 = arith.constant 0 : index
    %90 = vector.load %arg4[%c65, %c0_77] : memref<272x128xbf16, #tpu.memory_space<vmem>>, vector<14x128xbf16>
    tpu.vector_store %arg4[%c65, %c0_77], %89 {strides = array<i32>} : memref<272x128xbf16, #tpu.memory_space<vmem>>, vector<14x128xbf16>,
    %c240 = arith.constant 240 : index
    %c0_78 = arith.constant 0 : index
    %91 = vector.load %arg5[%c240, %c0_78] : memref<840x128xf32, #tpu.memory_space<vmem>>, vector<28x128xf32>
    %c270 = arith.constant 270 : index
    %c0_79 = arith.constant 0 : index
    %92 = vector.load %arg5[%c270, %c0_79] : memref<840x128xf32, #tpu.memory_space<vmem>>, vector<28x128xf32>
    %93 = arith.maximumf %91, %92 : vector<28x128xf32>
    %c0_80 = arith.constant 0 : index
    %c0_81 = arith.constant 0 : index
    %94 = vector.load %arg6[%c0_80, %c0_81] : memref<28x128xf32, #tpu.memory_space<vmem>>, vector<28x128xf32>
    tpu.vector_store %arg6[%c0_80, %c0_81], %93 {strides = array<i32>} : memref<28x128xf32, #tpu.memory_space<vmem>>, vector<28x128xf32>,
    %c0_82 = arith.constant 0 : index
    %c0_83 = arith.constant 0 : index
    %95 = tpu.strided_load %arg6[%c0_82, %c0_83] {strides = array<i32: 2, 1>} : memref<28x128xf32, #tpu.memory_space<vmem>>, vector<14x128xf32>
    %c1_84 = arith.constant 1 : index
    %c0_85 = arith.constant 0 : index
    %96 = tpu.strided_load %arg6[%c1_84, %c0_85] {strides = array<i32: 2, 1>} : memref<28x128xf32, #tpu.memory_space<vmem>>, vector<14x128xf32>
    %97 = arith.maximumf %95, %96 : vector<14x128xf32>
    %98 = vector.broadcast %38 : vector<1x128xf32> to vector<14x128xf32>
    %99 = arith.addf %97, %98 : vector<14x128xf32>
    %cst_86 = arith.constant 0.000000e+00 : f32
    %100 = vector.broadcast %cst_86 : f32 to vector<14x128xf32>
    %101 = arith.maximumf %99, %100 : vector<14x128xf32>
    %102 = arith.truncf %101 : vector<14x128xf32> to vector<14x128xbf16>
    %c81 = arith.constant 81 : index
    %c0_87 = arith.constant 0 : index
    %103 = vector.load %arg4[%c81, %c0_87] : memref<272x128xbf16, #tpu.memory_space<vmem>>, vector<14x128xbf16>
    tpu.vector_store %arg4[%c81, %c0_87], %102 {strides = array<i32>} : memref<272x128xbf16, #tpu.memory_space<vmem>>, vector<14x128xbf16>,
    %c300 = arith.constant 300 : index
    %c0_88 = arith.constant 0 : index
    %104 = vector.load %arg5[%c300, %c0_88] : memref<840x128xf32, #tpu.memory_space<vmem>>, vector<28x128xf32>
    %c330 = arith.constant 330 : index
    %c0_89 = arith.constant 0 : index
    %105 = vector.load %arg5[%c330, %c0_89] : memref<840x128xf32, #tpu.memory_space<vmem>>, vector<28x128xf32>
    %106 = arith.maximumf %104, %105 : vector<28x128xf32>
    %c0_90 = arith.constant 0 : index
    %c0_91 = arith.constant 0 : index
    %107 = vector.load %arg6[%c0_90, %c0_91] : memref<28x128xf32, #tpu.memory_space<vmem>>, vector<28x128xf32>
    tpu.vector_store %arg6[%c0_90, %c0_91], %106 {strides = array<i32>} : memref<28x128xf32, #tpu.memory_space<vmem>>, vector<28x128xf32>,
    %c0_92 = arith.constant 0 : index
    %c0_93 = arith.constant 0 : index
    %108 = tpu.strided_load %arg6[%c0_92, %c0_93] {strides = array<i32: 2, 1>} : memref<28x128xf32, #tpu.memory_space<vmem>>, vector<14x128xf32>
    %c1_94 = arith.constant 1 : index
    %c0_95 = arith.constant 0 : index
    %109 = tpu.strided_load %arg6[%c1_94, %c0_95] {strides = array<i32: 2, 1>} : memref<28x128xf32, #tpu.memory_space<vmem>>, vector<14x128xf32>
    %110 = arith.maximumf %108, %109 : vector<14x128xf32>
    %111 = vector.broadcast %38 : vector<1x128xf32> to vector<14x128xf32>
    %112 = arith.addf %110, %111 : vector<14x128xf32>
    %cst_96 = arith.constant 0.000000e+00 : f32
    %113 = vector.broadcast %cst_96 : f32 to vector<14x128xf32>
    %114 = arith.maximumf %112, %113 : vector<14x128xf32>
    %115 = arith.truncf %114 : vector<14x128xf32> to vector<14x128xbf16>
    %c97 = arith.constant 97 : index
    %c0_97 = arith.constant 0 : index
    %116 = vector.load %arg4[%c97, %c0_97] : memref<272x128xbf16, #tpu.memory_space<vmem>>, vector<14x128xbf16>
    tpu.vector_store %arg4[%c97, %c0_97], %115 {strides = array<i32>} : memref<272x128xbf16, #tpu.memory_space<vmem>>, vector<14x128xbf16>,
    %c360 = arith.constant 360 : index
    %c0_98 = arith.constant 0 : index
    %117 = vector.load %arg5[%c360, %c0_98] : memref<840x128xf32, #tpu.memory_space<vmem>>, vector<28x128xf32>
    %c390 = arith.constant 390 : index
    %c0_99 = arith.constant 0 : index
    %118 = vector.load %arg5[%c390, %c0_99] : memref<840x128xf32, #tpu.memory_space<vmem>>, vector<28x128xf32>
    %119 = arith.maximumf %117, %118 : vector<28x128xf32>
    %c0_100 = arith.constant 0 : index
    %c0_101 = arith.constant 0 : index
    %120 = vector.load %arg6[%c0_100, %c0_101] : memref<28x128xf32, #tpu.memory_space<vmem>>, vector<28x128xf32>
    tpu.vector_store %arg6[%c0_100, %c0_101], %119 {strides = array<i32>} : memref<28x128xf32, #tpu.memory_space<vmem>>, vector<28x128xf32>,
    %c0_102 = arith.constant 0 : index
    %c0_103 = arith.constant 0 : index
    %121 = tpu.strided_load %arg6[%c0_102, %c0_103] {strides = array<i32: 2, 1>} : memref<28x128xf32, #tpu.memory_space<vmem>>, vector<14x128xf32>
    %c1_104 = arith.constant 1 : index
    %c0_105 = arith.constant 0 : index
    %122 = tpu.strided_load %arg6[%c1_104, %c0_105] {strides = array<i32: 2, 1>} : memref<28x128xf32, #tpu.memory_space<vmem>>, vector<14x128xf32>
    %123 = arith.maximumf %121, %122 : vector<14x128xf32>
    %124 = vector.broadcast %38 : vector<1x128xf32> to vector<14x128xf32>
    %125 = arith.addf %123, %124 : vector<14x128xf32>
    %cst_106 = arith.constant 0.000000e+00 : f32
    %126 = vector.broadcast %cst_106 : f32 to vector<14x128xf32>
    %127 = arith.maximumf %125, %126 : vector<14x128xf32>
    %128 = arith.truncf %127 : vector<14x128xf32> to vector<14x128xbf16>
    %c113 = arith.constant 113 : index
    %c0_107 = arith.constant 0 : index
    %129 = vector.load %arg4[%c113, %c0_107] : memref<272x128xbf16, #tpu.memory_space<vmem>>, vector<14x128xbf16>
    tpu.vector_store %arg4[%c113, %c0_107], %128 {strides = array<i32>} : memref<272x128xbf16, #tpu.memory_space<vmem>>, vector<14x128xbf16>,
    %c420 = arith.constant 420 : index
    %c0_108 = arith.constant 0 : index
    %130 = vector.load %arg5[%c420, %c0_108] : memref<840x128xf32, #tpu.memory_space<vmem>>, vector<28x128xf32>
    %c450 = arith.constant 450 : index
    %c0_109 = arith.constant 0 : index
    %131 = vector.load %arg5[%c450, %c0_109] : memref<840x128xf32, #tpu.memory_space<vmem>>, vector<28x128xf32>
    %132 = arith.maximumf %130, %131 : vector<28x128xf32>
    %c0_110 = arith.constant 0 : index
    %c0_111 = arith.constant 0 : index
    %133 = vector.load %arg6[%c0_110, %c0_111] : memref<28x128xf32, #tpu.memory_space<vmem>>, vector<28x128xf32>
    tpu.vector_store %arg6[%c0_110, %c0_111], %132 {strides = array<i32>} : memref<28x128xf32, #tpu.memory_space<vmem>>, vector<28x128xf32>,
    %c0_112 = arith.constant 0 : index
    %c0_113 = arith.constant 0 : index
    %134 = tpu.strided_load %arg6[%c0_112, %c0_113] {strides = array<i32: 2, 1>} : memref<28x128xf32, #tpu.memory_space<vmem>>, vector<14x128xf32>
    %c1_114 = arith.constant 1 : index
    %c0_115 = arith.constant 0 : index
    %135 = tpu.strided_load %arg6[%c1_114, %c0_115] {strides = array<i32: 2, 1>} : memref<28x128xf32, #tpu.memory_space<vmem>>, vector<14x128xf32>
    %136 = arith.maximumf %134, %135 : vector<14x128xf32>
    %137 = vector.broadcast %38 : vector<1x128xf32> to vector<14x128xf32>
    %138 = arith.addf %136, %137 : vector<14x128xf32>
    %cst_116 = arith.constant 0.000000e+00 : f32
    %139 = vector.broadcast %cst_116 : f32 to vector<14x128xf32>
    %140 = arith.maximumf %138, %139 : vector<14x128xf32>
    %141 = arith.truncf %140 : vector<14x128xf32> to vector<14x128xbf16>
    %c129 = arith.constant 129 : index
    %c0_117 = arith.constant 0 : index
    %142 = vector.load %arg4[%c129, %c0_117] : memref<272x128xbf16, #tpu.memory_space<vmem>>, vector<14x128xbf16>
    tpu.vector_store %arg4[%c129, %c0_117], %141 {strides = array<i32>} : memref<272x128xbf16, #tpu.memory_space<vmem>>, vector<14x128xbf16>,
    %c480 = arith.constant 480 : index
    %c0_118 = arith.constant 0 : index
    %143 = vector.load %arg5[%c480, %c0_118] : memref<840x128xf32, #tpu.memory_space<vmem>>, vector<28x128xf32>
    %c510 = arith.constant 510 : index
    %c0_119 = arith.constant 0 : index
    %144 = vector.load %arg5[%c510, %c0_119] : memref<840x128xf32, #tpu.memory_space<vmem>>, vector<28x128xf32>
    %145 = arith.maximumf %143, %144 : vector<28x128xf32>
    %c0_120 = arith.constant 0 : index
    %c0_121 = arith.constant 0 : index
    %146 = vector.load %arg6[%c0_120, %c0_121] : memref<28x128xf32, #tpu.memory_space<vmem>>, vector<28x128xf32>
    tpu.vector_store %arg6[%c0_120, %c0_121], %145 {strides = array<i32>} : memref<28x128xf32, #tpu.memory_space<vmem>>, vector<28x128xf32>,
    %c0_122 = arith.constant 0 : index
    %c0_123 = arith.constant 0 : index
    %147 = tpu.strided_load %arg6[%c0_122, %c0_123] {strides = array<i32: 2, 1>} : memref<28x128xf32, #tpu.memory_space<vmem>>, vector<14x128xf32>
    %c1_124 = arith.constant 1 : index
    %c0_125 = arith.constant 0 : index
    %148 = tpu.strided_load %arg6[%c1_124, %c0_125] {strides = array<i32: 2, 1>} : memref<28x128xf32, #tpu.memory_space<vmem>>, vector<14x128xf32>
    %149 = arith.maximumf %147, %148 : vector<14x128xf32>
    %150 = vector.broadcast %38 : vector<1x128xf32> to vector<14x128xf32>
    %151 = arith.addf %149, %150 : vector<14x128xf32>
    %cst_126 = arith.constant 0.000000e+00 : f32
    %152 = vector.broadcast %cst_126 : f32 to vector<14x128xf32>
    %153 = arith.maximumf %151, %152 : vector<14x128xf32>
    %154 = arith.truncf %153 : vector<14x128xf32> to vector<14x128xbf16>
    %c145 = arith.constant 145 : index
    %c0_127 = arith.constant 0 : index
    %155 = vector.load %arg4[%c145, %c0_127] : memref<272x128xbf16, #tpu.memory_space<vmem>>, vector<14x128xbf16>
    tpu.vector_store %arg4[%c145, %c0_127], %154 {strides = array<i32>} : memref<272x128xbf16, #tpu.memory_space<vmem>>, vector<14x128xbf16>,
    %c540 = arith.constant 540 : index
    %c0_128 = arith.constant 0 : index
    %156 = vector.load %arg5[%c540, %c0_128] : memref<840x128xf32, #tpu.memory_space<vmem>>, vector<28x128xf32>
    %c570 = arith.constant 570 : index
    %c0_129 = arith.constant 0 : index
    %157 = vector.load %arg5[%c570, %c0_129] : memref<840x128xf32, #tpu.memory_space<vmem>>, vector<28x128xf32>
    %158 = arith.maximumf %156, %157 : vector<28x128xf32>
    %c0_130 = arith.constant 0 : index
    %c0_131 = arith.constant 0 : index
    %159 = vector.load %arg6[%c0_130, %c0_131] : memref<28x128xf32, #tpu.memory_space<vmem>>, vector<28x128xf32>
    tpu.vector_store %arg6[%c0_130, %c0_131], %158 {strides = array<i32>} : memref<28x128xf32, #tpu.memory_space<vmem>>, vector<28x128xf32>,
    %c0_132 = arith.constant 0 : index
    %c0_133 = arith.constant 0 : index
    %160 = tpu.strided_load %arg6[%c0_132, %c0_133] {strides = array<i32: 2, 1>} : memref<28x128xf32, #tpu.memory_space<vmem>>, vector<14x128xf32>
    %c1_134 = arith.constant 1 : index
    %c0_135 = arith.constant 0 : index
    %161 = tpu.strided_load %arg6[%c1_134, %c0_135] {strides = array<i32: 2, 1>} : memref<28x128xf32, #tpu.memory_space<vmem>>, vector<14x128xf32>
    %162 = arith.maximumf %160, %161 : vector<14x128xf32>
    %163 = vector.broadcast %38 : vector<1x128xf32> to vector<14x128xf32>
    %164 = arith.addf %162, %163 : vector<14x128xf32>
    %cst_136 = arith.constant 0.000000e+00 : f32
    %165 = vector.broadcast %cst_136 : f32 to vector<14x128xf32>
    %166 = arith.maximumf %164, %165 : vector<14x128xf32>
    %167 = arith.truncf %166 : vector<14x128xf32> to vector<14x128xbf16>
    %c161 = arith.constant 161 : index
    %c0_137 = arith.constant 0 : index
    %168 = vector.load %arg4[%c161, %c0_137] : memref<272x128xbf16, #tpu.memory_space<vmem>>, vector<14x128xbf16>
    tpu.vector_store %arg4[%c161, %c0_137], %167 {strides = array<i32>} : memref<272x128xbf16, #tpu.memory_space<vmem>>, vector<14x128xbf16>,
    %c600 = arith.constant 600 : index
    %c0_138 = arith.constant 0 : index
    %169 = vector.load %arg5[%c600, %c0_138] : memref<840x128xf32, #tpu.memory_space<vmem>>, vector<28x128xf32>
    %c630 = arith.constant 630 : index
    %c0_139 = arith.constant 0 : index
    %170 = vector.load %arg5[%c630, %c0_139] : memref<840x128xf32, #tpu.memory_space<vmem>>, vector<28x128xf32>
    %171 = arith.maximumf %169, %170 : vector<28x128xf32>
    %c0_140 = arith.constant 0 : index
    %c0_141 = arith.constant 0 : index
    %172 = vector.load %arg6[%c0_140, %c0_141] : memref<28x128xf32, #tpu.memory_space<vmem>>, vector<28x128xf32>
    tpu.vector_store %arg6[%c0_140, %c0_141], %171 {strides = array<i32>} : memref<28x128xf32, #tpu.memory_space<vmem>>, vector<28x128xf32>,
    %c0_142 = arith.constant 0 : index
    %c0_143 = arith.constant 0 : index
    %173 = tpu.strided_load %arg6[%c0_142, %c0_143] {strides = array<i32: 2, 1>} : memref<28x128xf32, #tpu.memory_space<vmem>>, vector<14x128xf32>
    %c1_144 = arith.constant 1 : index
    %c0_145 = arith.constant 0 : index
    %174 = tpu.strided_load %arg6[%c1_144, %c0_145] {strides = array<i32: 2, 1>} : memref<28x128xf32, #tpu.memory_space<vmem>>, vector<14x128xf32>
    %175 = arith.maximumf %173, %174 : vector<14x128xf32>
    %176 = vector.broadcast %38 : vector<1x128xf32> to vector<14x128xf32>
    %177 = arith.addf %175, %176 : vector<14x128xf32>
    %cst_146 = arith.constant 0.000000e+00 : f32
    %178 = vector.broadcast %cst_146 : f32 to vector<14x128xf32>
    %179 = arith.maximumf %177, %178 : vector<14x128xf32>
    %180 = arith.truncf %179 : vector<14x128xf32> to vector<14x128xbf16>
    %c177 = arith.constant 177 : index
    %c0_147 = arith.constant 0 : index
    %181 = vector.load %arg4[%c177, %c0_147] : memref<272x128xbf16, #tpu.memory_space<vmem>>, vector<14x128xbf16>
    tpu.vector_store %arg4[%c177, %c0_147], %180 {strides = array<i32>} : memref<272x128xbf16, #tpu.memory_space<vmem>>, vector<14x128xbf16>,
    %c660 = arith.constant 660 : index
    %c0_148 = arith.constant 0 : index
    %182 = vector.load %arg5[%c660, %c0_148] : memref<840x128xf32, #tpu.memory_space<vmem>>, vector<28x128xf32>
    %c690 = arith.constant 690 : index
    %c0_149 = arith.constant 0 : index
    %183 = vector.load %arg5[%c690, %c0_149] : memref<840x128xf32, #tpu.memory_space<vmem>>, vector<28x128xf32>
    %184 = arith.maximumf %182, %183 : vector<28x128xf32>
    %c0_150 = arith.constant 0 : index
    %c0_151 = arith.constant 0 : index
    %185 = vector.load %arg6[%c0_150, %c0_151] : memref<28x128xf32, #tpu.memory_space<vmem>>, vector<28x128xf32>
    tpu.vector_store %arg6[%c0_150, %c0_151], %184 {strides = array<i32>} : memref<28x128xf32, #tpu.memory_space<vmem>>, vector<28x128xf32>,
    %c0_152 = arith.constant 0 : index
    %c0_153 = arith.constant 0 : index
    %186 = tpu.strided_load %arg6[%c0_152, %c0_153] {strides = array<i32: 2, 1>} : memref<28x128xf32, #tpu.memory_space<vmem>>, vector<14x128xf32>
    %c1_154 = arith.constant 1 : index
    %c0_155 = arith.constant 0 : index
    %187 = tpu.strided_load %arg6[%c1_154, %c0_155] {strides = array<i32: 2, 1>} : memref<28x128xf32, #tpu.memory_space<vmem>>, vector<14x128xf32>
    %188 = arith.maximumf %186, %187 : vector<14x128xf32>
    %189 = vector.broadcast %38 : vector<1x128xf32> to vector<14x128xf32>
    %190 = arith.addf %188, %189 : vector<14x128xf32>
    %cst_156 = arith.constant 0.000000e+00 : f32
    %191 = vector.broadcast %cst_156 : f32 to vector<14x128xf32>
    %192 = arith.maximumf %190, %191 : vector<14x128xf32>
    %193 = arith.truncf %192 : vector<14x128xf32> to vector<14x128xbf16>
    %c193 = arith.constant 193 : index
    %c0_157 = arith.constant 0 : index
    %194 = vector.load %arg4[%c193, %c0_157] : memref<272x128xbf16, #tpu.memory_space<vmem>>, vector<14x128xbf16>
    tpu.vector_store %arg4[%c193, %c0_157], %193 {strides = array<i32>} : memref<272x128xbf16, #tpu.memory_space<vmem>>, vector<14x128xbf16>,
    %c720 = arith.constant 720 : index
    %c0_158 = arith.constant 0 : index
    %195 = vector.load %arg5[%c720, %c0_158] : memref<840x128xf32, #tpu.memory_space<vmem>>, vector<28x128xf32>
    %c750 = arith.constant 750 : index
    %c0_159 = arith.constant 0 : index
    %196 = vector.load %arg5[%c750, %c0_159] : memref<840x128xf32, #tpu.memory_space<vmem>>, vector<28x128xf32>
    %197 = arith.maximumf %195, %196 : vector<28x128xf32>
    %c0_160 = arith.constant 0 : index
    %c0_161 = arith.constant 0 : index
    %198 = vector.load %arg6[%c0_160, %c0_161] : memref<28x128xf32, #tpu.memory_space<vmem>>, vector<28x128xf32>
    tpu.vector_store %arg6[%c0_160, %c0_161], %197 {strides = array<i32>} : memref<28x128xf32, #tpu.memory_space<vmem>>, vector<28x128xf32>,
    %c0_162 = arith.constant 0 : index
    %c0_163 = arith.constant 0 : index
    %199 = tpu.strided_load %arg6[%c0_162, %c0_163] {strides = array<i32: 2, 1>} : memref<28x128xf32, #tpu.memory_space<vmem>>, vector<14x128xf32>
    %c1_164 = arith.constant 1 : index
    %c0_165 = arith.constant 0 : index
    %200 = tpu.strided_load %arg6[%c1_164, %c0_165] {strides = array<i32: 2, 1>} : memref<28x128xf32, #tpu.memory_space<vmem>>, vector<14x128xf32>
    %201 = arith.maximumf %199, %200 : vector<14x128xf32>
    %202 = vector.broadcast %38 : vector<1x128xf32> to vector<14x128xf32>
    %203 = arith.addf %201, %202 : vector<14x128xf32>
    %cst_166 = arith.constant 0.000000e+00 : f32
    %204 = vector.broadcast %cst_166 : f32 to vector<14x128xf32>
    %205 = arith.maximumf %203, %204 : vector<14x128xf32>
    %206 = arith.truncf %205 : vector<14x128xf32> to vector<14x128xbf16>
    %c209 = arith.constant 209 : index
    %c0_167 = arith.constant 0 : index
    %207 = vector.load %arg4[%c209, %c0_167] : memref<272x128xbf16, #tpu.memory_space<vmem>>, vector<14x128xbf16>
    tpu.vector_store %arg4[%c209, %c0_167], %206 {strides = array<i32>} : memref<272x128xbf16, #tpu.memory_space<vmem>>, vector<14x128xbf16>,
    %c780 = arith.constant 780 : index
    %c0_168 = arith.constant 0 : index
    %208 = vector.load %arg5[%c780, %c0_168] : memref<840x128xf32, #tpu.memory_space<vmem>>, vector<28x128xf32>
    %c810 = arith.constant 810 : index
    %c0_169 = arith.constant 0 : index
    %209 = vector.load %arg5[%c810, %c0_169] : memref<840x128xf32, #tpu.memory_space<vmem>>, vector<28x128xf32>
    %210 = arith.maximumf %208, %209 : vector<28x128xf32>
    %c0_170 = arith.constant 0 : index
    %c0_171 = arith.constant 0 : index
    %211 = vector.load %arg6[%c0_170, %c0_171] : memref<28x128xf32, #tpu.memory_space<vmem>>, vector<28x128xf32>
    tpu.vector_store %arg6[%c0_170, %c0_171], %210 {strides = array<i32>} : memref<28x128xf32, #tpu.memory_space<vmem>>, vector<28x128xf32>,
    %c0_172 = arith.constant 0 : index
    %c0_173 = arith.constant 0 : index
    %212 = tpu.strided_load %arg6[%c0_172, %c0_173] {strides = array<i32: 2, 1>} : memref<28x128xf32, #tpu.memory_space<vmem>>, vector<14x128xf32>
    %c1_174 = arith.constant 1 : index
    %c0_175 = arith.constant 0 : index
    %213 = tpu.strided_load %arg6[%c1_174, %c0_175] {strides = array<i32: 2, 1>} : memref<28x128xf32, #tpu.memory_space<vmem>>, vector<14x128xf32>
    %214 = arith.maximumf %212, %213 : vector<14x128xf32>
    %215 = vector.broadcast %38 : vector<1x128xf32> to vector<14x128xf32>
    %216 = arith.addf %214, %215 : vector<14x128xf32>
    %cst_176 = arith.constant 0.000000e+00 : f32
    %217 = vector.broadcast %cst_176 : f32 to vector<14x128xf32>
    %218 = arith.maximumf %216, %217 : vector<14x128xf32>
    %219 = arith.truncf %218 : vector<14x128xf32> to vector<14x128xbf16>
    %c225 = arith.constant 225 : index
    %c0_177 = arith.constant 0 : index
    %220 = vector.load %arg4[%c225, %c0_177] : memref<272x128xbf16, #tpu.memory_space<vmem>>, vector<14x128xbf16>
    tpu.vector_store %arg4[%c225, %c0_177], %219 {strides = array<i32>} : memref<272x128xbf16, #tpu.memory_space<vmem>>, vector<14x128xbf16>,
    return
  }
  func.func @transform_0(%arg0: i32) -> (i32, i32) {
    %c0_i32 = arith.constant 0 : i32
    %c0_i32_0 = arith.constant 0 : i32
    return %arg0, %c0_i32 : i32, i32
  }
  func.func @transform_1(%arg0: i32) -> (i32, i32) {
    %c0_i32 = arith.constant 0 : i32
    %c0_i32_0 = arith.constant 0 : i32
    %c0_i32_1 = arith.constant 0 : i32
    return %c0_i32, %c0_i32_0 : i32, i32
  }
  func.func @transform_2(%arg0: i32) -> (i32, i32) {
    %c0_i32 = arith.constant 0 : i32
    %c0_i32_0 = arith.constant 0 : i32
    %c0_i32_1 = arith.constant 0 : i32
    return %c0_i32, %c0_i32_0 : i32, i32
  }
  func.func @transform_3(%arg0: i32) -> (i32, i32) {
    %c0_i32 = arith.constant 0 : i32
    %c0_i32_0 = arith.constant 0 : i32
    return %arg0, %c0_i32 : i32, i32
  }
}

module attributes {stable_mosaic.version = 11 : i64} {
  func.func @_conv3x3_relu_pool_kernel(%arg0: i32, %arg1: memref<272x128xbf16, #tpu.memory_space<vmem>>, %arg2: memref<1152x128xbf16, #tpu.memory_space<vmem>>, %arg3: memref<1x128xf32, #tpu.memory_space<vmem>>, %arg4: memref<1x49x128xbf16, #tpu.memory_space<vmem>>, %arg5: memref<224x128xf32, #tpu.memory_space<vmem>>, %arg6: memref<14x128xf32, #tpu.memory_space<vmem>>) attributes {dimension_semantics = [#tpu.dimension_semantics<parallel>], iteration_bounds = array<i64: 1>, scalar_prefetch = 0 : i64, scratch_operands = 2 : i64, tpu.core_type = #tpu.core_type<tc>, window_params = [{transform_indices = @transform_0, window_bounds = array<i64: 272, 128>}, {pipeline_mode = #tpu.pipeline_mode<synchronous>, transform_indices = @transform_1, window_bounds = array<i64: 1152, 128>}, {pipeline_mode = #tpu.pipeline_mode<synchronous>, transform_indices = @transform_2, window_bounds = array<i64: 1, 128>}, {transform_indices = @transform_3, window_bounds = array<i64: 1, 49, 128>}]} {
    %c0 = arith.constant 0 : index
    %c0_0 = arith.constant 0 : index
    %0 = vector.load %arg1[%c0, %c0_0] : memref<272x128xbf16, #tpu.memory_space<vmem>>, vector<224x128xbf16>
    %c1 = arith.constant 1 : index
    %c0_1 = arith.constant 0 : index
    %1 = vector.load %arg1[%c1, %c0_1] : memref<272x128xbf16, #tpu.memory_space<vmem>>, vector<224x128xbf16>
    %c2 = arith.constant 2 : index
    %c0_2 = arith.constant 0 : index
    %2 = vector.load %arg1[%c2, %c0_2] : memref<272x128xbf16, #tpu.memory_space<vmem>>, vector<224x128xbf16>
    %c16 = arith.constant 16 : index
    %c0_3 = arith.constant 0 : index
    %3 = vector.load %arg1[%c16, %c0_3] : memref<272x128xbf16, #tpu.memory_space<vmem>>, vector<224x128xbf16>
    %c17 = arith.constant 17 : index
    %c0_4 = arith.constant 0 : index
    %4 = vector.load %arg1[%c17, %c0_4] : memref<272x128xbf16, #tpu.memory_space<vmem>>, vector<224x128xbf16>
    %c18 = arith.constant 18 : index
    %c0_5 = arith.constant 0 : index
    %5 = vector.load %arg1[%c18, %c0_5] : memref<272x128xbf16, #tpu.memory_space<vmem>>, vector<224x128xbf16>
    %c32 = arith.constant 32 : index
    %c0_6 = arith.constant 0 : index
    %6 = vector.load %arg1[%c32, %c0_6] : memref<272x128xbf16, #tpu.memory_space<vmem>>, vector<224x128xbf16>
    %c33 = arith.constant 33 : index
    %c0_7 = arith.constant 0 : index
    %7 = vector.load %arg1[%c33, %c0_7] : memref<272x128xbf16, #tpu.memory_space<vmem>>, vector<224x128xbf16>
    %c34 = arith.constant 34 : index
    %c0_8 = arith.constant 0 : index
    %8 = vector.load %arg1[%c34, %c0_8] : memref<272x128xbf16, #tpu.memory_space<vmem>>, vector<224x128xbf16>
    %9 = tpu.concatenate %0, %1, %2, %3, %4, %5, %6, %7, %8 in 1 : vector<224x128xbf16>, vector<224x128xbf16>, vector<224x128xbf16>, vector<224x128xbf16>, vector<224x128xbf16>, vector<224x128xbf16>, vector<224x128xbf16>, vector<224x128xbf16>, vector<224x128xbf16> -> vector<224x1152xbf16>
    %c0_9 = arith.constant 0 : index
    %c0_10 = arith.constant 0 : index
    %10 = vector.load %arg2[%c0_9, %c0_10] : memref<1152x128xbf16, #tpu.memory_space<vmem>>, vector<1152x128xbf16>
    %cst = arith.constant dense<0.000000e+00> : vector<224x128xf32>
    %11 = tpu.matmul %9, %10, %cst {dimension_numbers = #tpu.dot_dimension_numbers<[1], [0], [0], [1], [0, 0, 1, 1], [], []>} : vector<224x1152xbf16>, vector<1152x128xbf16>, vector<224x128xf32> -> vector<224x128xf32>
    %c0_11 = arith.constant 0 : index
    %c0_12 = arith.constant 0 : index
    %12 = vector.load %arg5[%c0_11, %c0_12] : memref<224x128xf32, #tpu.memory_space<vmem>>, vector<224x128xf32>
    tpu.vector_store %arg5[%c0_11, %c0_12], %11 {strides = array<i32>} : memref<224x128xf32, #tpu.memory_space<vmem>>, vector<224x128xf32>,
    %c0_13 = arith.constant 0 : index
    %c0_14 = arith.constant 0 : index
    %13 = vector.load %arg3[%c0_13, %c0_14] : memref<1x128xf32, #tpu.memory_space<vmem>>, vector<1x128xf32>
    %c0_15 = arith.constant 0 : index
    %c0_16 = arith.constant 0 : index
    %14 = vector.load %arg5[%c0_15, %c0_16] : memref<224x128xf32, #tpu.memory_space<vmem>>, vector<14x128xf32>
    %c16_17 = arith.constant 16 : index
    %c0_18 = arith.constant 0 : index
    %15 = vector.load %arg5[%c16_17, %c0_18] : memref<224x128xf32, #tpu.memory_space<vmem>>, vector<14x128xf32>
    %16 = arith.maximumf %14, %15 : vector<14x128xf32>
    %c0_19 = arith.constant 0 : index
    %c0_20 = arith.constant 0 : index
    %17 = vector.load %arg6[%c0_19, %c0_20] : memref<14x128xf32, #tpu.memory_space<vmem>>, vector<14x128xf32>
    tpu.vector_store %arg6[%c0_19, %c0_20], %16 {strides = array<i32>} : memref<14x128xf32, #tpu.memory_space<vmem>>, vector<14x128xf32>,
    %c0_21 = arith.constant 0 : index
    %c0_22 = arith.constant 0 : index
    %18 = tpu.strided_load %arg6[%c0_21, %c0_22] {strides = array<i32: 2, 1>} : memref<14x128xf32, #tpu.memory_space<vmem>>, vector<7x128xf32>
    %c1_23 = arith.constant 1 : index
    %c0_24 = arith.constant 0 : index
    %19 = tpu.strided_load %arg6[%c1_23, %c0_24] {strides = array<i32: 2, 1>} : memref<14x128xf32, #tpu.memory_space<vmem>>, vector<7x128xf32>
    %20 = arith.maximumf %18, %19 : vector<7x128xf32>
    %21 = vector.broadcast %13 : vector<1x128xf32> to vector<7x128xf32>
    %22 = arith.addf %20, %21 : vector<7x128xf32>
    %cst_25 = arith.constant 0.000000e+00 : f32
    %23 = vector.broadcast %cst_25 : f32 to vector<7x128xf32>
    %24 = arith.maximumf %22, %23 : vector<7x128xf32>
    %25 = arith.truncf %24 : vector<7x128xf32> to vector<7x128xbf16>
    %c0_26 = arith.constant 0 : index
    %c0_27 = arith.constant 0 : index
    %c0_28 = arith.constant 0 : index
    %26 = vector.load %arg4[%c0_26, %c0_27, %c0_28] : memref<1x49x128xbf16, #tpu.memory_space<vmem>>, vector<1x7x128xbf16>
    %27 = vector.shape_cast %26 : vector<1x7x128xbf16> to vector<7x128xbf16>
    %28 = vector.shape_cast %25 : vector<7x128xbf16> to vector<1x7x128xbf16>
    tpu.vector_store %arg4[%c0_26, %c0_27, %c0_28], %28 {strides = array<i32>} : memref<1x49x128xbf16, #tpu.memory_space<vmem>>, vector<1x7x128xbf16>,
    %c32_29 = arith.constant 32 : index
    %c0_30 = arith.constant 0 : index
    %29 = vector.load %arg5[%c32_29, %c0_30] : memref<224x128xf32, #tpu.memory_space<vmem>>, vector<14x128xf32>
    %c48 = arith.constant 48 : index
    %c0_31 = arith.constant 0 : index
    %30 = vector.load %arg5[%c48, %c0_31] : memref<224x128xf32, #tpu.memory_space<vmem>>, vector<14x128xf32>
    %31 = arith.maximumf %29, %30 : vector<14x128xf32>
    %c0_32 = arith.constant 0 : index
    %c0_33 = arith.constant 0 : index
    %32 = vector.load %arg6[%c0_32, %c0_33] : memref<14x128xf32, #tpu.memory_space<vmem>>, vector<14x128xf32>
    tpu.vector_store %arg6[%c0_32, %c0_33], %31 {strides = array<i32>} : memref<14x128xf32, #tpu.memory_space<vmem>>, vector<14x128xf32>,
    %c0_34 = arith.constant 0 : index
    %c0_35 = arith.constant 0 : index
    %33 = tpu.strided_load %arg6[%c0_34, %c0_35] {strides = array<i32: 2, 1>} : memref<14x128xf32, #tpu.memory_space<vmem>>, vector<7x128xf32>
    %c1_36 = arith.constant 1 : index
    %c0_37 = arith.constant 0 : index
    %34 = tpu.strided_load %arg6[%c1_36, %c0_37] {strides = array<i32: 2, 1>} : memref<14x128xf32, #tpu.memory_space<vmem>>, vector<7x128xf32>
    %35 = arith.maximumf %33, %34 : vector<7x128xf32>
    %36 = vector.broadcast %13 : vector<1x128xf32> to vector<7x128xf32>
    %37 = arith.addf %35, %36 : vector<7x128xf32>
    %cst_38 = arith.constant 0.000000e+00 : f32
    %38 = vector.broadcast %cst_38 : f32 to vector<7x128xf32>
    %39 = arith.maximumf %37, %38 : vector<7x128xf32>
    %40 = arith.truncf %39 : vector<7x128xf32> to vector<7x128xbf16>
    %c0_39 = arith.constant 0 : index
    %c7 = arith.constant 7 : index
    %c0_40 = arith.constant 0 : index
    %41 = vector.load %arg4[%c0_39, %c7, %c0_40] : memref<1x49x128xbf16, #tpu.memory_space<vmem>>, vector<1x7x128xbf16>
    %42 = vector.shape_cast %41 : vector<1x7x128xbf16> to vector<7x128xbf16>
    %43 = vector.shape_cast %40 : vector<7x128xbf16> to vector<1x7x128xbf16>
    tpu.vector_store %arg4[%c0_39, %c7, %c0_40], %43 {strides = array<i32>} : memref<1x49x128xbf16, #tpu.memory_space<vmem>>, vector<1x7x128xbf16>,
    %c64 = arith.constant 64 : index
    %c0_41 = arith.constant 0 : index
    %44 = vector.load %arg5[%c64, %c0_41] : memref<224x128xf32, #tpu.memory_space<vmem>>, vector<14x128xf32>
    %c80 = arith.constant 80 : index
    %c0_42 = arith.constant 0 : index
    %45 = vector.load %arg5[%c80, %c0_42] : memref<224x128xf32, #tpu.memory_space<vmem>>, vector<14x128xf32>
    %46 = arith.maximumf %44, %45 : vector<14x128xf32>
    %c0_43 = arith.constant 0 : index
    %c0_44 = arith.constant 0 : index
    %47 = vector.load %arg6[%c0_43, %c0_44] : memref<14x128xf32, #tpu.memory_space<vmem>>, vector<14x128xf32>
    tpu.vector_store %arg6[%c0_43, %c0_44], %46 {strides = array<i32>} : memref<14x128xf32, #tpu.memory_space<vmem>>, vector<14x128xf32>,
    %c0_45 = arith.constant 0 : index
    %c0_46 = arith.constant 0 : index
    %48 = tpu.strided_load %arg6[%c0_45, %c0_46] {strides = array<i32: 2, 1>} : memref<14x128xf32, #tpu.memory_space<vmem>>, vector<7x128xf32>
    %c1_47 = arith.constant 1 : index
    %c0_48 = arith.constant 0 : index
    %49 = tpu.strided_load %arg6[%c1_47, %c0_48] {strides = array<i32: 2, 1>} : memref<14x128xf32, #tpu.memory_space<vmem>>, vector<7x128xf32>
    %50 = arith.maximumf %48, %49 : vector<7x128xf32>
    %51 = vector.broadcast %13 : vector<1x128xf32> to vector<7x128xf32>
    %52 = arith.addf %50, %51 : vector<7x128xf32>
    %cst_49 = arith.constant 0.000000e+00 : f32
    %53 = vector.broadcast %cst_49 : f32 to vector<7x128xf32>
    %54 = arith.maximumf %52, %53 : vector<7x128xf32>
    %55 = arith.truncf %54 : vector<7x128xf32> to vector<7x128xbf16>
    %c0_50 = arith.constant 0 : index
    %c14 = arith.constant 14 : index
    %c0_51 = arith.constant 0 : index
    %56 = vector.load %arg4[%c0_50, %c14, %c0_51] : memref<1x49x128xbf16, #tpu.memory_space<vmem>>, vector<1x7x128xbf16>
    %57 = vector.shape_cast %56 : vector<1x7x128xbf16> to vector<7x128xbf16>
    %58 = vector.shape_cast %55 : vector<7x128xbf16> to vector<1x7x128xbf16>
    tpu.vector_store %arg4[%c0_50, %c14, %c0_51], %58 {strides = array<i32>} : memref<1x49x128xbf16, #tpu.memory_space<vmem>>, vector<1x7x128xbf16>,
    %c96 = arith.constant 96 : index
    %c0_52 = arith.constant 0 : index
    %59 = vector.load %arg5[%c96, %c0_52] : memref<224x128xf32, #tpu.memory_space<vmem>>, vector<14x128xf32>
    %c112 = arith.constant 112 : index
    %c0_53 = arith.constant 0 : index
    %60 = vector.load %arg5[%c112, %c0_53] : memref<224x128xf32, #tpu.memory_space<vmem>>, vector<14x128xf32>
    %61 = arith.maximumf %59, %60 : vector<14x128xf32>
    %c0_54 = arith.constant 0 : index
    %c0_55 = arith.constant 0 : index
    %62 = vector.load %arg6[%c0_54, %c0_55] : memref<14x128xf32, #tpu.memory_space<vmem>>, vector<14x128xf32>
    tpu.vector_store %arg6[%c0_54, %c0_55], %61 {strides = array<i32>} : memref<14x128xf32, #tpu.memory_space<vmem>>, vector<14x128xf32>,
    %c0_56 = arith.constant 0 : index
    %c0_57 = arith.constant 0 : index
    %63 = tpu.strided_load %arg6[%c0_56, %c0_57] {strides = array<i32: 2, 1>} : memref<14x128xf32, #tpu.memory_space<vmem>>, vector<7x128xf32>
    %c1_58 = arith.constant 1 : index
    %c0_59 = arith.constant 0 : index
    %64 = tpu.strided_load %arg6[%c1_58, %c0_59] {strides = array<i32: 2, 1>} : memref<14x128xf32, #tpu.memory_space<vmem>>, vector<7x128xf32>
    %65 = arith.maximumf %63, %64 : vector<7x128xf32>
    %66 = vector.broadcast %13 : vector<1x128xf32> to vector<7x128xf32>
    %67 = arith.addf %65, %66 : vector<7x128xf32>
    %cst_60 = arith.constant 0.000000e+00 : f32
    %68 = vector.broadcast %cst_60 : f32 to vector<7x128xf32>
    %69 = arith.maximumf %67, %68 : vector<7x128xf32>
    %70 = arith.truncf %69 : vector<7x128xf32> to vector<7x128xbf16>
    %c0_61 = arith.constant 0 : index
    %c21 = arith.constant 21 : index
    %c0_62 = arith.constant 0 : index
    %71 = vector.load %arg4[%c0_61, %c21, %c0_62] : memref<1x49x128xbf16, #tpu.memory_space<vmem>>, vector<1x7x128xbf16>
    %72 = vector.shape_cast %71 : vector<1x7x128xbf16> to vector<7x128xbf16>
    %73 = vector.shape_cast %70 : vector<7x128xbf16> to vector<1x7x128xbf16>
    tpu.vector_store %arg4[%c0_61, %c21, %c0_62], %73 {strides = array<i32>} : memref<1x49x128xbf16, #tpu.memory_space<vmem>>, vector<1x7x128xbf16>,
    %c128 = arith.constant 128 : index
    %c0_63 = arith.constant 0 : index
    %74 = vector.load %arg5[%c128, %c0_63] : memref<224x128xf32, #tpu.memory_space<vmem>>, vector<14x128xf32>
    %c144 = arith.constant 144 : index
    %c0_64 = arith.constant 0 : index
    %75 = vector.load %arg5[%c144, %c0_64] : memref<224x128xf32, #tpu.memory_space<vmem>>, vector<14x128xf32>
    %76 = arith.maximumf %74, %75 : vector<14x128xf32>
    %c0_65 = arith.constant 0 : index
    %c0_66 = arith.constant 0 : index
    %77 = vector.load %arg6[%c0_65, %c0_66] : memref<14x128xf32, #tpu.memory_space<vmem>>, vector<14x128xf32>
    tpu.vector_store %arg6[%c0_65, %c0_66], %76 {strides = array<i32>} : memref<14x128xf32, #tpu.memory_space<vmem>>, vector<14x128xf32>,
    %c0_67 = arith.constant 0 : index
    %c0_68 = arith.constant 0 : index
    %78 = tpu.strided_load %arg6[%c0_67, %c0_68] {strides = array<i32: 2, 1>} : memref<14x128xf32, #tpu.memory_space<vmem>>, vector<7x128xf32>
    %c1_69 = arith.constant 1 : index
    %c0_70 = arith.constant 0 : index
    %79 = tpu.strided_load %arg6[%c1_69, %c0_70] {strides = array<i32: 2, 1>} : memref<14x128xf32, #tpu.memory_space<vmem>>, vector<7x128xf32>
    %80 = arith.maximumf %78, %79 : vector<7x128xf32>
    %81 = vector.broadcast %13 : vector<1x128xf32> to vector<7x128xf32>
    %82 = arith.addf %80, %81 : vector<7x128xf32>
    %cst_71 = arith.constant 0.000000e+00 : f32
    %83 = vector.broadcast %cst_71 : f32 to vector<7x128xf32>
    %84 = arith.maximumf %82, %83 : vector<7x128xf32>
    %85 = arith.truncf %84 : vector<7x128xf32> to vector<7x128xbf16>
    %c0_72 = arith.constant 0 : index
    %c28 = arith.constant 28 : index
    %c0_73 = arith.constant 0 : index
    %86 = vector.load %arg4[%c0_72, %c28, %c0_73] : memref<1x49x128xbf16, #tpu.memory_space<vmem>>, vector<1x7x128xbf16>
    %87 = vector.shape_cast %86 : vector<1x7x128xbf16> to vector<7x128xbf16>
    %88 = vector.shape_cast %85 : vector<7x128xbf16> to vector<1x7x128xbf16>
    tpu.vector_store %arg4[%c0_72, %c28, %c0_73], %88 {strides = array<i32>} : memref<1x49x128xbf16, #tpu.memory_space<vmem>>, vector<1x7x128xbf16>,
    %c160 = arith.constant 160 : index
    %c0_74 = arith.constant 0 : index
    %89 = vector.load %arg5[%c160, %c0_74] : memref<224x128xf32, #tpu.memory_space<vmem>>, vector<14x128xf32>
    %c176 = arith.constant 176 : index
    %c0_75 = arith.constant 0 : index
    %90 = vector.load %arg5[%c176, %c0_75] : memref<224x128xf32, #tpu.memory_space<vmem>>, vector<14x128xf32>
    %91 = arith.maximumf %89, %90 : vector<14x128xf32>
    %c0_76 = arith.constant 0 : index
    %c0_77 = arith.constant 0 : index
    %92 = vector.load %arg6[%c0_76, %c0_77] : memref<14x128xf32, #tpu.memory_space<vmem>>, vector<14x128xf32>
    tpu.vector_store %arg6[%c0_76, %c0_77], %91 {strides = array<i32>} : memref<14x128xf32, #tpu.memory_space<vmem>>, vector<14x128xf32>,
    %c0_78 = arith.constant 0 : index
    %c0_79 = arith.constant 0 : index
    %93 = tpu.strided_load %arg6[%c0_78, %c0_79] {strides = array<i32: 2, 1>} : memref<14x128xf32, #tpu.memory_space<vmem>>, vector<7x128xf32>
    %c1_80 = arith.constant 1 : index
    %c0_81 = arith.constant 0 : index
    %94 = tpu.strided_load %arg6[%c1_80, %c0_81] {strides = array<i32: 2, 1>} : memref<14x128xf32, #tpu.memory_space<vmem>>, vector<7x128xf32>
    %95 = arith.maximumf %93, %94 : vector<7x128xf32>
    %96 = vector.broadcast %13 : vector<1x128xf32> to vector<7x128xf32>
    %97 = arith.addf %95, %96 : vector<7x128xf32>
    %cst_82 = arith.constant 0.000000e+00 : f32
    %98 = vector.broadcast %cst_82 : f32 to vector<7x128xf32>
    %99 = arith.maximumf %97, %98 : vector<7x128xf32>
    %100 = arith.truncf %99 : vector<7x128xf32> to vector<7x128xbf16>
    %c0_83 = arith.constant 0 : index
    %c35 = arith.constant 35 : index
    %c0_84 = arith.constant 0 : index
    %101 = vector.load %arg4[%c0_83, %c35, %c0_84] : memref<1x49x128xbf16, #tpu.memory_space<vmem>>, vector<1x7x128xbf16>
    %102 = vector.shape_cast %101 : vector<1x7x128xbf16> to vector<7x128xbf16>
    %103 = vector.shape_cast %100 : vector<7x128xbf16> to vector<1x7x128xbf16>
    tpu.vector_store %arg4[%c0_83, %c35, %c0_84], %103 {strides = array<i32>} : memref<1x49x128xbf16, #tpu.memory_space<vmem>>, vector<1x7x128xbf16>,
    %c192 = arith.constant 192 : index
    %c0_85 = arith.constant 0 : index
    %104 = vector.load %arg5[%c192, %c0_85] : memref<224x128xf32, #tpu.memory_space<vmem>>, vector<14x128xf32>
    %c208 = arith.constant 208 : index
    %c0_86 = arith.constant 0 : index
    %105 = vector.load %arg5[%c208, %c0_86] : memref<224x128xf32, #tpu.memory_space<vmem>>, vector<14x128xf32>
    %106 = arith.maximumf %104, %105 : vector<14x128xf32>
    %c0_87 = arith.constant 0 : index
    %c0_88 = arith.constant 0 : index
    %107 = vector.load %arg6[%c0_87, %c0_88] : memref<14x128xf32, #tpu.memory_space<vmem>>, vector<14x128xf32>
    tpu.vector_store %arg6[%c0_87, %c0_88], %106 {strides = array<i32>} : memref<14x128xf32, #tpu.memory_space<vmem>>, vector<14x128xf32>,
    %c0_89 = arith.constant 0 : index
    %c0_90 = arith.constant 0 : index
    %108 = tpu.strided_load %arg6[%c0_89, %c0_90] {strides = array<i32: 2, 1>} : memref<14x128xf32, #tpu.memory_space<vmem>>, vector<7x128xf32>
    %c1_91 = arith.constant 1 : index
    %c0_92 = arith.constant 0 : index
    %109 = tpu.strided_load %arg6[%c1_91, %c0_92] {strides = array<i32: 2, 1>} : memref<14x128xf32, #tpu.memory_space<vmem>>, vector<7x128xf32>
    %110 = arith.maximumf %108, %109 : vector<7x128xf32>
    %111 = vector.broadcast %13 : vector<1x128xf32> to vector<7x128xf32>
    %112 = arith.addf %110, %111 : vector<7x128xf32>
    %cst_93 = arith.constant 0.000000e+00 : f32
    %113 = vector.broadcast %cst_93 : f32 to vector<7x128xf32>
    %114 = arith.maximumf %112, %113 : vector<7x128xf32>
    %115 = arith.truncf %114 : vector<7x128xf32> to vector<7x128xbf16>
    %c0_94 = arith.constant 0 : index
    %c42 = arith.constant 42 : index
    %c0_95 = arith.constant 0 : index
    %116 = vector.load %arg4[%c0_94, %c42, %c0_95] : memref<1x49x128xbf16, #tpu.memory_space<vmem>>, vector<1x7x128xbf16>
    %117 = vector.shape_cast %116 : vector<1x7x128xbf16> to vector<7x128xbf16>
    %118 = vector.shape_cast %115 : vector<7x128xbf16> to vector<1x7x128xbf16>
    tpu.vector_store %arg4[%c0_94, %c42, %c0_95], %118 {strides = array<i32>} : memref<1x49x128xbf16, #tpu.memory_space<vmem>>, vector<1x7x128xbf16>,
    return
  }
  func.func @transform_0(%arg0: i32) -> (i32, i32) {
    %c0_i32 = arith.constant 0 : i32
    %c0_i32_0 = arith.constant 0 : i32
    return %arg0, %c0_i32 : i32, i32
  }
  func.func @transform_1(%arg0: i32) -> (i32, i32) {
    %c0_i32 = arith.constant 0 : i32
    %c0_i32_0 = arith.constant 0 : i32
    %c0_i32_1 = arith.constant 0 : i32
    return %c0_i32, %c0_i32_0 : i32, i32
  }
  func.func @transform_2(%arg0: i32) -> (i32, i32) {
    %c0_i32 = arith.constant 0 : i32
    %c0_i32_0 = arith.constant 0 : i32
    %c0_i32_1 = arith.constant 0 : i32
    return %c0_i32, %c0_i32_0 : i32, i32
  }
  func.func @transform_3(%arg0: i32) -> (i32, i32, i32) {
    %c0_i32 = arith.constant 0 : i32
    %c0_i32_0 = arith.constant 0 : i32
    %c0_i32_1 = arith.constant 0 : i32
    return %arg0, %c0_i32, %c0_i32_0 : i32, i32, i32
  }
}

module attributes {stable_mosaic.version = 11 : i64} {
  func.func @_mlp_kernel(%arg0: i32, %arg1: memref<4x1568xbf16, #tpu.memory_space<vmem>>, %arg2: memref<1568x64xbf16, #tpu.memory_space<vmem>>, %arg3: memref<1x64xf32, #tpu.memory_space<vmem>>, %arg4: memref<64x128xbf16, #tpu.memory_space<vmem>>, %arg5: memref<1x128xf32, #tpu.memory_space<vmem>>, %arg6: memref<4x128xf32, #tpu.memory_space<vmem>>) attributes {dimension_semantics = [#tpu.dimension_semantics<parallel>], iteration_bounds = array<i64: 1>, scalar_prefetch = 0 : i64, scratch_operands = 0 : i64, tpu.core_type = #tpu.core_type<tc>, window_params = [{transform_indices = @transform_0, window_bounds = array<i64: 4, 1568>}, {pipeline_mode = #tpu.pipeline_mode<synchronous>, transform_indices = @transform_1, window_bounds = array<i64: 1568, 64>}, {pipeline_mode = #tpu.pipeline_mode<synchronous>, transform_indices = @transform_2, window_bounds = array<i64: 1, 64>}, {pipeline_mode = #tpu.pipeline_mode<synchronous>, transform_indices = @transform_3, window_bounds = array<i64: 64, 128>}, {pipeline_mode = #tpu.pipeline_mode<synchronous>, transform_indices = @transform_4, window_bounds = array<i64: 1, 128>}, {transform_indices = @transform_5, window_bounds = array<i64: 4, 128>}]} {
    %c0 = arith.constant 0 : index
    %c0_0 = arith.constant 0 : index
    %0 = vector.load %arg1[%c0, %c0_0] : memref<4x1568xbf16, #tpu.memory_space<vmem>>, vector<4x1568xbf16>
    %c0_1 = arith.constant 0 : index
    %c0_2 = arith.constant 0 : index
    %1 = vector.load %arg2[%c0_1, %c0_2] : memref<1568x64xbf16, #tpu.memory_space<vmem>>, vector<1568x64xbf16>
    %cst = arith.constant dense<0.000000e+00> : vector<4x64xf32>
    %2 = tpu.matmul %0, %1, %cst {dimension_numbers = #tpu.dot_dimension_numbers<[1], [0], [0], [1], [0, 0, 1, 1], [], []>} : vector<4x1568xbf16>, vector<1568x64xbf16>, vector<4x64xf32> -> vector<4x64xf32>
    %c0_3 = arith.constant 0 : index
    %c0_4 = arith.constant 0 : index
    %3 = vector.load %arg3[%c0_3, %c0_4] : memref<1x64xf32, #tpu.memory_space<vmem>>, vector<1x64xf32>
    %4 = vector.broadcast %3 : vector<1x64xf32> to vector<4x64xf32>
    %5 = arith.addf %2, %4 : vector<4x64xf32>
    %cst_5 = arith.constant 0.000000e+00 : f32
    %6 = vector.broadcast %cst_5 : f32 to vector<4x64xf32>
    %7 = arith.maximumf %5, %6 : vector<4x64xf32>
    %8 = arith.truncf %7 : vector<4x64xf32> to vector<4x64xbf16>
    %c0_6 = arith.constant 0 : index
    %c0_7 = arith.constant 0 : index
    %9 = vector.load %arg4[%c0_6, %c0_7] : memref<64x128xbf16, #tpu.memory_space<vmem>>, vector<64x128xbf16>
    %cst_8 = arith.constant dense<0.000000e+00> : vector<4x128xf32>
    %10 = tpu.matmul %8, %9, %cst_8 {dimension_numbers = #tpu.dot_dimension_numbers<[1], [0], [0], [1], [0, 0, 1, 1], [], []>} : vector<4x64xbf16>, vector<64x128xbf16>, vector<4x128xf32> -> vector<4x128xf32>
    %c0_9 = arith.constant 0 : index
    %c0_10 = arith.constant 0 : index
    %11 = vector.load %arg5[%c0_9, %c0_10] : memref<1x128xf32, #tpu.memory_space<vmem>>, vector<1x128xf32>
    %12 = vector.broadcast %11 : vector<1x128xf32> to vector<4x128xf32>
    %13 = arith.addf %10, %12 : vector<4x128xf32>
    %c0_11 = arith.constant 0 : index
    %c0_12 = arith.constant 0 : index
    %14 = vector.load %arg6[%c0_11, %c0_12] : memref<4x128xf32, #tpu.memory_space<vmem>>, vector<4x128xf32>
    tpu.vector_store %arg6[%c0_11, %c0_12], %13 {strides = array<i32>} : memref<4x128xf32, #tpu.memory_space<vmem>>, vector<4x128xf32>,
    return
  }
  func.func @transform_0(%arg0: i32) -> (i32, i32) {
    %c0_i32 = arith.constant 0 : i32
    %c0_i32_0 = arith.constant 0 : i32
    return %arg0, %c0_i32 : i32, i32
  }
  func.func @transform_1(%arg0: i32) -> (i32, i32) {
    %c0_i32 = arith.constant 0 : i32
    %c0_i32_0 = arith.constant 0 : i32
    %c0_i32_1 = arith.constant 0 : i32
    return %c0_i32, %c0_i32_0 : i32, i32
  }
  func.func @transform_2(%arg0: i32) -> (i32, i32) {
    %c0_i32 = arith.constant 0 : i32
    %c0_i32_0 = arith.constant 0 : i32
    %c0_i32_1 = arith.constant 0 : i32
    return %c0_i32, %c0_i32_0 : i32, i32
  }
  func.func @transform_3(%arg0: i32) -> (i32, i32) {
    %c0_i32 = arith.constant 0 : i32
    %c0_i32_0 = arith.constant 0 : i32
    %c0_i32_1 = arith.constant 0 : i32
    return %c0_i32, %c0_i32_0 : i32, i32
  }
  func.func @transform_4(%arg0: i32) -> (i32, i32) {
    %c0_i32 = arith.constant 0 : i32
    %c0_i32_0 = arith.constant 0 : i32
    %c0_i32_1 = arith.constant 0 : i32
    return %c0_i32, %c0_i32_0 : i32, i32
  }
  func.func @transform_5(%arg0: i32) -> (i32, i32) {
    %c0_i32 = arith.constant 0 : i32
    %c0_i32_0 = arith.constant 0 : i32
    return %arg0, %c0_i32 : i32, i32
  }
}

</mosaic_0001>

<bundles_post_ra>
// kernel: cnn_forward.5
= control target key start
LH: loop header
LB: loop body
LE: loop exit
PB: predicated region body
PF: predicated region fallthrough
CT: control target
= control target key end

     0   :  { %v1639_v22 = vmov 1983009808   ;;  %v236_v24 = vlaneseq  ;;  %vm1641_vm0 = vmmov 0   ;;  %vm890_vm1 = vcmask 261120   ;;  %s2007_s1 = inlined_call_operand.vmem [shape: bf16[1568,64], index: 1, kind: input, shape index: {}]   ;;  %s2008_s0 = inlined_call_operand.vmem [shape: bf16[4,1568], index: 0, kind: input, shape index: {}]   ;;  %s2009_s3 = inlined_call_operand.vmem [shape: bf16[64,128], index: 3, kind: input, shape index: {}]   ;;  %s2010_s2 = inlined_call_operand.vmem [shape: f32[1,64], index: 2, kind: input, shape index: {}]   ;;  %s2011_s4 = inlined_call_operand.vmem [shape: f32[1,128], index: 4, kind: input, shape index: {}]   ;;  %s2012_s5 = inlined_call_operand.vmem [shape: f32[4,128], index: 5, kind: output, shape index: {}]  }
   0x1   :  { %v1534_v0 = vld [vmem:[%s2007_s1 + $0x40] sm:$0xff]   ;;  %v1538_v4 = vld [vmem:[%s2007_s1 + $0x48] sm:$0xff]   ;;  %v1542_v8 = vld [vmem:[%s2007_s1 + $0x50] sm:$0xff]   ;;  %v234_v23 = vunpack.c.l.s4 %v1639_v22  ;;  %vm1215_vm2 = vcmask 523264  }
   0x2   :  { %v1535_v1 = vld [vmem:[%s2007_s1] sm:$0xff]   ;;  %1371 = vmatprep.subr.bf16.mxu0 %v1534_v0  ;;  %v1539_v5 = vld [vmem:[%s2007_s1 + $0x8] sm:$0xff]   ;;  %v1543_v9 = vld [vmem:[%s2007_s1 + $0x10] sm:$0xff]   ;;  %v237_v30 = vshrl.u32 %v236_v24, 7 }
   0x3   :  { %v1536_v2 = vld [vmem:[%s2007_s1 + $0xc0] sm:$0xff]   ;;  %1372 = vmatpush3.bf16.msra.mxu0 %v1535_v1  ;;  %v1540_v6 = vld [vmem:[%s2007_s1 + $0xc8] sm:$0xff]   ;;  %v1544_v10 = vld [vmem:[%s2007_s1 + $0xd0] sm:$0xff]   ;;  %v235_v29 = vunpack.c.0.s8 %v234_v23 }
   0x4   :  { %v1537_v3 = vld [vmem:[%s2007_s1 + $0x80] sm:$0xff]   ;;  %1393 = vmatprep.subr.bf16.mxu1 %v1536_v2  ;;  %1373 = vmatprep.subr.bf16.mxu0 %v1538_v4  ;;  %v1541_v7 = vld [vmem:[%s2007_s1 + $0x88] sm:$0xff]   ;;  %v1545_v11 = vld [vmem:[%s2007_s1 + $0x90] sm:$0xff]  }
   0x5   :  { %1394 = vmatpush3.bf16.msra.mxu1 %v1537_v3  ;;  %v1546_v12 = vld [vmem:[%s2007_s1 + $0x58] sm:$0xff]   ;;  %v1550_v16 = vld [vmem:[%s2007_s1 + $0x60] sm:$0xff]   ;;  %v1554_v20 = vld [vmem:[%s2007_s1 + $0x68] sm:$0xff]   ;;  %v1762_v35 = vsub.s32 %v235_v29, %v237_v30 }
   0x6   :  { %1395 = vmatprep.subr.bf16.mxu1 %v1540_v6  ;;  %v1547_v13 = vld [vmem:[%s2007_s1 + $0x18] sm:$0xff]   ;;  %v1551_v17 = vld [vmem:[%s2007_s1 + $0x20] sm:$0xff]   ;;  %v1555_v21 = vld [vmem:[%s2007_s1 + $0x28] sm:$0xff]  }
   0x7   :  { %1374 = vmatpush3.bf16.msra.mxu0 %v1539_v5  ;;  %v1548_v14 = vld [vmem:[%s2007_s1 + $0xd8] sm:$0xff]   ;;  %v1552_v18 = vld [vmem:[%s2007_s1 + $0xe0] sm:$0xff]   ;;  %v1556_v25 = vld [vmem:[%s2007_s1 + $0xe8] sm:$0xff]  }
   0x8   :  { %1375 = vmatprep.subr.bf16.mxu0 %v1542_v8  ;;  %v1549_v15 = vld [vmem:[%s2007_s1 + $0x98] sm:$0xff]   ;;  %v1553_v19 = vld [vmem:[%s2007_s1 + $0xa0] sm:$0xff]   ;;  %v1557_v26 = vld [vmem:[%s2007_s1 + $0xa8] sm:$0xff]  }
   0x9   :  { %1396 = vmatpush3.bf16.msra.mxu1 %v1541_v7  ;;  %v1558_v27 = vld [vmem:[%s2007_s1 + $0x70] sm:$0xff]   ;;  %v1562_v33 = vld [vmem:[%s2007_s1 + $0x78] sm:$0xff]   ;;  %v21_v38 = vld [vmem:[%s2008_s0] sm:$0xff] }
   0xa   :  { %1397 = vmatprep.subr.bf16.mxu1 %v1544_v10  ;;  %v1559_v28 = vld [vmem:[%s2007_s1 + $0x30] sm:$0xff]   ;;  %v1563_v34 = vld [vmem:[%s2007_s1 + $0x38] sm:$0xff]   ;;  %v239_v39 = vrot.slane %v21_v38, %v1762_v35  ;;  %v1566_v40 = vld [vmem:[%s2007_s1 + $0x140] sm:$0xff]   ;;  %v232_v41 = vcombine.high %v21_v38, %v21_v38 }
   0xb   :  { %1376 = vmatpush3.bf16.msra.mxu0 %v1543_v9  ;;  %v1560_v31 = vld [vmem:[%s2007_s1 + $0xf0] sm:$0xff]   ;;  %v1564_v36 = vld [vmem:[%s2007_s1 + $0xf8] sm:$0xff]   ;;  %v1568_v42 = vld [vmem:[%s2007_s1 + $0x100] sm:$0xff]  }
   0xc   :  { %1377 = vmatprep.subr.bf16.mxu0 %v1546_v12  ;;  %v1561_v32 = vld [vmem:[%s2007_s1 + $0xb0] sm:$0xff]   ;;  %v1565_v37 = vld [vmem:[%s2007_s1 + $0xb8] sm:$0xff]   ;;  %v247_v43 = vcombine.high %v239_v39, %v239_v39  ;;  %v246_v44 = vrot.slane %v232_v41, %v1762_v35  ;;  %v1569_v45 = vld [vmem:[%s2007_s1 + $0x1c0] sm:$0xff]  }
   0xd   :  { %1398 = vmatpush3.bf16.msra.mxu1 %v1545_v11  ;;  %v1570_v46 = vld [vmem:[%s2007_s1 + $0x180] sm:$0xff]   ;;  %v1571_v48 = vld [vmem:[%s2007_s1 + $0x148] sm:$0xff]   ;;  %v1575_v52 = vld [vmem:[%s2007_s1 + $0x150] sm:$0xff]  }
   0xe   :  { %1399 = vmatprep.subr.bf16.mxu1 %v1548_v14  ;;  %926 = vmatprep.mubr.bf16.mxu0 %v247_v43  ;;  %v248_v47 = vcombine.high %v246_v44, %v246_v44  ;;  %v1572_v49 = vld [vmem:[%s2007_s1 + $0x108] sm:$0xff]   ;;  %v1576_v53 = vld [vmem:[%s2007_s1 + $0x110] sm:$0xff]   ;;  %v1579_v56 = vld [vmem:[%s2007_s1 + $0x158] sm:$0xff]  }
   0xf   :  { %1378 = vmatpush3.bf16.msra.mxu0 %v1547_v13  ;;  %v1573_v50 = vld [vmem:[%s2007_s1 + $0x1c8] sm:$0xff]   ;;  %v1577_v54 = vld [vmem:[%s2007_s1 + $0x1d0] sm:$0xff]   ;;  %v1580_v57 = vld [vmem:[%s2007_s1 + $0x118] sm:$0xff]  }
  0x10   :  { %1379 = vmatprep.subr.bf16.mxu0 %v1550_v16  ;;  %966 = vmatprep.mubr.bf16.mxu1 %v248_v47  ;;  %v1574_v51 = vld [vmem:[%s2007_s1 + $0x188] sm:$0xff]   ;;  %v1578_v55 = vld [vmem:[%s2007_s1 + $0x190] sm:$0xff]   ;;  %v1581_v58 = vld [vmem:[%s2007_s1 + $0x1d8] sm:$0xff]  }
  0x11   :  { %1400 = vmatpush3.bf16.msra.mxu1 %v1549_v15  ;;  %v1582_v59 = vld [vmem:[%s2007_s1 + $0x198] sm:$0xff]   ;;  %v1583_v60 = vld [vmem:[%s2007_s1 + $0x160] sm:$0xff]   ;;  %v1587_v0 = vld [vmem:[%s2007_s1 + $0x168] sm:$0xff]  }
  0x12   :  { %1401 = vmatprep.subr.bf16.mxu1 %v1552_v18  ;;  %v1584_v61 = vld [vmem:[%s2007_s1 + $0x120] sm:$0xff]   ;;  %v1588_v1 = vld [vmem:[%s2007_s1 + $0x128] sm:$0xff]   ;;  %v1591_v4 = vld [vmem:[%s2007_s1 + $0x170] sm:$0xff]  }
  0x13   :  { %1380 = vmatpush3.bf16.msra.mxu0 %v1551_v17  ;;  %v1585_v62 = vld [vmem:[%s2007_s1 + $0x1e0] sm:$0xff]   ;;  %v1589_v2 = vld [vmem:[%s2007_s1 + $0x1e8] sm:$0xff]   ;;  %v1592_v5 = vld [vmem:[%s2007_s1 + $0x130] sm:$0xff]  }
  0x14   :  { %1381 = vmatprep.subr.bf16.mxu0 %v1554_v20  ;;  %v1586_v63 = vld [vmem:[%s2007_s1 + $0x1a0] sm:$0xff]   ;;  %v1590_v3 = vld [vmem:[%s2007_s1 + $0x1a8] sm:$0xff]   ;;  %v1593_v6 = vld [vmem:[%s2007_s1 + $0x1f0] sm:$0xff]  }
  0x15   :  { %1402 = vmatpush3.bf16.msra.mxu1 %v1553_v19  ;;  %v1594_v7 = vld [vmem:[%s2007_s1 + $0x1b0] sm:$0xff]   ;;  %v1595_v8 = vld [vmem:[%s2007_s1 + $0x178] sm:$0xff]   ;;  %v22_v12 = vld [vmem:[%s2008_s0 + $0x8] sm:$0xff] }
  0x16   :  { %1403 = vmatprep.subr.bf16.mxu1 %v1556_v25  ;;  %v1596_v9 = vld [vmem:[%s2007_s1 + $0x138] sm:$0xff]   ;;  %v256_v13 = vrot.slane %v22_v12, %v1762_v35  ;;  %v1599_v14 = vld [vmem:[%s2007_s1 + $0x240] sm:$0xff]   ;;  %v249_v15 = vcombine.high %v22_v12, %v22_v12  ;;  %v1604_v22 = vld [vmem:[%s2007_s1 + $0x248] sm:$0xff]  }
  0x17   :  { %1382 = vmatpush3.bf16.msra.mxu0 %v1555_v21  ;;  %v1597_v10 = vld [vmem:[%s2007_s1 + $0x1f8] sm:$0xff]   ;;  %v1601_v16 = vld [vmem:[%s2007_s1 + $0x200] sm:$0xff]   ;;  %v1605_v23 = vld [vmem:[%s2007_s1 + $0x208] sm:$0xff]  }
  0x18   :  { %1383 = vmatprep.subr.bf16.mxu0 %v1558_v27  ;;  %v1598_v11 = vld [vmem:[%s2007_s1 + $0x1b8] sm:$0xff]   ;;  %v264_v17 = vcombine.high %v256_v13, %v256_v13  ;;  %v263_v18 = vrot.slane %v249_v15, %v1762_v35  ;;  %v1602_v19 = vld [vmem:[%s2007_s1 + $0x2c0] sm:$0xff]   ;;  %v1606_v24 = vld [vmem:[%s2007_s1 + $0x2c8] sm:$0xff]  }
  0x19   :  { %1404 = vmatpush3.bf16.msra.mxu1 %v1557_v26  ;;  %v1603_v20 = vld [vmem:[%s2007_s1 + $0x280] sm:$0xff]   ;;  %v1607_v25 = vld [vmem:[%s2007_s1 + $0x288] sm:$0xff]   ;;  %v1608_v26 = vld [vmem:[%s2007_s1 + $0x250] sm:$0xff]  }
  0x1a   :  { %1405 = vmatprep.subr.bf16.mxu1 %v1560_v31  ;;  %v265_v21 = vcombine.high %v263_v18, %v263_v18  ;;  %v1609_v27 = vld [vmem:[%s2007_s1 + $0x210] sm:$0xff]   ;;  %v1612_v30 = vld [vmem:[%s2007_s1 + $0x258] sm:$0xff]   ;;  %v1619_v38 = vld [vmem:[%s2007_s1 + $0x2a0] sm:$0xff]  }
  0x1b   :  { %1384 = vmatpush3.bf16.msra.mxu0 %v1559_v28  ;;  %v1610_v28 = vld [vmem:[%s2007_s1 + $0x2d0] sm:$0xff]   ;;  %v1613_v31 = vld [vmem:[%s2007_s1 + $0x218] sm:$0xff]   ;;  %v1622_v41 = vld [vmem:[%s2007_s1 + $0x2e8] sm:$0xff]  }
  0x1c   :  { %1385 = vmatprep.subr.bf16.mxu0 %v1562_v33  ;;  %v1611_v29 = vld [vmem:[%s2007_s1 + $0x290] sm:$0xff]   ;;  %v1615_v33 = vld [vmem:[%s2007_s1 + $0x298] sm:$0xff]  }
  0x1d   :  { %1406 = vmatpush3.bf16.msra.mxu1 %v1561_v32  ;;  %v1614_v32 = vld [vmem:[%s2007_s1 + $0x2d8] sm:$0xff]   ;;  %v1624_v43 = vld [vmem:[%s2007_s1 + $0x270] sm:$0xff]  }
  0x1e   :  { %1407 = vmatprep.subr.bf16.mxu1 %v1564_v36  ;;  %v1617_v36 = vld [vmem:[%s2007_s1 + $0x220] sm:$0xff]   ;;  %v1628_v47 = vld [vmem:[%s2007_s1 + $0x278] sm:$0xff]  }
  0x1f   :  { %1386 = vmatpush3.bf16.msra.mxu0 %v1563_v34  ;;  %v1616_v34 = vld [vmem:[%s2007_s1 + $0x260] sm:$0xff]  }
  0x20   :  { %1415 = vmatprep.subr.bf16.mxu0 %v1566_v40  ;;  %v1621_v40 = vld [vmem:[%s2007_s1 + $0x228] sm:$0xff]  }
  0x21   :  { %1408 = vmatpush3.bf16.msra.mxu1 %v1565_v37  ;;  %v1618_v37 = vld [vmem:[%s2007_s1 + $0x2e0] sm:$0xff]  }
  0x22   :  { %1437 = vmatprep.subr.bf16.mxu1 %v1569_v45  ;;  %927 = vmatmul.mubr.bf16.vlgmr.msra.gmra.mrb[0].mxu0 %v239_v39  ;;  %v1620_v39 = vld [vmem:[%s2007_s1 + $0x268] sm:$0xff]   ;;  %v1626_v45 = vld [vmem:[%s2007_s1 + $0x2f0] sm:$0xff]  }
  0x23   :  { %1416 = vmatpush3.bf16.msra.mxu0 %v1568_v42  ;;  %1006 = vmatprep.mubr.bf16.mxu0 %v264_v17  ;;  %v1623_v42 = vld [vmem:[%s2007_s1 + $0x2a8] sm:$0xff]  }
  0x24   :  { %967 = vmatmul.mubr.bf16.vlgmr.msra.gmra.mrb[0].mxu1 %v246_v44  ;;  %1417 = vmatprep.subr.bf16.mxu0 %v1571_v48  ;;  %v1625_v44 = vld [vmem:[%s2007_s1 + $0x230] sm:$0xff]   ;;  %v1629_v48 = vld [vmem:[%s2007_s1 + $0x238] sm:$0xff]  }
  0x25   :  { %1438 = vmatpush3.bf16.msra.mxu1 %v1570_v46  ;;  %1046 = vmatprep.mubr.bf16.mxu1 %v265_v21  ;;  %v1627_v46 = vld [vmem:[%s2007_s1 + $0x2b0] sm:$0xff]  }
  0x26   :  { %1439 = vmatprep.subr.bf16.mxu1 %v1573_v50  ;;  %v23_v50 = vld [vmem:[%s2008_s0 + $0x10] sm:$0xff] }
  0x27   :  { %1418 = vmatpush3.bf16.msra.mxu0 %v1572_v49  ;;  %v1630_v49 = vld [vmem:[%s2007_s1 + $0x2f8] sm:$0xff]  }
  0x28   :  { %1419 = vmatprep.subr.bf16.mxu0 %v1575_v52  ;;  %v273_v52 = vrot.slane %v23_v50, %v1762_v35 }
  0x29   :  { %1440 = vmatpush3.bf16.msra.mxu1 %v1574_v51  ;;  %v1631_v51 = vld [vmem:[%s2007_s1 + $0x2b8] sm:$0xff]  }
  0x2a   :  { %1441 = vmatprep.subr.bf16.mxu1 %v1577_v54  ;;  %v281_v54 = vcombine.high %v273_v52, %v273_v52 }
  0x2b   :  { %1420 = vmatpush3.bf16.msra.mxu0 %v1576_v53  ;;  %v266_v53 = vcombine.high %v23_v50, %v23_v50 }
  0x2c   :  { %1421 = vmatprep.subr.bf16.mxu0 %v1579_v56  ;;  %v1633_v56 = vld [vmem:[%s2007_s1 + $0x300] sm:$0xff]  }
  0x2d   :  { %1442 = vmatpush3.bf16.msra.mxu1 %v1578_v55  ;;  %v280_v55 = vrot.slane %v266_v53, %v1762_v35  ;;  %v1265_v35 = vld.sshfl [vmem:[%s2008_s0 + $0x18] sm:$0x3 pattern:$0x76325410] }
  0x2e   :  { %1443 = vmatprep.subr.bf16.mxu1 %v1581_v58 }
  0x2f   :  { %1422 = vmatpush3.bf16.msra.mxu0 %v1580_v57  ;;  %v1640_v57 = vmov 0.0   ;;  %v282_v58 = vcombine.high %v280_v55, %v280_v55 }
  0x30   :  { %1423 = vmatprep.subr.bf16.mxu0 %v1583_v60  ;;  %v1635_v60 = vld [vmem:[%s2009_s3] sm:$0xff]  }
  0x31   :  { %1444 = vmatpush3.bf16.msra.mxu1 %v1582_v59  ;;  %v1634_v59 = vld [vmem:[%s2007_s1 + $0x308] sm:$0xff]  }
  0x32   :  { %1445 = vmatprep.subr.bf16.mxu1 %v1585_v62  ;;  %v1637_v62 = vld [vmem:[%s2009_s3 + $0x10] sm:$0xff]  }
  0x33   :  { %1424 = vmatpush3.bf16.msra.mxu0 %v1584_v61  ;;  %v1636_v61 = vld [vmem:[%s2009_s3 + $0x8] sm:$0xff]  }
  0x34   :  { %1425 = vmatprep.subr.bf16.mxu0 %v1587_v0 }
  0x35   :  { %1446 = vmatpush3.bf16.msra.mxu1 %v1586_v63  ;;  %v1638_v63 = vld [vmem:[%s2009_s3 + $0x18] sm:$0xff]  }
  0x36   :  { %1447 = vmatprep.subr.bf16.mxu1 %v1589_v2 }
  0x37   :  { %1426 = vmatpush3.bf16.msra.mxu0 %v1588_v1  ;;  %v1264_v1 = vld [vmem:[%s2010_s2] ss:$0 sm:$0xff] }
  0x38   :  { %1427 = vmatprep.subr.bf16.mxu0 %v1591_v4 }
  0x39   :  { %1448 = vmatpush3.bf16.msra.mxu1 %v1590_v3 }
  0x3a   :  { %1449 = vmatprep.subr.bf16.mxu1 %v1593_v6 }
  0x3b   :  { %1428 = vmatpush3.bf16.msra.mxu0 %v1592_v5 }
  0x3c   :  { %1429 = vmatprep.subr.bf16.mxu0 %v1595_v8 }
  0x3d   :  { %1450 = vmatpush3.bf16.msra.mxu1 %v1594_v7 }
  0x3e   :  { %1451 = vmatprep.subr.bf16.mxu1 %v1597_v10 }
  0x3f   :  { %1430 = vmatpush3.bf16.msra.mxu0 %v1596_v9 }
  0x40   :  { %1459 = vmatprep.subr.bf16.mxu0 %v1599_v14 }
  0x41   :  { %1452 = vmatpush3.bf16.msra.mxu1 %v1598_v11 }
  0x42   :  { %1007 = vmatmul.mubr.bf16.vlgmr.msra.gmra.mrb[4].mxu0 %v256_v13  ;;  %1481 = vmatprep.subr.bf16.mxu1 %v1602_v19 }
  0x43   :  { %1460 = vmatpush3.bf16.msra.mxu0 %v1601_v16  ;;  %1086 = vmatprep.mubr.bf16.mxu0 %v281_v54 }
  0x44   :  { %1047 = vmatmul.mubr.bf16.vlgmr.msra.gmra.mrb[4].mxu1 %v263_v18  ;;  %1461 = vmatprep.subr.bf16.mxu0 %v1604_v22 }
  0x45   :  { %1482 = vmatpush3.bf16.msra.mxu1 %v1603_v20  ;;  %1126 = vmatprep.mubr.bf16.mxu1 %v282_v58 }
  0x46   :  { %1483 = vmatprep.subr.bf16.mxu1 %v1606_v24 }
  0x47   :  { %1462 = vmatpush3.bf16.msra.mxu0 %v1605_v23 }
  0x48   :  { %1463 = vmatprep.subr.bf16.mxu0 %v1608_v26 }
  0x49   :  { %1484 = vmatpush3.bf16.msra.mxu1 %v1607_v25 }
  0x4a   :  { %1485 = vmatprep.subr.bf16.mxu1 %v1610_v28 }
  0x4b   :  { %1464 = vmatpush3.bf16.msra.mxu0 %v1609_v27 }
  0x4c   :  { %1465 = vmatprep.subr.bf16.mxu0 %v1612_v30 }
  0x4d   :  { %1486 = vmatpush3.bf16.msra.mxu1 %v1611_v29 }
  0x4e   :  { %1487 = vmatprep.subr.bf16.mxu1 %v1614_v32 }
  0x4f   :  { %1466 = vmatpush3.bf16.msra.mxu0 %v1613_v31 }
  0x50   :  { %1467 = vmatprep.subr.bf16.mxu0 %v1616_v34 }
  0x51   :  { %1488 = vmatpush3.bf16.msra.mxu1 %v1615_v33 }
  0x52   :  { %1489 = vmatprep.subr.bf16.mxu1 %v1618_v37 }
  0x53   :  { %1468 = vmatpush3.bf16.msra.mxu0 %v1617_v36 }
  0x54   :  { %1469 = vmatprep.subr.bf16.mxu0 %v1620_v39 }
  0x55   :  { %1490 = vmatpush3.bf16.msra.mxu1 %v1619_v38 }
  0x56   :  { %1491 = vmatprep.subr.bf16.mxu1 %v1622_v41 }
  0x57   :  { %1470 = vmatpush3.bf16.msra.mxu0 %v1621_v40 }
  0x58   :  { %1471 = vmatprep.subr.bf16.mxu0 %v1624_v43 }
  0x59   :  { %1492 = vmatpush3.bf16.msra.mxu1 %v1623_v42 }
  0x5a   :  { %1493 = vmatprep.subr.bf16.mxu1 %v1626_v45  ;;  %v1365_v45 = vld [vmem:[%s2011_s4] ss:$0 sm:$0xff] }
  0x5b   :  { %1472 = vmatpush3.bf16.msra.mxu0 %v1625_v44 }
  0x5c   :  { %1473 = vmatprep.subr.bf16.mxu0 %v1628_v47 }
  0x5d   :  { %1494 = vmatpush3.bf16.msra.mxu1 %v1627_v46 }
  0x5e   :  { %1495 = vmatprep.subr.bf16.mxu1 %v1630_v49 }
  0x5f   :  { %1474 = vmatpush3.bf16.msra.mxu0 %v1629_v48 }
  0x60   :  { %1511 = vmatprep.subr.bf16.mxu0 %v1640_v57 }
  0x61   :  { %1496 = vmatpush3.bf16.msra.mxu1 %v1631_v51 }
  0x62   :  { %1087 = vmatmul.mubr.bf16.vlgmr.msra.gmra.mrb[8].mxu0 %v273_v52  ;;  %1519 = vmatprep.subr.bf16.mxu1 %v1640_v57 }
  0x63   :  { %1512 = vmatpush3.bf16.msra.mxu0 %v1633_v56  ;;  %1515 = vmatprep.mubr.msk.bf16.mxu0 %vm1641_vm0, %v1640_v57 }
  0x64   :  { %1127 = vmatmul.mubr.bf16.vlgmr.msra.gmra.mrb[8].mxu1 %v280_v55  ;;  %1513 = vmatprep.subr.bf16.mxu0 %v1640_v57 }
  0x65   :  { %1527 = vmatprep.mubr.msk.bf16.mxu1 %vm1641_vm0, %v1640_v57  ;;  %1520 = vmatpush3.bf16.msra.mxu1 %v1635_v60 }
  0x66   :  { %1521 = vmatprep.subr.bf16.mxu1 %v1640_v57 }
  0x67   :  { %1514 = vmatpush3.bf16.msra.mxu0 %v1634_v59 }
  0x69   :  { %1522 = vmatpush3.bf16.msra.mxu1 %v1636_v61 }
  0x6a   :  { %1516 = vmatmul.mubr.msk.bf16.vlgmr.msra.gmra.mrb[12].mxu0 %vm890_vm1, %v1265_v35  ;;  %1523 = vmatprep.subr.bf16.mxu1 %v1640_v57 }
  0x6d   :  { %1524 = vmatpush3.bf16.msra.mxu1 %v1637_v62 }
  0x6e   :  { %1525 = vmatprep.subr.bf16.mxu1 %v1640_v57 }
  0x71   :  { %1526 = vmatpush3.bf16.msra.mxu1 %v1638_v63 }
  0xf5   :  { %v1387_v0 = vpop.f32.mrb[0].mxu0 }
  0xf6   :  { %v1388_v2 = vpop.f32.mrb[1].mxu0 }
  0xf7   :  { %v1389_v3 = vadd.f32 %v1388_v2, %v1387_v0  ;;  %v1390_v4 = vpop.f32.mrb[2].mxu0  ;;  %v1409_v5 = vpop.f32.mrb[0].mxu1 }
  0xf8   :  { %v1391_v6 = vpop.f32.mrb[3].mxu0  ;;  %v1410_v7 = vpop.f32.mrb[1].mxu1 }
  0xf9   :  { %v929_v8 = vadd.f32 %v1389_v3, %v1264_v1  ;;  %v1411_v9 = vadd.f32 %v1410_v7, %v1409_v5  ;;  %v1412_v10 = vpop.f32.mrb[2].mxu1 }
  0xfa   :  { %v1413_v11 = vpop.f32.mrb[3].mxu1 }
  0xfb   :  { %v969_v12 = vadd.f32 %v1411_v9, %v929_v8 }
 0x115   :  { %v1431_v13 = vpop.f32.mrb[4].mxu0 }
 0x116   :  { %v1432_v14 = vpop.f32.mrb[5].mxu0 }
 0x117   :  { %v1433_v15 = vadd.f32 %v1432_v14, %v1431_v13  ;;  %v1434_v16 = vpop.f32.mrb[6].mxu0  ;;  %v1453_v17 = vpop.f32.mrb[4].mxu1 }
 0x118   :  { %v1435_v18 = vpop.f32.mrb[7].mxu0  ;;  %v1454_v19 = vpop.f32.mrb[5].mxu1 }
 0x119   :  { %v1009_v20 = vadd.f32 %v1433_v15, %v969_v12  ;;  %v1455_v21 = vadd.f32 %v1454_v19, %v1453_v17  ;;  %v1456_v22 = vpop.f32.mrb[6].mxu1 }
 0x11a   :  { %v1457_v23 = vpop.f32.mrb[7].mxu1 }
 0x11b   :  { %v1049_v24 = vadd.f32 %v1455_v21, %v1009_v20 }
 0x135   :  { %v1475_v25 = vpop.f32.mrb[8].mxu0 }
 0x136   :  { %v1476_v26 = vpop.f32.mrb[9].mxu0 }
 0x137   :  { %v1477_v27 = vadd.f32 %v1476_v26, %v1475_v25  ;;  %v1497_v28 = vpop.f32.mrb[8].mxu1  ;;  %v1478_v29 = vpop.f32.mrb[10].mxu0 }
 0x138   :  { %v1498_v30 = vpop.f32.mrb[9].mxu1  ;;  %v1479_v31 = vpop.f32.mrb[11].mxu0 }
 0x139   :  { %v1089_v32 = vadd.f32 %v1477_v27, %v1049_v24  ;;  %v1499_v33 = vadd.f32 %v1498_v30, %v1497_v28  ;;  %v1500_v34 = vpop.f32.mrb[10].mxu1 }
 0x13a   :  { %v1501_v36 = vpop.f32.mrb[11].mxu1 }
 0x13b   :  { %v1129_v37 = vadd.f32 %v1499_v33, %v1089_v32 }
 0x13d   :  { %v1168_v38 = vpop.f32.mrb[12].mxu0 }
 0x13e   :  { %v1169_v39 = vadd.f32 %v1168_v38, %v1129_v37  ;;  %v1517_v40 = vpop.f32.mrb[13].mxu0 }
 0x13f   :  { %v1171_v41 = vpop.f32.mrb[14].mxu0 }
 0x140   :  { %v1174_v42 = vmax.f32 %v1169_v39, 0.0  ;;  %v1518_v43 = vpop.f32.mrb[15].mxu0 }
 0x142   :  { %v1175_v44 = vpack.c.bf16 %v1174_v42, %v1174_v42 }
 0x144   :  { %1528 = vmatmul.mubr.msk.bf16.vlgmr.msra.gmra.mrb[12].mxu1 %vm1215_vm2, %v1175_v44 }
 0x217   :  { %v1253_v46 = vpop.f32.mrb[12].mxu1 }
 0x218   :  { %v1254_v47 = vadd.f32 %v1365_v45, %v1253_v46  ;;  %v1529_v48 = vpop.f32.mrb[13].mxu1 }
 0x219   :  { %v1256_v49 = vpop.f32.mrb[14].mxu1 }
 0x21a   :  { %1259 = vst [vmem:[%s2012_s5] sm:$0xf] %v1254_v47  ;;  %v1530_v50 = vpop.f32.mrb[15].mxu1 }

// kernel: cnn_forward.4
= control target key start
LH: loop header
LB: loop body
LE: loop exit
PB: predicated region body
PF: predicated region fallthrough
CT: control target
= control target key end

     0   :  { %vm140_vm0 = vsmask.f32 7424  ;;  %vm274_vm1 = vcmask 1046528   ;;  %vm1741_vm2 = vcmask 1043456   ;;  %vm1742_vm3 = vsmask.f32 3328  ;;  %s3492_s1 = inlined_call_operand.vmem [shape: bf16[1152,128], index: 1, kind: input, shape index: {}]   ;;  %s3493_s0 = inlined_call_operand.vmem [shape: bf16[272,128], index: 0, kind: input, shape index: {}]   ;;  %s3494_s2 = inlined_call_operand.vmem [shape: f32[1,128], index: 2, kind: input, shape index: {}]   ;;  %s3495_s3 = inlined_call_operand.vmem [shape: bf16[1,49,128], index: 3, kind: output, shape index: {}]  }
   0x1   :  { %v2529_v0 = vld [vmem:[%s3492_s1 + $0x40] sm:$0xff]   ;;  %v2533_v4 = vld [vmem:[%s3492_s1 + $0x48] sm:$0xff]   ;;  %v2537_v8 = vld [vmem:[%s3492_s1 + $0x50] sm:$0xff]   ;;  %vm1775_vm5 = vcmask 1043459   ;;  %vm1776_vm6 = vsmask.f32 7950 }
   0x2   :  { %v2530_v1 = vld [vmem:[%s3492_s1 + $0xc0] sm:$0xff]   ;;  %2047 = vmatprep.subr.bf16.mxu0 %v2529_v0  ;;  %v2534_v5 = vld [vmem:[%s3492_s1 + $0xc8] sm:$0xff]   ;;  %v2538_v9 = vld [vmem:[%s3492_s1 + $0xd0] sm:$0xff]   ;;  %vm1804_vm8 = vcmask 1042432   ;;  %vm1805_vm9 = vsmask.f32 2304 }
   0x3   :  { %v2531_v2 = vld [vmem:[%s3492_s1] sm:$0xff]   ;;  %2147 = vmatprep.subr.bf16.mxu1 %v2530_v1  ;;  %v2535_v6 = vld [vmem:[%s3492_s1 + $0x8] sm:$0xff]   ;;  %v2539_v10 = vld [vmem:[%s3492_s1 + $0x10] sm:$0xff]   ;;  %vm1838_vm11 = vcmask 1043458   ;;  %vm1839_vm12 = vsmask.f32 7946 }
   0x4   :  { %v2532_v3 = vld [vmem:[%s3492_s1 + $0x80] sm:$0xff]   ;;  %2048 = vmatpush3.bf16.msra.mxu0 %v2531_v2  ;;  %v2536_v7 = vld [vmem:[%s3492_s1 + $0x88] sm:$0xff]   ;;  %v2540_v11 = vld [vmem:[%s3492_s1 + $0x90] sm:$0xff]   ;;  %vm1867_vm14 = vcmask 1041408   ;;  %vm1868_vm15 = vsmask.f32 1280 }
   0x5   :  { %2148 = vmatpush3.bf16.msra.mxu1 %v2532_v3  ;;  %2049 = vmatprep.subr.bf16.mxu0 %v2533_v4  ;;  %v2541_v12 = vld [vmem:[%s3492_s1 + $0x58] sm:$0xff]   ;;  %v2545_v16 = vld [vmem:[%s3492_s1 + $0x60] sm:$0xff]   ;;  %v2549_v20 = vld [vmem:[%s3492_s1 + $0x68] sm:$0xff]  }
   0x6   :  { %2149 = vmatprep.subr.bf16.mxu1 %v2534_v5  ;;  %v2542_v13 = vld [vmem:[%s3492_s1 + $0xd8] sm:$0xff]   ;;  %v2546_v17 = vld [vmem:[%s3492_s1 + $0xe0] sm:$0xff]   ;;  %v2550_v21 = vld [vmem:[%s3492_s1 + $0xe8] sm:$0xff]  }
   0x7   :  { %v2543_v14 = vld [vmem:[%s3492_s1 + $0x18] sm:$0xff]   ;;  %v2547_v18 = vld [vmem:[%s3492_s1 + $0x20] sm:$0xff]   ;;  %v2551_v22 = vld [vmem:[%s3492_s1 + $0x28] sm:$0xff]  }
   0x8   :  { %2050 = vmatpush3.bf16.msra.mxu0 %v2535_v6  ;;  %v2544_v15 = vld [vmem:[%s3492_s1 + $0x98] sm:$0xff]   ;;  %v2548_v19 = vld [vmem:[%s3492_s1 + $0xa0] sm:$0xff]   ;;  %v2552_v23 = vld [vmem:[%s3492_s1 + $0xa8] sm:$0xff]  }
   0x9   :  { %2150 = vmatpush3.bf16.msra.mxu1 %v2536_v7  ;;  %2051 = vmatprep.subr.bf16.mxu0 %v2537_v8  ;;  %v2553_v24 = vld [vmem:[%s3492_s1 + $0x70] sm:$0xff]   ;;  %v2557_v28 = vld [vmem:[%s3492_s1 + $0x78] sm:$0xff]   ;;  %v15_v32 = vld [vmem:[%s3493_s0] sm:$0xf] }
   0xa   :  { %2151 = vmatprep.subr.bf16.mxu1 %v2538_v9  ;;  %v2554_v25 = vld [vmem:[%s3492_s1 + $0xf0] sm:$0xff]   ;;  %v2558_v29 = vld [vmem:[%s3492_s1 + $0xf8] sm:$0xff]   ;;  %v16_v33 = vld [vmem:[%s3493_s0 + $0x4] sm:$0xf] }
   0xb   :  { %v2555_v26 = vld [vmem:[%s3492_s1 + $0x30] sm:$0xff]   ;;  %v2559_v30 = vld [vmem:[%s3492_s1 + $0x38] sm:$0xff]   ;;  %v17_v34 = vld [vmem:[%s3493_s0 + $0x8] sm:$0xf]  ;;  %v1940_v36 = vcombine.low %v15_v32, %v16_v33 }
   0xc   :  { %2052 = vmatpush3.bf16.msra.mxu0 %v2539_v10  ;;  %v2556_v27 = vld [vmem:[%s3492_s1 + $0xb0] sm:$0xff]   ;;  %v2560_v31 = vld [vmem:[%s3492_s1 + $0xb8] sm:$0xff]   ;;  %v2751_v35 = vld [vmem:[%s3493_s0 + $0xc] sm:$0xf] }
   0xd   :  { %2152 = vmatpush3.bf16.msra.mxu1 %v2540_v11  ;;  %2053 = vmatprep.subr.bf16.mxu0 %v2541_v12  ;;  %v44_v37 = vld [vmem:[%s3493_s0] sm:$0xe]  ;;  %v1941_v38 = vcombine.low %v17_v34, %v2751_v35  ;;  %v142_v41 = vshrl.u32 %v1940_v36, 16  ;;  %v144_v42 = vshll.u32 %v1940_v36, 16  ;;  %v19_v46 = vld [vmem:[%s3493_s0 + $0x10] sm:$0xf]  ;;  %vm1743_vm4 = vmand %vm1741_vm2, %vm1742_vm3 }
   0xe   :  { %2153 = vmatprep.subr.bf16.mxu1 %v2542_v13  ;;  %v1955_v39 = vcombine.low %v44_v37, %v16_v33  ;;  %v2564_v40 = vld [vmem:[%s3492_s1 + $0x140] sm:$0xff]   ;;  %v2766_v49 = vld [vmem:[%s3493_s0 + $0x14] sm:$0xf]  ;;  %v2771_v50 = vld [vmem:[%s3493_s0 + $0x18] sm:$0xff]   ;;  %vm1902_vm2 = vsmask.f32 7942 }
   0xf   :  { %v149_v43 = vshll.u32 %v1941_v38, 16  ;;  %1143 = vmatprep.mubr.bf16.mxu1 %v1941_v38  ;;  %v276_v45 = vrot.slane %v1941_v38, 1  ;;  %v153_v47 = vshrl.u32 %v1941_v38, 16  ;;  %v146_v48 = vrot.slane %v144_v42, 1  ;;  %v2565_v55 = vld [vmem:[%s3492_s1 + $0x100] sm:$0xff]   ;;  %v2567_v59 = vld [vmem:[%s3492_s1 + $0x148] sm:$0xff]   ;;  %vm1777_vm7 = vmand %vm1775_vm5, %vm1776_vm6 }
  0x10   :  { %2054 = vmatpush3.bf16.msra.mxu0 %v2543_v14  ;;  %v275_v44 = vrot.slane %v1955_v39, 1  ;;  %v2775_v53 = vcombine.low %v19_v46, %v2766_v49  ;;  %v165_v62 = vshll.u32 %v2771_v50, 16  ;;  %v2569_v0 = vld [vmem:[%s3492_s1 + $0x108] sm:$0xff]   ;;  %v2802_v3 = vld [vmem:[%s3493_s0 + $0x20] sm:$0xff]   ;;  %v2571_v6 = vld [vmem:[%s3492_s1 + $0x150] sm:$0xff]   ;;  %v2816_v9 = vrot.slane %v2771_v50, 1 }
  0x11   :  { %2154 = vmatpush3.bf16.msra.mxu1 %v2544_v15  ;;  %2055 = vmatprep.subr.bf16.mxu0 %v2545_v16  ;;  %v151_v51 = vrot.slane %v149_v43, 1  ;;  %v147_v54 = vor.u32 %v146_v48, %v142_v41  ;;  %v2574_v7 = vld [vmem:[%s3492_s1 + $0x1c0] sm:$0xff]   ;;  %v2572_v10 = vld [vmem:[%s3492_s1 + $0x110] sm:$0xff]   ;;  %v169_v12 = vshrl.u32 %v2771_v50, 16  ;;  %v173_v13 = vshll.u32 %v2802_v3, 16  ;;  %v2577_v14 = vld [vmem:[%s3492_s1 + $0x158] sm:$0xff]  }
  0x12   :  { %2155 = vmatprep.subr.bf16.mxu1 %v2546_v17  ;;  %v277_v52 = vsel %vm274_vm1, %v275_v44, %v276_v45  ;;  %v157_v57 = vshll.u32 %v2775_v53, 16  ;;  %v2783_v58 = vrot.slane %v2775_v53, 1  ;;  %v161_v61 = vshrl.u32 %v2775_v53, 16  ;;  %v2575_v8 = vld [vmem:[%s3492_s1 + $0x180] sm:$0xff]   ;;  %v2832_v15 = vld [vmem:[%s3493_s0 + $0x28] sm:$0xff]   ;;  %v2591_v39 = vld [vmem:[%s3492_s1 + $0x1d8] sm:$0xff]  }
  0x13   :  { %v155_v56 = vor.u32 %v153_v47, %v151_v51  ;;  %v152_v60 = vsel %vm140_vm0, %v147_v54, %v151_v51  ;;  %v167_v5 = vrot.slane %v165_v62, 1  ;;  %v2579_v16 = vld [vmem:[%s3492_s1 + $0x1c8] sm:$0xff]   ;;  %v284_v37 = vrot.slane %v2832_v15, 1  ;;  %v2592_v42 = vld [vmem:[%s3492_s1 + $0x198] sm:$0xff]   ;;  %v2594_v43 = vld [vmem:[%s3492_s1 + $0x170] sm:$0xff]  }
  0x14   :  { %2056 = vmatpush3.bf16.msra.mxu0 %v2547_v18  ;;  %998 = vmatprep.mubr.bf16.mxu0 %v152_v60  ;;  %v159_v63 = vrot.slane %v157_v57, 1  ;;  %v279_v2 = vsel %vm274_vm1, %v276_v45, %v2783_v58  ;;  %v2841_v17 = vsel %vm274_vm1, %v2783_v58, %v2816_v9  ;;  %v2578_v18 = vld [vmem:[%s3492_s1 + $0x118] sm:$0xff]   ;;  %v2588_v34 = vld [vmem:[%s3492_s1 + $0x168] sm:$0xff]   ;;  %v2595_v48 = vld [vmem:[%s3492_s1 + $0x130] sm:$0xff]   ;;  %vm1931_vm5 = vsmask.f32 256 }
  0x15   :  { %2156 = vmatpush3.bf16.msra.mxu1 %v2548_v19  ;;  %2057 = vmatprep.subr.bf16.mxu0 %v2549_v20  ;;  %v171_v19 = vor.u32 %v169_v12, %v167_v5  ;;  %v175_v20 = vrot.slane %v173_v13, 1  ;;  %v2911_v45 = vld [vmem:[%s3493_s0 + $0x38] sm:$0xff]   ;;  %v2597_v51 = vld [vmem:[%s3492_s1 + $0x1e0] sm:$0xff]   ;;  %v2969_v13 = vld [vmem:[%s3493_s0 + $0x48] sm:$0xff]  }
  0x16   :  { %2157 = vmatprep.subr.bf16.mxu1 %v2550_v21  ;;  %v2795_v1 = vsel %vm140_vm0, %v155_v56, %v159_v63  ;;  %v163_v4 = vor.u32 %v161_v61, %v159_v63  ;;  %v2581_v21 = vld [vmem:[%s3492_s1 + $0x188] sm:$0xff]   ;;  %v197_v57 = vshll.u32 %v2911_v45, 16  ;;  %v2936_v60 = vld [vmem:[%s3493_s0 + $0x40] sm:$0xff]   ;;  %v2601_v61 = vld [vmem:[%s3492_s1 + $0x138] sm:$0xff]  }
  0x17   :  { %v2602_v63 = vld [vmem:[%s3492_s1 + $0x1e8] sm:$0xff]   ;;  %vm1806_vm10 = vmand %vm1804_vm8, %vm1805_vm9 }
  0x18   :  { %2058 = vmatpush3.bf16.msra.mxu0 %v2551_v22  ;;  %v2822_v11 = vsel %vm140_vm0, %v163_v4, %v167_v5  ;;  %v2583_v22 = vld [vmem:[%s3492_s1 + $0x160] sm:$0xff]   ;;  %v2603_v4 = vld [vmem:[%s3492_s1 + $0x1a8] sm:$0xff]   ;;  %v288_v5 = vrot.slane %v2911_v45, 1  ;;  %vm1840_vm13 = vmand %vm1838_vm11, %vm1839_vm12 }
  0x19   :  { %2158 = vmatpush3.bf16.msra.mxu1 %v2552_v23  ;;  %2059 = vmatprep.subr.bf16.mxu0 %v2553_v24  ;;  %v282_v23 = vrot.slane %v2802_v3, 1  ;;  %v177_v24 = vshrl.u32 %v2802_v3, 16 }
  0x1a   :  { %2159 = vmatprep.subr.bf16.mxu1 %v2554_v25  ;;  %v181_v25 = vshll.u32 %v2832_v15, 16 }
  0x1b   :  { %v179_v32 = vor.u32 %v177_v24, %v175_v20  ;;  %v2906_v44 = vsel %vm274_vm1, %v282_v23, %v284_v37 }
  0x1c   :  { %2060 = vmatpush3.bf16.msra.mxu0 %v2555_v26  ;;  %v2584_v26 = vld [vmem:[%s3492_s1 + $0x120] sm:$0xff]   ;;  %v183_v33 = vrot.slane %v181_v25, 1  ;;  %v290_v25 = vrot.slane %v2936_v60, 1 }
  0x1d   :  { %2160 = vmatpush3.bf16.msra.mxu1 %v2556_v27  ;;  %2061 = vmatprep.subr.bf16.mxu0 %v2557_v28  ;;  %v2861_v27 = vsel %vm140_vm0, %v171_v19, %v175_v20  ;;  %v2585_v28 = vld [vmem:[%s3492_s1 + $0x1d0] sm:$0xff]  }
  0x1e   :  { %2161 = vmatprep.subr.bf16.mxu1 %v2558_v29  ;;  %v2586_v29 = vld [vmem:[%s3492_s1 + $0x190] sm:$0xff]  }
  0x20   :  { %2062 = vmatpush3.bf16.msra.mxu0 %v2559_v30  ;;  %v2873_v30 = vsel %vm274_vm1, %v2816_v9, %v282_v23 }
  0x21   :  { %2162 = vmatpush3.bf16.msra.mxu1 %v2560_v31  ;;  %2247 = vmatprep.subr.bf16.mxu0 %v2564_v40  ;;  %v2878_v31 = vld [vmem:[%s3493_s0 + $0x30] sm:$0xff]   ;;  %v2894_v40 = vsel %vm140_vm0, %v179_v32, %v183_v33  ;;  %v3008_v32 = vsel %vm274_vm1, %v288_v5, %v290_v25 }
  0x22   :  { %2347 = vmatprep.subr.bf16.mxu1 %v2574_v7  ;;  %v189_v41 = vshll.u32 %v2878_v31, 16  ;;  %v193_v54 = vshrl.u32 %v2878_v31, 16  ;;  %v205_v7 = vshll.u32 %v2936_v60, 16 }
  0x23   :  { %999 = vmatmul.mubr.bf16.vlgmr.msra.gmra.mrb[0].mxu0 %v1940_v36  ;;  %v2590_v36 = vld [vmem:[%s3492_s1 + $0x128] sm:$0xff]  }
  0x24   :  { %1144 = vmatmul.mubr.bf16.vlgmr.msra.gmra.mrb[0].mxu1 %v277_v52  ;;  %2248 = vmatpush3.bf16.msra.mxu0 %v2565_v55  ;;  %v191_v47 = vrot.slane %v189_v41, 1  ;;  %v286_v52 = vrot.slane %v2878_v31, 1  ;;  %v2598_v55 = vld [vmem:[%s3492_s1 + $0x1a0] sm:$0xff]   ;;  %v207_v23 = vrot.slane %v205_v7, 1  ;;  %v3067_v7 = vld [vmem:[%s3493_s0 + $0x68] sm:$0xff]  }
  0x25   :  { %1151 = vmatprep.mubr.bf16.mxu1 %v2775_v53  ;;  %1006 = vmatprep.mubr.bf16.mxu0 %v2795_v1 }
  0x26   :  { %2249 = vmatprep.subr.bf16.mxu0 %v2567_v59  ;;  %2348 = vmatpush3.bf16.msra.mxu1 %v2575_v8  ;;  %v2600_v59 = vld [vmem:[%s3492_s1 + $0x178] sm:$0xff]   ;;  %v2944_v62 = vsel %vm274_vm1, %v284_v37, %v286_v52  ;;  %v2606_v8 = vld [vmem:[%s3492_s1 + $0x1f0] sm:$0xff]   ;;  %v2983_v19 = vsel %vm274_vm1, %v286_v52, %v288_v5 }
  0x27   :  { %2349 = vmatprep.subr.bf16.mxu1 %v2579_v16  ;;  %v2609_v16 = vld [vmem:[%s3492_s1 + $0x1b8] sm:$0xff]  }
  0x28   :  { %2250 = vmatpush3.bf16.msra.mxu0 %v2569_v0  ;;  %v195_v0 = vor.u32 %v193_v54, %v191_v47 }
  0x29   :  { %2251 = vmatprep.subr.bf16.mxu0 %v2571_v6  ;;  %v201_v6 = vshrl.u32 %v2911_v45, 16 }
  0x2a   :  { %2350 = vmatpush3.bf16.msra.mxu1 %v2581_v21  ;;  %v2989_v21 = vld [vmem:[%s3492_s1 + $0x200] sm:$0xff]  }
  0x2b   :  { %1007 = vmatmul.mubr.bf16.gmra.mrb[4].mxu0 %v1941_v38  ;;  %2351 = vmatprep.subr.bf16.mxu1 %v2585_v28  ;;  %v185_v38 = vshrl.u32 %v2832_v15, 16 }
  0x2c   :  { %1152 = vmatmul.mubr.bf16.gmra.mrb[4].mxu1 %v279_v2  ;;  %1014 = vmatprep.mubr.bf16.mxu0 %v2822_v11  ;;  %v199_v2 = vrot.slane %v197_v57, 1 }
  0x2d   :  { %1159 = vmatprep.mubr.bf16.mxu1 %v2771_v50  ;;  %2252 = vmatpush3.bf16.msra.mxu0 %v2572_v10  ;;  %v187_v46 = vor.u32 %v185_v38, %v183_v33  ;;  %v2607_v10 = vld [vmem:[%s3492_s1 + $0x1b0] sm:$0xff]   ;;  %v217_v38 = vshrl.u32 %v2969_v13, 16 }
  0x2e   :  { %2253 = vmatprep.subr.bf16.mxu0 %v2577_v14  ;;  %2352 = vmatpush3.bf16.msra.mxu1 %v2586_v29  ;;  %v2964_v12 = vsel %vm140_vm0, %v195_v0, %v199_v2  ;;  %v2608_v14 = vld [vmem:[%s3492_s1 + $0x1f8] sm:$0xff]  }
  0x2f   :  { %2353 = vmatprep.subr.bf16.mxu1 %v2591_v39  ;;  %v2927_v56 = vsel %vm140_vm0, %v187_v46, %v191_v47  ;;  %v3031_v46 = vld [vmem:[%s3493_s0 + $0x58] sm:$0xff]  }
  0x30   :  { %v229_v52 = vshll.u32 %v3031_v46, 16  ;;  %v233_v0 = vshrl.u32 %v3031_v46, 16 }
  0x31   :  { %2254 = vmatpush3.bf16.msra.mxu0 %v2578_v18  ;;  %v48_v18 = vld [vmem:[%s3493_s0 + $0x8] sm:$0xe] }
  0x32   :  { %2255 = vmatprep.subr.bf16.mxu0 %v2583_v22  ;;  %2354 = vmatpush3.bf16.msra.mxu1 %v2592_v42  ;;  %v1958_v20 = vcombine.low %v48_v18, %v2751_v35  ;;  %v203_v22 = vor.u32 %v201_v6, %v199_v2  ;;  %v213_v35 = vshll.u32 %v2969_v13, 16  ;;  %v231_v57 = vrot.slane %v229_v52, 1 }
  0x33   :  { %1015 = vmatmul.mubr.bf16.gmra.mrb[8].mxu0 %v2775_v53  ;;  %2355 = vmatprep.subr.bf16.mxu1 %v2597_v51 }
  0x34   :  { %1160 = vmatmul.mubr.bf16.gmra.mrb[8].mxu1 %v2841_v17  ;;  %1022 = vmatprep.mubr.bf16.mxu0 %v2861_v27  ;;  %v345_v24 = vrot.slane %v1958_v20, 1  ;;  %v3002_v29 = vsel %vm140_vm0, %v203_v22, %v207_v23  ;;  %v235_v5 = vor.u32 %v233_v0, %v231_v57 }
  0x35   :  { %1167 = vmatprep.mubr.bf16.mxu1 %v2802_v3  ;;  %2256 = vmatpush3.bf16.msra.mxu0 %v2584_v26  ;;  %v209_v26 = vshrl.u32 %v2936_v60, 16 }
  0x36   :  { %2257 = vmatprep.subr.bf16.mxu0 %v2588_v34  ;;  %2356 = vmatpush3.bf16.msra.mxu1 %v2598_v55  ;;  %v2999_v28 = vsel %vm274_vm1, %v345_v24, %v2783_v58  ;;  %v215_v34 = vrot.slane %v213_v35, 1  ;;  %v292_v58 = vrot.slane %v2969_v13, 1  ;;  %v3088_v24 = vrot.slane %v3067_v7, 1 }
  0x37   :  { %2357 = vmatprep.subr.bf16.mxu1 %v2602_v63  ;;  %v211_v33 = vor.u32 %v209_v26, %v207_v23  ;;  %v2604_v23 = vld [vmem:[%s3493_s0 + $0x70] ss:$0 sps:$4 sm:$0x11]   ;;  %v249_v26 = vshrl.u32 %v3067_v7, 16 }
  0x38   :  { %v3026_v41 = vsel %vm274_vm1, %v290_v25, %v292_v58  ;;  %v219_v42 = vor.u32 %v217_v38, %v215_v34  ;;  %v253_v35 = vshll.u32 %v2604_v23, 16 }
  0x39   :  { %2258 = vmatpush3.bf16.msra.mxu0 %v2590_v36  ;;  %v3013_v36 = vld [vmem:[%s3493_s0 + $0x50] sm:$0xff]   ;;  %v3019_v37 = vsel %vm140_vm0, %v211_v33, %v215_v34 }
  0x3a   :  { %2259 = vmatprep.subr.bf16.mxu0 %v2594_v43  ;;  %2358 = vmatpush3.bf16.msra.mxu1 %v2603_v4  ;;  %v221_v39 = vshll.u32 %v3013_v36, 16  ;;  %v294_v47 = vrot.slane %v3013_v36, 1  ;;  %v225_v51 = vshrl.u32 %v3013_v36, 16  ;;  %v3103_v34 = vld [vmem:[%s3493_s0 + $0x70] sm:$0xff]   ;;  %v255_v38 = vrot.slane %v253_v35, 1 }
  0x3b   :  { %1023 = vmatmul.mubr.bf16.gmra.mrb[12].mxu0 %v2771_v50  ;;  %2359 = vmatprep.subr.bf16.mxu1 %v2606_v8 }
  0x3c   :  { %1168 = vmatmul.mubr.bf16.gmra.mrb[12].mxu1 %v2873_v30  ;;  %1030 = vmatprep.mubr.bf16.mxu0 %v2894_v40  ;;  %v223_v43 = vrot.slane %v221_v39, 1  ;;  %v3044_v54 = vsel %vm274_vm1, %v292_v58, %v294_v47  ;;  %v302_v39 = vrot.slane %v2604_v23, 1 }
  0x3d   :  { %1175 = vmatprep.mubr.bf16.mxu1 %v2832_v15  ;;  %2260 = vmatpush3.bf16.msra.mxu0 %v2595_v48 }
  0x3e   :  { %2261 = vmatprep.subr.bf16.mxu0 %v2600_v59  ;;  %2360 = vmatpush3.bf16.msra.mxu1 %v2607_v10  ;;  %v3037_v48 = vsel %vm140_vm0, %v219_v42, %v223_v43  ;;  %v227_v55 = vor.u32 %v225_v51, %v223_v43  ;;  %v3049_v59 = vld [vmem:[%s3493_s0 + $0x60] sm:$0xff]   ;;  %v303_v43 = vsel %vm274_vm1, %v3088_v24, %v302_v39  ;;  %v2613_v51 = vld [vmem:[%s3492_s1 + $0x210] sm:$0xff]  }
  0x3f   :  { %2361 = vmatprep.subr.bf16.mxu1 %v2608_v14  ;;  %v237_v2 = vshll.u32 %v3049_v59, 16  ;;  %v298_v8 = vrot.slane %v3049_v59, 1  ;;  %v241_v14 = vshrl.u32 %v3049_v59, 16 }
  0x40   :  { %v3055_v63 = vsel %vm140_vm0, %v227_v55, %v231_v57  ;;  %v52_v57 = vld [vmem:[%s3493_s0 + $0x10] sm:$0xe] }
  0x41   :  { %2262 = vmatpush3.bf16.msra.mxu0 %v2601_v61  ;;  %v296_v61 = vrot.slane %v3031_v46, 1  ;;  %v239_v6 = vrot.slane %v237_v2, 1  ;;  %v3098_v33 = vsel %vm274_vm1, %v298_v8, %v3088_v24 }
  0x42   :  { %2469 = vmatprep.subr.bf16.mxu0 %v2989_v21  ;;  %2362 = vmatpush3.bf16.msra.mxu1 %v2609_v16  ;;  %v245_v16 = vshll.u32 %v3067_v7, 16 }
  0x43   :  { %1031 = vmatmul.mubr.bf16.gmra.mrb[16].mxu0 %v2802_v3  ;;  %2513 = vmatprep.subr.bf16.mxu1 %v2989_v21  ;;  %v3062_v4 = vsel %vm274_vm1, %v294_v47, %v296_v61  ;;  %v3073_v10 = vsel %vm140_vm0, %v235_v5, %v239_v6  ;;  %v3080_v18 = vsel %vm274_vm1, %v296_v61, %v298_v8  ;;  %v2612_v47 = vld [vmem:[%s3492_s1 + $0x208] sm:$0xff]  }
  0x44   :  { %1176 = vmatmul.mubr.bf16.gmra.mrb[16].mxu1 %v2906_v44  ;;  %1038 = vmatprep.mubr.bf16.mxu0 %v2927_v56  ;;  %v243_v20 = vor.u32 %v241_v14, %v239_v6  ;;  %v247_v22 = vrot.slane %v245_v16, 1 }
  0x45   :  { %1183 = vmatprep.mubr.bf16.mxu1 %v2878_v31 }
  0x46   :  { %v3091_v25 = vsel %vm140_vm0, %v243_v20, %v247_v22  ;;  %v3105_v58 = vor.u32 %v249_v26, %v247_v22 }
  0x48   :  { %v256_v42 = vsel %vm140_vm0, %v3105_v58, %v255_v38 }
  0x4b   :  { %1039 = vmatmul.mubr.bf16.gmra.mrb[20].mxu0 %v2832_v15 }
  0x4c   :  { %1184 = vmatmul.mubr.bf16.gmra.mrb[20].mxu1 %v2944_v62  ;;  %1046 = vmatprep.mubr.bf16.mxu0 %v2964_v12 }
  0x4d   :  { %1191 = vmatprep.mubr.bf16.mxu1 %v2911_v45 }
  0x53   :  { %1047 = vmatmul.mubr.bf16.gmra.mrb[24].mxu0 %v2878_v31 }
  0x54   :  { %1192 = vmatmul.mubr.bf16.gmra.mrb[24].mxu1 %v2983_v19  ;;  %1054 = vmatprep.mubr.bf16.mxu0 %v3002_v29 }
  0x55   :  { %1199 = vmatprep.mubr.bf16.mxu1 %v2936_v60 }
  0x5b   :  { %1055 = vmatmul.mubr.bf16.gmra.mrb[28].mxu0 %v2911_v45 }
  0x5c   :  { %1200 = vmatmul.mubr.bf16.gmra.mrb[28].mxu1 %v3008_v32  ;;  %1062 = vmatprep.mubr.bf16.mxu0 %v3019_v37 }
  0x5d   :  { %1207 = vmatprep.mubr.bf16.mxu1 %v2969_v13 }
  0x63   :  { %1063 = vmatmul.mubr.bf16.gmra.mrb[32].mxu0 %v2936_v60 }
  0x64   :  { %1208 = vmatmul.mubr.bf16.gmra.mrb[32].mxu1 %v3026_v41  ;;  %1070 = vmatprep.mubr.bf16.mxu0 %v3037_v48 }
  0x65   :  { %1215 = vmatprep.mubr.bf16.mxu1 %v3013_v36 }
  0x6b   :  { %1071 = vmatmul.mubr.bf16.gmra.mrb[36].mxu0 %v2969_v13 }
  0x6c   :  { %1216 = vmatmul.mubr.bf16.gmra.mrb[36].mxu1 %v3044_v54  ;;  %1078 = vmatprep.mubr.bf16.mxu0 %v3055_v63 }
  0x6d   :  { %1223 = vmatprep.mubr.bf16.mxu1 %v3031_v46 }
  0x73   :  { %1079 = vmatmul.mubr.bf16.gmra.mrb[40].mxu0 %v3013_v36 }
  0x74   :  { %1224 = vmatmul.mubr.bf16.gmra.mrb[40].mxu1 %v3062_v4  ;;  %1086 = vmatprep.mubr.bf16.mxu0 %v3073_v10 }
  0x75   :  { %1231 = vmatprep.mubr.bf16.mxu1 %v3049_v59 }
  0x7b   :  { %1087 = vmatmul.mubr.bf16.gmra.mrb[44].mxu0 %v3031_v46 }
  0x7c   :  { %1232 = vmatmul.mubr.bf16.gmra.mrb[44].mxu1 %v3080_v18  ;;  %1094 = vmatprep.mubr.bf16.mxu0 %v3091_v25 }
  0x7d   :  { %1239 = vmatprep.mubr.bf16.mxu1 %v3067_v7 }
  0x83   :  { %1095 = vmatmul.mubr.bf16.gmra.mrb[48].mxu0 %v3049_v59 }
  0x84   :  { %1240 = vmatmul.mubr.bf16.gmra.mrb[48].mxu1 %v3098_v33  ;;  %1102 = vmatprep.mubr.bf16.mxu0 %v256_v42 }
  0x85   :  { %1247 = vmatprep.mubr.bf16.mxu1 %v3103_v34 }
  0x8b   :  { %1103 = vmatmul.mubr.bf16.gmra.mrb[52].mxu0 %v3067_v7 }
  0x8c   :  { %1248 = vmatmul.mubr.bf16.gmra.mrb[52].mxu1 %v303_v43  ;;  %1288 = vmatprep.mubr.bf16.mxu0 %v2999_v28 }
  0x8d   :  { %1433 = vmatprep.mubr.bf16.mxu1 %v2822_v11 }
  0x93   :  { %1289 = vmatmul.mubr.bf16.vlgmr.msra.gmra.mrb[56].mxu0 %v2795_v1  ;;  %v2615_v1 = vld [vmem:[%s3492_s1 + $0x220] sm:$0xff]  }
  0x94   :  { %1434 = vmatmul.mubr.bf16.vlgmr.msra.gmra.mrb[56].mxu1 %v2775_v53  ;;  %2470 = vmatpush3.bf16.msra.mxu0 %v2989_v21  ;;  %v2614_v53 = vld [vmem:[%s3492_s1 + $0x218] sm:$0xff]  }
  0x95   :  { %1441 = vmatprep.mubr.bf16.mxu1 %v2861_v27  ;;  %2521 = vmatpush3.bf16.msra.mxu1 %v2989_v21 }
  0x96   :  { %2514 = vmatprep.subr.bf16.mxu1 %v2612_v47  ;;  %1296 = vmatprep.mubr.bf16.mxu0 %v2841_v17 }
  0x97   :  { %2471 = vmatprep.subr.bf16.mxu0 %v2612_v47 }
  0x98   :  { %2472 = vmatpush3.bf16.msra.mxu0 %v2612_v47 }
  0x99   :  { %2522 = vmatpush3.bf16.msra.mxu1 %v2612_v47  ;;  %2473 = vmatprep.subr.bf16.mxu0 %v2613_v51 }
  0x9a   :  { %2515 = vmatprep.subr.bf16.mxu1 %v2613_v51 }
  0x9b   :  { %1297 = vmatmul.mubr.bf16.gmra.mrb[60].mxu0 %v2822_v11  ;;  %v2617_v11 = vld [vmem:[%s3492_s1 + $0x230] sm:$0xff]  }
  0x9c   :  { %1442 = vmatmul.mubr.bf16.gmra.mrb[60].mxu1 %v2771_v50  ;;  %1304 = vmatprep.mubr.bf16.mxu0 %v2873_v30  ;;  %v2616_v50 = vld [vmem:[%s3492_s1 + $0x228] sm:$0xff]  }
  0x9d   :  { %1449 = vmatprep.mubr.bf16.mxu1 %v2894_v40  ;;  %2523 = vmatpush3.bf16.msra.mxu1 %v2613_v51 }
  0x9e   :  { %2516 = vmatprep.subr.bf16.mxu1 %v2614_v53  ;;  %2474 = vmatpush3.bf16.msra.mxu0 %v2613_v51 }
  0x9f   :  { %2475 = vmatprep.subr.bf16.mxu0 %v2614_v53 }
  0xa1   :  { %2524 = vmatpush3.bf16.msra.mxu1 %v2614_v53 }
  0xa2   :  { %2517 = vmatprep.subr.bf16.mxu1 %v2615_v1  ;;  %2476 = vmatpush3.bf16.msra.mxu0 %v2614_v53 }
  0xa3   :  { %2477 = vmatprep.subr.bf16.mxu0 %v2615_v1  ;;  %1305 = vmatmul.mubr.bf16.gmra.mrb[64].mxu0 %v2861_v27  ;;  %v3182_v27 = vld [vmem:[%s3493_s0 + $0x78] sm:$0xff]  }
  0xa4   :  { %1450 = vmatmul.mubr.bf16.gmra.mrb[64].mxu1 %v2802_v3  ;;  %1312 = vmatprep.mubr.bf16.mxu0 %v2906_v44  ;;  %v2619_v3 = vld [vmem:[%s3492_s1 + $0x238] sm:$0xff]   ;;  %v368_v28 = vshrl.u32 %v3182_v27, 16 }
  0xa5   :  { %1457 = vmatprep.mubr.bf16.mxu1 %v2927_v56  ;;  %2525 = vmatpush3.bf16.msra.mxu1 %v2615_v1 }
  0xa6   :  { %2518 = vmatprep.subr.bf16.mxu1 %v2616_v50  ;;  %2478 = vmatpush3.bf16.msra.mxu0 %v2615_v1 }
  0xa7   :  { %2479 = vmatprep.subr.bf16.mxu0 %v2616_v50 }
  0xa9   :  { %2526 = vmatpush3.bf16.msra.mxu1 %v2616_v50 }
  0xaa   :  { %2519 = vmatprep.subr.bf16.mxu1 %v2617_v11  ;;  %2480 = vmatpush3.bf16.msra.mxu0 %v2616_v50  ;;  %v383_v50 = vrot.slane %v3182_v27, 1 }
  0xab   :  { %2481 = vmatprep.subr.bf16.mxu0 %v2617_v11  ;;  %1313 = vmatmul.mubr.bf16.gmra.mrb[68].mxu0 %v2894_v40  ;;  %v332_v40 = vshrl.u32 %v3103_v34, 16 }
  0xac   :  { %1458 = vmatmul.mubr.bf16.gmra.mrb[68].mxu1 %v2832_v15  ;;  %1320 = vmatprep.mubr.bf16.mxu0 %v2944_v62  ;;  %v328_v15 = vshll.u32 %v3103_v34, 16 }
  0xad   :  { %1465 = vmatprep.mubr.bf16.mxu1 %v2964_v12  ;;  %2527 = vmatpush3.bf16.msra.mxu1 %v2617_v11 }
  0xae   :  { %2520 = vmatprep.subr.bf16.mxu1 %v2619_v3  ;;  %2482 = vmatpush3.bf16.msra.mxu0 %v2617_v11  ;;  %v330_v17 = vrot.slane %v328_v15, 1 }
  0xaf   :  { %2483 = vmatprep.subr.bf16.mxu0 %v2619_v3 }
  0xb1   :  { %2528 = vmatpush3.bf16.msra.mxu1 %v2619_v3 }
  0xb2   :  { %2484 = vmatpush3.bf16.msra.mxu0 %v2619_v3 }
  0xb3   :  { %1321 = vmatmul.mubr.bf16.gmra.mrb[72].mxu0 %v2927_v56  ;;  %v334_v56 = vor.u32 %v332_v40, %v330_v17 }
  0xb4   :  { %1466 = vmatmul.mubr.bf16.gmra.mrb[72].mxu1 %v2878_v31  ;;  %1328 = vmatprep.mubr.bf16.mxu0 %v2983_v19  ;;  %v331_v31 = vsel %vm140_vm0, %v3105_v58, %v330_v17 }
  0xb5   :  { %1473 = vmatprep.mubr.bf16.mxu1 %v3002_v29 }
  0xbb   :  { %1329 = vmatmul.mubr.bf16.gmra.mrb[76].mxu0 %v2964_v12  ;;  %v3194_v12 = vld [vmem:[%s3493_s0 + $0x80] ss:$0 sps:$4 sm:$0x11]  }
  0xbc   :  { %1474 = vmatmul.mubr.bf16.gmra.mrb[76].mxu1 %v2911_v45  ;;  %1336 = vmatprep.mubr.bf16.mxu0 %v3008_v32  ;;  %v364_v45 = vshll.u32 %v3182_v27, 16 }
  0xbd   :  { %1481 = vmatprep.mubr.bf16.mxu1 %v3019_v37 }
  0xc3   :  { %1337 = vmatmul.mubr.bf16.gmra.mrb[80].mxu0 %v3002_v29  ;;  %v372_v29 = vshll.u32 %v3194_v12, 16 }
  0xc4   :  { %1482 = vmatmul.mubr.bf16.gmra.mrb[80].mxu1 %v2936_v60  ;;  %1344 = vmatprep.mubr.bf16.mxu0 %v3026_v41  ;;  %v366_v60 = vrot.slane %v364_v45, 1 }
  0xc5   :  { %1489 = vmatprep.mubr.bf16.mxu1 %v3037_v48 }
  0xc6   :  { %v367_v21 = vsel %vm140_vm0, %v334_v56, %v366_v60 }
  0xcb   :  { %1345 = vmatmul.mubr.bf16.gmra.mrb[84].mxu0 %v3019_v37  ;;  %v2620_v37 = vld [vmem:[%s3493_s0 + $0x78] ss:$0 sps:$4 sm:$0x11]  }
  0xcc   :  { %1490 = vmatmul.mubr.bf16.gmra.mrb[84].mxu1 %v2969_v13  ;;  %1352 = vmatprep.mubr.bf16.mxu0 %v3044_v54  ;;  %v3199_v13 = vrot.slane %v3103_v34, 1  ;;  %v349_v52 = vrot.slane %v2620_v37, 1 }
  0xcd   :  { %1497 = vmatprep.mubr.bf16.mxu1 %v3055_v63 }
  0xce   :  { %v350_v61 = vsel %vm274_vm1, %v3199_v13, %v349_v52 }
  0xd3   :  { %1353 = vmatmul.mubr.bf16.gmra.mrb[88].mxu0 %v3037_v48  ;;  %v374_v48 = vrot.slane %v372_v29, 1 }
  0xd4   :  { %1498 = vmatmul.mubr.bf16.gmra.mrb[88].mxu1 %v3013_v36  ;;  %1360 = vmatprep.mubr.bf16.mxu0 %v3062_v4  ;;  %v3208_v36 = vsel %vm274_vm1, %v3088_v24, %v3199_v13 }
  0xd5   :  { %1505 = vmatprep.mubr.bf16.mxu1 %v3073_v10 }
  0xdb   :  { %1361 = vmatmul.mubr.bf16.gmra.mrb[92].mxu0 %v3055_v63  ;;  %v1961_v63 = vcombine.low %v52_v57, %v2766_v49 }
  0xdc   :  { %1506 = vmatmul.mubr.bf16.gmra.mrb[92].mxu1 %v3031_v46  ;;  %1368 = vmatprep.mubr.bf16.mxu0 %v3080_v18  ;;  %v370_v46 = vor.u32 %v368_v28, %v366_v60 }
  0xdd   :  { %1513 = vmatprep.mubr.bf16.mxu1 %v3091_v25 }
  0xde   :  { %v375_v55 = vsel %vm140_vm0, %v370_v46, %v374_v48 }
  0xe3   :  { %1369 = vmatmul.mubr.bf16.gmra.mrb[96].mxu0 %v3073_v10  ;;  %v381_v10 = vrot.slane %v1961_v63, 1 }
  0xe4   :  { %1514 = vmatmul.mubr.bf16.gmra.mrb[96].mxu1 %v3049_v59  ;;  %1376 = vmatprep.mubr.bf16.mxu0 %v3098_v33  ;;  %v336_v59 = vshll.u32 %v2620_v37, 16 }
  0xe5   :  { %1521 = vmatprep.mubr.bf16.mxu1 %v331_v31 }
  0xeb   :  { %1377 = vmatmul.mubr.bf16.gmra.mrb[100].mxu0 %v3091_v25  ;;  %v382_v25 = vsel %vm274_vm1, %v381_v10, %v2816_v9 }
  0xec   :  { %1522 = vmatmul.mubr.bf16.gmra.mrb[100].mxu1 %v3067_v7  ;;  %1384 = vmatprep.mubr.bf16.mxu0 %v3208_v36  ;;  %v338_v7 = vrot.slane %v336_v59, 1 }
  0xed   :  { %1529 = vmatprep.mubr.bf16.mxu1 %v367_v21 }
  0xee   :  { %v339_v24 = vsel %vm140_vm0, %v334_v56, %v338_v7  ;;  %vm1869_vm0 = vmand %vm1867_vm14, %vm1868_vm15 }
  0xf3   :  { %1385 = vmatmul.mubr.bf16.gmra.mrb[104].mxu0 %v331_v31 }
  0xf4   :  { %1530 = vmatmul.mubr.bf16.gmra.mrb[104].mxu1 %v3103_v34  ;;  %1392 = vmatprep.mubr.bf16.mxu0 %v350_v61 }
  0xf5   :  { %1537 = vmatprep.mubr.bf16.mxu1 %v375_v55 }
  0xf6   :  { %v2063_v14 = vpop.f32.mrb[0].mxu0 }
  0xf7   :  { %v2163_v0 = vpop.f32.mrb[0].mxu1  ;;  %v2064_v20 = vpop.f32.mrb[1].mxu0 }
  0xf8   :  { %v2164_v2 = vpop.f32.mrb[1].mxu1  ;;  %v2065_v22 = vadd.f32 %v2064_v20, %v2063_v14  ;;  %v2066_v23 = vpop.f32.mrb[2].mxu0 }
  0xf9   :  { %v2165_v5 = vadd.f32 %v2164_v2, %v2163_v0  ;;  %v2166_v6 = vpop.f32.mrb[2].mxu1  ;;  %v2067_v49 = vpop.f32.mrb[3].mxu0 }
  0xfa   :  { %v2167_v8 = vpop.f32.mrb[3].mxu1  ;;  %v2068_v35 = vadd.f32 %v2067_v49, %v2066_v23 }
  0xfb   :  { %v2168_v16 = vadd.f32 %v2167_v8, %v2166_v6  ;;  %v3228_v26 = vadd.f32 %v2165_v5, %v2065_v22  ;;  %1393 = vmatmul.mubr.bf16.gmra.mrb[108].mxu0 %v339_v24 }
  0xfc   :  { %1538 = vmatmul.mubr.bf16.gmra.mrb[108].mxu1 %v3182_v27  ;;  %2485 = vmatprep.mubr.bf16.mxu0 %v382_v25 }
  0xfd   :  { %2501 = vmatprep.mubr.bf16.mxu1 %v3062_v4  ;;  %v3230_v38 = vadd.f32 %v2168_v16, %v2068_v35 }
  0xfe   :  { %v2069_v47 = vpop.f32.mrb[4].mxu0 }
  0xff   :  { %v2169_v34 = vpop.f32.mrb[4].mxu1  ;;  %v2070_v53 = vpop.f32.mrb[5].mxu0 }
 0x100   :  { %v2170_v58 = vpop.f32.mrb[5].mxu1  ;;  %v2071_v4 = vadd.f32 %v2070_v53, %v2069_v47  ;;  %v2072_v1 = vpop.f32.mrb[6].mxu0 }
 0x101   :  { %v2171_v39 = vadd.f32 %v2170_v58, %v2169_v34  ;;  %v2172_v42 = vpop.f32.mrb[6].mxu1  ;;  %v2073_v9 = vpop.f32.mrb[7].mxu0 }
 0x102   :  { %v2173_v43 = vpop.f32.mrb[7].mxu1  ;;  %v2074_v3 = vadd.f32 %v2073_v9, %v2072_v1 }
 0x103   :  { %v2174_v51 = vadd.f32 %v2173_v43, %v2172_v42  ;;  %v3235_v11 = vadd.f32 %v2171_v39, %v2071_v4  ;;  %2486 = vmatmul.mubr.bf16.vlgmr.msra.gmra.mrb[112].mxu0 %v2873_v30  ;;  %v385_v30 = vrot.slane %v3194_v12, 1 }
 0x104   :  { %2502 = vmatmul.mubr.bf16.vlgmr.msra.gmra.mrb[112].mxu1 %v3080_v18  ;;  %2489 = vmatprep.mubr.bf16.mxu0 %v2906_v44 }
 0x105   :  { %2505 = vmatprep.mubr.bf16.mxu1 %v3098_v33  ;;  %v3238_v31 = vadd.f32 %v2174_v51, %v2074_v3  ;;  %v384_v33 = vsel %vm274_vm1, %v3199_v13, %v383_v50 }
 0x106   :  { %v2075_v56 = vpop.f32.mrb[8].mxu0 }
 0x107   :  { %v2175_v15 = vpop.f32.mrb[8].mxu1  ;;  %v2076_v27 = vpop.f32.mrb[9].mxu0 }
 0x108   :  { %v2176_v17 = vpop.f32.mrb[9].mxu1  ;;  %v2077_v21 = vadd.f32 %v2076_v27, %v2075_v56  ;;  %v2078_v28 = vpop.f32.mrb[10].mxu0 }
 0x109   :  { %v2177_v40 = vadd.f32 %v2176_v17, %v2175_v15  ;;  %v2178_v45 = vpop.f32.mrb[10].mxu1  ;;  %v2079_v29 = vpop.f32.mrb[11].mxu0 }
 0x10a   :  { %v2179_v18 = vpop.f32.mrb[11].mxu1  ;;  %v2080_v46 = vadd.f32 %v2079_v29, %v2078_v28 }
 0x10b   :  { %v2180_v60 = vadd.f32 %v2179_v18, %v2178_v45  ;;  %v3245_v37 = vadd.f32 %v2177_v40, %v2077_v21  ;;  %2490 = vmatmul.mubr.bf16.gmra.mrb[116].mxu0 %v2944_v62 }
 0x10c   :  { %2506 = vmatmul.mubr.bf16.gmra.mrb[116].mxu1 %v3208_v36  ;;  %2493 = vmatprep.mubr.bf16.mxu0 %v2983_v19  ;;  %v386_v36 = vsel %vm274_vm1, %v383_v50, %v385_v30  ;;  %vm1901_vm1 = vcmask 1043457  }
 0x10d   :  { %2509 = vmatprep.mubr.bf16.mxu1 %v384_v33  ;;  %v3248_v52 = vadd.f32 %v2180_v60, %v2080_v46  ;;  %vm1903_vm3 = vmand %vm1901_vm1, %vm1902_vm2 }
 0x10e   :  { %v2081_v59 = vpop.f32.mrb[12].mxu0 }
 0x10f   :  { %v2181_v48 = vpop.f32.mrb[12].mxu1  ;;  %v2082_v12 = vpop.f32.mrb[13].mxu0 }
 0x110   :  { %v2182_v44 = vpop.f32.mrb[13].mxu1  ;;  %v2083_v63 = vadd.f32 %v2082_v12, %v2081_v59  ;;  %v2084_v0 = vpop.f32.mrb[14].mxu0 }
 0x111   :  { %v2183_v13 = vadd.f32 %v2182_v44, %v2181_v48  ;;  %v2184_v55 = vpop.f32.mrb[14].mxu1  ;;  %v2085_v2 = vpop.f32.mrb[15].mxu0 }
 0x112   :  { %v2185_v57 = vpop.f32.mrb[15].mxu1  ;;  %v2086_v62 = vadd.f32 %v2085_v2, %v2084_v0 }
 0x113   :  { %v2186_v61 = vadd.f32 %v2185_v57, %v2184_v55  ;;  %v3252_v5 = vadd.f32 %v2183_v13, %v2083_v63  ;;  %2494 = vmatmul.mubr.bf16.gmra.mrb[120].mxu0 %v3008_v32 }
 0x114   :  { %2510 = vmatmul.mubr.bf16.gmra.mrb[120].mxu1 %v386_v36  ;;  %2497 = vmatprep.mubr.bf16.mxu0 %v3026_v41 }
 0x115   :  { %v3255_v8 = vadd.f32 %v2186_v61, %v2086_v62 }
 0x116   :  { %v2087_v16 = vpop.f32.mrb[16].mxu0 }
 0x117   :  { %v2187_v6 = vpop.f32.mrb[16].mxu1  ;;  %v2088_v22 = vpop.f32.mrb[17].mxu0 }
 0x118   :  { %v2188_v7 = vpop.f32.mrb[17].mxu1  ;;  %v2089_v23 = vadd.f32 %v2088_v22, %v2087_v16  ;;  %v2090_v24 = vpop.f32.mrb[18].mxu0 }
 0x119   :  { %v2189_v19 = vadd.f32 %v2188_v7, %v2187_v6  ;;  %v2190_v10 = vpop.f32.mrb[18].mxu1  ;;  %v2091_v49 = vpop.f32.mrb[19].mxu0 }
 0x11a   :  { %v2191_v14 = vpop.f32.mrb[19].mxu1  ;;  %v2092_v35 = vadd.f32 %v2091_v49, %v2090_v24 }
 0x11b   :  { %v2192_v20 = vadd.f32 %v2191_v14, %v2190_v10  ;;  %v3258_v25 = vadd.f32 %v2189_v19, %v2089_v23  ;;  %2498 = vmatmul.mubr.bf16.gmra.mrb[124].mxu0 %v3044_v54 }
 0x11d   :  { %v3261_v58 = vadd.f32 %v2192_v20, %v2092_v35 }
 0x11e   :  { %v2093_v41 = vpop.f32.mrb[20].mxu0 }
 0x11f   :  { %v2193_v34 = vpop.f32.mrb[20].mxu1  ;;  %v2094_v51 = vpop.f32.mrb[21].mxu0 }
 0x120   :  { %v2194_v32 = vpop.f32.mrb[21].mxu1  ;;  %v2095_v53 = vadd.f32 %v2094_v51, %v2093_v41  ;;  %v2096_v4 = vpop.f32.mrb[22].mxu0 }
 0x121   :  { %v2195_v39 = vadd.f32 %v2194_v32, %v2193_v34  ;;  %v2196_v42 = vpop.f32.mrb[22].mxu1  ;;  %v2097_v1 = vpop.f32.mrb[23].mxu0 }
 0x122   :  { %v2197_v43 = vpop.f32.mrb[23].mxu1  ;;  %v2098_v50 = vadd.f32 %v2097_v1, %v2096_v4 }
 0x123   :  { %v2198_v47 = vadd.f32 %v2197_v43, %v2196_v42  ;;  %v3263_v9 = vadd.f32 %v2195_v39, %v2095_v53 }
 0x125   :  { %v3265_v17 = vadd.f32 %v2198_v47, %v2098_v50 }
 0x126   :  { %v2099_v18 = vpop.f32.mrb[24].mxu0 }
 0x127   :  { %v2199_v3 = vpop.f32.mrb[24].mxu1  ;;  %v2100_v56 = vpop.f32.mrb[25].mxu0 }
 0x128   :  { %v2200_v15 = vpop.f32.mrb[25].mxu1  ;;  %v2101_v60 = vadd.f32 %v2100_v56, %v2099_v18  ;;  %v2102_v27 = vpop.f32.mrb[26].mxu0 }
 0x129   :  { %v2201_v54 = vadd.f32 %v2200_v15, %v2199_v3  ;;  %v2202_v40 = vpop.f32.mrb[26].mxu1  ;;  %v2103_v21 = vpop.f32.mrb[27].mxu0 }
 0x12a   :  { %v2203_v45 = vpop.f32.mrb[27].mxu1  ;;  %v2104_v30 = vadd.f32 %v2103_v21, %v2102_v27 }
 0x12b   :  { %v2204_v33 = vadd.f32 %v2203_v45, %v2202_v40  ;;  %v3267_v28 = vadd.f32 %v2201_v54, %v2101_v60 }
 0x12d   :  { %v3269_v48 = vadd.f32 %v2204_v33, %v2104_v30 }
 0x12e   :  { %v2105_v36 = vpop.f32.mrb[28].mxu0 }
 0x12f   :  { %v2205_v29 = vpop.f32.mrb[28].mxu1  ;;  %v2106_v59 = vpop.f32.mrb[29].mxu0 }
 0x130   :  { %v2206_v46 = vpop.f32.mrb[29].mxu1  ;;  %v2107_v61 = vadd.f32 %v2106_v59, %v2105_v36  ;;  %v2108_v12 = vpop.f32.mrb[30].mxu0 }
 0x131   :  { %v2207_v44 = vadd.f32 %v2206_v46, %v2205_v29  ;;  %v2208_v13 = vpop.f32.mrb[30].mxu1  ;;  %v2109_v63 = vpop.f32.mrb[31].mxu0 }
 0x132   :  { %v2209_v55 = vpop.f32.mrb[31].mxu1  ;;  %v2110_v2 = vadd.f32 %v2109_v63, %v2108_v12 }
 0x133   :  { %v2210_v57 = vadd.f32 %v2209_v55, %v2208_v13  ;;  %v3271_v0 = vadd.f32 %v2207_v44, %v2107_v61 }
 0x135   :  { %v3273_v7 = vadd.f32 %v2210_v57, %v2110_v2 }
 0x136   :  { %v2111_v16 = vpop.f32.mrb[32].mxu0 }
 0x137   :  { %v2211_v62 = vpop.f32.mrb[32].mxu1  ;;  %v2112_v22 = vpop.f32.mrb[33].mxu0 }
 0x138   :  { %v2212_v6 = vpop.f32.mrb[33].mxu1  ;;  %v2113_v23 = vadd.f32 %v2112_v22, %v2111_v16  ;;  %v2114_v24 = vpop.f32.mrb[34].mxu0 }
 0x139   :  { %v2213_v19 = vadd.f32 %v2212_v6, %v2211_v62  ;;  %v2214_v10 = vpop.f32.mrb[34].mxu1  ;;  %v2115_v49 = vpop.f32.mrb[35].mxu0 }
 0x13a   :  { %v2215_v14 = vpop.f32.mrb[35].mxu1  ;;  %v2116_v34 = vadd.f32 %v2115_v49, %v2114_v24 }
 0x13b   :  { %v2216_v20 = vadd.f32 %v2215_v14, %v2214_v10  ;;  %v3275_v35 = vadd.f32 %v2213_v19, %v2113_v23 }
 0x13d   :  { %v3277_v42 = vadd.f32 %v2216_v20, %v2116_v34 }
 0x13e   :  { %v2117_v51 = vpop.f32.mrb[36].mxu0 }
 0x13f   :  { %v2217_v32 = vpop.f32.mrb[36].mxu1  ;;  %v2118_v4 = vpop.f32.mrb[37].mxu0 }
 0x140   :  { %v2218_v39 = vpop.f32.mrb[37].mxu1  ;;  %v2119_v1 = vadd.f32 %v2118_v4, %v2117_v51  ;;  %v2120_v50 = vpop.f32.mrb[38].mxu0 }
 0x141   :  { %v2219_v43 = vadd.f32 %v2218_v39, %v2217_v32  ;;  %v2220_v41 = vpop.f32.mrb[38].mxu1  ;;  %v2121_v3 = vpop.f32.mrb[39].mxu0 }
 0x142   :  { %v2221_v47 = vpop.f32.mrb[39].mxu1  ;;  %v2122_v54 = vadd.f32 %v2121_v3, %v2120_v50 }
 0x143   :  { %v2222_v53 = vadd.f32 %v2221_v47, %v2220_v41  ;;  %v3279_v15 = vadd.f32 %v2219_v43, %v2119_v1 }
 0x145   :  { %v3281_v18 = vadd.f32 %v2222_v53, %v2122_v54 }
 0x146   :  { %v2123_v27 = vpop.f32.mrb[40].mxu0 }
 0x147   :  { %v2223_v40 = vpop.f32.mrb[40].mxu1  ;;  %v2124_v30 = vpop.f32.mrb[41].mxu0 }
 0x148   :  { %v2224_v45 = vpop.f32.mrb[41].mxu1  ;;  %v2125_v29 = vadd.f32 %v2124_v30, %v2123_v27  ;;  %v2126_v46 = vpop.f32.mrb[42].mxu0 }
 0x149   :  { %v2225_v33 = vadd.f32 %v2224_v45, %v2223_v40  ;;  %v2226_v56 = vpop.f32.mrb[42].mxu1  ;;  %v2127_v44 = vpop.f32.mrb[43].mxu0 }
 0x14a   :  { %v2227_v60 = vpop.f32.mrb[43].mxu1  ;;  %v2128_v55 = vadd.f32 %v2127_v44, %v2126_v46 }
 0x14b   :  { %v2228_v21 = vadd.f32 %v2227_v60, %v2226_v56  ;;  %v3283_v13 = vadd.f32 %v2225_v33, %v2125_v29 }
 0x14d   :  { %v3285_v59 = vadd.f32 %v2228_v21, %v2128_v55 }
 0x14e   :  { %v2129_v2 = vpop.f32.mrb[44].mxu0 }
 0x14f   :  { %v2229_v36 = vpop.f32.mrb[44].mxu1  ;;  %v2130_v6 = vpop.f32.mrb[45].mxu0 }
 0x150   :  { %v2230_v57 = vpop.f32.mrb[45].mxu1  ;;  %v2131_v19 = vadd.f32 %v2130_v6, %v2129_v2  ;;  %v2132_v10 = vpop.f32.mrb[46].mxu0 }
 0x151   :  { %v2231_v61 = vadd.f32 %v2230_v57, %v2229_v36  ;;  %v2232_v12 = vpop.f32.mrb[46].mxu1  ;;  %v2133_v14 = vpop.f32.mrb[47].mxu0 }
 0x152   :  { %v2233_v63 = vpop.f32.mrb[47].mxu1  ;;  %v2134_v20 = vadd.f32 %v2133_v14, %v2132_v10 }
 0x153   :  { %v2234_v62 = vadd.f32 %v2233_v63, %v2232_v12  ;;  %v3287_v16 = vadd.f32 %v2231_v61, %v2131_v19 }
 0x155   :  { %v3289_v24 = vadd.f32 %v2234_v62, %v2134_v20 }
 0x156   :  { %v2135_v39 = vpop.f32.mrb[48].mxu0 }
 0x157   :  { %v2235_v22 = vpop.f32.mrb[48].mxu1  ;;  %v2136_v41 = vpop.f32.mrb[49].mxu0 }
 0x158   :  { %v2236_v23 = vpop.f32.mrb[49].mxu1  ;;  %v2137_v47 = vadd.f32 %v2136_v41, %v2135_v39  ;;  %v2138_v51 = vpop.f32.mrb[50].mxu0 }
 0x159   :  { %v2237_v49 = vadd.f32 %v2236_v23, %v2235_v22  ;;  %v2238_v34 = vpop.f32.mrb[50].mxu1  ;;  %v2139_v53 = vpop.f32.mrb[51].mxu0 }
 0x15a   :  { %v2239_v32 = vpop.f32.mrb[51].mxu1  ;;  %v2140_v1 = vadd.f32 %v2139_v53, %v2138_v51 }
 0x15b   :  { %v2240_v43 = vadd.f32 %v2239_v32, %v2238_v34  ;;  %v3291_v4 = vadd.f32 %v2237_v49, %v2137_v47 }
 0x15d   :  { %v3293_v54 = vadd.f32 %v2240_v43, %v2140_v1 }
 0x15e   :  { %v2141_v56 = vpop.f32.mrb[52].mxu0 }
 0x15f   :  { %v2241_v50 = vpop.f32.mrb[52].mxu1  ;;  %v2142_v27 = vpop.f32.mrb[53].mxu0 }
 0x160   :  { %v2242_v3 = vpop.f32.mrb[53].mxu1  ;;  %v2143_v21 = vadd.f32 %v2142_v27, %v2141_v56  ;;  %v2144_v30 = vpop.f32.mrb[54].mxu0 }
 0x161   :  { %v2243_v40 = vadd.f32 %v2242_v3, %v2241_v50  ;;  %v2244_v45 = vpop.f32.mrb[54].mxu1  ;;  %v2145_v29 = vpop.f32.mrb[55].mxu0 }
 0x162   :  { %v2245_v33 = vpop.f32.mrb[55].mxu1  ;;  %v2146_v44 = vadd.f32 %v2145_v29, %v2144_v30 }
 0x163   :  { %v2246_v60 = vadd.f32 %v2245_v33, %v2244_v45  ;;  %v3295_v46 = vadd.f32 %v2243_v40, %v2143_v21 }
 0x165   :  { %v3297_v57 = vadd.f32 %v2246_v60, %v2146_v44 }
 0x166   :  { %v2263_v2 = vpop.f32.mrb[56].mxu0 }
 0x167   :  { %v2363_v55 = vpop.f32.mrb[56].mxu1  ;;  %v2264_v6 = vpop.f32.mrb[57].mxu0 }
 0x168   :  { %v2364_v36 = vpop.f32.mrb[57].mxu1  ;;  %v2265_v19 = vadd.f32 %v2264_v6, %v2263_v2  ;;  %v2266_v10 = vpop.f32.mrb[58].mxu0 }
 0x169   :  { %v2365_v61 = vadd.f32 %v2364_v36, %v2363_v55  ;;  %v2366_v12 = vpop.f32.mrb[58].mxu1  ;;  %v2267_v14 = vpop.f32.mrb[59].mxu0 }
 0x16a   :  { %v2367_v63 = vpop.f32.mrb[59].mxu1  ;;  %v1291_v20 = vadd.f32 %v2265_v19, %v3228_v26  ;;  %v2268_v22 = vadd.f32 %v2267_v14, %v2266_v10 }
 0x16b   :  { %v2368_v62 = vadd.f32 %v2367_v63, %v2366_v12 }
 0x16c   :  { %v1294_v34 = vadd.f32 %v2268_v22, %v3230_v38  ;;  %v3301_v43 = vadd.f32 %v2365_v61, %v1291_v20 }
 0x16e   :  { %v2269_v47 = vpop.f32.mrb[60].mxu0  ;;  %v3303_v53 = vadd.f32 %v2368_v62, %v1294_v34 }
 0x16f   :  { %v2369_v23 = vpop.f32.mrb[60].mxu1  ;;  %v2270_v1 = vpop.f32.mrb[61].mxu0 }
 0x170   :  { %v2370_v49 = vpop.f32.mrb[61].mxu1  ;;  %v2271_v50 = vadd.f32 %v2270_v1, %v2269_v47  ;;  %v2272_v3 = vpop.f32.mrb[62].mxu0 }
 0x171   :  { %v2371_v32 = vadd.f32 %v2370_v49, %v2369_v23  ;;  %v2372_v39 = vpop.f32.mrb[62].mxu1  ;;  %v2273_v40 = vpop.f32.mrb[63].mxu0 }
 0x172   :  { %v2373_v41 = vpop.f32.mrb[63].mxu1  ;;  %v1299_v26 = vadd.f32 %v2271_v50, %v3235_v11  ;;  %v2274_v45 = vadd.f32 %v2273_v40, %v2272_v3 }
 0x173   :  { %v2374_v51 = vadd.f32 %v2373_v41, %v2372_v39 }
 0x174   :  { %v1302_v38 = vadd.f32 %v2274_v45, %v3238_v31  ;;  %v3307_v21 = vadd.f32 %v2371_v32, %v1299_v26 }
 0x176   :  { %v2275_v29 = vpop.f32.mrb[64].mxu0  ;;  %v3309_v55 = vadd.f32 %v2374_v51, %v1302_v38 }
 0x177   :  { %v2375_v33 = vpop.f32.mrb[64].mxu1  ;;  %v2276_v36 = vpop.f32.mrb[65].mxu0 }
 0x178   :  { %v2376_v56 = vpop.f32.mrb[65].mxu1  ;;  %v2277_v61 = vadd.f32 %v2276_v36, %v2275_v29  ;;  %v2278_v12 = vpop.f32.mrb[66].mxu0 }
 0x179   :  { %v2377_v60 = vadd.f32 %v2376_v56, %v2375_v33  ;;  %v2378_v27 = vpop.f32.mrb[66].mxu1  ;;  %v2279_v63 = vpop.f32.mrb[67].mxu0 }
 0x17a   :  { %v2379_v30 = vpop.f32.mrb[67].mxu1  ;;  %v1307_v11 = vadd.f32 %v2277_v61, %v3245_v37  ;;  %v2280_v2 = vadd.f32 %v2279_v63, %v2278_v12 }
 0x17b   :  { %v2380_v44 = vadd.f32 %v2379_v30, %v2378_v27 }
 0x17c   :  { %v1310_v31 = vadd.f32 %v2280_v2, %v3248_v52  ;;  %v3313_v14 = vadd.f32 %v2377_v60, %v1307_v11 }
 0x17e   :  { %v2281_v22 = vpop.f32.mrb[68].mxu0  ;;  %v3315_v49 = vadd.f32 %v2380_v44, %v1310_v31 }
 0x17f   :  { %v2381_v62 = vpop.f32.mrb[68].mxu1  ;;  %v2282_v34 = vpop.f32.mrb[69].mxu0 }
 0x180   :  { %v2382_v6 = vpop.f32.mrb[69].mxu1  ;;  %v2283_v32 = vadd.f32 %v2282_v34, %v2281_v22  ;;  %v2284_v39 = vpop.f32.mrb[70].mxu0 }
 0x181   :  { %v2383_v19 = vadd.f32 %v2382_v6, %v2381_v62  ;;  %v2384_v10 = vpop.f32.mrb[70].mxu1  ;;  %v2285_v41 = vpop.f32.mrb[71].mxu0 }
 0x182   :  { %v2385_v20 = vpop.f32.mrb[71].mxu1  ;;  %v1315_v37 = vadd.f32 %v2283_v32, %v3252_v5  ;;  %v2286_v47 = vadd.f32 %v2285_v41, %v2284_v39 }
 0x183   :  { %v2386_v23 = vadd.f32 %v2385_v20, %v2384_v10 }
 0x184   :  { %v1318_v52 = vadd.f32 %v2286_v47, %v3255_v8  ;;  %v3319_v40 = vadd.f32 %v2383_v19, %v1315_v37 }
 0x186   :  { %v2287_v45 = vpop.f32.mrb[72].mxu0  ;;  %v3321_v56 = vadd.f32 %v2386_v23, %v1318_v52 }
 0x187   :  { %v2387_v51 = vpop.f32.mrb[72].mxu1  ;;  %v2288_v38 = vpop.f32.mrb[73].mxu0 }
 0x188   :  { %v2388_v1 = vpop.f32.mrb[73].mxu1  ;;  %v2289_v60 = vadd.f32 %v2288_v38, %v2287_v45  ;;  %v2290_v27 = vpop.f32.mrb[74].mxu0 }
 0x189   :  { %v2389_v50 = vadd.f32 %v2388_v1, %v2387_v51  ;;  %v2390_v3 = vpop.f32.mrb[74].mxu1  ;;  %v2291_v30 = vpop.f32.mrb[75].mxu0 }
 0x18a   :  { %v2391_v26 = vpop.f32.mrb[75].mxu1  ;;  %v1323_v5 = vadd.f32 %v2289_v60, %v3258_v25  ;;  %v2292_v29 = vadd.f32 %v2291_v30, %v2290_v27 }
 0x18b   :  { %v2392_v33 = vadd.f32 %v2391_v26, %v2390_v3 }
 0x18c   :  { %v1326_v8 = vadd.f32 %v2292_v29, %v3261_v58  ;;  %v3325_v63 = vadd.f32 %v2389_v50, %v1323_v5 }
 0x18e   :  { %v2293_v2 = vpop.f32.mrb[76].mxu0  ;;  %v3327_v6 = vadd.f32 %v2392_v33, %v1326_v8 }
 0x18f   :  { %v2393_v44 = vpop.f32.mrb[76].mxu1  ;;  %v2294_v31 = vpop.f32.mrb[77].mxu0 }
 0x190   :  { %v2394_v36 = vpop.f32.mrb[77].mxu1  ;;  %v2295_v19 = vadd.f32 %v2294_v31, %v2293_v2  ;;  %v2296_v10 = vpop.f32.mrb[78].mxu0 }
 0x191   :  { %v2395_v61 = vadd.f32 %v2394_v36, %v2393_v44  ;;  %v2396_v12 = vpop.f32.mrb[78].mxu1  ;;  %v2297_v20 = vpop.f32.mrb[79].mxu0 }
 0x192   :  { %v2397_v11 = vpop.f32.mrb[79].mxu1  ;;  %v1331_v25 = vadd.f32 %v2295_v19, %v3263_v9  ;;  %v2298_v22 = vadd.f32 %v2297_v20, %v2296_v10 }
 0x193   :  { %v2398_v62 = vadd.f32 %v2397_v11, %v2396_v12 }
 0x194   :  { %v1334_v58 = vadd.f32 %v2298_v22, %v3265_v17  ;;  %v3331_v41 = vadd.f32 %v2395_v61, %v1331_v25 }
 0x196   :  { %v2299_v47 = vpop.f32.mrb[80].mxu0  ;;  %v3333_v1 = vadd.f32 %v2398_v62, %v1334_v58 }
 0x197   :  { %v2399_v23 = vpop.f32.mrb[80].mxu1  ;;  %v2300_v52 = vpop.f32.mrb[81].mxu0 }
 0x198   :  { %v2400_v34 = vpop.f32.mrb[81].mxu1  ;;  %v2301_v50 = vadd.f32 %v2300_v52, %v2299_v47  ;;  %v2302_v3 = vpop.f32.mrb[82].mxu0 }
 0x199   :  { %v2401_v32 = vadd.f32 %v2400_v34, %v2399_v23  ;;  %v2402_v39 = vpop.f32.mrb[82].mxu1  ;;  %v2303_v26 = vpop.f32.mrb[83].mxu0 }
 0x19a   :  { %v2403_v37 = vpop.f32.mrb[83].mxu1  ;;  %v1339_v9 = vadd.f32 %v2301_v50, %v3267_v28  ;;  %v2304_v45 = vadd.f32 %v2303_v26, %v2302_v3 }
 0x19b   :  { %v2404_v51 = vadd.f32 %v2403_v37, %v2402_v39 }
 0x19c   :  { %v1342_v17 = vadd.f32 %v2304_v45, %v3269_v48  ;;  %v3337_v30 = vadd.f32 %v2401_v32, %v1339_v9 }
 0x19e   :  { %v2305_v29 = vpop.f32.mrb[84].mxu0  ;;  %v3339_v36 = vadd.f32 %v2404_v51, %v1342_v17 }
 0x19f   :  { %v2405_v33 = vpop.f32.mrb[84].mxu1  ;;  %v2306_v8 = vpop.f32.mrb[85].mxu0 }
 0x1a0   :  { %v2406_v38 = vpop.f32.mrb[85].mxu1  ;;  %v2307_v61 = vadd.f32 %v2306_v8, %v2305_v29  ;;  %v2308_v12 = vpop.f32.mrb[86].mxu0 }
 0x1a1   :  { %v2407_v60 = vadd.f32 %v2406_v38, %v2405_v33  ;;  %v2408_v27 = vpop.f32.mrb[86].mxu1  ;;  %v2309_v11 = vpop.f32.mrb[87].mxu0 }
 0x1a2   :  { %v2409_v5 = vpop.f32.mrb[87].mxu1  ;;  %v1347_v28 = vadd.f32 %v2307_v61, %v3271_v0  ;;  %v2310_v2 = vadd.f32 %v2309_v11, %v2308_v12 }
 0x1a3   :  { %v2410_v44 = vadd.f32 %v2409_v5, %v2408_v27 }
 0x1a4   :  { %v1350_v48 = vadd.f32 %v2310_v2, %v3273_v7  ;;  %v3343_v20 = vadd.f32 %v2407_v60, %v1347_v28 }
 0x1a6   :  { %v2311_v22 = vpop.f32.mrb[88].mxu0  ;;  %v3345_v34 = vadd.f32 %v2410_v44, %v1350_v48 }
 0x1a7   :  { %v2411_v62 = vpop.f32.mrb[88].mxu1  ;;  %v2312_v58 = vpop.f32.mrb[89].mxu0 }
 0x1a8   :  { %v2412_v31 = vpop.f32.mrb[89].mxu1  ;;  %v2313_v32 = vadd.f32 %v2312_v58, %v2311_v22  ;;  %v2314_v39 = vpop.f32.mrb[90].mxu0 }
 0x1a9   :  { %v2413_v19 = vadd.f32 %v2412_v31, %v2411_v62  ;;  %v2414_v10 = vpop.f32.mrb[90].mxu1  ;;  %v2315_v37 = vpop.f32.mrb[91].mxu0 }
 0x1aa   :  { %v2415_v25 = vpop.f32.mrb[91].mxu1  ;;  %v1355_v0 = vadd.f32 %v2313_v32, %v3275_v35  ;;  %v2316_v47 = vadd.f32 %v2315_v37, %v2314_v39 }
 0x1ab   :  { %v2416_v23 = vadd.f32 %v2415_v25, %v2414_v10 }
 0x1ac   :  { %v1358_v7 = vadd.f32 %v2316_v47, %v3277_v42  ;;  %v3349_v26 = vadd.f32 %v2413_v19, %v1355_v0 }
 0x1ae   :  { %v2317_v45 = vpop.f32.mrb[92].mxu0  ;;  %v3351_v38 = vadd.f32 %v2416_v23, %v1358_v7 }
 0x1af   :  { %v2417_v51 = vpop.f32.mrb[92].mxu1  ;;  %v2318_v17 = vpop.f32.mrb[93].mxu0 }
 0x1b0   :  { %v2418_v52 = vpop.f32.mrb[93].mxu1  ;;  %v2319_v60 = vadd.f32 %v2318_v17, %v2317_v45  ;;  %v2320_v27 = vpop.f32.mrb[94].mxu0 }
 0x1b1   :  { %v2419_v50 = vadd.f32 %v2418_v52, %v2417_v51  ;;  %v2420_v3 = vpop.f32.mrb[94].mxu1  ;;  %v2321_v5 = vpop.f32.mrb[95].mxu0 }
 0x1b2   :  { %v2421_v9 = vpop.f32.mrb[95].mxu1  ;;  %v1363_v35 = vadd.f32 %v2319_v60, %v3279_v15  ;;  %v2322_v29 = vadd.f32 %v2321_v5, %v2320_v27 }
 0x1b3   :  { %v2422_v33 = vadd.f32 %v2421_v9, %v2420_v3 }
 0x1b4   :  { %v1366_v42 = vadd.f32 %v2322_v29, %v3281_v18  ;;  %v1508_v11 = vadd.f32 %v2419_v50, %v1363_v35 }
 0x1b6   :  { %v2323_v2 = vpop.f32.mrb[96].mxu0  ;;  %v1511_v31 = vadd.f32 %v2422_v33, %v1366_v42 }
 0x1b7   :  { %v2423_v44 = vpop.f32.mrb[96].mxu1  ;;  %v2324_v48 = vpop.f32.mrb[97].mxu0 }
 0x1b8   :  { %v2424_v8 = vpop.f32.mrb[97].mxu1  ;;  %v2325_v19 = vadd.f32 %v2324_v48, %v2323_v2  ;;  %v2326_v10 = vpop.f32.mrb[98].mxu0 }
 0x1b9   :  { %v2425_v61 = vadd.f32 %v2424_v8, %v2423_v44  ;;  %v2426_v12 = vpop.f32.mrb[98].mxu1  ;;  %v2327_v25 = vpop.f32.mrb[99].mxu0 }
 0x1ba   :  { %v2427_v28 = vpop.f32.mrb[99].mxu1  ;;  %v1371_v22 = vadd.f32 %v2325_v19, %v3283_v13  ;;  %v2328_v23 = vadd.f32 %v2327_v25, %v2326_v10 }
 0x1bb   :  { %v2428_v62 = vadd.f32 %v2427_v28, %v2426_v12 }
 0x1bc   :  { %v1374_v32 = vadd.f32 %v2328_v23, %v3285_v59  ;;  %v3357_v37 = vadd.f32 %v2425_v61, %v1371_v22 }
 0x1be   :  { %v2329_v47 = vpop.f32.mrb[100].mxu0  ;;  %v3359_v52 = vadd.f32 %v2428_v62, %v1374_v32 }
 0x1bf   :  { %v2429_v15 = vpop.f32.mrb[100].mxu1  ;;  %v2330_v7 = vpop.f32.mrb[101].mxu0 }
 0x1c0   :  { %v2430_v58 = vpop.f32.mrb[101].mxu1  ;;  %v2331_v50 = vadd.f32 %v2330_v7, %v2329_v47  ;;  %v2332_v3 = vpop.f32.mrb[102].mxu0 }
 0x1c1   :  { %v2431_v39 = vadd.f32 %v2430_v58, %v2429_v15  ;;  %v2432_v18 = vpop.f32.mrb[102].mxu1  ;;  %v2333_v9 = vpop.f32.mrb[103].mxu0 }
 0x1c2   :  { %v2433_v0 = vpop.f32.mrb[103].mxu1  ;;  %v1379_v13 = vadd.f32 %v2331_v50, %v3287_v16  ;;  %v2334_v45 = vadd.f32 %v2333_v9, %v2332_v3 }
 0x1c3   :  { %v2434_v51 = vadd.f32 %v2433_v0, %v2432_v18 }
 0x1c4   :  { %v1382_v59 = vadd.f32 %v2334_v45, %v3289_v24  ;;  %v1524_v5 = vadd.f32 %v2431_v39, %v1379_v13 }
 0x1c6   :  { %v2335_v29 = vpop.f32.mrb[104].mxu0  ;;  %v1527_v8 = vadd.f32 %v2434_v51, %v1382_v59 }
 0x1c7   :  { %v2435_v33 = vpop.f32.mrb[104].mxu1  ;;  %v2336_v42 = vpop.f32.mrb[105].mxu0 }
 0x1c8   :  { %v2436_v17 = vpop.f32.mrb[105].mxu1  ;;  %v2337_v61 = vadd.f32 %v2336_v42, %v2335_v29  ;;  %v2338_v12 = vpop.f32.mrb[106].mxu0 }
 0x1c9   :  { %v2437_v60 = vadd.f32 %v2436_v17, %v2435_v33  ;;  %v2438_v27 = vpop.f32.mrb[106].mxu1  ;;  %v2339_v28 = vpop.f32.mrb[107].mxu0 }
 0x1ca   :  { %v2439_v35 = vpop.f32.mrb[107].mxu1  ;;  %v1387_v2 = vadd.f32 %v2337_v61, %v3291_v4  ;;  %v2340_v62 = vadd.f32 %v2339_v28, %v2338_v12 }
 0x1cb   :  { %v2440_v44 = vadd.f32 %v2439_v35, %v2438_v27 }
 0x1cc   :  { %v1390_v19 = vadd.f32 %v2340_v62, %v3293_v54  ;;  %v3365_v25 = vadd.f32 %v2437_v60, %v1387_v2 }
 0x1ce   :  { %v2341_v23 = vpop.f32.mrb[108].mxu0  ;;  %v3367_v58 = vadd.f32 %v2440_v44, %v1390_v19 }
 0x1cf   :  { %v2441_v16 = vpop.f32.mrb[108].mxu1  ;;  %v2342_v32 = vpop.f32.mrb[109].mxu0 }
 0x1d0   :  { %v2442_v48 = vpop.f32.mrb[109].mxu1  ;;  %v2343_v39 = vadd.f32 %v2342_v32, %v2341_v23  ;;  %v2344_v18 = vpop.f32.mrb[110].mxu0 }
 0x1d1   :  { %v2443_v10 = vadd.f32 %v2442_v48, %v2441_v16  ;;  %v2444_v24 = vpop.f32.mrb[110].mxu1  ;;  %v2345_v0 = vpop.f32.mrb[111].mxu0 }
 0x1d2   :  { %v2445_v22 = vpop.f32.mrb[111].mxu1  ;;  %v1395_v4 = vadd.f32 %v2343_v39, %v3295_v46  ;;  %v2346_v47 = vadd.f32 %v2345_v0, %v2344_v18 }
 0x1d3   :  { %v2446_v15 = vadd.f32 %v2445_v22, %v2444_v24 }
 0x1d4   :  { %v1398_v50 = vadd.f32 %v2346_v47, %v3297_v57  ;;  %v1540_v13 = vadd.f32 %v2443_v10, %v1395_v4 }
 0x1d6   :  { %v2487_v17 = vpop.f32.mrb[112].mxu0  ;;  %v1543_v60 = vadd.f32 %v2446_v15, %v1398_v50 }
 0x1d7   :  { %v2503_v51 = vpop.f32.mrb[112].mxu1  ;;  %v1580_v27 = vpop.f32.mrb[113].mxu0 }
 0x1d8   :  { %v3370_v7 = vadd.f32 %v2503_v51, %v1508_v11  ;;  %v1644_v54 = vpop.f32.mrb[113].mxu1  ;;  %v1589_v11 = vadd.f32 %v2487_v17, %v3307_v21  ;;  %v1581_v57 = vadd.f32 %v1580_v27, %v3301_v43  ;;  %v2488_v35 = vpop.f32.mrb[114].mxu0 }
 0x1d9   :  { %v3374_v3 = vadd.f32 %v1644_v54, %v3349_v26  ;;  %v2504_v9 = vpop.f32.mrb[114].mxu1  ;;  %v1592_v26 = vadd.f32 %v2488_v35, %v3309_v55  ;;  %v1583_v29 = vpop.f32.mrb[115].mxu0 }
 0x1da   :  { %v1656_v45 = vadd.f32 %v2504_v9, %v1511_v31  ;;  %v1647_v33 = vpop.f32.mrb[115].mxu1  ;;  %v1724_v31 = vmax.f32 %v1581_v57, %v1589_v11  ;;  %v1584_v44 = vadd.f32 %v1583_v29, %v3303_v53 }
 0x1db   :  { %v1849_v59 = vmax.f32 %v3374_v3, %v3370_v7  ;;  %v1648_v46 = vadd.f32 %v1647_v33, %v3351_v38  ;;  %1694 = vst [vmem:[#allocation2 + $0x18] sm:$0xff] %v1592_v26 }
 0x1dc   :  { %1710 = vst [vmem:[#allocation2 + $0x98] sm:$0xff] %v1656_v45  ;;  %1726 = vst [vmem:[#allocation3] sm:$0xff] %v1724_v31 }
 0x1dd   :  { %1708 = vst [vmem:[#allocation2 + $0x88] sm:$0xff] %v1648_v46  ;;  %1692 = vst [vmem:[#allocation2 + $0x8] sm:$0xff] %v1584_v44 }
 0x1de   :  { %v2491_v2 = vpop.f32.mrb[116].mxu0 }
 0x1df   :  { %v2507_v42 = vpop.f32.mrb[116].mxu1  ;;  %v1605_v53 = vadd.f32 %v2491_v2, %v3319_v40  ;;  %v1596_v16 = vpop.f32.mrb[117].mxu0 }
 0x1e0   :  { %v3383_v61 = vadd.f32 %v2507_v42, %v1524_v5  ;;  %v1660_v38 = vpop.f32.mrb[117].mxu1  ;;  %v1597_v5 = vadd.f32 %v1596_v16, %v3313_v14  ;;  %v2492_v48 = vpop.f32.mrb[118].mxu0 }
 0x1e1   :  { %v3386_v21 = vadd.f32 %v1660_v38, %v3357_v37  ;;  %v2508_v12 = vpop.f32.mrb[118].mxu1  ;;  %v1608_v37 = vadd.f32 %v2492_v48, %v3321_v56  ;;  %v1599_v19 = vpop.f32.mrb[119].mxu0 }
 0x1e2   :  { %v1672_v43 = vadd.f32 %v2508_v12, %v1527_v8  ;;  %v1663_v28 = vpop.f32.mrb[119].mxu1  ;;  %v1723_v10 = vld [vmem:[#allocation2 + $0x18] sm:$0x3f]  ;;  %v1751_v8 = vmax.f32 %v1597_v5, %v1605_v53  ;;  %v1600_v24 = vadd.f32 %v1599_v19, %v3315_v49 }
 0x1e3   :  { %v1877_v55 = vmax.f32 %v3386_v21, %v3383_v61  ;;  %v1664_v62 = vadd.f32 %v1663_v28, %v3359_v52  ;;  %1698 = vst [vmem:[#allocation2 + $0x38] sm:$0xff] %v1608_v37 }
 0x1e4   :  { %1714 = vst [vmem:[#allocation2 + $0xb8] sm:$0xff] %v1672_v43  ;;  %v1721_v23 = vld [vmem:[#allocation2 + $0x8] sm:$0x3f]  ;;  %1696 = vst [vmem:[#allocation2 + $0x28] sm:$0xff] %v1600_v24 }
 0x1e5   :  { %1712 = vst [vmem:[#allocation2 + $0xa8] sm:$0xff] %v1664_v62  ;;  %v1725_v40 = vmax.f32 %v1721_v23, %v1723_v10 }
 0x1e6   :  { %v2495_v56 = vpop.f32.mrb[120].mxu0 }
 0x1e7   :  { %v2511_v22 = vpop.f32.mrb[120].mxu1  ;;  %1727 = vst [vmem:[#allocation3 + $0x8] sm:$0x3f] %v1725_v40  ;;  %v1621_v4 = vadd.f32 %v2495_v56, %v3331_v41  ;;  %v1612_v47 = vpop.f32.mrb[121].mxu0  ;;  %v1848_v40 = vld [vmem:[#allocation2 + $0x98] sm:$0x3f] }
 0x1e8   :  { %v3395_v15 = vadd.f32 %v2511_v22, %v1540_v13  ;;  %v1676_v52 = vpop.f32.mrb[121].mxu1  ;;  %v1613_v51 = vadd.f32 %v1612_v47, %v3325_v63  ;;  %v2496_v54 = vpop.f32.mrb[122].mxu0 }
 0x1e9   :  { %v3398_v32 = vadd.f32 %v1676_v52, %v3365_v25  ;;  %v2512_v14 = vpop.f32.mrb[122].mxu1  ;;  %v1624_v25 = vadd.f32 %v2496_v54, %v3333_v1  ;;  %v1615_v50 = vpop.f32.mrb[123].mxu0 }
 0x1ea   :  { %v1688_v39 = vadd.f32 %v2512_v14, %v1543_v60  ;;  %v1679_v18 = vpop.f32.mrb[123].mxu1  ;;  %v1750_v9 = vld [vmem:[#allocation2 + $0x38] sm:$0x3f]  ;;  %v1786_v13 = vmax.f32 %v1613_v51, %v1621_v4  ;;  %v1616_v45 = vadd.f32 %v1615_v50, %v3327_v6  ;;  %v1846_v14 = vld [vmem:[#allocation2 + $0x88] sm:$0x3f] }
 0x1eb   :  { %v1912_v0 = vmax.f32 %v3398_v32, %v3395_v15  ;;  %v1680_v49 = vadd.f32 %v1679_v18, %v3367_v58  ;;  %v1748_v33 = vld [vmem:[#allocation2 + $0x28] sm:$0x3f]  ;;  %1702 = vst [vmem:[#allocation2 + $0x58] sm:$0xff] %v1624_v25  ;;  %v3410_v58 = vld [vmem:[%s3494_s2] ss:$0 sm:$0xff]  ;;  %v1850_v4 = vmax.f32 %v1846_v14, %v1848_v40 }
 0x1ec   :  { %1718 = vst [vmem:[#allocation2 + $0xd8] sm:$0xff] %v1688_v39  ;;  %v1752_v41 = vmax.f32 %v1748_v33, %v1750_v9  ;;  %1700 = vst [vmem:[#allocation2 + $0x48] sm:$0xff] %v1616_v45  ;;  %v1933_v40 = vld [vmem:[%s3495_s3 + $0x18] sm:$0x1] }
 0x1ed   :  { %1716 = vst [vmem:[#allocation2 + $0xc8] sm:$0xff] %v1680_v49 }
 0x1ee   :  { %v1728_v17 = vld [vmem:[#allocation3] ss:$2 sm:$0x7f]  ;;  %v1730_v63 = vld [vmem:[#allocation3 + $0x1] ss:$2 sm:$0x7f] }
 0x1ef   :  { %v1731_v46 = vmax.f32 %v1728_v17, %v1730_v63  ;;  %1753 = vst [vmem:[#allocation3] sm:$0xff] %v1751_v8  ;;  %1754 = vst [vmem:[#allocation3 + $0x8] sm:$0x3f] %v1752_v41  ;;  %v2499_v1 = vpop.f32.mrb[124].mxu0  ;;  %v1876_v41 = vld [vmem:[#allocation2 + $0xb8] sm:$0x3f] }
 0x1f0   :  { %v1637_v60 = vadd.f32 %v2499_v1, %v3343_v20  ;;  %v1628_v11 = vpop.f32.mrb[125].mxu0  ;;  %v1744_v20 = vld [vmem:[%s3495_s3] sm:$0xf]  ;;  %v1874_v17 = vld [vmem:[#allocation2 + $0xa8] sm:$0x3f] }
 0x1f1   :  { %v1738_v6 = vadd.f32 %v3410_v58, %v1731_v46  ;;  %v1629_v27 = vadd.f32 %v1628_v11, %v3337_v30  ;;  %v2500_v57 = vpop.f32.mrb[126].mxu0  ;;  %v1878_v7 = vmax.f32 %v1874_v17, %v1876_v41 }
 0x1f2   :  { %v1640_v35 = vadd.f32 %v2500_v57, %v3345_v34  ;;  %v1631_v26 = vpop.f32.mrb[127].mxu0  ;;  %v1785_v31 = vld [vmem:[#allocation2 + $0x58] sm:$0x3f] }
 0x1f3   :  { %v1739_v29 = vmax.f32 %v1738_v6, 0.0  ;;  %v1814_v44 = vmax.f32 %v1629_v27, %v1637_v60  ;;  %v1632_v42 = vadd.f32 %v1631_v26, %v3339_v36  ;;  %v1783_v38 = vld [vmem:[#allocation2 + $0x48] sm:$0x3f]  ;;  %v1911_v26 = vld [vmem:[#allocation2 + $0xd8] sm:$0x3f] }
 0x1f4   :  { %1706 = vst [vmem:[#allocation2 + $0x78] sm:$0xff] %v1640_v35  ;;  %v1787_v43 = vmax.f32 %v1783_v38, %v1785_v31 }
 0x1f5   :  { %v1740_v12 = vpack.c.bf16 %v1739_v29, %v1739_v29  ;;  %1704 = vst [vmem:[#allocation2 + $0x68] sm:$0xff] %v1632_v42  ;;  %v1909_v29 = vld [vmem:[#allocation2 + $0xc8] sm:$0x3f] }
 0x1f6   :  { %v1755_v30 = vld [vmem:[#allocation3] ss:$2 sm:$0x7f]  ;;  %v1756_v28 = vld [vmem:[#allocation3 + $0x1] ss:$2 sm:$0x7f] }
 0x1f7   :  { %v1745_v2 = vsel %vm1743_vm4, %v1740_v12, %v1744_v20  ;;  %v1757_v34 = vmax.f32 %v1755_v30, %v1756_v28  ;;  %1788 = vst [vmem:[#allocation3] sm:$0xff] %v1786_v13  ;;  %1789 = vst [vmem:[#allocation3 + $0x8] sm:$0x3f] %v1787_v43  ;;  %v1807_v13 = vld [vmem:[%s3495_s3 + $0x8] sm:$0x7]  ;;  %v1913_v20 = vmax.f32 %v1909_v29, %v1911_v26  ;;  %vm1930_vm4 = vcmask 1040384  }
 0x1f8   :  { %1746 = vst [vmem:[%s3495_s3] sm:$0xf] %v1745_v2  ;;  %v1870_v28 = vld [vmem:[%s3495_s3 + $0x10] sm:$0x3]  ;;  %vm1932_vm6 = vmand %vm1930_vm4, %vm1931_vm5 }
 0x1f9   :  { %v1758_v36 = vadd.f32 %v3410_v58, %v1757_v34 }
 0x1fb   :  { %v1759_v62 = vmax.f32 %v1758_v36, 0.0  ;;  %v1813_v53 = vld [vmem:[#allocation2 + $0x78] sm:$0x3f] }
 0x1fc   :  { %v1811_v16 = vld [vmem:[#allocation2 + $0x68] sm:$0x3f] }
 0x1fd   :  { %v2041_v5 = vpack.c.bf16 %v1759_v62, %v1759_v62  ;;  %v1815_v48 = vmax.f32 %v1811_v16, %v1813_v53 }
 0x1fe   :  { %v1790_v37 = vld [vmem:[#allocation3] ss:$2 sm:$0x7f]  ;;  %v1791_v19 = vld [vmem:[#allocation3 + $0x1] ss:$2 sm:$0x7f] }
 0x1ff   :  { %v1765_v10 = vshll.u32 %v2041_v5, 16  ;;  %v1768_v8 = vshrl.u32 %v2041_v5, 16  ;;  %v1792_v24 = vmax.f32 %v1790_v37, %v1791_v19  ;;  %1816 = vst [vmem:[#allocation3] sm:$0xff] %v1814_v44  ;;  %1817 = vst [vmem:[#allocation3 + $0x8] sm:$0x3f] %v1815_v48 }
 0x200   :  { %v1778_v39 = vld [vmem:[%s3495_s3] sm:$0x8] }
 0x201   :  { %v1767_v22 = vrot.slane %v1765_v10, 5  ;;  %v1770_v23 = vrot.slane %v1768_v8, 4  ;;  %v1793_v52 = vadd.f32 %v3410_v58, %v1792_v24 }
 0x203   :  { %v1771_v18 = vor.u32 %v1770_v23, %v1767_v22  ;;  %v1779_v56 = vsel %vm1777_vm7, %v1767_v22, %v1778_v39  ;;  %v1794_v49 = vmax.f32 %v1793_v52, 0.0 }
 0x204   :  { %1780 = vst [vmem:[%s3495_s3] sm:$0x8] %v1779_v56 }
 0x205   :  { %v1772_v47 = vrot.slane %v1771_v18, 4  ;;  %v2042_v51 = vpack.c.bf16 %v1794_v49, %v1794_v49 }
 0x206   :  { %v1818_v54 = vld [vmem:[#allocation3] ss:$2 sm:$0x7f]  ;;  %v1819_v25 = vld [vmem:[#allocation3 + $0x1] ss:$2 sm:$0x7f] }
 0x207   :  { %1781 = vst [vmem:[%s3495_s3 + $0x4] sm:$0x7] %v1772_v47  ;;  %v1799_v50 = vrot.slane %v2042_v51, 5  ;;  %v1820_v9 = vmax.f32 %v1818_v54, %v1819_v25  ;;  %1851 = vst [vmem:[#allocation3] sm:$0xff] %v1849_v59 }
 0x208   :  { %1852 = vst [vmem:[#allocation3 + $0x8] sm:$0x3f] %v1850_v4 }
 0x209   :  { %v1800_v45 = vrot.slane %v1799_v50, 4  ;;  %1803 = vst [vmem:[%s3495_s3 + $0x4] sm:$0x8] %v1799_v50  ;;  %v1821_v33 = vadd.f32 %v3410_v58, %v1820_v9 }
 0x20b   :  { %v1808_v63 = vsel %vm1806_vm10, %v1800_v45, %v1807_v13  ;;  %v1822_v46 = vmax.f32 %v1821_v33, 0.0 }
 0x20c   :  { %1809 = vst [vmem:[%s3495_s3 + $0x8] sm:$0x7] %v1808_v63 }
 0x20d   :  { %v2043_v3 = vpack.c.bf16 %v1822_v46, %v1822_v46 }
 0x20f   :  { %v1853_v59 = vld [vmem:[#allocation3] ss:$2 sm:$0x7f]  ;;  %v1854_v1 = vld [vmem:[#allocation3 + $0x1] ss:$2 sm:$0x7f] }
 0x210   :  { %v1828_v60 = vshrl.u32 %v2043_v3, 16  ;;  %v1831_v11 = vshll.u32 %v2043_v3, 16  ;;  %v1855_v6 = vmax.f32 %v1853_v59, %v1854_v1  ;;  %1879 = vst [vmem:[#allocation3] sm:$0xff] %v1877_v55  ;;  %1880 = vst [vmem:[#allocation3 + $0x8] sm:$0x3f] %v1878_v7 }
 0x212   :  { %v1830_v27 = vrot.slane %v1828_v60, 5  ;;  %v1833_v57 = vrot.slane %v1831_v11, 6  ;;  %v1856_v35 = vadd.f32 %v3410_v58, %v1855_v6 }
 0x213   :  { %v1841_v44 = vld [vmem:[%s3495_s3 + $0x8] sm:$0xc] }
 0x214   :  { %v1834_v31 = vor.u32 %v1833_v57, %v1830_v27  ;;  %v1857_v42 = vmax.f32 %v1856_v35, 0.0 }
 0x216   :  { %v1835_v38 = vrot.slane %v1834_v31, 4  ;;  %v1842_v61 = vsel %vm1840_vm13, %v1834_v31, %v1841_v44  ;;  %v2044_v21 = vpack.c.bf16 %v1857_v42, %v1857_v42 }
 0x217   :  { %1843 = vst [vmem:[%s3495_s3 + $0x8] sm:$0xc] %v1842_v61  ;;  %v1881_v55 = vld [vmem:[#allocation3] ss:$2 sm:$0x7f] }
 0x218   :  { %v1882_v12 = vld [vmem:[#allocation3 + $0x1] ss:$2 sm:$0x7f]  ;;  %1844 = vst [vmem:[%s3495_s3 + $0xc] sm:$0x3] %v1835_v38  ;;  %v1862_v43 = vrot.slane %v2044_v21, 6 }
 0x219   :  { %v1883_v30 = vmax.f32 %v1881_v55, %v1882_v12  ;;  %1914 = vst [vmem:[#allocation3] sm:$0xff] %v1912_v0  ;;  %1915 = vst [vmem:[#allocation3 + $0x8] sm:$0x3f] %v1913_v20 }
 0x21a   :  { %v1863_v2 = vrot.slane %v1862_v43, 4  ;;  %1866 = vst [vmem:[%s3495_s3 + $0xc] sm:$0xc] %v1862_v43 }
 0x21b   :  { %v1884_v34 = vadd.f32 %v3410_v58, %v1883_v30 }
 0x21c   :  { %v1871_v36 = vsel %vm1869_vm0, %v1863_v2, %v1870_v28 }
 0x21d   :  { %v1885_v62 = vmax.f32 %v1884_v34, 0.0  ;;  %1872 = vst [vmem:[%s3495_s3 + $0x10] sm:$0x3] %v1871_v36 }
 0x21f   :  { %v2045_v15 = vpack.c.bf16 %v1885_v62, %v1885_v62 }
 0x220   :  { %v1916_v32 = vld [vmem:[#allocation3] ss:$2 sm:$0x7f]  ;;  %v1917_v0 = vld [vmem:[#allocation3 + $0x1] ss:$2 sm:$0x7f] }
 0x221   :  { %v1891_v53 = vshrl.u32 %v2045_v15, 16  ;;  %v1894_v16 = vshll.u32 %v2045_v15, 16  ;;  %v1918_v5 = vmax.f32 %v1916_v32, %v1917_v0 }
 0x223   :  { %v1893_v48 = vrot.slane %v1891_v53, 6  ;;  %v1896_v37 = vrot.slane %v1894_v16, 7  ;;  %v1919_v19 = vadd.f32 %v3410_v58, %v1918_v5 }
 0x224   :  { %v1904_v8 = vld [vmem:[%s3495_s3 + $0x10] sm:$0xe] }
 0x225   :  { %v1897_v10 = vor.u32 %v1896_v37, %v1893_v48  ;;  %v1920_v24 = vmax.f32 %v1919_v19, 0.0 }
 0x227   :  { %v1898_v22 = vrot.slane %v1897_v10, 4  ;;  %v1905_v23 = vsel %vm1903_vm3, %v1897_v10, %v1904_v8  ;;  %v2046_v52 = vpack.c.bf16 %v1920_v24, %v1920_v24 }
 0x228   :  { %1906 = vst [vmem:[%s3495_s3 + $0x10] sm:$0xe] %v1905_v23 }
 0x229   :  { %1907 = vst [vmem:[%s3495_s3 + $0x14] sm:$0x1] %v1898_v22  ;;  %v1925_v58 = vrot.slane %v2046_v52, 7 }
 0x22b   :  { %v1926_v14 = vrot.slane %v1925_v58, 4  ;;  %1929 = vst [vmem:[%s3495_s3 + $0x14] sm:$0xe] %v1925_v58 }
 0x22d   :  { %v1934_v39 = vsel %vm1932_vm6, %v1926_v14, %v1933_v40 }
 0x22e   :  { %1935 = vst [vmem:[%s3495_s3 + $0x18] sm:$0x1] %v1934_v39 }

// kernel: cnn_forward.3
= control target key start
LH: loop header
LB: loop body
LE: loop exit
PB: predicated region body
PF: predicated region fallthrough
CT: control target
= control target key end

     0   :  { %vm990_vm0 = vcmask 1041408   ;;  %vm402_vm1 = vsmask.f32 7424  ;;  %v18042_v0 = vmov 0.0   ;;  %vm13708_vm2 = vmmov 0   ;;  %s17999_s1 = inlined_call_operand.vmem [shape: bf16[36,128], index: 1, kind: input, shape index: {}]   ;;  %s18000_s0 = inlined_call_operand.vmem [shape: bf16[936,4], index: 0, kind: input, shape index: {}]   ;;  %s18001_s3 = inlined_call_operand.vmem [shape: bf16[272,128], index: 3, kind: output, shape index: {}]   ;;  %s18002_s2 = inlined_call_operand.vmem [shape: f32[1,128], index: 2, kind: input, shape index: {}]  }
   0x1   :  { %10866 = vmatprep.subr.bf16.mxu0 %v18042_v0  ;;  %10010 = vmatprep.subr.bf16.mxu1 %v18042_v0  ;;  %v3747_v1 = vld [vmem:[%s17999_s1 + $0x8] sm:$0x3]  ;;  %v15_v2 = vld [vmem:[%s18000_s0] sm:$0xf]  ;;  %v16_v5 = vld [vmem:[%s18000_s0 + $0x4] sm:$0xf] }
   0x2   :  { %v13739_v3 = vsel %vm990_vm0, %v3747_v1, 0  ;;  %v13530_v4 = vld [vmem:[%s17999_s1] ss:$0 sps:$4 sm:$0xcc]   ;;  %10012 = vmatprep.mubr.msk.bf16.mxu1 %vm13708_vm2, %v18042_v0  ;;  %10868 = vmatprep.mubr.msk.bf16.mxu0 %vm13708_vm2, %v18042_v0  ;;  %v13752_v6 = vcombine.low %v15_v2, %v16_v5  ;;  %v13532_v7 = vld [vmem:[%s18000_s0 + $0x8] sm:$0xff]   ;;  %vm830_vm3 = vcmask 31744  }
   0x3   :  { %18183 = vst [vmem:[#allocation4_spill] sm:$0xff] %v13739_v3  ;;  %10867 = vmatpush3.bf16.msra.mxu0 %v13739_v3  ;;  %v829_v8 = vrot.slane %v13530_v4, 2  ;;  %v19_v9 = vld [vmem:[%s18000_s0 + $0x10] sm:$0xf]  ;;  %v20_v10 = vld [vmem:[%s18000_s0 + $0x14] sm:$0xf] }
   0x4   :  { %11080 = vmatprep.subr.bf16.mxu0 %v18042_v0  ;;  %v404_v11 = vshrl.u32 %v13752_v6, 16  ;;  %v406_v12 = vshll.u32 %v13752_v6, 16  ;;  %v411_v13 = vshll.u32 %v13532_v7, 16  ;;  %v21_v14 = vld [vmem:[%s18000_s0 + $0x18] sm:$0xf]  ;;  %v13769_v15 = vcombine.low %v19_v9, %v20_v10 }
   0x5   :  { %v992_v16 = vsel %vm990_vm0, %v829_v8, 0  ;;  %v122_v17 = vld [vmem:[%s18000_s0 + $0xc] sm:$0x8]  ;;  %v13775_v18 = vcombine.low %v20_v10, %v21_v14  ;;  %vm3751_vm4 = vsmask.f32 4352  ;;  %v415_v22 = vshrl.u32 %v13532_v7, 16 }
   0x6   :  { %10011 = vmatpush3.bf16.msra.mxu1 %v992_v16  ;;  %v408_v19 = vrot.slane %v406_v12, 1  ;;  %v413_v20 = vrot.slane %v411_v13, 1  ;;  %v13777_v21 = vcombine.low %v122_v17, %v19_v9  ;;  %v13536_v25 = vld [vmem:[%s17999_s1 + $0x8] ss:$0 sps:$4 sm:$0xcc]   ;;  %v419_v26 = vshll.u32 %v13769_v15, 16 }
   0x7   :  { %18184 = vst [vmem:[#allocation5_spill] sm:$0xff] %v13775_v18  ;;  %v3761_v23 = vshrl.u32 %v13775_v18, 16  ;;  %v3764_v24 = vshll.u32 %v13775_v18, 16  ;;  %10224 = vmatprep.subr.bf16.mxu1 %v18042_v0  ;;  %v135_v30 = vld [vmem:[%s17999_s1] sm:$0x3]  ;;  %v4958_v34 = vrot.slane %v13536_v25, 2 }
   0x8   :  { %18185 = vst [vmem:[#allocation6_spill] sm:$0xff] %v13777_v21  ;;  %v409_v27 = vor.u32 %v408_v19, %v404_v11  ;;  %v3753_v28 = vshrl.u32 %v13777_v21, 16  ;;  %v3756_v29 = vshll.u32 %v13777_v21, 16  ;;  %v22_v31 = vld [vmem:[%s18000_s0 + $0x1c] sm:$0xf]  ;;  %v1559_v39 = vsel %vm990_vm0, %v135_v30, 0 }
   0x9   :  { %v3763_v32 = vrot.slane %v3761_v23, 3  ;;  %v3766_v33 = vrot.slane %v3764_v24, 4  ;;  %v23_v35 = vld [vmem:[%s18000_s0 + $0x20] sm:$0xf]  ;;  %v24_v40 = vld [vmem:[%s18000_s0 + $0x24] sm:$0xf]  ;;  %v417_v42 = vor.u32 %v415_v22, %v413_v20  ;;  %v13803_v44 = vcombine.low %v21_v14, %v22_v31 }
   0xa   :  { %v414_v36 = vsel %vm402_vm1, %v409_v27, %v413_v20  ;;  %v3755_v37 = vrot.slane %v3753_v28, 3  ;;  %v3758_v38 = vrot.slane %v3756_v29, 4  ;;  %v421_v43 = vrot.slane %v419_v26, 1  ;;  %v25_v45 = vld [vmem:[%s18000_s0 + $0x28] sm:$0xf] }
   0xb   :  { %10013 = vmatmul.mubr.msk.bf16.vlgmr.msra.gmra.mrb[0].mxu1 %vm830_vm3, %v414_v36  ;;  %v3767_v41 = vor.u32 %v3766_v33, %v3763_v32  ;;  %v13810_v47 = vcombine.low %v22_v31, %v23_v35  ;;  %v4969_v48 = vsel %vm990_vm0, %v4958_v34, 0  ;;  %v13813_v49 = vcombine.low %v24_v40, %v25_v45  ;;  %v26_v56 = vld [vmem:[%s18000_s0 + $0x2c] sm:$0xf]  ;;  %v27_v61 = vld [vmem:[%s18000_s0 + $0x30] sm:$0xf] }
   0xc   :  { %v3759_v46 = vor.u32 %v3758_v38, %v3755_v37  ;;  %10016 = vmatprep.mubr.msk.bf16.mxu1 %vm13708_vm2, %v18042_v0  ;;  %10225 = vmatpush3.bf16.msra.mxu1 %v1559_v39  ;;  %v422_v53 = vsel %vm402_vm1, %v417_v42, %v421_v43  ;;  %v423_v54 = vshrl.u32 %v13769_v15, 16  ;;  %v427_v55 = vshll.u32 %v13803_v44, 16  ;;  %v28_v16 = vld [vmem:[%s18000_s0 + $0x34] sm:$0xf]  ;;  %v29_v17 = vld [vmem:[%s18000_s0 + $0x38] sm:$0xf] }
   0xd   :  { %18186 = vst [vmem:[#allocation7_spill] sm:$0xff] %v13810_v47  ;;  %10438 = vmatprep.subr.bf16.mxu1 %v18042_v0  ;;  %v3770_v51 = vshrl.u32 %v13810_v47, 16  ;;  %v3773_v52 = vshll.u32 %v13810_v47, 16  ;;  %v18038_v59 = vshrl.u32 %v13813_v49, 16  ;;  %v18035_v60 = vshll.u32 %v13813_v49, 16 }
   0xe   :  { %v3768_v50 = vsel %vm3751_vm4, %v3759_v46, %v3767_v41  ;;  %v425_v63 = vor.u32 %v423_v54, %v421_v43  ;;  %v13835_v1 = vcombine.low %v23_v35, %v24_v40  ;;  %v13837_v2 = vcombine.low %v26_v56, %v27_v61  ;;  %v30_v29 = vld [vmem:[%s18000_s0 + $0x3c] sm:$0xf]  ;;  %v31_v34 = vld [vmem:[%s18000_s0 + $0x40] sm:$0xf] }
   0xf   :  { %10869 = vmatmul.mubr.msk.bf16.vlgmr.msra.gmra.mrb[0].mxu0 %vm830_vm3, %v3768_v50  ;;  %v3772_v57 = vrot.slane %v3770_v51, 3  ;;  %v3775_v58 = vrot.slane %v3773_v52, 4  ;;  %v429_v5 = vrot.slane %v427_v55, 1  ;;  %v3781_v7 = vrot.slane %v18038_v59, 3  ;;  %v32_v51 = vld [vmem:[%s18000_s0 + $0x44] sm:$0xf] }
  0x10   :  { %11081 = vmatpush3.bf16.msra.mxu0 %v4969_v48  ;;  %10872 = vmatprep.mubr.msk.bf16.mxu0 %vm13708_vm2, %v18042_v0  ;;  %18187 = vst [vmem:[#allocation8_spill] sm:$0xff] %v13837_v2  ;;  %v3784_v8 = vrot.slane %v18035_v60, 4  ;;  %v431_v9 = vshrl.u32 %v13803_v44, 16  ;;  %v18034_v10 = vshrl.u32 %v13837_v2, 16  ;;  %v18031_v11 = vshll.u32 %v13837_v2, 16 }
  0x11   :  { %11294 = vmatprep.subr.bf16.mxu0 %v18042_v0  ;;  %v3776_v62 = vor.u32 %v3775_v58, %v3772_v57  ;;  %v430_v12 = vsel %vm402_vm1, %v425_v63, %v429_v5  ;;  %v435_v14 = vshll.u32 %v13835_v1, 16  ;;  %v13868_v25 = vcombine.low %v25_v45, %v26_v56  ;;  %v33_v52 = vld [vmem:[%s18000_s0 + $0x48] sm:$0xf] }
  0x12   :  { %v3785_v13 = vor.u32 %v3784_v8, %v3781_v7  ;;  %v433_v19 = vor.u32 %v431_v9, %v429_v5  ;;  %v3790_v20 = vrot.slane %v18034_v10, 3  ;;  %v3793_v22 = vrot.slane %v18031_v11, 4  ;;  %v34_v9 = vld [vmem:[%s18000_s0 + $0x4c] sm:$0xf] }
  0x13   :  { %10017 = vmatmul.mubr.msk.bf16.gmra.mrb[4].mxu1 %vm830_vm3, %v422_v53  ;;  %v3777_v4 = vsel %vm3751_vm4, %v3767_v41, %v3776_v62  ;;  %v437_v24 = vrot.slane %v435_v14, 1  ;;  %v13870_v26 = vcombine.low %v28_v16, %v29_v17  ;;  %v439_v28 = vshrl.u32 %v13835_v1, 16 }
  0x14   :  { %10020 = vmatprep.mubr.msk.bf16.mxu1 %vm13708_vm2, %v18042_v0  ;;  %v3786_v23 = vsel %vm3751_vm4, %v3776_v62, %v3785_v13  ;;  %v3794_v27 = vor.u32 %v3793_v22, %v3790_v20  ;;  %v443_v31 = vshll.u32 %v13868_v25, 16  ;;  %v13888_v37 = vcombine.low %v27_v61, %v28_v16 }
  0x15   :  { %18188 = vst [vmem:[#allocation9_spill] sm:$0xff] %v13870_v26  ;;  %v438_v30 = vsel %vm402_vm1, %v433_v19, %v437_v24  ;;  %v18030_v32 = vshrl.u32 %v13870_v26, 16  ;;  %v18027_v33 = vshll.u32 %v13870_v26, 16  ;;  %v441_v36 = vor.u32 %v439_v28, %v437_v24 }
  0x16   :  { %v3795_v35 = vsel %vm3751_vm4, %v3785_v13, %v3794_v27  ;;  %v445_v38 = vrot.slane %v443_v31, 1  ;;  %v13896_v41 = vcombine.low %v30_v29, %v31_v34  ;;  %v447_v42 = vshrl.u32 %v13868_v25, 16  ;;  %v36_v31 = vld [vmem:[%s18000_s0 + $0x54] sm:$0xf] }
  0x17   :  { %10873 = vmatmul.mubr.msk.bf16.gmra.mrb[4].mxu0 %vm830_vm3, %v3777_v4  ;;  %v3799_v39 = vrot.slane %v18030_v32, 3  ;;  %v3802_v40 = vrot.slane %v18027_v33, 4  ;;  %v451_v43 = vshll.u32 %v13888_v37, 16  ;;  %v13913_v55 = vcombine.low %v29_v17, %v30_v29 }
  0x18   :  { %10876 = vmatprep.mubr.msk.bf16.mxu0 %vm13708_vm2, %v18042_v0  ;;  %18189 = vst [vmem:[#allocation10_spill] sm:$0xff] %v13896_v41  ;;  %v446_v45 = vsel %vm402_vm1, %v441_v36, %v445_v38  ;;  %v18026_v48 = vshrl.u32 %v13896_v41, 16  ;;  %v18023_v50 = vshll.u32 %v13896_v41, 16  ;;  %v449_v53 = vor.u32 %v447_v42, %v445_v38 }
  0x19   :  { %v3803_v46 = vor.u32 %v3802_v40, %v3799_v39  ;;  %v453_v54 = vrot.slane %v451_v43, 1  ;;  %v13922_v61 = vcombine.low %v32_v51, %v33_v52  ;;  %v455_v62 = vshrl.u32 %v13888_v37, 16 }
  0x1a   :  { %v3808_v57 = vrot.slane %v18026_v48, 3  ;;  %v3811_v58 = vrot.slane %v18023_v50, 4  ;;  %v459_v63 = vshll.u32 %v13913_v55, 16  ;;  %v13939_v16 = vcombine.low %v31_v34, %v32_v51  ;;  %v37_v34 = vld [vmem:[%s18000_s0 + $0x58] sm:$0xf] }
  0x1b   :  { %10021 = vmatmul.mubr.msk.bf16.gmra.mrb[8].mxu1 %vm830_vm3, %v430_v12  ;;  %v3804_v56 = vsel %vm3751_vm4, %v3794_v27, %v3803_v46  ;;  %18190 = vst [vmem:[#allocation11_spill] sm:$0xff] %v13922_v61  ;;  %v454_v4 = vsel %vm402_vm1, %v449_v53, %v453_v54  ;;  %v18022_v7 = vshrl.u32 %v13922_v61, 16  ;;  %v18019_v8 = vshll.u32 %v13922_v61, 16  ;;  %v35_v12 = vld [vmem:[%s18000_s0 + $0x50] sm:$0xf] }
  0x1c   :  { %10024 = vmatprep.mubr.msk.bf16.mxu1 %vm13708_vm2, %v18042_v0  ;;  %v3812_v5 = vor.u32 %v3811_v58, %v3808_v57  ;;  %v457_v13 = vor.u32 %v455_v62, %v453_v54  ;;  %v461_v14 = vrot.slane %v459_v63, 1  ;;  %v13948_v22 = vcombine.low %v34_v9, %v35_v12  ;;  %v39_v57 = vld [vmem:[%s18000_s0 + $0x60] sm:$0xf] }
  0x1d   :  { %v3817_v19 = vrot.slane %v18022_v7, 3  ;;  %v3820_v20 = vrot.slane %v18019_v8, 4  ;;  %v467_v24 = vshll.u32 %v13939_v16, 16  ;;  %v13965_v38 = vcombine.low %v33_v52, %v34_v9 }
  0x1e   :  { %v3813_v17 = vsel %vm3751_vm4, %v3803_v46, %v3812_v5  ;;  %18191 = vst [vmem:[#allocation12_spill] sm:$0xff] %v13948_v22  ;;  %v462_v27 = vsel %vm402_vm1, %v457_v13, %v461_v14  ;;  %v18018_v29 = vshrl.u32 %v13948_v22, 16  ;;  %v13974_v43 = vcombine.low %v36_v31, %v37_v34 }
  0x1f   :  { %10877 = vmatmul.mubr.msk.bf16.gmra.mrb[8].mxu0 %vm830_vm3, %v3786_v23  ;;  %v463_v23 = vshrl.u32 %v13913_v55, 16  ;;  %v3821_v28 = vor.u32 %v3820_v20, %v3817_v19  ;;  %v469_v36 = vrot.slane %v467_v24, 1  ;;  %v475_v46 = vshll.u32 %v13965_v38, 16  ;;  %v40_v24 = vld [vmem:[%s18000_s0 + $0x64] sm:$0xf] }
  0x20   :  { %10880 = vmatprep.mubr.msk.bf16.mxu0 %vm13708_vm2, %v18042_v0  ;;  %v3826_v40 = vrot.slane %v18018_v29, 3  ;;  %18192 = vst [vmem:[#allocation13_spill] sm:$0xff] %v13974_v43  ;;  %v18014_v53 = vshrl.u32 %v13974_v43, 16  ;;  %v18011_v54 = vshll.u32 %v13974_v43, 16  ;;  %v13991_v63 = vcombine.low %v35_v12, %v36_v31 }
  0x21   :  { %v3822_v39 = vsel %vm3751_vm4, %v3812_v5, %v3821_v28  ;;  %v477_v62 = vrot.slane %v475_v46, 1  ;;  %vm5546_vm5 = vcmask 1045504   ;;  %vm2021_vm6 = vcmask 1046528  }
  0x22   :  { %v3835_v5 = vrot.slane %v18014_v53, 3  ;;  %v3838_v9 = vrot.slane %v18011_v54, 4  ;;  %v483_v12 = vshll.u32 %v13991_v63, 16  ;;  %vm6379_vm7 = vsmask.f32 5376 }
  0x23   :  { %10025 = vmatmul.mubr.msk.bf16.gmra.mrb[12].mxu1 %vm830_vm3, %v438_v30  ;;  %v18015_v30 = vshll.u32 %v13948_v22, 16  ;;  %vm2914_vm8 = vcmask 1044480   ;;  %vm8126_vm9 = vcmask 1043456   ;;  %vm8127_vm10 = vsmask.f32 7938 }
  0x24   :  { %10028 = vmatprep.mubr.msk.bf16.mxu1 %vm13708_vm2, %v18042_v0  ;;  %v3839_v19 = vor.u32 %v3838_v9, %v3835_v5  ;;  %v485_v31 = vrot.slane %v483_v12, 1  ;;  %v14043_v9 = vcombine.low %v39_v57, %v40_v24  ;;  %vm17385_vm11 = vmand %vm8126_vm9, %vm8127_vm10  ;;  %vm8105_vm12 = vsmask.f32 256 }
  0x25   :  { %v3829_v42 = vrot.slane %v18015_v30, 4  ;;  %vm8106_vm13 = vsmask.f32 4368  ;;  %vm8132_vm14 = vsmask.f32 3328 }
  0x26   :  { %vm17411_vm15 = vmor %vm8105_vm12, %vm8106_vm13 }
  0x27   :  { %10881 = vmatmul.mubr.msk.bf16.gmra.mrb[12].mxu0 %vm830_vm3, %v3795_v35  ;;  %v465_v35 = vor.u32 %v463_v23, %v461_v14  ;;  %v3830_v52 = vor.u32 %v3829_v42, %v3826_v40  ;;  %v479_v14 = vshrl.u32 %v13965_v38, 16 }
  0x28   :  { %10884 = vmatprep.mubr.msk.bf16.mxu0 %vm13708_vm2, %v18042_v0 }
  0x29   :  { %v470_v51 = vsel %vm402_vm1, %v465_v35, %v469_v36 }
  0x2b   :  { %10029 = vmatmul.mubr.msk.bf16.gmra.mrb[16].mxu1 %vm830_vm3, %v446_v45  ;;  %v471_v45 = vshrl.u32 %v13939_v16, 16 }
  0x2c   :  { %10032 = vmatprep.mubr.msk.bf16.mxu1 %vm13708_vm2, %v18042_v0 }
  0x2d   :  { %v473_v58 = vor.u32 %v471_v45, %v469_v36  ;;  %v3840_v36 = vsel %vm3751_vm4, %v3830_v52, %v3839_v19  ;;  %v487_v45 = vshrl.u32 %v13991_v63, 16 }
  0x2f   :  { %10885 = vmatmul.mubr.msk.bf16.gmra.mrb[16].mxu0 %vm830_vm3, %v3804_v56  ;;  %v38_v56 = vld [vmem:[%s18000_s0 + $0x5c] sm:$0xf] }
  0x30   :  { %10888 = vmatprep.mubr.msk.bf16.mxu0 %vm13708_vm2, %v18042_v0  ;;  %v14000_v13 = vcombine.low %v38_v56, %v39_v57  ;;  %v14017_v35 = vcombine.low %v37_v34, %v38_v56  ;;  %v499_v57 = vshll.u32 %v14043_v9, 16 }
  0x32   :  { %18193 = vst [vmem:[#allocation14_spill] sm:$0xff] %v14000_v13  ;;  %v18010_v20 = vshrl.u32 %v14000_v13, 16  ;;  %v18007_v23 = vshll.u32 %v14000_v13, 16  ;;  %v491_v34 = vshll.u32 %v14017_v35, 16 }
  0x33   :  { %10033 = vmatmul.mubr.msk.bf16.gmra.mrb[20].mxu1 %vm830_vm3, %v454_v4  ;;  %v3831_v4 = vsel %vm3751_vm4, %v3821_v28, %v3830_v52  ;;  %v481_v28 = vor.u32 %v479_v14, %v477_v62 }
  0x34   :  { %10036 = vmatprep.mubr.msk.bf16.mxu1 %vm13708_vm2, %v18042_v0  ;;  %v3847_v40 = vrot.slane %v18007_v23, 4  ;;  %v493_v5 = vrot.slane %v491_v34, 1 }
  0x35   :  { %v486_v46 = vsel %vm402_vm1, %v481_v28, %v485_v31 }
  0x37   :  { %10889 = vmatmul.mubr.msk.bf16.gmra.mrb[20].mxu0 %vm830_vm3, %v3813_v17  ;;  %v478_v17 = vsel %vm402_vm1, %v473_v58, %v477_v62  ;;  %v42_v58 = vld [vmem:[%s18000_s0 + $0x6c] sm:$0xf]  ;;  %v43_v62 = vld [vmem:[%s18000_s0 + $0x70] sm:$0xf] }
  0x38   :  { %10892 = vmatprep.mubr.msk.bf16.mxu0 %vm13708_vm2, %v18042_v0  ;;  %v14052_v28 = vcombine.low %v42_v58, %v43_v62 }
  0x3a   :  { %18195 = vst [vmem:[#allocation16_spill] sm:$0xff] %v14052_v28 }
  0x3b   :  { %10037 = vmatmul.mubr.msk.bf16.gmra.mrb[24].mxu1 %vm830_vm3, %v462_v27  ;;  %v41_v27 = vld [vmem:[%s18000_s0 + $0x68] sm:$0xf] }
  0x3c   :  { %10040 = vmatprep.mubr.msk.bf16.mxu1 %vm13708_vm2, %v18042_v0  ;;  %v14026_v42 = vcombine.low %v40_v24, %v41_v27 }
  0x3e   :  { %18194 = vst [vmem:[#allocation15_spill] sm:$0xff] %v14026_v42  ;;  %v18006_v52 = vshrl.u32 %v14026_v42, 16  ;;  %v18003_v56 = vshll.u32 %v14026_v42, 16 }
  0x3f   :  { %10893 = vmatmul.mubr.msk.bf16.gmra.mrb[24].mxu0 %vm830_vm3, %v3822_v39  ;;  %v3844_v39 = vrot.slane %v18010_v20, 3 }
  0x40   :  { %10896 = vmatprep.mubr.msk.bf16.mxu0 %vm13708_vm2, %v18042_v0  ;;  %v3853_v12 = vrot.slane %v18006_v52, 3 }
  0x43   :  { %10041 = vmatmul.mubr.msk.bf16.gmra.mrb[28].mxu1 %vm830_vm3, %v470_v51  ;;  %v3848_v51 = vor.u32 %v3847_v40, %v3844_v39  ;;  %v18004_v39 = vshll.u32 %v14052_v28, 16  ;;  %v44_v40 = vld [vmem:[%s18000_s0 + $0x74] sm:$0xf] }
  0x44   :  { %10044 = vmatprep.mubr.msk.bf16.mxu1 %vm13708_vm2, %v18042_v0  ;;  %v14095_v52 = vcombine.low %v43_v62, %v44_v40 }
  0x45   :  { %v3849_v14 = vsel %vm3751_vm4, %v3839_v19, %v3848_v51 }
  0x46   :  { %v515_v62 = vshll.u32 %v14095_v52, 16 }
  0x47   :  { %10897 = vmatmul.mubr.msk.bf16.gmra.mrb[28].mxu0 %vm830_vm3, %v3831_v4  ;;  %v489_v4 = vor.u32 %v487_v45, %v485_v31  ;;  %v495_v31 = vshrl.u32 %v14017_v35, 16  ;;  %v45_v45 = vld [vmem:[%s18000_s0 + $0x78] sm:$0xf] }
  0x48   :  { %10900 = vmatprep.mubr.msk.bf16.mxu0 %vm13708_vm2, %v18042_v0 }
  0x49   :  { %v494_v19 = vsel %vm402_vm1, %v489_v4, %v493_v5  ;;  %v497_v34 = vor.u32 %v495_v31, %v493_v5  ;;  %v503_v5 = vshrl.u32 %v14043_v9, 16 }
  0x4b   :  { %10045 = vmatmul.mubr.msk.bf16.gmra.mrb[32].mxu1 %vm830_vm3, %v478_v17  ;;  %v3856_v17 = vrot.slane %v18003_v56, 4  ;;  %v14078_v56 = vcombine.low %v44_v40, %v45_v45 }
  0x4c   :  { %10048 = vmatprep.mubr.msk.bf16.mxu1 %vm13708_vm2, %v18042_v0 }
  0x4d   :  { %v3857_v24 = vor.u32 %v3856_v17, %v3853_v12  ;;  %v3865_v17 = vrot.slane %v18004_v39, 4  ;;  %18196 = vst [vmem:[#allocation17_spill] sm:$0xff] %v14078_v56  ;;  %v18009_v31 = vshrl.u32 %v14078_v56, 16 }
  0x4f   :  { %10901 = vmatmul.mubr.msk.bf16.gmra.mrb[32].mxu0 %vm830_vm3, %v3840_v36  ;;  %v18005_v36 = vshrl.u32 %v14052_v28, 16  ;;  %v3858_v4 = vsel %vm3751_vm4, %v3848_v51, %v3857_v24 }
  0x50   :  { %10904 = vmatprep.mubr.msk.bf16.mxu0 %vm13708_vm2, %v18042_v0 }
  0x51   :  { %v3862_v12 = vrot.slane %v18005_v36, 3 }
  0x53   :  { %10049 = vmatmul.mubr.msk.bf16.gmra.mrb[36].mxu1 %vm830_vm3, %v486_v46  ;;  %v501_v46 = vrot.slane %v499_v57, 1  ;;  %v18008_v57 = vshll.u32 %v14078_v56, 16 }
  0x54   :  { %10052 = vmatprep.mubr.msk.bf16.mxu1 %vm13708_vm2, %v18042_v0 }
  0x55   :  { %v502_v51 = vsel %vm402_vm1, %v497_v34, %v501_v46  ;;  %v505_v39 = vor.u32 %v503_v5, %v501_v46 }
  0x57   :  { %10905 = vmatmul.mubr.msk.bf16.gmra.mrb[36].mxu0 %vm830_vm3, %v3849_v14  ;;  %v14069_v14 = vcombine.low %v41_v27, %v42_v58  ;;  %v3866_v58 = vor.u32 %v3865_v17, %v3862_v12  ;;  %v3871_v12 = vrot.slane %v18009_v31, 3  ;;  %v3874_v17 = vrot.slane %v18008_v57, 4 }
  0x58   :  { %10908 = vmatprep.mubr.msk.bf16.mxu0 %vm13708_vm2, %v18042_v0  ;;  %v517_v31 = vrot.slane %v515_v62, 1 }
  0x59   :  { %v507_v27 = vshll.u32 %v14069_v14, 16  ;;  %v3867_v34 = vsel %vm3751_vm4, %v3857_v24, %v3866_v58  ;;  %v511_v46 = vshrl.u32 %v14069_v14, 16  ;;  %v3875_v40 = vor.u32 %v3874_v17, %v3871_v12 }
  0x5b   :  { %10053 = vmatmul.mubr.msk.bf16.gmra.mrb[40].mxu1 %vm830_vm3, %v494_v19  ;;  %v46_v19 = vld [vmem:[%s18000_s0 + $0x7c] sm:$0xf]  ;;  %v509_v36 = vrot.slane %v507_v27, 1 }
  0x5c   :  { %10056 = vmatprep.mubr.msk.bf16.mxu1 %vm13708_vm2, %v18042_v0  ;;  %v14121_v20 = vcombine.low %v45_v45, %v46_v19 }
  0x5d   :  { %v510_v24 = vsel %vm402_vm1, %v505_v39, %v509_v36  ;;  %v513_v57 = vor.u32 %v511_v46, %v509_v36  ;;  %v3876_v39 = vsel %vm3751_vm4, %v3866_v58, %v3875_v40  ;;  %v519_v36 = vshrl.u32 %v14095_v52, 16 }
  0x5e   :  { %v523_v45 = vshll.u32 %v14121_v20, 16 }
  0x5f   :  { %10909 = vmatmul.mubr.msk.bf16.gmra.mrb[40].mxu0 %vm830_vm3, %v3858_v4  ;;  %v47_v4 = vld [vmem:[%s18000_s0 + $0x80] sm:$0xf]  ;;  %v518_v58 = vsel %vm402_vm1, %v513_v57, %v517_v31 }
  0x60   :  { %10912 = vmatprep.mubr.msk.bf16.mxu0 %vm13708_vm2, %v18042_v0  ;;  %v14104_v23 = vcombine.low %v46_v19, %v47_v4 }
  0x62   :  { %18197 = vst [vmem:[#allocation18_spill] sm:$0xff] %v14104_v23  ;;  %v18013_v5 = vshrl.u32 %v14104_v23, 16  ;;  %v18012_v27 = vshll.u32 %v14104_v23, 16 }
  0x63   :  { %10057 = vmatmul.mubr.msk.bf16.gmra.mrb[44].mxu1 %vm830_vm3, %v502_v51  ;;  %v48_v51 = vld [vmem:[%s18000_s0 + $0x84] sm:$0xf] }
  0x64   :  { %10060 = vmatprep.mubr.msk.bf16.mxu1 %vm13708_vm2, %v18042_v0  ;;  %v3880_v12 = vrot.slane %v18013_v5, 3  ;;  %v3883_v17 = vrot.slane %v18012_v27, 4  ;;  %v521_v27 = vor.u32 %v519_v36, %v517_v31  ;;  %v525_v5 = vrot.slane %v523_v45, 1 }
  0x65   :  { %v14147_v53 = vcombine.low %v47_v4, %v48_v51  ;;  %v527_v31 = vshrl.u32 %v14121_v20, 16 }
  0x66   :  { %v3884_v19 = vor.u32 %v3883_v17, %v3880_v12 }
  0x67   :  { %10913 = vmatmul.mubr.msk.bf16.gmra.mrb[44].mxu0 %vm830_vm3, %v3867_v34  ;;  %v49_v34 = vld [vmem:[%s18000_s0 + $0x88] sm:$0xf]  ;;  %v531_v4 = vshll.u32 %v14147_v53, 16 }
  0x68   :  { %10916 = vmatprep.mubr.msk.bf16.mxu0 %vm13708_vm2, %v18042_v0  ;;  %v14130_v54 = vcombine.low %v48_v51, %v49_v34  ;;  %v3885_v57 = vsel %vm3751_vm4, %v3875_v40, %v3884_v19  ;;  %v526_v40 = vsel %vm402_vm1, %v521_v27, %v525_v5 }
  0x6a   :  { %18198 = vst [vmem:[#allocation19_spill] sm:$0xff] %v14130_v54  ;;  %v18017_v46 = vshrl.u32 %v14130_v54, 16  ;;  %v18016_v62 = vshll.u32 %v14130_v54, 16 }
  0x6b   :  { %10061 = vmatmul.mubr.msk.bf16.gmra.mrb[48].mxu1 %vm830_vm3, %v510_v24  ;;  %v50_v24 = vld [vmem:[%s18000_s0 + $0x8c] sm:$0xf] }
  0x6c   :  { %10064 = vmatprep.mubr.msk.bf16.mxu1 %vm13708_vm2, %v18042_v0  ;;  %v3889_v12 = vrot.slane %v18017_v46, 3  ;;  %v3892_v17 = vrot.slane %v18016_v62, 4  ;;  %v529_v62 = vor.u32 %v527_v31, %v525_v5  ;;  %v533_v46 = vrot.slane %v531_v4, 1 }
  0x6d   :  { %v14173_v29 = vcombine.low %v49_v34, %v50_v24  ;;  %v535_v5 = vshrl.u32 %v14147_v53, 16 }
  0x6e   :  { %v3893_v51 = vor.u32 %v3892_v17, %v3889_v12 }
  0x6f   :  { %10917 = vmatmul.mubr.msk.bf16.gmra.mrb[48].mxu0 %vm830_vm3, %v3876_v39  ;;  %v51_v39 = vld [vmem:[%s18000_s0 + $0x90] sm:$0xf]  ;;  %v539_v34 = vshll.u32 %v14173_v29, 16 }
  0x70   :  { %10920 = vmatprep.mubr.msk.bf16.mxu0 %vm13708_vm2, %v18042_v0  ;;  %v14156_v30 = vcombine.low %v50_v24, %v51_v39  ;;  %v3894_v27 = vsel %vm3751_vm4, %v3884_v19, %v3893_v51  ;;  %v534_v19 = vsel %vm402_vm1, %v529_v62, %v533_v46 }
  0x72   :  { %18199 = vst [vmem:[#allocation20_spill] sm:$0xff] %v14156_v30  ;;  %v18021_v36 = vshrl.u32 %v14156_v30, 16  ;;  %v18020_v45 = vshll.u32 %v14156_v30, 16 }
  0x73   :  { %10065 = vmatmul.mubr.msk.bf16.gmra.mrb[52].mxu1 %vm830_vm3, %v518_v58  ;;  %v52_v58 = vld [vmem:[%s18000_s0 + $0x94] sm:$0xf] }
  0x74   :  { %10068 = vmatprep.mubr.msk.bf16.mxu1 %vm13708_vm2, %v18042_v0  ;;  %v3898_v12 = vrot.slane %v18021_v36, 3  ;;  %v3901_v17 = vrot.slane %v18020_v45, 4  ;;  %v537_v45 = vor.u32 %v535_v5, %v533_v46  ;;  %v541_v36 = vrot.slane %v539_v34, 1 }
  0x75   :  { %v14199_v7 = vcombine.low %v51_v39, %v52_v58  ;;  %v543_v46 = vshrl.u32 %v14173_v29, 16 }
  0x76   :  { %v3902_v24 = vor.u32 %v3901_v17, %v3898_v12 }
  0x77   :  { %10921 = vmatmul.mubr.msk.bf16.gmra.mrb[52].mxu0 %vm830_vm3, %v3885_v57  ;;  %v53_v57 = vld [vmem:[%s18000_s0 + $0x98] sm:$0xf]  ;;  %v547_v39 = vshll.u32 %v14199_v7, 16 }
  0x78   :  { %10924 = vmatprep.mubr.msk.bf16.mxu0 %vm13708_vm2, %v18042_v0  ;;  %v14182_v8 = vcombine.low %v52_v58, %v53_v57  ;;  %v3903_v62 = vsel %vm3751_vm4, %v3893_v51, %v3902_v24  ;;  %v542_v51 = vsel %vm402_vm1, %v537_v45, %v541_v36 }
  0x7a   :  { %18200 = vst [vmem:[#allocation21_spill] sm:$0xff] %v14182_v8  ;;  %v18025_v31 = vshrl.u32 %v14182_v8, 16  ;;  %v18024_v4 = vshll.u32 %v14182_v8, 16 }
  0x7b   :  { %10069 = vmatmul.mubr.msk.bf16.gmra.mrb[56].mxu1 %vm830_vm3, %v526_v40  ;;  %v54_v40 = vld [vmem:[%s18000_s0 + $0x9c] sm:$0xf] }
  0x7c   :  { %10072 = vmatprep.mubr.msk.bf16.mxu1 %vm13708_vm2, %v18042_v0  ;;  %v3907_v12 = vrot.slane %v18025_v31, 3  ;;  %v3910_v17 = vrot.slane %v18024_v4, 4  ;;  %v545_v4 = vor.u32 %v543_v46, %v541_v36  ;;  %v549_v31 = vrot.slane %v547_v39, 1 }
  0x7d   :  { %v14225_v48 = vcombine.low %v53_v57, %v54_v40  ;;  %v551_v36 = vshrl.u32 %v14199_v7, 16 }
  0x7e   :  { %v3911_v58 = vor.u32 %v3910_v17, %v3907_v12 }
  0x7f   :  { %10925 = vmatmul.mubr.msk.bf16.gmra.mrb[56].mxu0 %vm830_vm3, %v3894_v27  ;;  %v55_v27 = vld [vmem:[%s18000_s0 + $0xa0] sm:$0xf]  ;;  %v555_v57 = vshll.u32 %v14225_v48, 16 }
  0x80   :  { %10928 = vmatprep.mubr.msk.bf16.mxu0 %vm13708_vm2, %v18042_v0  ;;  %v14208_v50 = vcombine.low %v54_v40, %v55_v27  ;;  %v3912_v45 = vsel %vm3751_vm4, %v3902_v24, %v3911_v58  ;;  %v550_v24 = vsel %vm402_vm1, %v545_v4, %v549_v31 }
  0x82   :  { %18201 = vst [vmem:[#allocation22_spill] sm:$0xff] %v14208_v50  ;;  %v18029_v5 = vshrl.u32 %v14208_v50, 16  ;;  %v18028_v34 = vshll.u32 %v14208_v50, 16 }
  0x83   :  { %10073 = vmatmul.mubr.msk.bf16.gmra.mrb[60].mxu1 %vm830_vm3, %v534_v19  ;;  %v56_v19 = vld [vmem:[%s18000_s0 + $0xa4] sm:$0xf] }
  0x84   :  { %10076 = vmatprep.mubr.msk.bf16.mxu1 %vm13708_vm2, %v18042_v0  ;;  %v3916_v12 = vrot.slane %v18029_v5, 3  ;;  %v3919_v17 = vrot.slane %v18028_v34, 4  ;;  %v553_v34 = vor.u32 %v551_v36, %v549_v31  ;;  %v557_v5 = vrot.slane %v555_v57, 1 }
  0x85   :  { %v14251_v32 = vcombine.low %v55_v27, %v56_v19  ;;  %v559_v31 = vshrl.u32 %v14225_v48, 16 }
  0x86   :  { %v3920_v40 = vor.u32 %v3919_v17, %v3916_v12 }
  0x87   :  { %10929 = vmatmul.mubr.msk.bf16.gmra.mrb[60].mxu0 %vm830_vm3, %v3903_v62  ;;  %v57_v62 = vld [vmem:[%s18000_s0 + $0xa8] sm:$0xf]  ;;  %v563_v27 = vshll.u32 %v14251_v32, 16 }
  0x88   :  { %10932 = vmatprep.mubr.msk.bf16.mxu0 %vm13708_vm2, %v18042_v0  ;;  %v14234_v33 = vcombine.low %v56_v19, %v57_v62  ;;  %v3921_v4 = vsel %vm3751_vm4, %v3911_v58, %v3920_v40  ;;  %v558_v58 = vsel %vm402_vm1, %v553_v34, %v557_v5 }
  0x8a   :  { %18202 = vst [vmem:[#allocation23_spill] sm:$0xff] %v14234_v33  ;;  %v18033_v46 = vshrl.u32 %v14234_v33, 16  ;;  %v18032_v39 = vshll.u32 %v14234_v33, 16 }
  0x8b   :  { %10077 = vmatmul.mubr.msk.bf16.gmra.mrb[64].mxu1 %vm830_vm3, %v542_v51  ;;  %v58_v51 = vld [vmem:[%s18000_s0 + $0xac] sm:$0xf] }
  0x8c   :  { %10080 = vmatprep.mubr.msk.bf16.mxu1 %vm13708_vm2, %v18042_v0  ;;  %v3925_v12 = vrot.slane %v18033_v46, 3  ;;  %v3928_v17 = vrot.slane %v18032_v39, 4  ;;  %v561_v39 = vor.u32 %v559_v31, %v557_v5  ;;  %v565_v46 = vrot.slane %v563_v27, 1 }
  0x8d   :  { %v14277_v10 = vcombine.low %v57_v62, %v58_v51  ;;  %v567_v5 = vshrl.u32 %v14251_v32, 16 }
  0x8e   :  { %v3929_v19 = vor.u32 %v3928_v17, %v3925_v12 }
  0x8f   :  { %10933 = vmatmul.mubr.msk.bf16.gmra.mrb[64].mxu0 %vm830_vm3, %v3912_v45  ;;  %v59_v45 = vld [vmem:[%s18000_s0 + $0xb0] sm:$0xf]  ;;  %v571_v62 = vshll.u32 %v14277_v10, 16 }
  0x90   :  { %10936 = vmatprep.mubr.msk.bf16.mxu0 %vm13708_vm2, %v18042_v0  ;;  %v14260_v11 = vcombine.low %v58_v51, %v59_v45  ;;  %v3930_v34 = vsel %vm3751_vm4, %v3920_v40, %v3929_v19  ;;  %v566_v40 = vsel %vm402_vm1, %v561_v39, %v565_v46 }
  0x92   :  { %18203 = vst [vmem:[#allocation24_spill] sm:$0xff] %v14260_v11  ;;  %v18037_v36 = vshrl.u32 %v14260_v11, 16  ;;  %v18036_v57 = vshll.u32 %v14260_v11, 16 }
  0x93   :  { %10081 = vmatmul.mubr.msk.bf16.gmra.mrb[68].mxu1 %vm830_vm3, %v550_v24  ;;  %v60_v24 = vld [vmem:[%s18000_s0 + $0xb4] sm:$0xf] }
  0x94   :  { %10084 = vmatprep.mubr.msk.bf16.mxu1 %vm13708_vm2, %v18042_v0  ;;  %v3934_v12 = vrot.slane %v18037_v36, 3  ;;  %v3937_v17 = vrot.slane %v18036_v57, 4  ;;  %v569_v57 = vor.u32 %v567_v5, %v565_v46  ;;  %v573_v36 = vrot.slane %v571_v62, 1 }
  0x95   :  { %v14303_v59 = vcombine.low %v59_v45, %v60_v24  ;;  %v575_v46 = vshrl.u32 %v14277_v10, 16 }
  0x96   :  { %v3938_v51 = vor.u32 %v3937_v17, %v3934_v12 }
  0x97   :  { %10937 = vmatmul.mubr.msk.bf16.gmra.mrb[68].mxu0 %vm830_vm3, %v3921_v4  ;;  %v61_v4 = vld [vmem:[%s18000_s0 + $0xb8] sm:$0xf]  ;;  %v579_v45 = vshll.u32 %v14303_v59, 16 }
  0x98   :  { %10940 = vmatprep.mubr.msk.bf16.mxu0 %vm13708_vm2, %v18042_v0  ;;  %v14286_v60 = vcombine.low %v60_v24, %v61_v4  ;;  %v3939_v39 = vsel %vm3751_vm4, %v3929_v19, %v3938_v51  ;;  %v574_v19 = vsel %vm402_vm1, %v569_v57, %v573_v36 }
  0x9a   :  { %18204 = vst [vmem:[#allocation25_spill] sm:$0xff] %v14286_v60  ;;  %v18041_v31 = vshrl.u32 %v14286_v60, 16  ;;  %v18040_v27 = vshll.u32 %v14286_v60, 16 }
  0x9b   :  { %10085 = vmatmul.mubr.msk.bf16.gmra.mrb[72].mxu1 %vm830_vm3, %v558_v58  ;;  %v62_v58 = vld [vmem:[%s18000_s0 + $0xbc] sm:$0xf] }
  0x9c   :  { %10088 = vmatprep.mubr.msk.bf16.mxu1 %vm13708_vm2, %v18042_v0  ;;  %v3943_v12 = vrot.slane %v18041_v31, 3  ;;  %v3946_v17 = vrot.slane %v18040_v27, 4  ;;  %v577_v27 = vor.u32 %v575_v46, %v573_v36  ;;  %v581_v31 = vrot.slane %v579_v45, 1 }
  0x9d   :  { %v583_v36 = vshrl.u32 %v14303_v59, 16 }
  0x9e   :  { %v3947_v24 = vor.u32 %v3946_v17, %v3943_v12  ;;  %v18206_v12 = vmov 0.0  }
  0x9f   :  { %10941 = vmatmul.mubr.msk.bf16.gmra.mrb[72].mxu0 %vm830_vm3, %v3930_v34  ;;  %v63_v34 = vld [vmem:[%s18000_s0 + $0xc0] sm:$0xf] }
  0xa0   :  { %10944 = vmatprep.mubr.msk.bf16.mxu0 %vm13708_vm2, %v18042_v0  ;;  %v14312_v3 = vcombine.low %v62_v58, %v63_v34  ;;  %v3948_v57 = vsel %vm3751_vm4, %v3938_v51, %v3947_v24  ;;  %v582_v51 = vsel %vm402_vm1, %v577_v27, %v581_v31 }
  0xa2   :  { %18205 = vst [vmem:[#allocation26_spill] sm:$0xff] %v14312_v3  ;;  %v18047_v5 = vshrl.u32 %v14312_v3, 16  ;;  %v18046_v62 = vshll.u32 %v14312_v3, 16 }
  0xa3   :  { %10089 = vmatmul.mubr.msk.bf16.gmra.mrb[76].mxu1 %vm830_vm3, %v566_v40  ;;  %v64_v40 = vld [vmem:[%s18000_s0 + $0xc4] sm:$0xf] }
  0xa4   :  { %10092 = vmatprep.mubr.msk.bf16.mxu1 %vm13708_vm2, %v18042_v0  ;;  %v3952_v17 = vrot.slane %v18047_v5, 3  ;;  %v3955_v47 = vrot.slane %v18046_v62, 4  ;;  %v585_v62 = vor.u32 %v583_v36, %v581_v31  ;;  %v14355_v21 = vcombine.low %v63_v34, %v64_v40 }
  0xa6   :  { %v595_v34 = vshll.u32 %v14355_v21, 16 }
  0xa7   :  { %10945 = vmatmul.mubr.msk.bf16.gmra.mrb[76].mxu0 %vm830_vm3, %v3939_v39  ;;  %v65_v39 = vld [vmem:[%s18000_s0 + $0xc8] sm:$0xf] }
  0xa8   :  { %10948 = vmatprep.mubr.msk.bf16.mxu0 %vm13708_vm2, %v18042_v0  ;;  %v14329_v0 = vcombine.low %v61_v4, %v62_v58  ;;  %v14338_v18 = vcombine.low %v64_v40, %v65_v39  ;;  %v3956_v58 = vor.u32 %v3955_v47, %v3952_v17 }
  0xaa   :  { %18207 = vst [vmem:[#allocation27_spill] sm:$0xff] %v14338_v18  ;;  %v587_v4 = vshll.u32 %v14329_v0, 16  ;;  %v18052_v46 = vshrl.u32 %v14338_v18, 16  ;;  %v18051_v45 = vshll.u32 %v14338_v18, 16  ;;  %v3957_v47 = vsel %vm3751_vm4, %v3947_v24, %v3956_v58 }
  0xab   :  { %10093 = vmatmul.mubr.msk.bf16.gmra.mrb[80].mxu1 %vm830_vm3, %v574_v19  ;;  %v66_v19 = vld [vmem:[%s18000_s0 + $0xcc] sm:$0xf]  ;;  %v591_v31 = vshrl.u32 %v14329_v0, 16 }
  0xac   :  { %10096 = vmatprep.mubr.msk.bf16.mxu1 %vm13708_vm2, %v18206_v12  ;;  %v589_v5 = vrot.slane %v587_v4, 1  ;;  %v3961_v27 = vrot.slane %v18052_v46, 3  ;;  %v3964_v17 = vrot.slane %v18051_v45, 4  ;;  %v597_v46 = vrot.slane %v595_v34, 1 }
  0xad   :  { %v14381_v18 = vcombine.low %v65_v39, %v66_v19 }
  0xae   :  { %v590_v24 = vsel %vm402_vm1, %v585_v62, %v589_v5  ;;  %v3965_v40 = vor.u32 %v3964_v17, %v3961_v27  ;;  %v593_v45 = vor.u32 %v591_v31, %v589_v5  ;;  %v599_v5 = vshrl.u32 %v14355_v21, 16 }
  0xaf   :  { %10949 = vmatmul.mubr.msk.bf16.gmra.mrb[80].mxu0 %vm830_vm3, %v3948_v57  ;;  %v67_v57 = vld [vmem:[%s18000_s0 + $0xd0] sm:$0xf]  ;;  %v603_v39 = vshll.u32 %v14381_v18, 16 }
  0xb0   :  { %10952 = vmatprep.mubr.msk.bf16.mxu0 %vm13708_vm2, %v18206_v12  ;;  %v14364_v3 = vcombine.low %v66_v19, %v67_v57  ;;  %v3966_v62 = vsel %vm3751_vm4, %v3956_v58, %v3965_v40  ;;  %v598_v58 = vsel %vm402_vm1, %v593_v45, %v597_v46 }
  0xb2   :  { %18208 = vst [vmem:[#allocation28_spill] sm:$0xff] %v14364_v3  ;;  %v18058_v36 = vshrl.u32 %v14364_v3, 16  ;;  %v18057_v4 = vshll.u32 %v14364_v3, 16 }
  0xb3   :  { %10097 = vmatmul.mubr.msk.bf16.gmra.mrb[84].mxu1 %vm830_vm3, %v582_v51  ;;  %v68_v51 = vld [vmem:[%s18000_s0 + $0xd4] sm:$0xf] }
  0xb4   :  { %10100 = vmatprep.mubr.msk.bf16.mxu1 %vm13708_vm2, %v18206_v12  ;;  %v3970_v27 = vrot.slane %v18058_v36, 3  ;;  %v3973_v17 = vrot.slane %v18057_v4, 4  ;;  %v601_v4 = vor.u32 %v599_v5, %v597_v46  ;;  %v605_v36 = vrot.slane %v603_v39, 1 }
  0xb5   :  { %v14407_v3 = vcombine.low %v67_v57, %v68_v51  ;;  %v607_v46 = vshrl.u32 %v14381_v18, 16 }
  0xb6   :  { %v3974_v19 = vor.u32 %v3973_v17, %v3970_v27 }
  0xb7   :  { %10953 = vmatmul.mubr.msk.bf16.gmra.mrb[84].mxu0 %vm830_vm3, %v3957_v47  ;;  %v69_v47 = vld [vmem:[%s18000_s0 + $0xd8] sm:$0xf]  ;;  %18210 = vst [vmem:[#allocation30_spill] sm:$0xff] %v14407_v3  ;;  %v611_v57 = vshll.u32 %v14407_v3, 16 }
  0xb8   :  { %10956 = vmatprep.mubr.msk.bf16.mxu0 %vm13708_vm2, %v18206_v12  ;;  %v14390_v60 = vcombine.low %v68_v51, %v69_v47  ;;  %v3975_v45 = vsel %vm3751_vm4, %v3965_v40, %v3974_v19  ;;  %v606_v40 = vsel %vm402_vm1, %v601_v4, %v605_v36 }
  0xba   :  { %18209 = vst [vmem:[#allocation29_spill] sm:$0xff] %v14390_v60  ;;  %v18064_v31 = vshrl.u32 %v14390_v60, 16  ;;  %v18063_v34 = vshll.u32 %v14390_v60, 16 }
  0xbb   :  { %10101 = vmatmul.mubr.msk.bf16.gmra.mrb[88].mxu1 %vm830_vm3, %v590_v24  ;;  %v70_v24 = vld [vmem:[%s18000_s0 + $0xdc] sm:$0xf] }
  0xbc   :  { %10104 = vmatprep.mubr.msk.bf16.mxu1 %vm13708_vm2, %v18206_v12  ;;  %v3979_v27 = vrot.slane %v18064_v31, 3  ;;  %v3982_v17 = vrot.slane %v18063_v34, 4  ;;  %v609_v34 = vor.u32 %v607_v46, %v605_v36  ;;  %v613_v31 = vrot.slane %v611_v57, 1 }
  0xbd   :  { %v14433_v60 = vcombine.low %v69_v47, %v70_v24  ;;  %v615_v36 = vshrl.u32 %v14407_v3, 16 }
  0xbe   :  { %v3983_v51 = vor.u32 %v3982_v17, %v3979_v27 }
  0xbf   :  { %10957 = vmatmul.mubr.msk.bf16.gmra.mrb[88].mxu0 %vm830_vm3, %v3966_v62  ;;  %v71_v62 = vld [vmem:[%s18000_s0 + $0xe0] sm:$0xf]  ;;  %v619_v47 = vshll.u32 %v14433_v60, 16 }
  0xc0   :  { %10960 = vmatprep.mubr.msk.bf16.mxu0 %vm13708_vm2, %v18206_v12  ;;  %v14416_v11 = vcombine.low %v70_v24, %v71_v62  ;;  %v3984_v4 = vsel %vm3751_vm4, %v3974_v19, %v3983_v51  ;;  %v614_v19 = vsel %vm402_vm1, %v609_v34, %v613_v31 }
  0xc2   :  { %18211 = vst [vmem:[#allocation31_spill] sm:$0xff] %v14416_v11  ;;  %v18070_v5 = vshrl.u32 %v14416_v11, 16  ;;  %v18069_v39 = vshll.u32 %v14416_v11, 16 }
  0xc3   :  { %10105 = vmatmul.mubr.msk.bf16.gmra.mrb[92].mxu1 %vm830_vm3, %v598_v58  ;;  %v72_v58 = vld [vmem:[%s18000_s0 + $0xe4] sm:$0xf] }
  0xc4   :  { %10108 = vmatprep.mubr.msk.bf16.mxu1 %vm13708_vm2, %v18206_v12  ;;  %v3988_v27 = vrot.slane %v18070_v5, 3  ;;  %v3991_v17 = vrot.slane %v18069_v39, 4  ;;  %v621_v39 = vrot.slane %v619_v47, 1  ;;  %v74_v47 = vld [vmem:[%s18000_s0 + $0xec] sm:$0xf] }
  0xc6   :  { %v3992_v24 = vor.u32 %v3991_v17, %v3988_v27  ;;  %v14460_v27 = vcombine.low %v71_v62, %v72_v58 }
  0xc7   :  { %10961 = vmatmul.mubr.msk.bf16.gmra.mrb[92].mxu0 %vm830_vm3, %v3975_v45  ;;  %v73_v45 = vld [vmem:[%s18000_s0 + $0xe8] sm:$0xf] }
  0xc8   :  { %10964 = vmatprep.mubr.msk.bf16.mxu0 %vm13708_vm2, %v18206_v12  ;;  %v14442_v33 = vcombine.low %v72_v58, %v73_v45 }
  0xca   :  { %18212 = vst [vmem:[#allocation32_spill] sm:$0xff] %v14442_v33  ;;  %v18072_v46 = vshrl.u32 %v14442_v33, 16  ;;  %v18071_v57 = vshll.u32 %v14442_v33, 16 }
  0xcb   :  { %10109 = vmatmul.mubr.msk.bf16.gmra.mrb[96].mxu1 %vm830_vm3, %v606_v40  ;;  %v617_v40 = vor.u32 %v615_v36, %v613_v31  ;;  %v627_v36 = vshll.u32 %v14460_v27, 16 }
  0xcc   :  { %10112 = vmatprep.mubr.msk.bf16.mxu1 %vm13708_vm2, %v18206_v12  ;;  %v3997_v5 = vrot.slane %v18072_v46, 3  ;;  %v4000_v34 = vrot.slane %v18071_v57, 4 }
  0xcd   :  { %v622_v31 = vsel %vm402_vm1, %v617_v40, %v621_v39 }
  0xce   :  { %v14466_v17 = vor.u32 %v4000_v34, %v3997_v5  ;;  %v14478_v5 = vcombine.low %v73_v45, %v74_v47  ;;  %v5532_v45 = vld [vmem:[%s17999_s1 + $0xc] sm:$0x3] }
  0xcf   :  { %10965 = vmatmul.mubr.msk.bf16.gmra.mrb[96].mxu0 %vm830_vm3, %v3984_v4  ;;  %v3993_v4 = vsel %vm3751_vm4, %v3983_v51, %v3992_v24  ;;  %v623_v51 = vshrl.u32 %v14433_v60, 16  ;;  %v5812_v47 = vsel %vm990_vm0, %v5532_v45, 0 }
  0xd0   :  { %10968 = vmatprep.mubr.msk.bf16.mxu0 %vm13708_vm2, %v18206_v12  ;;  %18213 = vst [vmem:[#allocation33_spill] sm:$0xff] %v14466_v17  ;;  %v4002_v62 = vsel %vm3751_vm4, %v3992_v24, %v14466_v17  ;;  %v635_v34 = vshll.u32 %v14478_v5, 16  ;;  %v75_v24 = vld [vmem:[%s18000_s0 + $0xf0] sm:$0xf] }
  0xd1   :  { %v625_v58 = vor.u32 %v623_v51, %v621_v39  ;;  %v76_v39 = vld [vmem:[%s18000_s0 + $0xf4] sm:$0xf] }
  0xd2   :  { %v637_v51 = vrot.slane %v635_v34, 1 }
  0xd3   :  { %10113 = vmatmul.mubr.msk.bf16.gmra.mrb[100].mxu1 %vm830_vm3, %v614_v19  ;;  %v629_v19 = vrot.slane %v627_v36, 1  ;;  %v14498_v36 = vcombine.low %v75_v24, %v76_v39 }
  0xd4   :  { %10116 = vmatprep.mubr.msk.bf16.mxu1 %vm13708_vm2, %v18206_v12 }
  0xd5   :  { %v630_v40 = vsel %vm402_vm1, %v625_v58, %v629_v19  ;;  %v639_v58 = vshrl.u32 %v14478_v5, 16 }
  0xd7   :  { %10969 = vmatmul.mubr.msk.bf16.gmra.mrb[100].mxu0 %vm830_vm3, %v3993_v4  ;;  %v631_v4 = vshrl.u32 %v14460_v27, 16  ;;  %v641_v34 = vor.u32 %v639_v58, %v637_v51 }
  0xd8   :  { %10972 = vmatprep.mubr.msk.bf16.mxu0 %vm13708_vm2, %v18206_v12 }
  0xdb   :  { %10117 = vmatmul.mubr.msk.bf16.gmra.mrb[104].mxu1 %vm830_vm3, %v622_v31  ;;  %v633_v31 = vor.u32 %v631_v4, %v629_v19  ;;  %v77_v19 = vld [vmem:[%s18000_s0 + $0xf8] sm:$0xf]  ;;  %v78_v4 = vld [vmem:[%s18000_s0 + $0xfc] sm:$0xf] }
  0xdc   :  { %10120 = vmatprep.mubr.msk.bf16.mxu1 %vm13708_vm2, %v18206_v12  ;;  %v14518_v39 = vcombine.low %v77_v19, %v78_v4 }
  0xdf   :  { %10973 = vmatmul.mubr.msk.bf16.gmra.mrb[104].mxu0 %vm830_vm3, %v4002_v62  ;;  %v638_v62 = vsel %vm402_vm1, %v633_v31, %v637_v51  ;;  %v647_v31 = vshrl.u32 %v14498_v36, 16  ;;  %v80_v51 = vld [vmem:[%s18000_s0 + $0x104] sm:$0xf] }
  0xe0   :  { %11082 = vmatprep.mubr.msk.bf16.mxu0 %vm13708_vm2, %v18206_v12 }
  0xe3   :  { %10121 = vmatmul.mubr.msk.bf16.gmra.mrb[108].mxu1 %vm830_vm3, %v630_v40  ;;  %v643_v40 = vshll.u32 %v14498_v36, 16 }
  0xe4   :  { %10124 = vmatprep.mubr.msk.bf16.mxu1 %vm13708_vm2, %v18206_v12 }
  0xe5   :  { %v645_v24 = vrot.slane %v643_v40, 1 }
  0xe7   :  { %11083 = vmatmul.mubr.msk.bf16.vlgmr.msra.gmra.mrb[0].mxu0 %vm830_vm3, %v13769_v15  ;;  %v646_v45 = vsel %vm402_vm1, %v641_v34, %v645_v24  ;;  %v649_v58 = vor.u32 %v647_v31, %v645_v24  ;;  %v655_v34 = vshrl.u32 %v14518_v39, 16  ;;  %v82_v24 = vld [vmem:[%s18000_s0 + $0x10c] sm:$0xf] }
  0xe8   :  { %11295 = vmatpush3.bf16.msra.mxu0 %v5812_v47  ;;  %11086 = vmatprep.mubr.msk.bf16.mxu0 %vm13708_vm2, %v18206_v12  ;;  %v651_v47 = vshll.u32 %v14518_v39, 16 }
  0xe9   :  { %11508 = vmatprep.subr.bf16.mxu0 %v18206_v12 }
  0xea   :  { %v653_v40 = vrot.slane %v651_v47, 1 }
  0xeb   :  { %10125 = vmatmul.mubr.msk.bf16.gmra.mrb[112].mxu1 %vm830_vm3, %v638_v62  ;;  %v79_v62 = vld [vmem:[%s18000_s0 + $0x100] sm:$0xf] }
  0xec   :  { %10128 = vmatprep.mubr.msk.bf16.mxu1 %vm13708_vm2, %v18206_v12  ;;  %v14536_v19 = vcombine.low %v79_v62, %v80_v51  ;;  %v654_v4 = vsel %vm402_vm1, %v649_v58, %v653_v40  ;;  %v657_v31 = vor.u32 %v655_v34, %v653_v40 }
  0xee   :  { %v659_v57 = vshll.u32 %v14536_v19, 16  ;;  %v663_v58 = vshrl.u32 %v14536_v19, 16 }
  0xef   :  { %11087 = vmatmul.mubr.msk.bf16.gmra.mrb[4].mxu0 %vm830_vm3, %v13803_v44 }
  0xf0   :  { %11090 = vmatprep.mubr.msk.bf16.mxu0 %vm13708_vm2, %v18206_v12  ;;  %v661_v47 = vrot.slane %v659_v57, 1  ;;  %v84_v57 = vld [vmem:[%s18000_s0 + $0x114] sm:$0xf] }
  0xf2   :  { %v662_v51 = vsel %vm402_vm1, %v657_v31, %v661_v47  ;;  %v665_v40 = vor.u32 %v663_v58, %v661_v47 }
  0xf3   :  { %10129 = vmatmul.mubr.msk.bf16.gmra.mrb[116].mxu1 %vm830_vm3, %v646_v45  ;;  %v81_v45 = vld [vmem:[%s18000_s0 + $0x108] sm:$0xf] }
  0xf4   :  { %10132 = vmatprep.mubr.msk.bf16.mxu1 %vm13708_vm2, %v18206_v12  ;;  %v14554_v62 = vcombine.low %v81_v45, %v82_v24 }
  0xf6   :  { %v667_v46 = vshll.u32 %v14554_v62, 16  ;;  %v671_v31 = vshrl.u32 %v14554_v62, 16 }
  0xf7   :  { %11091 = vmatmul.mubr.msk.bf16.gmra.mrb[8].mxu0 %vm830_vm3, %v13835_v1 }
  0xf8   :  { %11094 = vmatprep.mubr.msk.bf16.mxu0 %vm13708_vm2, %v18206_v12  ;;  %v669_v34 = vrot.slane %v667_v46, 1  ;;  %v86_v46 = vld [vmem:[%s18000_s0 + $0x11c] sm:$0xf] }
  0xfa   :  { %v670_v24 = vsel %vm402_vm1, %v665_v40, %v669_v34  ;;  %v673_v47 = vor.u32 %v671_v31, %v669_v34 }
  0xfb   :  { %10133 = vmatmul.mubr.msk.bf16.gmra.mrb[120].mxu1 %vm830_vm3, %v654_v4  ;;  %v83_v4 = vld [vmem:[%s18000_s0 + $0x110] sm:$0xf] }
  0xfc   :  { %10136 = vmatprep.mubr.msk.bf16.mxu1 %vm13708_vm2, %v18206_v12  ;;  %v14572_v45 = vcombine.low %v83_v4, %v84_v57 }
  0xfe   :  { %v675_v17 = vshll.u32 %v14572_v45, 16  ;;  %v679_v40 = vshrl.u32 %v14572_v45, 16 }
  0xff   :  { %11095 = vmatmul.mubr.msk.bf16.gmra.mrb[12].mxu0 %vm830_vm3, %v13868_v25 }
 0x100   :  { %11098 = vmatprep.mubr.msk.bf16.mxu0 %vm13708_vm2, %v18206_v12  ;;  %v677_v58 = vrot.slane %v675_v17, 1  ;;  %v88_v17 = vld [vmem:[%s18000_s0 + $0x124] sm:$0xf] }
 0x102   :  { %v678_v57 = vsel %vm402_vm1, %v673_v47, %v677_v58  ;;  %v681_v34 = vor.u32 %v679_v40, %v677_v58 }
 0x103   :  { %10137 = vmatmul.mubr.msk.bf16.gmra.mrb[124].mxu1 %vm830_vm3, %v662_v51  ;;  %v85_v51 = vld [vmem:[%s18000_s0 + $0x118] sm:$0xf] }
 0x104   :  { %10140 = vmatprep.mubr.msk.bf16.mxu1 %vm13708_vm2, %v18206_v12  ;;  %v14590_v4 = vcombine.low %v85_v51, %v86_v46 }
 0x106   :  { %v683_v33 = vshll.u32 %v14590_v4, 16  ;;  %v687_v47 = vshrl.u32 %v14590_v4, 16 }
 0x107   :  { %11099 = vmatmul.mubr.msk.bf16.gmra.mrb[16].mxu0 %vm830_vm3, %v13888_v37 }
 0x108   :  { %11102 = vmatprep.mubr.msk.bf16.mxu0 %vm13708_vm2, %v18206_v12  ;;  %v685_v31 = vrot.slane %v683_v33, 1  ;;  %v90_v33 = vld [vmem:[%s18000_s0 + $0x12c] sm:$0xf] }
 0x10a   :  { %v686_v46 = vsel %vm402_vm1, %v681_v34, %v685_v31  ;;  %v689_v58 = vor.u32 %v687_v47, %v685_v31 }
 0x10b   :  { %10141 = vmatmul.mubr.msk.bf16.gmra.mrb[128].mxu1 %vm830_vm3, %v670_v24  ;;  %v87_v24 = vld [vmem:[%s18000_s0 + $0x120] sm:$0xf] }
 0x10c   :  { %10144 = vmatprep.mubr.msk.bf16.mxu1 %vm13708_vm2, %v18206_v12  ;;  %v14608_v51 = vcombine.low %v87_v24, %v88_v17 }
 0x10e   :  { %v691_v11 = vshll.u32 %v14608_v51, 16  ;;  %v695_v34 = vshrl.u32 %v14608_v51, 16 }
 0x10f   :  { %11103 = vmatmul.mubr.msk.bf16.gmra.mrb[20].mxu0 %vm830_vm3, %v13913_v55 }
 0x110   :  { %11106 = vmatprep.mubr.msk.bf16.mxu0 %vm13708_vm2, %v18206_v12  ;;  %v693_v40 = vrot.slane %v691_v11, 1  ;;  %v92_v11 = vld [vmem:[%s18000_s0 + $0x134] sm:$0xf] }
 0x112   :  { %v694_v17 = vsel %vm402_vm1, %v689_v58, %v693_v40  ;;  %v697_v31 = vor.u32 %v695_v34, %v693_v40 }
 0x113   :  { %10145 = vmatmul.mubr.msk.bf16.gmra.mrb[132].mxu1 %vm830_vm3, %v678_v57  ;;  %v89_v57 = vld [vmem:[%s18000_s0 + $0x128] sm:$0xf] }
 0x114   :  { %10148 = vmatprep.mubr.msk.bf16.mxu1 %vm13708_vm2, %v18206_v12  ;;  %v14626_v24 = vcombine.low %v89_v57, %v90_v33 }
 0x116   :  { %v699_v50 = vshll.u32 %v14626_v24, 16  ;;  %v703_v58 = vshrl.u32 %v14626_v24, 16 }
 0x117   :  { %11107 = vmatmul.mubr.msk.bf16.gmra.mrb[24].mxu0 %vm830_vm3, %v13939_v16 }
 0x118   :  { %11110 = vmatprep.mubr.msk.bf16.mxu0 %vm13708_vm2, %v18206_v12  ;;  %v701_v47 = vrot.slane %v699_v50, 1  ;;  %v94_v50 = vld [vmem:[%s18000_s0 + $0x13c] sm:$0xf] }
 0x11a   :  { %v702_v33 = vsel %vm402_vm1, %v697_v31, %v701_v47  ;;  %v705_v40 = vor.u32 %v703_v58, %v701_v47 }
 0x11b   :  { %10149 = vmatmul.mubr.msk.bf16.gmra.mrb[136].mxu1 %vm830_vm3, %v686_v46  ;;  %v91_v46 = vld [vmem:[%s18000_s0 + $0x130] sm:$0xf] }
 0x11c   :  { %10152 = vmatprep.mubr.msk.bf16.mxu1 %vm13708_vm2, %v18206_v12  ;;  %v14644_v57 = vcombine.low %v91_v46, %v92_v11 }
 0x11e   :  { %v707_v8 = vshll.u32 %v14644_v57, 16  ;;  %v711_v31 = vshrl.u32 %v14644_v57, 16 }
 0x11f   :  { %11111 = vmatmul.mubr.msk.bf16.gmra.mrb[28].mxu0 %vm830_vm3, %v13965_v38 }
 0x120   :  { %11114 = vmatprep.mubr.msk.bf16.mxu0 %vm13708_vm2, %v18206_v12  ;;  %v709_v34 = vrot.slane %v707_v8, 1  ;;  %v96_v8 = vld [vmem:[%s18000_s0 + $0x144] sm:$0xf] }
 0x122   :  { %v710_v11 = vsel %vm402_vm1, %v705_v40, %v709_v34  ;;  %v713_v47 = vor.u32 %v711_v31, %v709_v34 }
 0x123   :  { %10153 = vmatmul.mubr.msk.bf16.gmra.mrb[140].mxu1 %vm830_vm3, %v694_v17  ;;  %v93_v17 = vld [vmem:[%s18000_s0 + $0x138] sm:$0xf] }
 0x124   :  { %10156 = vmatprep.mubr.msk.bf16.mxu1 %vm13708_vm2, %v18206_v12  ;;  %v14662_v46 = vcombine.low %v93_v17, %v94_v50 }
 0x126   :  { %v715_v30 = vshll.u32 %v14662_v46, 16  ;;  %v719_v40 = vshrl.u32 %v14662_v46, 16 }
 0x127   :  { %11115 = vmatmul.mubr.msk.bf16.gmra.mrb[32].mxu0 %vm830_vm3, %v13991_v63 }
 0x128   :  { %11118 = vmatprep.mubr.msk.bf16.mxu0 %vm13708_vm2, %v18206_v12  ;;  %v717_v58 = vrot.slane %v715_v30, 1  ;;  %v98_v30 = vld [vmem:[%s18000_s0 + $0x14c] sm:$0xf] }
 0x12a   :  { %v718_v50 = vsel %vm402_vm1, %v713_v47, %v717_v58  ;;  %v721_v34 = vor.u32 %v719_v40, %v717_v58 }
 0x12b   :  { %10157 = vmatmul.mubr.msk.bf16.gmra.mrb[144].mxu1 %vm830_vm3, %v702_v33  ;;  %v95_v33 = vld [vmem:[%s18000_s0 + $0x140] sm:$0xf] }
 0x12c   :  { %10160 = vmatprep.mubr.msk.bf16.mxu1 %vm13708_vm2, %v18206_v12  ;;  %v14680_v17 = vcombine.low %v95_v33, %v96_v8 }
 0x12e   :  { %v723_v54 = vshll.u32 %v14680_v17, 16  ;;  %v727_v47 = vshrl.u32 %v14680_v17, 16 }
 0x12f   :  { %11119 = vmatmul.mubr.msk.bf16.gmra.mrb[36].mxu0 %vm830_vm3, %v14017_v35 }
 0x130   :  { %11122 = vmatprep.mubr.msk.bf16.mxu0 %vm13708_vm2, %v18206_v12  ;;  %v725_v31 = vrot.slane %v723_v54, 1  ;;  %v100_v54 = vld [vmem:[%s18000_s0 + $0x154] sm:$0xf] }
 0x132   :  { %v726_v8 = vsel %vm402_vm1, %v721_v34, %v725_v31  ;;  %v729_v58 = vor.u32 %v727_v47, %v725_v31 }
 0x133   :  { %10161 = vmatmul.mubr.msk.bf16.gmra.mrb[148].mxu1 %vm830_vm3, %v710_v11  ;;  %v97_v11 = vld [vmem:[%s18000_s0 + $0x148] sm:$0xf] }
 0x134   :  { %10164 = vmatprep.mubr.msk.bf16.mxu1 %vm13708_vm2, %v18206_v12  ;;  %v14698_v33 = vcombine.low %v97_v11, %v98_v30 }
 0x136   :  { %v731_v23 = vshll.u32 %v14698_v33, 16  ;;  %v735_v34 = vshrl.u32 %v14698_v33, 16 }
 0x137   :  { %11123 = vmatmul.mubr.msk.bf16.gmra.mrb[40].mxu0 %vm830_vm3, %v14043_v9 }
 0x138   :  { %11126 = vmatprep.mubr.msk.bf16.mxu0 %vm13708_vm2, %v18206_v12  ;;  %v733_v40 = vrot.slane %v731_v23, 1  ;;  %v102_v23 = vld [vmem:[%s18000_s0 + $0x15c] sm:$0xf] }
 0x13a   :  { %v734_v30 = vsel %vm402_vm1, %v729_v58, %v733_v40  ;;  %v737_v31 = vor.u32 %v735_v34, %v733_v40 }
 0x13b   :  { %10165 = vmatmul.mubr.msk.bf16.gmra.mrb[152].mxu1 %vm830_vm3, %v718_v50  ;;  %v99_v50 = vld [vmem:[%s18000_s0 + $0x150] sm:$0xf] }
 0x13c   :  { %10168 = vmatprep.mubr.msk.bf16.mxu1 %vm13708_vm2, %v18206_v12  ;;  %v14716_v11 = vcombine.low %v99_v50, %v100_v54 }
 0x13e   :  { %v739_v56 = vshll.u32 %v14716_v11, 16  ;;  %v743_v58 = vshrl.u32 %v14716_v11, 16 }
 0x13f   :  { %11127 = vmatmul.mubr.msk.bf16.gmra.mrb[44].mxu0 %vm830_vm3, %v14069_v14 }
 0x140   :  { %11130 = vmatprep.mubr.msk.bf16.mxu0 %vm13708_vm2, %v18206_v12  ;;  %v741_v47 = vrot.slane %v739_v56, 1  ;;  %v104_v56 = vld [vmem:[%s18000_s0 + $0x164] sm:$0xf] }
 0x142   :  { %v742_v54 = vsel %vm402_vm1, %v737_v31, %v741_v47  ;;  %v745_v40 = vor.u32 %v743_v58, %v741_v47 }
 0x143   :  { %10169 = vmatmul.mubr.msk.bf16.gmra.mrb[156].mxu1 %vm830_vm3, %v726_v8  ;;  %v101_v8 = vld [vmem:[%s18000_s0 + $0x158] sm:$0xf] }
 0x144   :  { %10172 = vmatprep.mubr.msk.bf16.mxu1 %vm13708_vm2, %v18206_v12  ;;  %v14734_v50 = vcombine.low %v101_v8, %v102_v23 }
 0x146   :  { %v747_v28 = vshll.u32 %v14734_v50, 16  ;;  %v751_v31 = vshrl.u32 %v14734_v50, 16 }
 0x147   :  { %11131 = vmatmul.mubr.msk.bf16.gmra.mrb[48].mxu0 %vm830_vm3, %v14095_v52 }
 0x148   :  { %11134 = vmatprep.mubr.msk.bf16.mxu0 %vm13708_vm2, %v18206_v12  ;;  %v749_v34 = vrot.slane %v747_v28, 1  ;;  %v106_v28 = vld [vmem:[%s18000_s0 + $0x16c] sm:$0xf] }
 0x14a   :  { %v750_v23 = vsel %vm402_vm1, %v745_v40, %v749_v34  ;;  %v753_v47 = vor.u32 %v751_v31, %v749_v34 }
 0x14b   :  { %10173 = vmatmul.mubr.msk.bf16.gmra.mrb[160].mxu1 %vm830_vm3, %v734_v30  ;;  %v103_v30 = vld [vmem:[%s18000_s0 + $0x160] sm:$0xf] }
 0x14c   :  { %10176 = vmatprep.mubr.msk.bf16.mxu1 %vm13708_vm2, %v18206_v12  ;;  %v14752_v8 = vcombine.low %v103_v30, %v104_v56 }
 0x14e   :  { %v755_v42 = vshll.u32 %v14752_v8, 16  ;;  %v759_v40 = vshrl.u32 %v14752_v8, 16 }
 0x14f   :  { %11135 = vmatmul.mubr.msk.bf16.gmra.mrb[52].mxu0 %vm830_vm3, %v14121_v20 }
 0x150   :  { %11138 = vmatprep.mubr.msk.bf16.mxu0 %vm13708_vm2, %v18206_v12  ;;  %v757_v58 = vrot.slane %v755_v42, 1  ;;  %v108_v42 = vld [vmem:[%s18000_s0 + $0x174] sm:$0xf] }
 0x152   :  { %v758_v56 = vsel %vm402_vm1, %v753_v47, %v757_v58  ;;  %v761_v34 = vor.u32 %v759_v40, %v757_v58 }
 0x153   :  { %10177 = vmatmul.mubr.msk.bf16.gmra.mrb[164].mxu1 %vm830_vm3, %v742_v54  ;;  %v105_v54 = vld [vmem:[%s18000_s0 + $0x168] sm:$0xf] }
 0x154   :  { %10180 = vmatprep.mubr.msk.bf16.mxu1 %vm13708_vm2, %v18206_v12  ;;  %v14770_v30 = vcombine.low %v105_v54, %v106_v28 }
 0x156   :  { %v763_v13 = vshll.u32 %v14770_v30, 16  ;;  %v767_v47 = vshrl.u32 %v14770_v30, 16 }
 0x157   :  { %11139 = vmatmul.mubr.msk.bf16.gmra.mrb[56].mxu0 %vm830_vm3, %v14147_v53 }
 0x158   :  { %11142 = vmatprep.mubr.msk.bf16.mxu0 %vm13708_vm2, %v18206_v12  ;;  %v765_v31 = vrot.slane %v763_v13, 1  ;;  %v110_v13 = vld [vmem:[%s18000_s0 + $0x17c] sm:$0xf] }
 0x15a   :  { %v766_v28 = vsel %vm402_vm1, %v761_v34, %v765_v31  ;;  %v769_v58 = vor.u32 %v767_v47, %v765_v31 }
 0x15b   :  { %10181 = vmatmul.mubr.msk.bf16.gmra.mrb[168].mxu1 %vm830_vm3, %v750_v23  ;;  %v107_v23 = vld [vmem:[%s18000_s0 + $0x170] sm:$0xf] }
 0x15c   :  { %10184 = vmatprep.mubr.msk.bf16.mxu1 %vm13708_vm2, %v18206_v12  ;;  %v14788_v54 = vcombine.low %v107_v23, %v108_v42 }
 0x15e   :  { %v771_v43 = vshll.u32 %v14788_v54, 16  ;;  %v775_v34 = vshrl.u32 %v14788_v54, 16 }
 0x15f   :  { %11143 = vmatmul.mubr.msk.bf16.gmra.mrb[60].mxu0 %vm830_vm3, %v14173_v29 }
 0x160   :  { %11146 = vmatprep.mubr.msk.bf16.mxu0 %vm13708_vm2, %v18206_v12  ;;  %v773_v40 = vrot.slane %v771_v43, 1  ;;  %v112_v43 = vld [vmem:[%s18000_s0 + $0x184] sm:$0xf] }
 0x162   :  { %v774_v42 = vsel %vm402_vm1, %v769_v58, %v773_v40  ;;  %v777_v31 = vor.u32 %v775_v34, %v773_v40 }
 0x163   :  { %10185 = vmatmul.mubr.msk.bf16.gmra.mrb[172].mxu1 %vm830_vm3, %v758_v56  ;;  %v109_v56 = vld [vmem:[%s18000_s0 + $0x178] sm:$0xf] }
 0x164   :  { %10188 = vmatprep.mubr.msk.bf16.mxu1 %vm13708_vm2, %v18206_v12  ;;  %v14806_v23 = vcombine.low %v109_v56, %v110_v13 }
 0x166   :  { %18214 = vst [vmem:[#allocation34_spill] sm:$0xff] %v14806_v23  ;;  %v779_v22 = vshll.u32 %v14806_v23, 16  ;;  %v783_v58 = vshrl.u32 %v14806_v23, 16 }
 0x167   :  { %11147 = vmatmul.mubr.msk.bf16.gmra.mrb[64].mxu0 %vm830_vm3, %v14199_v7 }
 0x168   :  { %11150 = vmatprep.mubr.msk.bf16.mxu0 %vm13708_vm2, %v18206_v12  ;;  %v781_v47 = vrot.slane %v779_v22, 1  ;;  %v114_v22 = vld [vmem:[%s18000_s0 + $0x18c] sm:$0xf] }
 0x16a   :  { %v782_v13 = vsel %vm402_vm1, %v777_v31, %v781_v47  ;;  %v785_v40 = vor.u32 %v783_v58, %v781_v47 }
 0x16b   :  { %10189 = vmatmul.mubr.msk.bf16.gmra.mrb[176].mxu1 %vm830_vm3, %v766_v28  ;;  %v111_v28 = vld [vmem:[%s18000_s0 + $0x180] sm:$0xf] }
 0x16c   :  { %10192 = vmatprep.mubr.msk.bf16.mxu1 %vm13708_vm2, %v18206_v12  ;;  %v14824_v56 = vcombine.low %v111_v28, %v112_v43 }
 0x16e   :  { %18215 = vst [vmem:[#allocation35_spill] sm:$0xff] %v14824_v56  ;;  %v787_v61 = vshll.u32 %v14824_v56, 16  ;;  %v791_v31 = vshrl.u32 %v14824_v56, 16 }
 0x16f   :  { %11151 = vmatmul.mubr.msk.bf16.gmra.mrb[68].mxu0 %vm830_vm3, %v14225_v48 }
 0x170   :  { %11154 = vmatprep.mubr.msk.bf16.mxu0 %vm13708_vm2, %v18206_v12  ;;  %v789_v34 = vrot.slane %v787_v61, 1  ;;  %v116_v61 = vld [vmem:[%s18000_s0 + $0x194] sm:$0xf] }
 0x172   :  { %v790_v43 = vsel %vm402_vm1, %v785_v40, %v789_v34  ;;  %v793_v47 = vor.u32 %v791_v31, %v789_v34 }
 0x173   :  { %10193 = vmatmul.mubr.msk.bf16.gmra.mrb[180].mxu1 %vm830_vm3, %v774_v42  ;;  %v113_v42 = vld [vmem:[%s18000_s0 + $0x188] sm:$0xf] }
 0x174   :  { %10196 = vmatprep.mubr.msk.bf16.mxu1 %vm13708_vm2, %v18206_v12  ;;  %v14842_v28 = vcombine.low %v113_v42, %v114_v22 }
 0x176   :  { %18216 = vst [vmem:[#allocation36_spill] sm:$0xff] %v14842_v28  ;;  %v795_v41 = vshll.u32 %v14842_v28, 16  ;;  %v799_v40 = vshrl.u32 %v14842_v28, 16 }
 0x177   :  { %11155 = vmatmul.mubr.msk.bf16.gmra.mrb[72].mxu0 %vm830_vm3, %v14251_v32 }
 0x178   :  { %11158 = vmatprep.mubr.msk.bf16.mxu0 %vm13708_vm2, %v18206_v12  ;;  %v797_v58 = vrot.slane %v795_v41, 1  ;;  %v118_v41 = vld [vmem:[%s18000_s0 + $0x19c] sm:$0xf] }
 0x17a   :  { %v798_v22 = vsel %vm402_vm1, %v793_v47, %v797_v58  ;;  %v801_v34 = vor.u32 %v799_v40, %v797_v58 }
 0x17b   :  { %10197 = vmatmul.mubr.msk.bf16.gmra.mrb[184].mxu1 %vm830_vm3, %v782_v13  ;;  %v115_v13 = vld [vmem:[%s18000_s0 + $0x190] sm:$0xf] }
 0x17c   :  { %10200 = vmatprep.mubr.msk.bf16.mxu1 %vm13708_vm2, %v18206_v12  ;;  %v14860_v42 = vcombine.low %v115_v13, %v116_v61 }
 0x17e   :  { %18217 = vst [vmem:[#allocation37_spill] sm:$0xff] %v14860_v42  ;;  %v803_v26 = vshll.u32 %v14860_v42, 16  ;;  %v807_v47 = vshrl.u32 %v14860_v42, 16 }
 0x17f   :  { %11159 = vmatmul.mubr.msk.bf16.gmra.mrb[76].mxu0 %vm830_vm3, %v14277_v10 }
 0x180   :  { %11162 = vmatprep.mubr.msk.bf16.mxu0 %vm13708_vm2, %v18206_v12  ;;  %v805_v31 = vrot.slane %v803_v26, 1  ;;  %v120_v26 = vld [vmem:[%s18000_s0 + $0x1a4] sm:$0x1] }
 0x182   :  { %v806_v61 = vsel %vm402_vm1, %v801_v34, %v805_v31  ;;  %v809_v58 = vor.u32 %v807_v47, %v805_v31 }
 0x183   :  { %10201 = vmatmul.mubr.msk.bf16.gmra.mrb[188].mxu1 %vm830_vm3, %v790_v43  ;;  %v117_v43 = vld [vmem:[%s18000_s0 + $0x198] sm:$0xf] }
 0x184   :  { %10204 = vmatprep.mubr.msk.bf16.mxu1 %vm13708_vm2, %v18206_v12  ;;  %v14878_v13 = vcombine.low %v117_v43, %v118_v41 }
 0x186   :  { %18218 = vst [vmem:[#allocation38_spill] sm:$0xff] %v14878_v13  ;;  %v811_v2 = vshll.u32 %v14878_v13, 16  ;;  %v815_v34 = vshrl.u32 %v14878_v13, 16 }
 0x187   :  { %11163 = vmatmul.mubr.msk.bf16.gmra.mrb[80].mxu0 %vm830_vm3, %v14303_v59 }
 0x188   :  { %11166 = vmatprep.mubr.msk.bf16.mxu0 %vm13708_vm2, %v18206_v12  ;;  %v813_v40 = vrot.slane %v811_v2, 1 }
 0x18a   :  { %v814_v41 = vsel %vm402_vm1, %v809_v58, %v813_v40  ;;  %v817_v2 = vor.u32 %v815_v34, %v813_v40  ;;  %v2017_v40 = vld [vmem:[%s17999_s1 + $0x4] sm:$0x3]  ;;  %v14947_v34 = vld [vmem:[%s18000_s0 + $0x8] sm:$0xff]  }
 0x18b   :  { %10205 = vmatmul.mubr.msk.bf16.gmra.mrb[192].mxu1 %vm830_vm3, %v798_v22  ;;  %v14890_v22 = vld [vmem:[%s18000_s0 + $0x1a0] sm:$0xf] }
 0x18c   :  { %10208 = vmatprep.mubr.msk.bf16.mxu1 %vm13708_vm2, %v18206_v12  ;;  %v14899_v43 = vcombine.low %v14890_v22, %v120_v26 }
 0x18e   :  { %18219 = vst [vmem:[#allocation39_spill] sm:$0xff] %v14899_v43  ;;  %v823_v26 = vshrl.u32 %v14899_v43, 16 }
 0x18f   :  { %11167 = vmatmul.mubr.msk.bf16.gmra.mrb[84].mxu0 %vm830_vm3, %v14329_v0 }
 0x190   :  { %11170 = vmatprep.mubr.msk.bf16.mxu0 %vm13708_vm2, %v18206_v12 }
 0x193   :  { %10209 = vmatmul.mubr.msk.bf16.gmra.mrb[196].mxu1 %vm830_vm3, %v806_v61  ;;  %v819_v61 = vshll.u32 %v14899_v43, 16  ;;  %v5548_v43 = vrot.slane %v13813_v49, 2 }
 0x194   :  { %10212 = vmatprep.mubr.msk.bf16.mxu1 %vm13708_vm2, %v18206_v12 }
 0x195   :  { %v821_v31 = vrot.slane %v819_v61, 1  ;;  %v15023_v61 = vld [vmem:[%s18000_s0 + $0x1a8] sm:$0xf] }
 0x197   :  { %11171 = vmatmul.mubr.msk.bf16.gmra.mrb[88].mxu0 %vm830_vm3, %v14355_v21  ;;  %v822_v47 = vsel %vm402_vm1, %v817_v2, %v821_v31  ;;  %v825_v58 = vor.u32 %v823_v26, %v821_v31 }
 0x198   :  { %11174 = vmatprep.mubr.msk.bf16.mxu0 %vm13708_vm2, %v18206_v12 }
 0x19b   :  { %10213 = vmatmul.mubr.msk.bf16.gmra.mrb[200].mxu1 %vm830_vm3, %v814_v41  ;;  %v2287_v41 = vsel %vm990_vm0, %v2017_v40, 0  ;;  %v128_v40 = vld [vmem:[%s18000_s0 + $0x1c] sm:$0xc] }
 0x19c   :  { %10216 = vmatprep.mubr.msk.bf16.mxu1 %vm13708_vm2, %v18206_v12 }
 0x19f   :  { %11175 = vmatmul.mubr.msk.bf16.gmra.mrb[92].mxu0 %vm830_vm3, %v14381_v18 }
 0x1a0   :  { %11178 = vmatprep.mubr.msk.bf16.mxu0 %vm13708_vm2, %v18206_v12 }
 0x1a3   :  { %10217 = vmatmul.mubr.msk.bf16.gmra.mrb[204].mxu1 %vm830_vm3, %v822_v47  ;;  %v15159_v47 = vld [vmem:[%s18000_s0 + $0x1ac] sm:$0xf] }
 0x1a4   :  { %10220 = vmatprep.mubr.msk.bf16.mxu1 %vm13708_vm2, %v18206_v12  ;;  %v9246_v26 = vcombine.low %v15023_v61, %v15159_v47 }
 0x1a7   :  { %11179 = vmatmul.mubr.msk.bf16.gmra.mrb[96].mxu0 %vm830_vm3, %v14407_v3 }
 0x1a8   :  { %11182 = vmatprep.mubr.msk.bf16.mxu0 %vm13708_vm2, %v18206_v12 }
 0x1ab   :  { %10221 = vmatmul.mubr.msk.bf16.gmra.mrb[208].mxu1 %vm830_vm3, %v825_v58  ;;  %v15173_v58 = vld [vmem:[%s18000_s0 + $0x1b0] sm:$0xf] }
 0x1ac   :  { %10226 = vmatprep.mubr.msk.bf16.mxu1 %vm13708_vm2, %v18206_v12 }
 0x1af   :  { %11183 = vmatmul.mubr.msk.bf16.gmra.mrb[100].mxu0 %vm830_vm3, %v14433_v60 }
 0x1b0   :  { %11186 = vmatprep.mubr.msk.bf16.mxu0 %vm13708_vm2, %v18206_v12 }
 0x1b3   :  { %10227 = vmatmul.mubr.msk.bf16.vlgmr.msra.gmra.mrb[0].mxu1 %vm830_vm3, %v13752_v6  ;;  %v15018_v6 = vld [vmem:[%s18000_s0 + $0x1a4] sm:$0xf] }
 0x1b4   :  { %10230 = vmatprep.mubr.msk.bf16.mxu1 %vm13708_vm2, %v18206_v12  ;;  %10439 = vmatpush3.bf16.msra.mxu1 %v2287_v41  ;;  %v15029_v2 = vcombine.low %v15018_v6, %v15023_v61  ;;  %v9245_v31 = vcombine.low %v14890_v22, %v15018_v6  ;;  %v9247_v41 = vcombine.low %v15173_v58, %v15173_v58  ;;  %v13652_v6 = vld [vmem:[%s18000_s0 + $0x20] sm:$0xf] }
 0x1b5   :  { %10652 = vmatprep.subr.bf16.mxu1 %v18206_v12  ;;  %v15187_v61 = vcombine.low %v128_v40, %v13652_v6 }
 0x1b6   :  { %18220 = vst [vmem:[#allocation40_spill] sm:$0xff] %v15029_v2 }
 0x1b7   :  { %11187 = vmatmul.mubr.msk.bf16.gmra.mrb[104].mxu0 %vm830_vm3, %v14460_v27  ;;  %18221 = vst [vmem:[#allocation41_spill] sm:$0xff] %v15187_v61 }
 0x1b8   :  { %11190 = vmatprep.mubr.msk.bf16.mxu0 %vm13708_vm2, %v18206_v12 }
 0x1bb   :  { %10231 = vmatmul.mubr.msk.bf16.gmra.mrb[4].mxu1 %vm830_vm3, %v14947_v34 }
 0x1bc   :  { %10234 = vmatprep.mubr.msk.bf16.mxu1 %vm13708_vm2, %v18206_v12 }
 0x1bf   :  { %11191 = vmatmul.mubr.msk.bf16.gmra.mrb[108].mxu0 %vm830_vm3, %v14478_v5 }
 0x1c0   :  { %11194 = vmatprep.mubr.msk.bf16.mxu0 %vm13708_vm2, %v18206_v12 }
 0x1c3   :  { %10235 = vmatmul.mubr.msk.bf16.gmra.mrb[8].mxu1 %vm830_vm3, %v13769_v15 }
 0x1c4   :  { %10238 = vmatprep.mubr.msk.bf16.mxu1 %vm13708_vm2, %v18206_v12 }
 0x1c7   :  { %11195 = vmatmul.mubr.msk.bf16.gmra.mrb[112].mxu0 %vm830_vm3, %v14498_v36 }
 0x1c8   :  { %11198 = vmatprep.mubr.msk.bf16.mxu0 %vm13708_vm2, %v18206_v12 }
 0x1cb   :  { %10239 = vmatmul.mubr.msk.bf16.gmra.mrb[12].mxu1 %vm830_vm3, %v13803_v44 }
 0x1cc   :  { %10242 = vmatprep.mubr.msk.bf16.mxu1 %vm13708_vm2, %v18206_v12 }
 0x1cf   :  { %11199 = vmatmul.mubr.msk.bf16.gmra.mrb[116].mxu0 %vm830_vm3, %v14518_v39 }
 0x1d0   :  { %11202 = vmatprep.mubr.msk.bf16.mxu0 %vm13708_vm2, %v18206_v12 }
 0x1d3   :  { %10243 = vmatmul.mubr.msk.bf16.gmra.mrb[16].mxu1 %vm830_vm3, %v13835_v1 }
 0x1d4   :  { %10246 = vmatprep.mubr.msk.bf16.mxu1 %vm13708_vm2, %v18206_v12 }
 0x1d7   :  { %11203 = vmatmul.mubr.msk.bf16.gmra.mrb[120].mxu0 %vm830_vm3, %v14536_v19 }
 0x1d8   :  { %11206 = vmatprep.mubr.msk.bf16.mxu0 %vm13708_vm2, %v18206_v12 }
 0x1db   :  { %10247 = vmatmul.mubr.msk.bf16.gmra.mrb[20].mxu1 %vm830_vm3, %v13868_v25 }
 0x1dc   :  { %10250 = vmatprep.mubr.msk.bf16.mxu1 %vm13708_vm2, %v18206_v12 }
 0x1df   :  { %11207 = vmatmul.mubr.msk.bf16.gmra.mrb[124].mxu0 %vm830_vm3, %v14554_v62 }
 0x1e0   :  { %11210 = vmatprep.mubr.msk.bf16.mxu0 %vm13708_vm2, %v18206_v12 }
 0x1e3   :  { %10251 = vmatmul.mubr.msk.bf16.gmra.mrb[24].mxu1 %vm830_vm3, %v13888_v37 }
 0x1e4   :  { %10254 = vmatprep.mubr.msk.bf16.mxu1 %vm13708_vm2, %v18206_v12 }
 0x1e7   :  { %11211 = vmatmul.mubr.msk.bf16.gmra.mrb[128].mxu0 %vm830_vm3, %v14572_v45 }
 0x1e8   :  { %11214 = vmatprep.mubr.msk.bf16.mxu0 %vm13708_vm2, %v18206_v12 }
 0x1eb   :  { %10255 = vmatmul.mubr.msk.bf16.gmra.mrb[28].mxu1 %vm830_vm3, %v13913_v55 }
 0x1ec   :  { %10258 = vmatprep.mubr.msk.bf16.mxu1 %vm13708_vm2, %v18206_v12 }
 0x1ef   :  { %11215 = vmatmul.mubr.msk.bf16.gmra.mrb[132].mxu0 %vm830_vm3, %v14590_v4 }
 0x1f0   :  { %11218 = vmatprep.mubr.msk.bf16.mxu0 %vm13708_vm2, %v18206_v12 }
 0x1f3   :  { %10259 = vmatmul.mubr.msk.bf16.gmra.mrb[32].mxu1 %vm830_vm3, %v13939_v16 }
 0x1f4   :  { %10262 = vmatprep.mubr.msk.bf16.mxu1 %vm13708_vm2, %v18206_v12 }
 0x1f7   :  { %11219 = vmatmul.mubr.msk.bf16.gmra.mrb[136].mxu0 %vm830_vm3, %v14608_v51 }
 0x1f8   :  { %11222 = vmatprep.mubr.msk.bf16.mxu0 %vm13708_vm2, %v18206_v12 }
 0x1fb   :  { %10263 = vmatmul.mubr.msk.bf16.gmra.mrb[36].mxu1 %vm830_vm3, %v13965_v38 }
 0x1fc   :  { %10266 = vmatprep.mubr.msk.bf16.mxu1 %vm13708_vm2, %v18206_v12 }
 0x1ff   :  { %11223 = vmatmul.mubr.msk.bf16.gmra.mrb[140].mxu0 %vm830_vm3, %v14626_v24 }
 0x200   :  { %11226 = vmatprep.mubr.msk.bf16.mxu0 %vm13708_vm2, %v18206_v12 }
 0x203   :  { %10267 = vmatmul.mubr.msk.bf16.gmra.mrb[40].mxu1 %vm830_vm3, %v13991_v63 }
 0x204   :  { %10270 = vmatprep.mubr.msk.bf16.mxu1 %vm13708_vm2, %v18206_v12 }
 0x207   :  { %11227 = vmatmul.mubr.msk.bf16.gmra.mrb[144].mxu0 %vm830_vm3, %v14644_v57 }
 0x208   :  { %11230 = vmatprep.mubr.msk.bf16.mxu0 %vm13708_vm2, %v18206_v12 }
 0x20b   :  { %10271 = vmatmul.mubr.msk.bf16.gmra.mrb[44].mxu1 %vm830_vm3, %v14017_v35 }
 0x20c   :  { %10274 = vmatprep.mubr.msk.bf16.mxu1 %vm13708_vm2, %v18206_v12 }
 0x20f   :  { %11231 = vmatmul.mubr.msk.bf16.gmra.mrb[148].mxu0 %vm830_vm3, %v14662_v46 }
 0x210   :  { %11234 = vmatprep.mubr.msk.bf16.mxu0 %vm13708_vm2, %v18206_v12 }
 0x213   :  { %10275 = vmatmul.mubr.msk.bf16.gmra.mrb[48].mxu1 %vm830_vm3, %v14043_v9 }
 0x214   :  { %10278 = vmatprep.mubr.msk.bf16.mxu1 %vm13708_vm2, %v18206_v12 }
 0x217   :  { %11235 = vmatmul.mubr.msk.bf16.gmra.mrb[152].mxu0 %vm830_vm3, %v14680_v17 }
 0x218   :  { %11238 = vmatprep.mubr.msk.bf16.mxu0 %vm13708_vm2, %v18206_v12 }
 0x21b   :  { %10279 = vmatmul.mubr.msk.bf16.gmra.mrb[52].mxu1 %vm830_vm3, %v14069_v14 }
 0x21c   :  { %10282 = vmatprep.mubr.msk.bf16.mxu1 %vm13708_vm2, %v18206_v12 }
 0x21f   :  { %11239 = vmatmul.mubr.msk.bf16.gmra.mrb[156].mxu0 %vm830_vm3, %v14698_v33 }
 0x220   :  { %11242 = vmatprep.mubr.msk.bf16.mxu0 %vm13708_vm2, %v18206_v12 }
 0x223   :  { %10283 = vmatmul.mubr.msk.bf16.gmra.mrb[56].mxu1 %vm830_vm3, %v14095_v52 }
 0x224   :  { %10286 = vmatprep.mubr.msk.bf16.mxu1 %vm13708_vm2, %v18206_v12 }
 0x227   :  { %11243 = vmatmul.mubr.msk.bf16.gmra.mrb[160].mxu0 %vm830_vm3, %v14716_v11 }
 0x228   :  { %11246 = vmatprep.mubr.msk.bf16.mxu0 %vm13708_vm2, %v18206_v12 }
 0x22b   :  { %10287 = vmatmul.mubr.msk.bf16.gmra.mrb[60].mxu1 %vm830_vm3, %v14121_v20 }
 0x22c   :  { %10290 = vmatprep.mubr.msk.bf16.mxu1 %vm13708_vm2, %v18206_v12 }
 0x22f   :  { %11247 = vmatmul.mubr.msk.bf16.gmra.mrb[164].mxu0 %vm830_vm3, %v14734_v50 }
 0x230   :  { %11250 = vmatprep.mubr.msk.bf16.mxu0 %vm13708_vm2, %v18206_v12 }
 0x233   :  { %10291 = vmatmul.mubr.msk.bf16.gmra.mrb[64].mxu1 %vm830_vm3, %v14147_v53 }
 0x234   :  { %10294 = vmatprep.mubr.msk.bf16.mxu1 %vm13708_vm2, %v18206_v12 }
 0x237   :  { %11251 = vmatmul.mubr.msk.bf16.gmra.mrb[168].mxu0 %vm830_vm3, %v14752_v8 }
 0x238   :  { %11254 = vmatprep.mubr.msk.bf16.mxu0 %vm13708_vm2, %v18206_v12 }
 0x23b   :  { %10295 = vmatmul.mubr.msk.bf16.gmra.mrb[68].mxu1 %vm830_vm3, %v14173_v29 }
 0x23c   :  { %10298 = vmatprep.mubr.msk.bf16.mxu1 %vm13708_vm2, %v18206_v12 }
 0x23f   :  { %11255 = vmatmul.mubr.msk.bf16.gmra.mrb[172].mxu0 %vm830_vm3, %v14770_v30 }
 0x240   :  { %11258 = vmatprep.mubr.msk.bf16.mxu0 %vm13708_vm2, %v18206_v12 }
 0x243   :  { %10299 = vmatmul.mubr.msk.bf16.gmra.mrb[72].mxu1 %vm830_vm3, %v14199_v7 }
 0x244   :  { %10302 = vmatprep.mubr.msk.bf16.mxu1 %vm13708_vm2, %v18206_v12 }
 0x247   :  { %11259 = vmatmul.mubr.msk.bf16.gmra.mrb[176].mxu0 %vm830_vm3, %v14788_v54 }
 0x248   :  { %11262 = vmatprep.mubr.msk.bf16.mxu0 %vm13708_vm2, %v18206_v12 }
 0x24b   :  { %10303 = vmatmul.mubr.msk.bf16.gmra.mrb[76].mxu1 %vm830_vm3, %v14225_v48 }
 0x24c   :  { %10306 = vmatprep.mubr.msk.bf16.mxu1 %vm13708_vm2, %v18206_v12 }
 0x24f   :  { %11263 = vmatmul.mubr.msk.bf16.gmra.mrb[180].mxu0 %vm830_vm3, %v14806_v23 }
 0x250   :  { %11266 = vmatprep.mubr.msk.bf16.mxu0 %vm13708_vm2, %v18206_v12 }
 0x253   :  { %10307 = vmatmul.mubr.msk.bf16.gmra.mrb[80].mxu1 %vm830_vm3, %v14251_v32 }
 0x254   :  { %10310 = vmatprep.mubr.msk.bf16.mxu1 %vm13708_vm2, %v18206_v12 }
 0x257   :  { %11267 = vmatmul.mubr.msk.bf16.gmra.mrb[184].mxu0 %vm830_vm3, %v14824_v56 }
 0x258   :  { %11270 = vmatprep.mubr.msk.bf16.mxu0 %vm13708_vm2, %v18206_v12 }
 0x25b   :  { %10311 = vmatmul.mubr.msk.bf16.gmra.mrb[84].mxu1 %vm830_vm3, %v14277_v10 }
 0x25c   :  { %10314 = vmatprep.mubr.msk.bf16.mxu1 %vm13708_vm2, %v18206_v12 }
 0x25f   :  { %11271 = vmatmul.mubr.msk.bf16.gmra.mrb[188].mxu0 %vm830_vm3, %v14842_v28 }
 0x260   :  { %11274 = vmatprep.mubr.msk.bf16.mxu0 %vm13708_vm2, %v18206_v12 }
 0x263   :  { %10315 = vmatmul.mubr.msk.bf16.gmra.mrb[88].mxu1 %vm830_vm3, %v14303_v59 }
 0x264   :  { %10318 = vmatprep.mubr.msk.bf16.mxu1 %vm13708_vm2, %v18206_v12 }
 0x267   :  { %11275 = vmatmul.mubr.msk.bf16.gmra.mrb[192].mxu0 %vm830_vm3, %v14860_v42 }
 0x268   :  { %11278 = vmatprep.mubr.msk.bf16.mxu0 %vm13708_vm2, %v18206_v12 }
 0x26b   :  { %10319 = vmatmul.mubr.msk.bf16.gmra.mrb[92].mxu1 %vm830_vm3, %v14329_v0 }
 0x26c   :  { %10322 = vmatprep.mubr.msk.bf16.mxu1 %vm13708_vm2, %v18206_v12 }
 0x26f   :  { %11279 = vmatmul.mubr.msk.bf16.gmra.mrb[196].mxu0 %vm830_vm3, %v14878_v13 }
 0x270   :  { %11282 = vmatprep.mubr.msk.bf16.mxu0 %vm13708_vm2, %v18206_v12 }
 0x273   :  { %10323 = vmatmul.mubr.msk.bf16.gmra.mrb[96].mxu1 %vm830_vm3, %v14355_v21 }
 0x274   :  { %10326 = vmatprep.mubr.msk.bf16.mxu1 %vm13708_vm2, %v18206_v12 }
 0x277   :  { %11283 = vmatmul.mubr.msk.bf16.gmra.mrb[200].mxu0 %vm830_vm3, %v9245_v31  ;;  %v13619_v31 = vld [vmem:[%s17999_s1 + $0xc] ss:$0 sps:$4 sm:$0xcc]  }
 0x278   :  { %11286 = vmatprep.mubr.msk.bf16.mxu0 %vm13708_vm2, %v18206_v12 }
 0x27b   :  { %10327 = vmatmul.mubr.msk.bf16.gmra.mrb[100].mxu1 %vm830_vm3, %v14381_v18 }
 0x27c   :  { %10330 = vmatprep.mubr.msk.bf16.mxu1 %vm13708_vm2, %v18206_v12 }
 0x27f   :  { %11287 = vmatmul.mubr.msk.bf16.gmra.mrb[204].mxu0 %vm830_vm3, %v9246_v26  ;;  %v5547_v26 = vrot.slane %v15187_v61, 2 }
 0x280   :  { %11290 = vmatprep.mubr.msk.bf16.mxu0 %vm13708_vm2, %v18206_v12 }
 0x281   :  { %v5549_v40 = vsel %vm5546_vm5, %v5547_v26, %v5548_v43 }
 0x283   :  { %10331 = vmatmul.mubr.msk.bf16.gmra.mrb[104].mxu1 %vm830_vm3, %v14407_v3  ;;  %v6609_v3 = vrot.slane %v13619_v31, 2 }
 0x284   :  { %10334 = vmatprep.mubr.msk.bf16.mxu1 %vm13708_vm2, %v18206_v12 }
 0x285   :  { %v6770_v6 = vsel %vm990_vm0, %v6609_v3, 0  ;;  %v18223_v3 = vld [vmem:[#allocation9_spill] sm:$0xff] }
 0x286   :  { %v5552_v26 = vrot.slane %v18223_v3, 2 }
 0x287   :  { %11291 = vmatmul.mubr.msk.bf16.gmra.mrb[208].mxu0 %vm830_vm3, %v9247_v41  ;;  %v18222_v41 = vld [vmem:[#allocation8_spill] sm:$0xff] }
 0x288   :  { %11296 = vmatprep.mubr.msk.bf16.mxu0 %vm13708_vm2, %v18206_v12  ;;  %v5550_v61 = vrot.slane %v18222_v41, 2 }
 0x28a   :  { %v5551_v31 = vsel %vm5546_vm5, %v5548_v43, %v5550_v61  ;;  %v18224_v43 = vld [vmem:[#allocation10_spill] sm:$0xff] }
 0x28b   :  { %10335 = vmatmul.mubr.msk.bf16.gmra.mrb[108].mxu1 %vm830_vm3, %v14433_v60 }
 0x28c   :  { %10338 = vmatprep.mubr.msk.bf16.mxu1 %vm13708_vm2, %v18206_v12 }
 0x28f   :  { %11297 = vmatmul.mubr.msk.bf16.vlgmr.msra.gmra.mrb[0].mxu0 %vm830_vm3, %v5549_v40  ;;  %v5553_v40 = vsel %vm5546_vm5, %v5550_v61, %v5552_v26  ;;  %v18225_v61 = vld [vmem:[#allocation11_spill] sm:$0xff] }
 0x290   :  { %11509 = vmatpush3.bf16.msra.mxu0 %v6770_v6  ;;  %11300 = vmatprep.mubr.msk.bf16.mxu0 %vm13708_vm2, %v18206_v12  ;;  %v5554_v6 = vrot.slane %v18224_v43, 2 }
 0x291   :  { %11722 = vmatprep.subr.bf16.mxu0 %v18206_v12 }
 0x293   :  { %10339 = vmatmul.mubr.msk.bf16.gmra.mrb[112].mxu1 %vm830_vm3, %v14460_v27 }
 0x294   :  { %10342 = vmatprep.mubr.msk.bf16.mxu1 %vm13708_vm2, %v18206_v12 }
 0x297   :  { %11301 = vmatmul.mubr.msk.bf16.gmra.mrb[4].mxu0 %vm830_vm3, %v5551_v31  ;;  %v5555_v31 = vsel %vm5546_vm5, %v5552_v26, %v5554_v6  ;;  %v18226_v26 = vld [vmem:[#allocation12_spill] sm:$0xff] }
 0x298   :  { %11304 = vmatprep.mubr.msk.bf16.mxu0 %vm13708_vm2, %v18206_v12 }
 0x29b   :  { %10343 = vmatmul.mubr.msk.bf16.gmra.mrb[116].mxu1 %vm830_vm3, %v14478_v5 }
 0x29c   :  { %10346 = vmatprep.mubr.msk.bf16.mxu1 %vm13708_vm2, %v18206_v12 }
 0x29f   :  { %11305 = vmatmul.mubr.msk.bf16.gmra.mrb[8].mxu0 %vm830_vm3, %v5553_v40  ;;  %v5556_v40 = vrot.slane %v18225_v61, 2 }
 0x2a0   :  { %11308 = vmatprep.mubr.msk.bf16.mxu0 %vm13708_vm2, %v18206_v12 }
 0x2a1   :  { %v5557_v43 = vsel %vm5546_vm5, %v5554_v6, %v5556_v40  ;;  %v18227_v6 = vld [vmem:[#allocation13_spill] sm:$0xff] }
 0x2a3   :  { %10347 = vmatmul.mubr.msk.bf16.gmra.mrb[120].mxu1 %vm830_vm3, %v14498_v36 }
 0x2a4   :  { %10350 = vmatprep.mubr.msk.bf16.mxu1 %vm13708_vm2, %v18206_v12 }
 0x2a7   :  { %11309 = vmatmul.mubr.msk.bf16.gmra.mrb[12].mxu0 %vm830_vm3, %v5555_v31  ;;  %v5558_v31 = vrot.slane %v18226_v26, 2 }
 0x2a8   :  { %11312 = vmatprep.mubr.msk.bf16.mxu0 %vm13708_vm2, %v18206_v12 }
 0x2a9   :  { %v5559_v61 = vsel %vm5546_vm5, %v5556_v40, %v5558_v31  ;;  %v18228_v40 = vld [vmem:[#allocation14_spill] sm:$0xff] }
 0x2ab   :  { %10351 = vmatmul.mubr.msk.bf16.gmra.mrb[124].mxu1 %vm830_vm3, %v14518_v39 }
 0x2ac   :  { %10354 = vmatprep.mubr.msk.bf16.mxu1 %vm13708_vm2, %v18206_v12 }
 0x2af   :  { %11313 = vmatmul.mubr.msk.bf16.gmra.mrb[16].mxu0 %vm830_vm3, %v5557_v43  ;;  %v5560_v43 = vrot.slane %v18227_v6, 2 }
 0x2b0   :  { %11316 = vmatprep.mubr.msk.bf16.mxu0 %vm13708_vm2, %v18206_v12 }
 0x2b1   :  { %v5561_v26 = vsel %vm5546_vm5, %v5558_v31, %v5560_v43  ;;  %v18229_v31 = vld [vmem:[#allocation15_spill] sm:$0xff] }
 0x2b3   :  { %10355 = vmatmul.mubr.msk.bf16.gmra.mrb[128].mxu1 %vm830_vm3, %v14536_v19 }
 0x2b4   :  { %10358 = vmatprep.mubr.msk.bf16.mxu1 %vm13708_vm2, %v18206_v12 }
 0x2b7   :  { %11317 = vmatmul.mubr.msk.bf16.gmra.mrb[20].mxu0 %vm830_vm3, %v5559_v61  ;;  %v5562_v61 = vrot.slane %v18228_v40, 2 }
 0x2b8   :  { %11320 = vmatprep.mubr.msk.bf16.mxu0 %vm13708_vm2, %v18206_v12 }
 0x2b9   :  { %v5563_v6 = vsel %vm5546_vm5, %v5560_v43, %v5562_v61  ;;  %v18230_v43 = vld [vmem:[#allocation16_spill] sm:$0xff] }
 0x2bb   :  { %10359 = vmatmul.mubr.msk.bf16.gmra.mrb[132].mxu1 %vm830_vm3, %v14554_v62 }
 0x2bc   :  { %10362 = vmatprep.mubr.msk.bf16.mxu1 %vm13708_vm2, %v18206_v12 }
 0x2bf   :  { %11321 = vmatmul.mubr.msk.bf16.gmra.mrb[24].mxu0 %vm830_vm3, %v5561_v26  ;;  %v5564_v26 = vrot.slane %v18229_v31, 2 }
 0x2c0   :  { %11324 = vmatprep.mubr.msk.bf16.mxu0 %vm13708_vm2, %v18206_v12 }
 0x2c1   :  { %v5565_v40 = vsel %vm5546_vm5, %v5562_v61, %v5564_v26  ;;  %v18231_v61 = vld [vmem:[#allocation17_spill] sm:$0xff] }
 0x2c3   :  { %10363 = vmatmul.mubr.msk.bf16.gmra.mrb[136].mxu1 %vm830_vm3, %v14572_v45 }
 0x2c4   :  { %10366 = vmatprep.mubr.msk.bf16.mxu1 %vm13708_vm2, %v18206_v12 }
 0x2c7   :  { %11325 = vmatmul.mubr.msk.bf16.gmra.mrb[28].mxu0 %vm830_vm3, %v5563_v6  ;;  %v5566_v6 = vrot.slane %v18230_v43, 2 }
 0x2c8   :  { %11328 = vmatprep.mubr.msk.bf16.mxu0 %vm13708_vm2, %v18206_v12 }
 0x2c9   :  { %v5567_v31 = vsel %vm5546_vm5, %v5564_v26, %v5566_v6  ;;  %v18232_v26 = vld [vmem:[#allocation18_spill] sm:$0xff] }
 0x2cb   :  { %10367 = vmatmul.mubr.msk.bf16.gmra.mrb[140].mxu1 %vm830_vm3, %v14590_v4 }
 0x2cc   :  { %10370 = vmatprep.mubr.msk.bf16.mxu1 %vm13708_vm2, %v18206_v12 }
 0x2cf   :  { %11329 = vmatmul.mubr.msk.bf16.gmra.mrb[32].mxu0 %vm830_vm3, %v5565_v40  ;;  %v5568_v40 = vrot.slane %v18231_v61, 2 }
 0x2d0   :  { %11332 = vmatprep.mubr.msk.bf16.mxu0 %vm13708_vm2, %v18206_v12 }
 0x2d1   :  { %v5569_v43 = vsel %vm5546_vm5, %v5566_v6, %v5568_v40  ;;  %v18233_v6 = vld [vmem:[#allocation19_spill] sm:$0xff] }
 0x2d3   :  { %10371 = vmatmul.mubr.msk.bf16.gmra.mrb[144].mxu1 %vm830_vm3, %v14608_v51 }
 0x2d4   :  { %10374 = vmatprep.mubr.msk.bf16.mxu1 %vm13708_vm2, %v18206_v12 }
 0x2d7   :  { %11333 = vmatmul.mubr.msk.bf16.gmra.mrb[36].mxu0 %vm830_vm3, %v5567_v31  ;;  %v5570_v31 = vrot.slane %v18232_v26, 2 }
 0x2d8   :  { %11336 = vmatprep.mubr.msk.bf16.mxu0 %vm13708_vm2, %v18206_v12 }
 0x2d9   :  { %v5571_v61 = vsel %vm5546_vm5, %v5568_v40, %v5570_v31  ;;  %v18234_v40 = vld [vmem:[#allocation20_spill] sm:$0xff] }
 0x2db   :  { %10375 = vmatmul.mubr.msk.bf16.gmra.mrb[148].mxu1 %vm830_vm3, %v14626_v24 }
 0x2dc   :  { %10378 = vmatprep.mubr.msk.bf16.mxu1 %vm13708_vm2, %v18206_v12 }
 0x2df   :  { %11337 = vmatmul.mubr.msk.bf16.gmra.mrb[40].mxu0 %vm830_vm3, %v5569_v43  ;;  %v5572_v43 = vrot.slane %v18233_v6, 2 }
 0x2e0   :  { %11340 = vmatprep.mubr.msk.bf16.mxu0 %vm13708_vm2, %v18206_v12 }
 0x2e1   :  { %v5573_v26 = vsel %vm5546_vm5, %v5570_v31, %v5572_v43  ;;  %v18235_v31 = vld [vmem:[#allocation21_spill] sm:$0xff] }
 0x2e3   :  { %10379 = vmatmul.mubr.msk.bf16.gmra.mrb[152].mxu1 %vm830_vm3, %v14644_v57 }
 0x2e4   :  { %10382 = vmatprep.mubr.msk.bf16.mxu1 %vm13708_vm2, %v18206_v12 }
 0x2e7   :  { %11341 = vmatmul.mubr.msk.bf16.gmra.mrb[44].mxu0 %vm830_vm3, %v5571_v61  ;;  %v5574_v61 = vrot.slane %v18234_v40, 2 }
 0x2e8   :  { %11344 = vmatprep.mubr.msk.bf16.mxu0 %vm13708_vm2, %v18206_v12 }
 0x2e9   :  { %v5575_v6 = vsel %vm5546_vm5, %v5572_v43, %v5574_v61  ;;  %v18236_v43 = vld [vmem:[#allocation22_spill] sm:$0xff] }
 0x2eb   :  { %10383 = vmatmul.mubr.msk.bf16.gmra.mrb[156].mxu1 %vm830_vm3, %v14662_v46 }
 0x2ec   :  { %10386 = vmatprep.mubr.msk.bf16.mxu1 %vm13708_vm2, %v18206_v12 }
 0x2ef   :  { %11345 = vmatmul.mubr.msk.bf16.gmra.mrb[48].mxu0 %vm830_vm3, %v5573_v26  ;;  %v5576_v26 = vrot.slane %v18235_v31, 2 }
 0x2f0   :  { %11348 = vmatprep.mubr.msk.bf16.mxu0 %vm13708_vm2, %v18206_v12 }
 0x2f1   :  { %v5577_v40 = vsel %vm5546_vm5, %v5574_v61, %v5576_v26  ;;  %v18237_v61 = vld [vmem:[#allocation23_spill] sm:$0xff] }
 0x2f3   :  { %10387 = vmatmul.mubr.msk.bf16.gmra.mrb[160].mxu1 %vm830_vm3, %v14680_v17 }
 0x2f4   :  { %10390 = vmatprep.mubr.msk.bf16.mxu1 %vm13708_vm2, %v18206_v12 }
 0x2f7   :  { %11349 = vmatmul.mubr.msk.bf16.gmra.mrb[52].mxu0 %vm830_vm3, %v5575_v6  ;;  %v5578_v6 = vrot.slane %v18236_v43, 2 }
 0x2f8   :  { %11352 = vmatprep.mubr.msk.bf16.mxu0 %vm13708_vm2, %v18206_v12 }
 0x2f9   :  { %v5579_v31 = vsel %vm5546_vm5, %v5576_v26, %v5578_v6  ;;  %v18238_v26 = vld [vmem:[#allocation24_spill] sm:$0xff] }
 0x2fb   :  { %10391 = vmatmul.mubr.msk.bf16.gmra.mrb[164].mxu1 %vm830_vm3, %v14698_v33 }
 0x2fc   :  { %10394 = vmatprep.mubr.msk.bf16.mxu1 %vm13708_vm2, %v18206_v12 }
 0x2ff   :  { %11353 = vmatmul.mubr.msk.bf16.gmra.mrb[56].mxu0 %vm830_vm3, %v5577_v40  ;;  %v5580_v40 = vrot.slane %v18237_v61, 2 }
 0x300   :  { %11356 = vmatprep.mubr.msk.bf16.mxu0 %vm13708_vm2, %v18206_v12 }
 0x301   :  { %v5581_v43 = vsel %vm5546_vm5, %v5578_v6, %v5580_v40  ;;  %v18239_v6 = vld [vmem:[#allocation25_spill] sm:$0xff] }
 0x303   :  { %10395 = vmatmul.mubr.msk.bf16.gmra.mrb[168].mxu1 %vm830_vm3, %v14716_v11 }
 0x304   :  { %10398 = vmatprep.mubr.msk.bf16.mxu1 %vm13708_vm2, %v18206_v12 }
 0x307   :  { %11357 = vmatmul.mubr.msk.bf16.gmra.mrb[60].mxu0 %vm830_vm3, %v5579_v31  ;;  %v5582_v31 = vrot.slane %v18238_v26, 2 }
 0x308   :  { %11360 = vmatprep.mubr.msk.bf16.mxu0 %vm13708_vm2, %v18206_v12 }
 0x309   :  { %v5583_v61 = vsel %vm5546_vm5, %v5580_v40, %v5582_v31  ;;  %v18240_v40 = vld [vmem:[#allocation26_spill] sm:$0xff] }
 0x30b   :  { %10399 = vmatmul.mubr.msk.bf16.gmra.mrb[172].mxu1 %vm830_vm3, %v14734_v50 }
 0x30c   :  { %10402 = vmatprep.mubr.msk.bf16.mxu1 %vm13708_vm2, %v18206_v12 }
 0x30f   :  { %11361 = vmatmul.mubr.msk.bf16.gmra.mrb[64].mxu0 %vm830_vm3, %v5581_v43  ;;  %v5584_v43 = vrot.slane %v18239_v6, 2 }
 0x310   :  { %11364 = vmatprep.mubr.msk.bf16.mxu0 %vm13708_vm2, %v18206_v12 }
 0x311   :  { %v5585_v26 = vsel %vm5546_vm5, %v5582_v31, %v5584_v43  ;;  %v18241_v31 = vld [vmem:[#allocation27_spill] sm:$0xff] }
 0x313   :  { %10403 = vmatmul.mubr.msk.bf16.gmra.mrb[176].mxu1 %vm830_vm3, %v14752_v8 }
 0x314   :  { %10406 = vmatprep.mubr.msk.bf16.mxu1 %vm13708_vm2, %v18206_v12 }
 0x317   :  { %11365 = vmatmul.mubr.msk.bf16.gmra.mrb[68].mxu0 %vm830_vm3, %v5583_v61  ;;  %v5586_v61 = vrot.slane %v18240_v40, 2 }
 0x318   :  { %11368 = vmatprep.mubr.msk.bf16.mxu0 %vm13708_vm2, %v18206_v12 }
 0x319   :  { %v5587_v6 = vsel %vm5546_vm5, %v5584_v43, %v5586_v61  ;;  %v18242_v43 = vld [vmem:[#allocation28_spill] sm:$0xff] }
 0x31b   :  { %10407 = vmatmul.mubr.msk.bf16.gmra.mrb[180].mxu1 %vm830_vm3, %v14770_v30 }
 0x31c   :  { %10410 = vmatprep.mubr.msk.bf16.mxu1 %vm13708_vm2, %v18206_v12 }
 0x31f   :  { %11369 = vmatmul.mubr.msk.bf16.gmra.mrb[72].mxu0 %vm830_vm3, %v5585_v26  ;;  %v5588_v26 = vrot.slane %v18241_v31, 2 }
 0x320   :  { %11372 = vmatprep.mubr.msk.bf16.mxu0 %vm13708_vm2, %v18206_v12 }
 0x321   :  { %v5589_v40 = vsel %vm5546_vm5, %v5586_v61, %v5588_v26  ;;  %v18243_v61 = vld [vmem:[#allocation29_spill] sm:$0xff] }
 0x323   :  { %10411 = vmatmul.mubr.msk.bf16.gmra.mrb[184].mxu1 %vm830_vm3, %v14788_v54 }
 0x324   :  { %10414 = vmatprep.mubr.msk.bf16.mxu1 %vm13708_vm2, %v18206_v12 }
 0x327   :  { %11373 = vmatmul.mubr.msk.bf16.gmra.mrb[76].mxu0 %vm830_vm3, %v5587_v6  ;;  %v5590_v6 = vrot.slane %v18242_v43, 2 }
 0x328   :  { %11376 = vmatprep.mubr.msk.bf16.mxu0 %vm13708_vm2, %v18206_v12 }
 0x329   :  { %v5591_v31 = vsel %vm5546_vm5, %v5588_v26, %v5590_v6  ;;  %v18244_v26 = vld [vmem:[#allocation31_spill] sm:$0xff] }
 0x32b   :  { %10415 = vmatmul.mubr.msk.bf16.gmra.mrb[188].mxu1 %vm830_vm3, %v14806_v23 }
 0x32c   :  { %10418 = vmatprep.mubr.msk.bf16.mxu1 %vm13708_vm2, %v18206_v12 }
 0x32f   :  { %11377 = vmatmul.mubr.msk.bf16.gmra.mrb[80].mxu0 %vm830_vm3, %v5589_v40  ;;  %v5592_v40 = vrot.slane %v18243_v61, 2 }
 0x330   :  { %11380 = vmatprep.mubr.msk.bf16.mxu0 %vm13708_vm2, %v18206_v12 }
 0x331   :  { %v5593_v43 = vsel %vm5546_vm5, %v5590_v6, %v5592_v40  ;;  %v18245_v6 = vld [vmem:[#allocation32_spill] sm:$0xff] }
 0x333   :  { %10419 = vmatmul.mubr.msk.bf16.gmra.mrb[192].mxu1 %vm830_vm3, %v14824_v56  ;;  %v2023_v56 = vrot.slane %v14947_v34, 1 }
 0x334   :  { %10422 = vmatprep.mubr.msk.bf16.mxu1 %vm13708_vm2, %v18206_v12 }
 0x337   :  { %11381 = vmatmul.mubr.msk.bf16.gmra.mrb[84].mxu0 %vm830_vm3, %v5591_v31  ;;  %v5594_v31 = vrot.slane %v18244_v26, 2 }
 0x338   :  { %11384 = vmatprep.mubr.msk.bf16.mxu0 %vm13708_vm2, %v18206_v12 }
 0x339   :  { %v5595_v61 = vsel %vm5546_vm5, %v5592_v40, %v5594_v31  ;;  %v13653_v40 = vld [vmem:[%s18000_s0 + $0xec] sm:$0xf] }
 0x33b   :  { %10423 = vmatmul.mubr.msk.bf16.gmra.mrb[196].mxu1 %vm830_vm3, %v14842_v28  ;;  %v13655_v28 = vld [vmem:[%s18000_s0 + $0x4] sm:$0xf] }
 0x33c   :  { %10426 = vmatprep.mubr.msk.bf16.mxu1 %vm13708_vm2, %v18206_v12 }
 0x33f   :  { %11385 = vmatmul.mubr.msk.bf16.gmra.mrb[88].mxu0 %vm830_vm3, %v5593_v43  ;;  %v5596_v43 = vrot.slane %v18245_v6, 2  ;;  %v121_v6 = vld [vmem:[%s18000_s0] sm:$0xe] }
 0x340   :  { %11388 = vmatprep.mubr.msk.bf16.mxu0 %vm13708_vm2, %v18206_v12 }
 0x341   :  { %v5597_v26 = vsel %vm5546_vm5, %v5594_v31, %v5596_v43  ;;  %v8976_v31 = vcombine.low %v14890_v22, %v14890_v22 }
 0x343   :  { %10427 = vmatmul.mubr.msk.bf16.gmra.mrb[200].mxu1 %vm830_vm3, %v14860_v42 }
 0x344   :  { %10430 = vmatprep.mubr.msk.bf16.mxu1 %vm13708_vm2, %v18206_v12 }
 0x347   :  { %11389 = vmatmul.mubr.msk.bf16.gmra.mrb[92].mxu0 %vm830_vm3, %v5595_v61  ;;  %v13654_v61 = vld [vmem:[%s18000_s0 + $0xf0] sm:$0xf] }
 0x348   :  { %11392 = vmatprep.mubr.msk.bf16.mxu0 %vm13708_vm2, %v18206_v12  ;;  %v15426_v42 = vcombine.low %v13653_v40, %v13654_v61  ;;  %v9030_v40 = vcombine.low %v121_v6, %v13655_v28  ;;  %v13624_v61 = vld [vmem:[%s17999_s1 + $0x4] ss:$0 sps:$4 sm:$0xcc]   ;;  %v13657_v28 = vld [vmem:[%s18000_s0 + $0xf8] sm:$0xf] }
 0x34a   :  { %18246 = vst [vmem:[#allocation8_spill] sm:$0xff] %v15426_v42  ;;  %v2022_v22 = vrot.slane %v9030_v40, 1 }
 0x34b   :  { %10431 = vmatmul.mubr.msk.bf16.gmra.mrb[204].mxu1 %vm830_vm3, %v14878_v13  ;;  %v5598_v13 = vrot.slane %v15426_v42, 2  ;;  %v13656_v42 = vld [vmem:[%s18000_s0 + $0xf4] sm:$0xf] }
 0x34c   :  { %10434 = vmatprep.mubr.msk.bf16.mxu1 %vm13708_vm2, %v18206_v12  ;;  %v15454_v6 = vcombine.low %v13656_v42, %v13657_v28  ;;  %v2025_v42 = vrot.slane %v13769_v15, 1 }
 0x34e   :  { %v5600_v34 = vrot.slane %v15454_v6, 2  ;;  %v2026_v15 = vsel %vm2021_vm6, %v2023_v56, %v2025_v42 }
 0x34f   :  { %11393 = vmatmul.mubr.msk.bf16.gmra.mrb[96].mxu0 %vm830_vm3, %v5597_v26  ;;  %v5599_v26 = vsel %vm5546_vm5, %v5596_v43, %v5598_v13  ;;  %v2024_v43 = vsel %vm2021_vm6, %v2022_v22, %v2023_v56 }
 0x350   :  { %11396 = vmatprep.mubr.msk.bf16.mxu0 %vm13708_vm2, %v18206_v12  ;;  %v5601_v23 = vsel %vm5546_vm5, %v5598_v13, %v5600_v34 }
 0x353   :  { %10435 = vmatmul.mubr.msk.bf16.gmra.mrb[208].mxu1 %vm830_vm3, %v8976_v31  ;;  %v3023_v31 = vrot.slane %v13624_v61, 2  ;;  %v13658_v61 = vld [vmem:[%s18000_s0 + $0xfc] sm:$0xf] }
 0x354   :  { %10440 = vmatprep.mubr.msk.bf16.mxu1 %vm13708_vm2, %v18206_v12 }
 0x355   :  { %v3184_v40 = vsel %vm990_vm0, %v3023_v31, 0  ;;  %v2027_v31 = vrot.slane %v13803_v44, 1 }
 0x357   :  { %11397 = vmatmul.mubr.msk.bf16.gmra.mrb[100].mxu0 %vm830_vm3, %v5599_v26  ;;  %v13659_v26 = vld [vmem:[%s18000_s0 + $0x100] sm:$0xf] }
 0x358   :  { %11400 = vmatprep.mubr.msk.bf16.mxu0 %vm13708_vm2, %v18206_v12  ;;  %v15473_v22 = vcombine.low %v13658_v61, %v13659_v26  ;;  %v2029_v61 = vrot.slane %v13835_v1, 1  ;;  %v13662_v26 = vld [vmem:[%s18000_s0 + $0x10c] sm:$0xf] }
 0x35a   :  { %v5602_v13 = vrot.slane %v15473_v22, 2 }
 0x35b   :  { %10441 = vmatmul.mubr.msk.bf16.vlgmr.msra.gmra.mrb[0].mxu1 %vm830_vm3, %v2024_v43  ;;  %v13661_v43 = vld [vmem:[%s18000_s0 + $0x108] sm:$0xf] }
 0x35c   :  { %10444 = vmatprep.mubr.msk.bf16.mxu1 %vm13708_vm2, %v18206_v12  ;;  %10653 = vmatpush3.bf16.msra.mxu1 %v3184_v40  ;;  %v5603_v28 = vsel %vm5546_vm5, %v5600_v34, %v5602_v13  ;;  %v2028_v34 = vsel %vm2021_vm6, %v2025_v42, %v2027_v31 }
 0x35d   :  { %11936 = vmatprep.subr.bf16.mxu1 %v18206_v12 }
 0x35f   :  { %11401 = vmatmul.mubr.msk.bf16.gmra.mrb[104].mxu0 %vm830_vm3, %v5601_v23  ;;  %v13660_v23 = vld [vmem:[%s18000_s0 + $0x104] sm:$0xf] }
 0x360   :  { %11404 = vmatprep.mubr.msk.bf16.mxu0 %vm13708_vm2, %v18206_v12  ;;  %v15492_v56 = vcombine.low %v13660_v23, %v13661_v43  ;;  %v2031_v23 = vrot.slane %v13868_v25, 1  ;;  %v13664_v43 = vld [vmem:[%s18000_s0 + $0x114] sm:$0xf] }
 0x362   :  { %v5604_v40 = vrot.slane %v15492_v56, 2 }
 0x363   :  { %10445 = vmatmul.mubr.msk.bf16.gmra.mrb[4].mxu1 %vm830_vm3, %v2026_v15  ;;  %v13663_v15 = vld [vmem:[%s18000_s0 + $0x110] sm:$0xf] }
 0x364   :  { %10448 = vmatprep.mubr.msk.bf16.mxu1 %vm13708_vm2, %v18206_v12  ;;  %v5605_v44 = vsel %vm5546_vm5, %v5602_v13, %v5604_v40  ;;  %v15510_v42 = vcombine.low %v13662_v26, %v13663_v15  ;;  %v2030_v13 = vsel %vm2021_vm6, %v2027_v31, %v2029_v61  ;;  %v2033_v26 = vrot.slane %v13888_v37, 1  ;;  %v13666_v15 = vld [vmem:[%s18000_s0 + $0x11c] sm:$0xf] }
 0x367   :  { %11405 = vmatmul.mubr.msk.bf16.gmra.mrb[108].mxu0 %vm830_vm3, %v5603_v28  ;;  %v5606_v28 = vrot.slane %v15510_v42, 2 }
 0x368   :  { %11408 = vmatprep.mubr.msk.bf16.mxu0 %vm13708_vm2, %v18206_v12 }
 0x369   :  { %v5607_v1 = vsel %vm5546_vm5, %v5604_v40, %v5606_v28  ;;  %v2032_v40 = vsel %vm2021_vm6, %v2029_v61, %v2031_v23 }
 0x36b   :  { %10449 = vmatmul.mubr.msk.bf16.gmra.mrb[8].mxu1 %vm830_vm3, %v2028_v34  ;;  %v13665_v34 = vld [vmem:[%s18000_s0 + $0x118] sm:$0xf] }
 0x36c   :  { %10452 = vmatprep.mubr.msk.bf16.mxu1 %vm13708_vm2, %v18206_v12  ;;  %v15528_v31 = vcombine.low %v13664_v43, %v13665_v34  ;;  %v2035_v43 = vrot.slane %v13913_v55, 1  ;;  %v13668_v34 = vld [vmem:[%s18000_s0 + $0x124] sm:$0xf] }
 0x36f   :  { %11409 = vmatmul.mubr.msk.bf16.gmra.mrb[112].mxu0 %vm830_vm3, %v5605_v44  ;;  %v5608_v44 = vrot.slane %v15528_v31, 2 }
 0x370   :  { %11412 = vmatprep.mubr.msk.bf16.mxu0 %vm13708_vm2, %v18206_v12 }
 0x371   :  { %v5609_v25 = vsel %vm5546_vm5, %v5606_v28, %v5608_v44  ;;  %v2034_v28 = vsel %vm2021_vm6, %v2031_v23, %v2033_v26 }
 0x373   :  { %10453 = vmatmul.mubr.msk.bf16.gmra.mrb[12].mxu1 %vm830_vm3, %v2030_v13  ;;  %v13667_v13 = vld [vmem:[%s18000_s0 + $0x120] sm:$0xf] }
 0x374   :  { %10456 = vmatprep.mubr.msk.bf16.mxu1 %vm13708_vm2, %v18206_v12  ;;  %v15546_v61 = vcombine.low %v13666_v15, %v13667_v13  ;;  %v2037_v15 = vrot.slane %v13939_v16, 1  ;;  %v13670_v13 = vld [vmem:[%s18000_s0 + $0x12c] sm:$0xf] }
 0x377   :  { %11413 = vmatmul.mubr.msk.bf16.gmra.mrb[116].mxu0 %vm830_vm3, %v5607_v1  ;;  %v5610_v1 = vrot.slane %v15546_v61, 2 }
 0x378   :  { %11416 = vmatprep.mubr.msk.bf16.mxu0 %vm13708_vm2, %v18206_v12 }
 0x379   :  { %v5611_v37 = vsel %vm5546_vm5, %v5608_v44, %v5610_v1  ;;  %v2036_v44 = vsel %vm2021_vm6, %v2033_v26, %v2035_v43 }
 0x37b   :  { %10457 = vmatmul.mubr.msk.bf16.gmra.mrb[16].mxu1 %vm830_vm3, %v2032_v40  ;;  %v13669_v40 = vld [vmem:[%s18000_s0 + $0x128] sm:$0xf] }
 0x37c   :  { %10460 = vmatprep.mubr.msk.bf16.mxu1 %vm13708_vm2, %v18206_v12  ;;  %v15564_v23 = vcombine.low %v13668_v34, %v13669_v40  ;;  %v2039_v34 = vrot.slane %v13965_v38, 1  ;;  %v13672_v40 = vld [vmem:[%s18000_s0 + $0x134] sm:$0xf] }
 0x37f   :  { %11417 = vmatmul.mubr.msk.bf16.gmra.mrb[120].mxu0 %vm830_vm3, %v5609_v25  ;;  %v5612_v25 = vrot.slane %v15564_v23, 2 }
 0x380   :  { %11420 = vmatprep.mubr.msk.bf16.mxu0 %vm13708_vm2, %v18206_v12 }
 0x381   :  { %v5613_v55 = vsel %vm5546_vm5, %v5610_v1, %v5612_v25  ;;  %v2038_v1 = vsel %vm2021_vm6, %v2035_v43, %v2037_v15 }
 0x383   :  { %10461 = vmatmul.mubr.msk.bf16.gmra.mrb[20].mxu1 %vm830_vm3, %v2034_v28  ;;  %v13671_v28 = vld [vmem:[%s18000_s0 + $0x130] sm:$0xf] }
 0x384   :  { %10464 = vmatprep.mubr.msk.bf16.mxu1 %vm13708_vm2, %v18206_v12  ;;  %v15582_v26 = vcombine.low %v13670_v13, %v13671_v28  ;;  %v2041_v13 = vrot.slane %v13991_v63, 1  ;;  %v13674_v28 = vld [vmem:[%s18000_s0 + $0x13c] sm:$0xf] }
 0x387   :  { %11421 = vmatmul.mubr.msk.bf16.gmra.mrb[124].mxu0 %vm830_vm3, %v5611_v37  ;;  %v5614_v37 = vrot.slane %v15582_v26, 2 }
 0x388   :  { %11424 = vmatprep.mubr.msk.bf16.mxu0 %vm13708_vm2, %v18206_v12 }
 0x389   :  { %v5615_v16 = vsel %vm5546_vm5, %v5612_v25, %v5614_v37  ;;  %v2040_v25 = vsel %vm2021_vm6, %v2037_v15, %v2039_v34 }
 0x38b   :  { %10465 = vmatmul.mubr.msk.bf16.gmra.mrb[24].mxu1 %vm830_vm3, %v2036_v44  ;;  %v13673_v44 = vld [vmem:[%s18000_s0 + $0x138] sm:$0xf] }
 0x38c   :  { %10468 = vmatprep.mubr.msk.bf16.mxu1 %vm13708_vm2, %v18206_v12  ;;  %v15600_v43 = vcombine.low %v13672_v40, %v13673_v44  ;;  %v2043_v40 = vrot.slane %v14017_v35, 1  ;;  %v13676_v44 = vld [vmem:[%s18000_s0 + $0x144] sm:$0xf] }
 0x38e   :  { %18247 = vst [vmem:[#allocation9_spill] sm:$0xff] %v15600_v43 }
 0x38f   :  { %11425 = vmatmul.mubr.msk.bf16.gmra.mrb[128].mxu0 %vm830_vm3, %v5613_v55  ;;  %v5616_v55 = vrot.slane %v15600_v43, 2 }
 0x390   :  { %11428 = vmatprep.mubr.msk.bf16.mxu0 %vm13708_vm2, %v18206_v12 }
 0x391   :  { %v5617_v38 = vsel %vm5546_vm5, %v5614_v37, %v5616_v55  ;;  %v2042_v37 = vsel %vm2021_vm6, %v2039_v34, %v2041_v13 }
 0x393   :  { %10469 = vmatmul.mubr.msk.bf16.gmra.mrb[28].mxu1 %vm830_vm3, %v2038_v1  ;;  %v13675_v1 = vld [vmem:[%s18000_s0 + $0x140] sm:$0xf] }
 0x394   :  { %10472 = vmatprep.mubr.msk.bf16.mxu1 %vm13708_vm2, %v18206_v12  ;;  %v15618_v15 = vcombine.low %v13674_v28, %v13675_v1  ;;  %v2045_v28 = vrot.slane %v14043_v9, 1  ;;  %v13678_v1 = vld [vmem:[%s18000_s0 + $0x14c] sm:$0xf] }
 0x396   :  { %18248 = vst [vmem:[#allocation42_spill] sm:$0xff] %v15618_v15  ;;  %v2046_v9 = vsel %vm2021_vm6, %v2043_v40, %v2045_v28 }
 0x397   :  { %11429 = vmatmul.mubr.msk.bf16.gmra.mrb[132].mxu0 %vm830_vm3, %v5615_v16  ;;  %v5618_v16 = vrot.slane %v15618_v15, 2 }
 0x398   :  { %11432 = vmatprep.mubr.msk.bf16.mxu0 %vm13708_vm2, %v18206_v12 }
 0x399   :  { %v5619_v63 = vsel %vm5546_vm5, %v5616_v55, %v5618_v16  ;;  %v2044_v55 = vsel %vm2021_vm6, %v2041_v13, %v2043_v40  ;;  %v13681_v40 = vld [vmem:[%s18000_s0 + $0x158] sm:$0xf] }
 0x39b   :  { %10473 = vmatmul.mubr.msk.bf16.gmra.mrb[32].mxu1 %vm830_vm3, %v2040_v25  ;;  %v13677_v25 = vld [vmem:[%s18000_s0 + $0x148] sm:$0xf] }
 0x39c   :  { %10476 = vmatprep.mubr.msk.bf16.mxu1 %vm13708_vm2, %v18206_v12  ;;  %v15636_v34 = vcombine.low %v13676_v44, %v13677_v25 }
 0x39e   :  { %18249 = vst [vmem:[#allocation43_spill] sm:$0xff] %v15636_v34 }
 0x39f   :  { %11433 = vmatmul.mubr.msk.bf16.gmra.mrb[136].mxu0 %vm830_vm3, %v5617_v38  ;;  %v5620_v38 = vrot.slane %v15636_v34, 2 }
 0x3a0   :  { %11436 = vmatprep.mubr.msk.bf16.mxu0 %vm13708_vm2, %v18206_v12 }
 0x3a1   :  { %v5621_v35 = vsel %vm5546_vm5, %v5618_v16, %v5620_v38  ;;  %v18251_v16 = vshll.u32 %v13813_v49, 16 }
 0x3a3   :  { %10477 = vmatmul.mubr.msk.bf16.gmra.mrb[36].mxu1 %vm830_vm3, %v2042_v37  ;;  %v13679_v37 = vld [vmem:[%s18000_s0 + $0x150] sm:$0xf]  ;;  %v6389_v25 = vrot.slane %v18251_v16, 3  ;;  %v2049_v16 = vrot.slane %v14095_v52, 1 }
 0x3a4   :  { %10480 = vmatprep.mubr.msk.bf16.mxu1 %vm13708_vm2, %v18206_v12  ;;  %v15654_v13 = vcombine.low %v13678_v1, %v13679_v37  ;;  %v2047_v37 = vrot.slane %v14069_v14, 1 }
 0x3a7   :  { %11437 = vmatmul.mubr.msk.bf16.gmra.mrb[140].mxu0 %vm830_vm3, %v5619_v63  ;;  %v18250_v63 = vshrl.u32 %v13813_v49, 16 }
 0x3a8   :  { %11440 = vmatprep.mubr.msk.bf16.mxu0 %vm13708_vm2, %v18206_v12 }
 0x3a9   :  { %v6388_v44 = vrot.slane %v18250_v63, 2 }
 0x3ab   :  { %10481 = vmatmul.mubr.msk.bf16.gmra.mrb[40].mxu1 %vm830_vm3, %v2044_v55  ;;  %v5622_v55 = vrot.slane %v15654_v13, 2  ;;  %v15666_v34 = vor.u32 %v6389_v25, %v6388_v44  ;;  %v13682_v25 = vld [vmem:[%s18000_s0 + $0x15c] sm:$0xf] }
 0x3ac   :  { %10484 = vmatprep.mubr.msk.bf16.mxu1 %vm13708_vm2, %v18206_v12 }
 0x3ad   :  { %v5623_v1 = vsel %vm5546_vm5, %v5620_v38, %v5622_v55  ;;  %v2048_v38 = vsel %vm2021_vm6, %v2045_v28, %v2047_v37 }
 0x3af   :  { %11441 = vmatmul.mubr.msk.bf16.gmra.mrb[144].mxu0 %vm830_vm3, %v5621_v35  ;;  %v13680_v35 = vld [vmem:[%s18000_s0 + $0x154] sm:$0xf] }
 0x3b0   :  { %11444 = vmatprep.mubr.msk.bf16.mxu0 %vm13708_vm2, %v18206_v12  ;;  %v15678_v63 = vcombine.low %v13680_v35, %v13681_v40  ;;  %v2051_v35 = vrot.slane %v14121_v20, 1  ;;  %v13684_v40 = vld [vmem:[%s18000_s0 + $0x164] sm:$0xf] }
 0x3b2   :  { %v5624_v44 = vrot.slane %v15678_v63, 2 }
 0x3b3   :  { %10485 = vmatmul.mubr.msk.bf16.gmra.mrb[44].mxu1 %vm830_vm3, %v2046_v9  ;;  %v13683_v9 = vld [vmem:[%s18000_s0 + $0x160] sm:$0xf] }
 0x3b4   :  { %10488 = vmatprep.mubr.msk.bf16.mxu1 %vm13708_vm2, %v18206_v12  ;;  %v5625_v14 = vsel %vm5546_vm5, %v5622_v55, %v5624_v44  ;;  %v15696_v28 = vcombine.low %v13682_v25, %v13683_v9  ;;  %v2050_v55 = vsel %vm2021_vm6, %v2047_v37, %v2049_v16  ;;  %v2053_v25 = vrot.slane %v14147_v53, 1  ;;  %v13686_v9 = vld [vmem:[%s18000_s0 + $0x16c] sm:$0xf] }
 0x3b7   :  { %11445 = vmatmul.mubr.msk.bf16.gmra.mrb[148].mxu0 %vm830_vm3, %v5623_v1  ;;  %v5626_v1 = vrot.slane %v15696_v28, 2 }
 0x3b8   :  { %11448 = vmatprep.mubr.msk.bf16.mxu0 %vm13708_vm2, %v18206_v12 }
 0x3b9   :  { %v5627_v52 = vsel %vm5546_vm5, %v5624_v44, %v5626_v1  ;;  %v2052_v44 = vsel %vm2021_vm6, %v2049_v16, %v2051_v35 }
 0x3bb   :  { %10489 = vmatmul.mubr.msk.bf16.gmra.mrb[48].mxu1 %vm830_vm3, %v2048_v38  ;;  %v13685_v38 = vld [vmem:[%s18000_s0 + $0x168] sm:$0xf] }
 0x3bc   :  { %10492 = vmatprep.mubr.msk.bf16.mxu1 %vm13708_vm2, %v18206_v12  ;;  %v15714_v37 = vcombine.low %v13684_v40, %v13685_v38  ;;  %v2055_v40 = vrot.slane %v14173_v29, 1  ;;  %v13688_v38 = vld [vmem:[%s18000_s0 + $0x174] sm:$0xf] }
 0x3bf   :  { %11449 = vmatmul.mubr.msk.bf16.gmra.mrb[152].mxu0 %vm830_vm3, %v5625_v14  ;;  %v5628_v14 = vrot.slane %v15714_v37, 2 }
 0x3c0   :  { %11452 = vmatprep.mubr.msk.bf16.mxu0 %vm13708_vm2, %v18206_v12 }
 0x3c1   :  { %v5629_v20 = vsel %vm5546_vm5, %v5626_v1, %v5628_v14  ;;  %v2054_v1 = vsel %vm2021_vm6, %v2051_v35, %v2053_v25 }
 0x3c3   :  { %10493 = vmatmul.mubr.msk.bf16.gmra.mrb[52].mxu1 %vm830_vm3, %v2050_v55  ;;  %v13687_v55 = vld [vmem:[%s18000_s0 + $0x170] sm:$0xf] }
 0x3c4   :  { %10496 = vmatprep.mubr.msk.bf16.mxu1 %vm13708_vm2, %v18206_v12  ;;  %v15732_v16 = vcombine.low %v13686_v9, %v13687_v55  ;;  %v2057_v9 = vrot.slane %v14199_v7, 1  ;;  %v13690_v55 = vld [vmem:[%s18000_s0 + $0x17c] sm:$0xf] }
 0x3c7   :  { %11453 = vmatmul.mubr.msk.bf16.gmra.mrb[156].mxu0 %vm830_vm3, %v5627_v52  ;;  %v5630_v52 = vrot.slane %v15732_v16, 2 }
 0x3c8   :  { %11456 = vmatprep.mubr.msk.bf16.mxu0 %vm13708_vm2, %v18206_v12 }
 0x3c9   :  { %v5631_v53 = vsel %vm5546_vm5, %v5628_v14, %v5630_v52  ;;  %v2056_v14 = vsel %vm2021_vm6, %v2053_v25, %v2055_v40 }
 0x3cb   :  { %10497 = vmatmul.mubr.msk.bf16.gmra.mrb[56].mxu1 %vm830_vm3, %v2052_v44  ;;  %v13689_v44 = vld [vmem:[%s18000_s0 + $0x178] sm:$0xf] }
 0x3cc   :  { %10500 = vmatprep.mubr.msk.bf16.mxu1 %vm13708_vm2, %v18206_v12  ;;  %v15750_v35 = vcombine.low %v13688_v38, %v13689_v44  ;;  %v2059_v38 = vrot.slane %v14225_v48, 1  ;;  %v13692_v44 = vld [vmem:[%s18000_s0 + $0x184] sm:$0xf] }
 0x3cf   :  { %11457 = vmatmul.mubr.msk.bf16.gmra.mrb[160].mxu0 %vm830_vm3, %v5629_v20  ;;  %v5632_v20 = vrot.slane %v15750_v35, 2 }
 0x3d0   :  { %11460 = vmatprep.mubr.msk.bf16.mxu0 %vm13708_vm2, %v18206_v12 }
 0x3d1   :  { %v5633_v29 = vsel %vm5546_vm5, %v5630_v52, %v5632_v20  ;;  %v2058_v52 = vsel %vm2021_vm6, %v2055_v40, %v2057_v9 }
 0x3d3   :  { %10501 = vmatmul.mubr.msk.bf16.gmra.mrb[60].mxu1 %vm830_vm3, %v2054_v1  ;;  %v13691_v1 = vld [vmem:[%s18000_s0 + $0x180] sm:$0xf] }
 0x3d4   :  { %10504 = vmatprep.mubr.msk.bf16.mxu1 %vm13708_vm2, %v18206_v12  ;;  %v15768_v25 = vcombine.low %v13690_v55, %v13691_v1  ;;  %v2061_v55 = vrot.slane %v14251_v32, 1  ;;  %v13694_v1 = vld [vmem:[%s18000_s0 + $0x18c] sm:$0xf] }
 0x3d7   :  { %11461 = vmatmul.mubr.msk.bf16.gmra.mrb[164].mxu0 %vm830_vm3, %v5631_v53  ;;  %v5634_v53 = vrot.slane %v15768_v25, 2 }
 0x3d8   :  { %11464 = vmatprep.mubr.msk.bf16.mxu0 %vm13708_vm2, %v18206_v12 }
 0x3d9   :  { %v5635_v7 = vsel %vm5546_vm5, %v5632_v20, %v5634_v53  ;;  %v2060_v20 = vsel %vm2021_vm6, %v2057_v9, %v2059_v38 }
 0x3db   :  { %10505 = vmatmul.mubr.msk.bf16.gmra.mrb[64].mxu1 %vm830_vm3, %v2056_v14  ;;  %v13693_v14 = vld [vmem:[%s18000_s0 + $0x188] sm:$0xf] }
 0x3dc   :  { %10508 = vmatprep.mubr.msk.bf16.mxu1 %vm13708_vm2, %v18206_v12  ;;  %v15786_v40 = vcombine.low %v13692_v44, %v13693_v14  ;;  %v2063_v44 = vrot.slane %v14277_v10, 1  ;;  %v13696_v14 = vld [vmem:[%s18000_s0 + $0x194] sm:$0xf] }
 0x3df   :  { %11465 = vmatmul.mubr.msk.bf16.gmra.mrb[168].mxu0 %vm830_vm3, %v5633_v29  ;;  %v5636_v29 = vrot.slane %v15786_v40, 2 }
 0x3e0   :  { %11468 = vmatprep.mubr.msk.bf16.mxu0 %vm13708_vm2, %v18206_v12 }
 0x3e1   :  { %v5637_v48 = vsel %vm5546_vm5, %v5634_v53, %v5636_v29  ;;  %v2062_v53 = vsel %vm2021_vm6, %v2059_v38, %v2061_v55 }
 0x3e3   :  { %10509 = vmatmul.mubr.msk.bf16.gmra.mrb[68].mxu1 %vm830_vm3, %v2058_v52  ;;  %v13695_v52 = vld [vmem:[%s18000_s0 + $0x190] sm:$0xf] }
 0x3e4   :  { %10512 = vmatprep.mubr.msk.bf16.mxu1 %vm13708_vm2, %v18206_v12  ;;  %v15804_v9 = vcombine.low %v13694_v1, %v13695_v52  ;;  %v2065_v1 = vrot.slane %v14303_v59, 1  ;;  %v13698_v52 = vld [vmem:[%s18000_s0 + $0x19c] sm:$0xf] }
 0x3e7   :  { %11469 = vmatmul.mubr.msk.bf16.gmra.mrb[172].mxu0 %vm830_vm3, %v5635_v7  ;;  %v5638_v7 = vrot.slane %v15804_v9, 2 }
 0x3e8   :  { %11472 = vmatprep.mubr.msk.bf16.mxu0 %vm13708_vm2, %v18206_v12 }
 0x3e9   :  { %v5639_v32 = vsel %vm5546_vm5, %v5636_v29, %v5638_v7  ;;  %v2064_v29 = vsel %vm2021_vm6, %v2061_v55, %v2063_v44 }
 0x3eb   :  { %10513 = vmatmul.mubr.msk.bf16.gmra.mrb[72].mxu1 %vm830_vm3, %v2060_v20  ;;  %v13697_v20 = vld [vmem:[%s18000_s0 + $0x198] sm:$0xf] }
 0x3ec   :  { %10516 = vmatprep.mubr.msk.bf16.mxu1 %vm13708_vm2, %v18206_v12  ;;  %v15822_v38 = vcombine.low %v13696_v14, %v13697_v20  ;;  %v2067_v14 = vrot.slane %v14329_v0, 1  ;;  %v2069_v0 = vrot.slane %v14355_v21, 1  ;;  %v13646_v21 = vld [vmem:[%s18000_s0 + $0x1b4] sm:$0xff]  }
 0x3ee   :  { %v2068_v20 = vsel %vm2021_vm6, %v2065_v1, %v2067_v14 }
 0x3ef   :  { %11473 = vmatmul.mubr.msk.bf16.gmra.mrb[176].mxu0 %vm830_vm3, %v5637_v48  ;;  %v5640_v48 = vrot.slane %v15822_v38, 2 }
 0x3f0   :  { %11476 = vmatprep.mubr.msk.bf16.mxu0 %vm13708_vm2, %v18206_v12 }
 0x3f1   :  { %v5641_v10 = vsel %vm5546_vm5, %v5638_v7, %v5640_v48  ;;  %v2066_v7 = vsel %vm2021_vm6, %v2063_v44, %v2065_v1  ;;  %v5644_v44 = vrot.slane %v15029_v2, 2 }
 0x3f3   :  { %10517 = vmatmul.mubr.msk.bf16.gmra.mrb[76].mxu1 %vm830_vm3, %v2062_v53  ;;  %v13699_v53 = vld [vmem:[%s18000_s0 + $0x1a0] sm:$0xf] }
 0x3f4   :  { %10520 = vmatprep.mubr.msk.bf16.mxu1 %vm13708_vm2, %v18206_v12  ;;  %v15840_v55 = vcombine.low %v13698_v52, %v13699_v53  ;;  %v5648_v53 = vrot.slane %v13646_v21, 2 }
 0x3f7   :  { %11477 = vmatmul.mubr.msk.bf16.gmra.mrb[180].mxu0 %vm830_vm3, %v5639_v32  ;;  %v5642_v32 = vrot.slane %v15840_v55, 2 }
 0x3f8   :  { %11480 = vmatprep.mubr.msk.bf16.mxu0 %vm13708_vm2, %v18206_v12 }
 0x3f9   :  { %v5643_v59 = vsel %vm5546_vm5, %v5640_v48, %v5642_v32  ;;  %v5645_v48 = vsel %vm5546_vm5, %v5642_v32, %v5644_v44 }
 0x3fb   :  { %10521 = vmatmul.mubr.msk.bf16.gmra.mrb[80].mxu1 %vm830_vm3, %v2064_v29  ;;  %v15860_v29 = vcombine.low %v15159_v47, %v15173_v58  ;;  %v2071_v58 = vrot.slane %v14381_v18, 1  ;;  %v132_v18 = vld [vmem:[%s18000_s0 + $0x1c0] sm:$0x3] }
 0x3fc   :  { %10524 = vmatprep.mubr.msk.bf16.mxu1 %vm13708_vm2, %v18206_v12 }
 0x3fd   :  { %18252 = vst [vmem:[#allocation44_spill] sm:$0xff] %v15860_v29  ;;  %v5646_v1 = vrot.slane %v15860_v29, 2  ;;  %v2072_v52 = vsel %vm2021_vm6, %v2069_v0, %v2071_v58 }
 0x3ff   :  { %11481 = vmatmul.mubr.msk.bf16.gmra.mrb[184].mxu0 %vm830_vm3, %v5641_v10  ;;  %v2070_v10 = vsel %vm2021_vm6, %v2067_v14, %v2069_v0  ;;  %v5647_v47 = vsel %vm5546_vm5, %v5644_v44, %v5646_v1  ;;  %v5649_v32 = vsel %vm5546_vm5, %v5646_v1, %v5648_v53 }
 0x400   :  { %11484 = vmatprep.mubr.msk.bf16.mxu0 %vm13708_vm2, %v18206_v12 }
 0x403   :  { %10525 = vmatmul.mubr.msk.bf16.gmra.mrb[84].mxu1 %vm830_vm3, %v2066_v7  ;;  %v131_v7 = vld [vmem:[%s18000_s0 + $0x1bc] sm:$0xf] }
 0x404   :  { %10528 = vmatprep.mubr.msk.bf16.mxu1 %vm13708_vm2, %v18206_v12 }
 0x407   :  { %11485 = vmatmul.mubr.msk.bf16.gmra.mrb[188].mxu0 %vm830_vm3, %v5643_v59  ;;  %v18253_v59 = vld [vmem:[#allocation30_spill] sm:$0xff] }
 0x408   :  { %11488 = vmatprep.mubr.msk.bf16.mxu0 %vm13708_vm2, %v18206_v12  ;;  %v2073_v14 = vrot.slane %v18253_v59, 1  ;;  %v2079_v59 = vrot.slane %v14478_v5, 1 }
 0x40a   :  { %v2074_v44 = vsel %vm2021_vm6, %v2071_v58, %v2073_v14 }
 0x40b   :  { %10529 = vmatmul.mubr.msk.bf16.gmra.mrb[88].mxu1 %vm830_vm3, %v2068_v20  ;;  %v9304_v20 = vcombine.low %v131_v7, %v132_v18 }
 0x40c   :  { %10532 = vmatprep.mubr.msk.bf16.mxu1 %vm13708_vm2, %v18206_v12 }
 0x40f   :  { %11489 = vmatmul.mubr.msk.bf16.gmra.mrb[192].mxu0 %vm830_vm3, %v5645_v48  ;;  %v5650_v48 = vrot.slane %v9304_v20, 2 }
 0x410   :  { %11492 = vmatprep.mubr.msk.bf16.mxu0 %vm13708_vm2, %v18206_v12 }
 0x411   :  { %v5651_v0 = vsel %vm5546_vm5, %v5648_v53, %v5650_v48 }
 0x413   :  { %10533 = vmatmul.mubr.msk.bf16.gmra.mrb[92].mxu1 %vm830_vm3, %v2070_v10  ;;  %v2075_v10 = vrot.slane %v14433_v60, 1 }
 0x414   :  { %10536 = vmatprep.mubr.msk.bf16.mxu1 %vm13708_vm2, %v18206_v12 }
 0x415   :  { %v2076_v1 = vsel %vm2021_vm6, %v2073_v14, %v2075_v10  ;;  %v18255_v14 = vshrl.u32 %v18222_v41, 16 }
 0x417   :  { %11493 = vmatmul.mubr.msk.bf16.gmra.mrb[196].mxu0 %vm830_vm3, %v5647_v47  ;;  %v18254_v47 = vld [vmem:[#allocation41_spill] sm:$0xff]  ;;  %v6392_v20 = vrot.slane %v18255_v14, 2 }
 0x418   :  { %11496 = vmatprep.mubr.msk.bf16.mxu0 %vm13708_vm2, %v18206_v12  ;;  %v6381_v21 = vshrl.u32 %v18254_v47, 16  ;;  %v6384_v58 = vshll.u32 %v18254_v47, 16  ;;  %v2081_v47 = vrot.slane %v14498_v36, 1  ;;  %v2083_v36 = vrot.slane %v14518_v39, 1 }
 0x419   :  { %v2085_v39 = vrot.slane %v14536_v19, 1  ;;  %v2087_v19 = vrot.slane %v14554_v62, 1  ;;  %v2089_v62 = vrot.slane %v14572_v45, 1  ;;  %v2091_v45 = vrot.slane %v14590_v4, 1 }
 0x41a   :  { %v6383_v53 = vrot.slane %v6381_v21, 2  ;;  %v6386_v60 = vrot.slane %v6384_v58, 3  ;;  %v18257_v21 = vshrl.u32 %v18223_v3, 16  ;;  %v2093_v4 = vrot.slane %v14608_v51, 1 }
 0x41b   :  { %10537 = vmatmul.mubr.msk.bf16.gmra.mrb[96].mxu1 %vm830_vm3, %v2072_v52  ;;  %v2077_v52 = vrot.slane %v14460_v27, 1  ;;  %v2095_v51 = vrot.slane %v14626_v24, 1  ;;  %v2097_v24 = vrot.slane %v14644_v57, 1  ;;  %v2099_v57 = vrot.slane %v14662_v46, 1 }
 0x41c   :  { %10540 = vmatprep.mubr.msk.bf16.mxu1 %vm13708_vm2, %v18206_v12  ;;  %v6387_v18 = vor.u32 %v6386_v60, %v6383_v53  ;;  %v6396_v58 = vrot.slane %v18257_v21, 2  ;;  %v18258_v53 = vshll.u32 %v18223_v3, 16  ;;  %v2101_v46 = vrot.slane %v14680_v17, 1 }
 0x41d   :  { %v2078_v7 = vsel %vm2021_vm6, %v2075_v10, %v2077_v52  ;;  %v2080_v10 = vsel %vm2021_vm6, %v2077_v52, %v2079_v59  ;;  %v2082_v52 = vsel %vm2021_vm6, %v2079_v59, %v2081_v47  ;;  %v2084_v59 = vsel %vm2021_vm6, %v2081_v47, %v2083_v36 }
 0x41e   :  { %v6391_v27 = vsel %vm6379_vm7, %v6387_v18, %v15666_v34  ;;  %v6397_v60 = vrot.slane %v18258_v53, 3  ;;  %v18259_v18 = vld [vmem:[#allocation10_spill] sm:$0xff]  ;;  %v2086_v47 = vsel %vm2021_vm6, %v2083_v36, %v2085_v39  ;;  %v2088_v36 = vsel %vm2021_vm6, %v2085_v39, %v2087_v19 }
 0x41f   :  { %11497 = vmatmul.mubr.msk.bf16.gmra.mrb[200].mxu0 %vm830_vm3, %v5649_v32  ;;  %v7333_v32 = vld [vmem:[%s17999_s1 + $0x10] sm:$0x3]  ;;  %v18261_v14 = vshll.u32 %v18259_v18, 16  ;;  %v2090_v39 = vsel %vm2021_vm6, %v2087_v19, %v2089_v62  ;;  %v2092_v19 = vsel %vm2021_vm6, %v2089_v62, %v2091_v45  ;;  %v2094_v62 = vsel %vm2021_vm6, %v2091_v45, %v2093_v4 }
 0x420   :  { %11500 = vmatprep.mubr.msk.bf16.mxu0 %vm13708_vm2, %v18206_v12  ;;  %v2096_v45 = vsel %vm2021_vm6, %v2093_v4, %v2095_v51  ;;  %v2098_v4 = vsel %vm2021_vm6, %v2095_v51, %v2097_v24  ;;  %v2100_v51 = vsel %vm2021_vm6, %v2097_v24, %v2099_v57  ;;  %v2102_v24 = vsel %vm2021_vm6, %v2099_v57, %v2101_v46 }
 0x421   :  { %v2103_v17 = vrot.slane %v14698_v33, 1  ;;  %v2105_v33 = vrot.slane %v14716_v11, 1  ;;  %v2107_v11 = vrot.slane %v14734_v50, 1  ;;  %v2109_v50 = vrot.slane %v14752_v8, 1 }
 0x422   :  { %v2111_v8 = vrot.slane %v14770_v30, 1  ;;  %v2113_v30 = vrot.slane %v14788_v54, 1  ;;  %v18307_v54 = vld [vmem:[#allocation34_spill] sm:$0xff] }
 0x423   :  { %10541 = vmatmul.mubr.msk.bf16.gmra.mrb[100].mxu1 %vm830_vm3, %v2074_v44  ;;  %v18256_v44 = vshll.u32 %v18222_v41, 16  ;;  %v2104_v57 = vsel %vm2021_vm6, %v2101_v46, %v2103_v17  ;;  %v2106_v46 = vsel %vm2021_vm6, %v2103_v17, %v2105_v33  ;;  %v2108_v17 = vsel %vm2021_vm6, %v2105_v33, %v2107_v11 }
 0x424   :  { %10544 = vmatprep.mubr.msk.bf16.mxu1 %vm13708_vm2, %v18206_v12  ;;  %v2110_v33 = vsel %vm2021_vm6, %v2107_v11, %v2109_v50  ;;  %v2112_v11 = vsel %vm2021_vm6, %v2109_v50, %v2111_v8  ;;  %v2114_v50 = vsel %vm2021_vm6, %v2111_v8, %v2113_v30 }
 0x427   :  { %11501 = vmatmul.mubr.msk.bf16.gmra.mrb[204].mxu0 %vm830_vm3, %v5651_v0  ;;  %v7361_v0 = vsel %vm990_vm0, %v7333_v32, 0  ;;  %v18260_v32 = vshrl.u32 %v18259_v18, 16  ;;  %vm17418_vm0 = vmand %vm8126_vm9, %vm8132_vm14 }
 0x428   :  { %11504 = vmatprep.mubr.msk.bf16.mxu0 %vm13708_vm2, %v18206_v12 }
 0x42b   :  { %10545 = vmatmul.mubr.msk.bf16.gmra.mrb[104].mxu1 %vm830_vm3, %v2076_v1 }
 0x42c   :  { %10548 = vmatprep.mubr.msk.bf16.mxu1 %vm13708_vm2, %v18206_v12 }
 0x42f   :  { %11505 = vmatmul.mubr.msk.bf16.gmra.mrb[208].mxu0 %vm830_vm3, %v5650_v48  ;;  %v6393_v48 = vrot.slane %v18256_v44, 3 }
 0x430   :  { %11510 = vmatprep.mubr.msk.bf16.mxu0 %vm13708_vm2, %v18206_v12 }
 0x431   :  { %v6394_v1 = vor.u32 %v6393_v48, %v6392_v20  ;;  %v6401_v20 = vrot.slane %v18261_v14, 3 }
 0x433   :  { %10549 = vmatmul.mubr.msk.bf16.gmra.mrb[108].mxu1 %vm830_vm3, %v2078_v7  ;;  %v6395_v5 = vsel %vm6379_vm7, %v15666_v34, %v6394_v1  ;;  %v6398_v7 = vor.u32 %v6397_v60, %v6396_v58  ;;  %v18265_v60 = vld [vmem:[#allocation12_spill] sm:$0xff] }
 0x434   :  { %10552 = vmatprep.mubr.msk.bf16.mxu1 %vm13708_vm2, %v18206_v12 }
 0x435   :  { %v6399_v34 = vsel %vm6379_vm7, %v6394_v1, %v6398_v7 }
 0x437   :  { %11511 = vmatmul.mubr.msk.bf16.vlgmr.msra.gmra.mrb[0].mxu0 %vm830_vm3, %v6391_v27  ;;  %v6400_v27 = vrot.slane %v18260_v32, 2 }
 0x438   :  { %11723 = vmatpush3.bf16.msra.mxu0 %v7361_v0  ;;  %11514 = vmatprep.mubr.msk.bf16.mxu0 %vm13708_vm2, %v18206_v12  ;;  %v18262_v0 = vld [vmem:[#allocation11_spill] sm:$0xff] }
 0x439   :  { %v6402_v44 = vor.u32 %v6401_v20, %v6400_v27  ;;  %v18268_v20 = vld [vmem:[#allocation13_spill] sm:$0xff] }
 0x43b   :  { %10553 = vmatmul.mubr.msk.bf16.gmra.mrb[112].mxu1 %vm830_vm3, %v2080_v10  ;;  %v6403_v48 = vsel %vm6379_vm7, %v6398_v7, %v6402_v44  ;;  %v18263_v10 = vshrl.u32 %v18262_v0, 16 }
 0x43c   :  { %10556 = vmatprep.mubr.msk.bf16.mxu1 %vm13708_vm2, %v18206_v12 }
 0x43d   :  { %v6404_v1 = vrot.slane %v18263_v10, 2 }
 0x43f   :  { %11515 = vmatmul.mubr.msk.bf16.gmra.mrb[4].mxu0 %vm830_vm3, %v6395_v5  ;;  %v18264_v5 = vshll.u32 %v18262_v0, 16 }
 0x440   :  { %11518 = vmatprep.mubr.msk.bf16.mxu0 %vm13708_vm2, %v18206_v12 }
 0x441   :  { %v6405_v21 = vrot.slane %v18264_v5, 3 }
 0x443   :  { %10557 = vmatmul.mubr.msk.bf16.gmra.mrb[116].mxu1 %vm830_vm3, %v2082_v52  ;;  %v6406_v58 = vor.u32 %v6405_v21, %v6404_v1  ;;  %v18266_v52 = vshrl.u32 %v18265_v60, 16  ;;  %v18271_v21 = vld [vmem:[#allocation14_spill] sm:$0xff] }
 0x444   :  { %10560 = vmatprep.mubr.msk.bf16.mxu1 %vm13708_vm2, %v18206_v12 }
 0x445   :  { %v6407_v53 = vsel %vm6379_vm7, %v6402_v44, %v6406_v58  ;;  %v6408_v7 = vrot.slane %v18266_v52, 2 }
 0x447   :  { %11519 = vmatmul.mubr.msk.bf16.gmra.mrb[8].mxu0 %vm830_vm3, %v6399_v34  ;;  %v18267_v34 = vshll.u32 %v18265_v60, 16 }
 0x448   :  { %11522 = vmatprep.mubr.msk.bf16.mxu0 %vm13708_vm2, %v18206_v12 }
 0x449   :  { %v6409_v32 = vrot.slane %v18267_v34, 3 }
 0x44b   :  { %10561 = vmatmul.mubr.msk.bf16.gmra.mrb[120].mxu1 %vm830_vm3, %v2084_v59  ;;  %v6410_v27 = vor.u32 %v6409_v32, %v6408_v7  ;;  %v18269_v59 = vshrl.u32 %v18268_v20, 16  ;;  %v18274_v32 = vld [vmem:[#allocation15_spill] sm:$0xff] }
 0x44c   :  { %10564 = vmatprep.mubr.msk.bf16.mxu1 %vm13708_vm2, %v18206_v12 }
 0x44d   :  { %v6411_v14 = vsel %vm6379_vm7, %v6406_v58, %v6410_v27  ;;  %v6412_v44 = vrot.slane %v18269_v59, 2 }
 0x44f   :  { %11523 = vmatmul.mubr.msk.bf16.gmra.mrb[12].mxu0 %vm830_vm3, %v6403_v48  ;;  %v18270_v48 = vshll.u32 %v18268_v20, 16 }
 0x450   :  { %11526 = vmatprep.mubr.msk.bf16.mxu0 %vm13708_vm2, %v18206_v12 }
 0x451   :  { %v6413_v10 = vrot.slane %v18270_v48, 3 }
 0x453   :  { %10565 = vmatmul.mubr.msk.bf16.gmra.mrb[124].mxu1 %vm830_vm3, %v2086_v47  ;;  %v6414_v1 = vor.u32 %v6413_v10, %v6412_v44  ;;  %v18272_v47 = vshrl.u32 %v18271_v21, 16  ;;  %v18277_v10 = vld [vmem:[#allocation16_spill] sm:$0xff] }
 0x454   :  { %10568 = vmatprep.mubr.msk.bf16.mxu1 %vm13708_vm2, %v18206_v12 }
 0x455   :  { %v6415_v5 = vsel %vm6379_vm7, %v6410_v27, %v6414_v1  ;;  %v6416_v58 = vrot.slane %v18272_v47, 2 }
 0x457   :  { %11527 = vmatmul.mubr.msk.bf16.gmra.mrb[16].mxu0 %vm830_vm3, %v6407_v53  ;;  %v18273_v53 = vshll.u32 %v18271_v21, 16 }
 0x458   :  { %11530 = vmatprep.mubr.msk.bf16.mxu0 %vm13708_vm2, %v18206_v12 }
 0x459   :  { %v6417_v52 = vrot.slane %v18273_v53, 3 }
 0x45b   :  { %10569 = vmatmul.mubr.msk.bf16.gmra.mrb[128].mxu1 %vm830_vm3, %v2088_v36  ;;  %v6418_v7 = vor.u32 %v6417_v52, %v6416_v58  ;;  %v18275_v36 = vshrl.u32 %v18274_v32, 16  ;;  %v18280_v52 = vld [vmem:[#allocation17_spill] sm:$0xff] }
 0x45c   :  { %10572 = vmatprep.mubr.msk.bf16.mxu1 %vm13708_vm2, %v18206_v12 }
 0x45d   :  { %v6419_v34 = vsel %vm6379_vm7, %v6414_v1, %v6418_v7  ;;  %v6420_v27 = vrot.slane %v18275_v36, 2 }
 0x45f   :  { %11531 = vmatmul.mubr.msk.bf16.gmra.mrb[20].mxu0 %vm830_vm3, %v6411_v14  ;;  %v18276_v14 = vshll.u32 %v18274_v32, 16 }
 0x460   :  { %11534 = vmatprep.mubr.msk.bf16.mxu0 %vm13708_vm2, %v18206_v12 }
 0x461   :  { %v6421_v59 = vrot.slane %v18276_v14, 3 }
 0x463   :  { %10573 = vmatmul.mubr.msk.bf16.gmra.mrb[132].mxu1 %vm830_vm3, %v2090_v39  ;;  %v6422_v44 = vor.u32 %v6421_v59, %v6420_v27  ;;  %v18278_v39 = vshrl.u32 %v18277_v10, 16  ;;  %v18283_v59 = vld [vmem:[#allocation18_spill] sm:$0xff] }
 0x464   :  { %10576 = vmatprep.mubr.msk.bf16.mxu1 %vm13708_vm2, %v18206_v12 }
 0x465   :  { %v6423_v48 = vsel %vm6379_vm7, %v6418_v7, %v6422_v44  ;;  %v6424_v1 = vrot.slane %v18278_v39, 2 }
 0x467   :  { %11535 = vmatmul.mubr.msk.bf16.gmra.mrb[24].mxu0 %vm830_vm3, %v6415_v5  ;;  %v18279_v5 = vshll.u32 %v18277_v10, 16 }
 0x468   :  { %11538 = vmatprep.mubr.msk.bf16.mxu0 %vm13708_vm2, %v18206_v12 }
 0x469   :  { %v6425_v47 = vrot.slane %v18279_v5, 3 }
 0x46b   :  { %10577 = vmatmul.mubr.msk.bf16.gmra.mrb[136].mxu1 %vm830_vm3, %v2092_v19  ;;  %v6426_v58 = vor.u32 %v6425_v47, %v6424_v1  ;;  %v18281_v19 = vshrl.u32 %v18280_v52, 16  ;;  %v18286_v47 = vld [vmem:[#allocation19_spill] sm:$0xff] }
 0x46c   :  { %10580 = vmatprep.mubr.msk.bf16.mxu1 %vm13708_vm2, %v18206_v12 }
 0x46d   :  { %v6427_v53 = vsel %vm6379_vm7, %v6422_v44, %v6426_v58  ;;  %v6428_v7 = vrot.slane %v18281_v19, 2 }
 0x46f   :  { %11539 = vmatmul.mubr.msk.bf16.gmra.mrb[28].mxu0 %vm830_vm3, %v6419_v34  ;;  %v18282_v34 = vshll.u32 %v18280_v52, 16 }
 0x470   :  { %11542 = vmatprep.mubr.msk.bf16.mxu0 %vm13708_vm2, %v18206_v12 }
 0x471   :  { %v6429_v36 = vrot.slane %v18282_v34, 3 }
 0x473   :  { %10581 = vmatmul.mubr.msk.bf16.gmra.mrb[140].mxu1 %vm830_vm3, %v2094_v62  ;;  %v6430_v27 = vor.u32 %v6429_v36, %v6428_v7  ;;  %v18284_v62 = vshrl.u32 %v18283_v59, 16  ;;  %v18289_v36 = vld [vmem:[#allocation20_spill] sm:$0xff] }
 0x474   :  { %10584 = vmatprep.mubr.msk.bf16.mxu1 %vm13708_vm2, %v18206_v12 }
 0x475   :  { %v6431_v14 = vsel %vm6379_vm7, %v6426_v58, %v6430_v27  ;;  %v6432_v44 = vrot.slane %v18284_v62, 2 }
 0x477   :  { %11543 = vmatmul.mubr.msk.bf16.gmra.mrb[32].mxu0 %vm830_vm3, %v6423_v48  ;;  %v18285_v48 = vshll.u32 %v18283_v59, 16 }
 0x478   :  { %11546 = vmatprep.mubr.msk.bf16.mxu0 %vm13708_vm2, %v18206_v12 }
 0x479   :  { %v6433_v39 = vrot.slane %v18285_v48, 3 }
 0x47b   :  { %10585 = vmatmul.mubr.msk.bf16.gmra.mrb[144].mxu1 %vm830_vm3, %v2096_v45  ;;  %v6434_v1 = vor.u32 %v6433_v39, %v6432_v44  ;;  %v18287_v45 = vshrl.u32 %v18286_v47, 16  ;;  %v18292_v39 = vld [vmem:[#allocation21_spill] sm:$0xff] }
 0x47c   :  { %10588 = vmatprep.mubr.msk.bf16.mxu1 %vm13708_vm2, %v18206_v12 }
 0x47d   :  { %v6435_v5 = vsel %vm6379_vm7, %v6430_v27, %v6434_v1  ;;  %v6436_v58 = vrot.slane %v18287_v45, 2 }
 0x47f   :  { %11547 = vmatmul.mubr.msk.bf16.gmra.mrb[36].mxu0 %vm830_vm3, %v6427_v53  ;;  %v18288_v53 = vshll.u32 %v18286_v47, 16 }
 0x480   :  { %11550 = vmatprep.mubr.msk.bf16.mxu0 %vm13708_vm2, %v18206_v12 }
 0x481   :  { %v6437_v19 = vrot.slane %v18288_v53, 3 }
 0x483   :  { %10589 = vmatmul.mubr.msk.bf16.gmra.mrb[148].mxu1 %vm830_vm3, %v2098_v4  ;;  %v6438_v7 = vor.u32 %v6437_v19, %v6436_v58  ;;  %v18290_v4 = vshrl.u32 %v18289_v36, 16  ;;  %v18295_v19 = vld [vmem:[#allocation22_spill] sm:$0xff] }
 0x484   :  { %10592 = vmatprep.mubr.msk.bf16.mxu1 %vm13708_vm2, %v18206_v12 }
 0x485   :  { %v6439_v34 = vsel %vm6379_vm7, %v6434_v1, %v6438_v7  ;;  %v6440_v27 = vrot.slane %v18290_v4, 2 }
 0x487   :  { %11551 = vmatmul.mubr.msk.bf16.gmra.mrb[40].mxu0 %vm830_vm3, %v6431_v14  ;;  %v18291_v14 = vshll.u32 %v18289_v36, 16 }
 0x488   :  { %11554 = vmatprep.mubr.msk.bf16.mxu0 %vm13708_vm2, %v18206_v12 }
 0x489   :  { %v6441_v62 = vrot.slane %v18291_v14, 3 }
 0x48b   :  { %10593 = vmatmul.mubr.msk.bf16.gmra.mrb[152].mxu1 %vm830_vm3, %v2100_v51  ;;  %v6442_v44 = vor.u32 %v6441_v62, %v6440_v27  ;;  %v18293_v51 = vshrl.u32 %v18292_v39, 16  ;;  %v18298_v62 = vld [vmem:[#allocation23_spill] sm:$0xff] }
 0x48c   :  { %10596 = vmatprep.mubr.msk.bf16.mxu1 %vm13708_vm2, %v18206_v12 }
 0x48d   :  { %v6443_v48 = vsel %vm6379_vm7, %v6438_v7, %v6442_v44  ;;  %v6444_v1 = vrot.slane %v18293_v51, 2 }
 0x48f   :  { %11555 = vmatmul.mubr.msk.bf16.gmra.mrb[44].mxu0 %vm830_vm3, %v6435_v5  ;;  %v18294_v5 = vshll.u32 %v18292_v39, 16 }
 0x490   :  { %11558 = vmatprep.mubr.msk.bf16.mxu0 %vm13708_vm2, %v18206_v12 }
 0x491   :  { %v6445_v45 = vrot.slane %v18294_v5, 3 }
 0x493   :  { %10597 = vmatmul.mubr.msk.bf16.gmra.mrb[156].mxu1 %vm830_vm3, %v2102_v24  ;;  %v6446_v58 = vor.u32 %v6445_v45, %v6444_v1  ;;  %v18296_v24 = vshrl.u32 %v18295_v19, 16  ;;  %v18301_v45 = vld [vmem:[#allocation24_spill] sm:$0xff] }
 0x494   :  { %10600 = vmatprep.mubr.msk.bf16.mxu1 %vm13708_vm2, %v18206_v12 }
 0x495   :  { %v6447_v53 = vsel %vm6379_vm7, %v6442_v44, %v6446_v58  ;;  %v6448_v7 = vrot.slane %v18296_v24, 2 }
 0x497   :  { %11559 = vmatmul.mubr.msk.bf16.gmra.mrb[48].mxu0 %vm830_vm3, %v6439_v34  ;;  %v18297_v34 = vshll.u32 %v18295_v19, 16 }
 0x498   :  { %11562 = vmatprep.mubr.msk.bf16.mxu0 %vm13708_vm2, %v18206_v12 }
 0x499   :  { %v6449_v4 = vrot.slane %v18297_v34, 3 }
 0x49b   :  { %10601 = vmatmul.mubr.msk.bf16.gmra.mrb[160].mxu1 %vm830_vm3, %v2104_v57  ;;  %v6450_v27 = vor.u32 %v6449_v4, %v6448_v7  ;;  %v18299_v57 = vshrl.u32 %v18298_v62, 16  ;;  %v18304_v4 = vld [vmem:[#allocation25_spill] sm:$0xff] }
 0x49c   :  { %10604 = vmatprep.mubr.msk.bf16.mxu1 %vm13708_vm2, %v18206_v12 }
 0x49d   :  { %v6451_v14 = vsel %vm6379_vm7, %v6446_v58, %v6450_v27  ;;  %v6452_v44 = vrot.slane %v18299_v57, 2 }
 0x49f   :  { %11563 = vmatmul.mubr.msk.bf16.gmra.mrb[52].mxu0 %vm830_vm3, %v6443_v48  ;;  %v18300_v48 = vshll.u32 %v18298_v62, 16 }
 0x4a0   :  { %11566 = vmatprep.mubr.msk.bf16.mxu0 %vm13708_vm2, %v18206_v12 }
 0x4a1   :  { %v6453_v51 = vrot.slane %v18300_v48, 3 }
 0x4a3   :  { %10605 = vmatmul.mubr.msk.bf16.gmra.mrb[164].mxu1 %vm830_vm3, %v2106_v46  ;;  %v6454_v1 = vor.u32 %v6453_v51, %v6452_v44  ;;  %v18302_v46 = vshrl.u32 %v18301_v45, 16  ;;  %v2115_v51 = vrot.slane %v18307_v54, 1 }
 0x4a4   :  { %10608 = vmatprep.mubr.msk.bf16.mxu1 %vm13708_vm2, %v18206_v12 }
 0x4a5   :  { %v6455_v5 = vsel %vm6379_vm7, %v6450_v27, %v6454_v1  ;;  %v6456_v58 = vrot.slane %v18302_v46, 2  ;;  %v2116_v8 = vsel %vm2021_vm6, %v2113_v30, %v2115_v51 }
 0x4a7   :  { %11567 = vmatmul.mubr.msk.bf16.gmra.mrb[56].mxu0 %vm830_vm3, %v6447_v53  ;;  %v18303_v53 = vshll.u32 %v18301_v45, 16 }
 0x4a8   :  { %11570 = vmatprep.mubr.msk.bf16.mxu0 %vm13708_vm2, %v18206_v12 }
 0x4a9   :  { %v6457_v24 = vrot.slane %v18303_v53, 3 }
 0x4ab   :  { %10609 = vmatmul.mubr.msk.bf16.gmra.mrb[168].mxu1 %vm830_vm3, %v2108_v17  ;;  %v6458_v7 = vor.u32 %v6457_v24, %v6456_v58  ;;  %v18305_v17 = vshrl.u32 %v18304_v4, 16 }
 0x4ac   :  { %10612 = vmatprep.mubr.msk.bf16.mxu1 %vm13708_vm2, %v18206_v12 }
 0x4ad   :  { %v6459_v34 = vsel %vm6379_vm7, %v6454_v1, %v6458_v7  ;;  %v6460_v27 = vrot.slane %v18305_v17, 2 }
 0x4af   :  { %11571 = vmatmul.mubr.msk.bf16.gmra.mrb[60].mxu0 %vm830_vm3, %v6451_v14  ;;  %v18306_v14 = vshll.u32 %v18304_v4, 16 }
 0x4b0   :  { %11574 = vmatprep.mubr.msk.bf16.mxu0 %vm13708_vm2, %v18206_v12 }
 0x4b1   :  { %v6461_v57 = vrot.slane %v18306_v14, 3 }
 0x4b3   :  { %10613 = vmatmul.mubr.msk.bf16.gmra.mrb[172].mxu1 %vm830_vm3, %v2110_v33  ;;  %v6462_v44 = vor.u32 %v6461_v57, %v6460_v27  ;;  %v18308_v33 = vld [vmem:[#allocation26_spill] sm:$0xff] }
 0x4b4   :  { %10616 = vmatprep.mubr.msk.bf16.mxu1 %vm13708_vm2, %v18206_v12  ;;  %v18309_v1 = vshrl.u32 %v18308_v33, 16  ;;  %v18310_v46 = vshll.u32 %v18308_v33, 16 }
 0x4b5   :  { %v6463_v48 = vsel %vm6379_vm7, %v6458_v7, %v6462_v44 }
 0x4b6   :  { %v6465_v58 = vrot.slane %v18310_v46, 3 }
 0x4b7   :  { %11575 = vmatmul.mubr.msk.bf16.gmra.mrb[64].mxu0 %vm830_vm3, %v6455_v5  ;;  %v6464_v5 = vrot.slane %v18309_v1, 2  ;;  %v18316_v1 = vld [vmem:[#allocation28_spill] sm:$0xff] }
 0x4b8   :  { %11578 = vmatprep.mubr.msk.bf16.mxu0 %vm13708_vm2, %v18206_v12 }
 0x4b9   :  { %v6466_v53 = vor.u32 %v6465_v58, %v6464_v5  ;;  %v18317_v5 = vshrl.u32 %v18316_v1, 16  ;;  %v18318_v58 = vshll.u32 %v18316_v1, 16 }
 0x4bb   :  { %10617 = vmatmul.mubr.msk.bf16.gmra.mrb[176].mxu1 %vm830_vm3, %v2112_v11  ;;  %v6467_v24 = vsel %vm6379_vm7, %v6462_v44, %v6466_v53  ;;  %v18311_v11 = vld [vmem:[#allocation35_spill] sm:$0xff]  ;;  %v6472_v46 = vrot.slane %v18317_v5, 2  ;;  %v18323_v5 = vld [vmem:[#allocation38_spill] sm:$0xff] }
 0x4bc   :  { %10620 = vmatprep.mubr.msk.bf16.mxu1 %vm13708_vm2, %v18206_v12  ;;  %v2117_v7 = vrot.slane %v18311_v11, 1  ;;  %v18319_v11 = vld [vmem:[#allocation37_spill] sm:$0xff] }
 0x4be   :  { %v2118_v30 = vsel %vm2021_vm6, %v2115_v51, %v2117_v7 }
 0x4bf   :  { %11579 = vmatmul.mubr.msk.bf16.gmra.mrb[68].mxu0 %vm830_vm3, %v6459_v34  ;;  %v18312_v34 = vld [vmem:[#allocation27_spill] sm:$0xff] }
 0x4c0   :  { %11582 = vmatprep.mubr.msk.bf16.mxu0 %vm13708_vm2, %v18206_v12  ;;  %v18313_v17 = vshrl.u32 %v18312_v34, 16  ;;  %v18314_v14 = vshll.u32 %v18312_v34, 16 }
 0x4c2   :  { %v6468_v27 = vrot.slane %v18313_v17, 2  ;;  %v6469_v57 = vrot.slane %v18314_v14, 3  ;;  %v2121_v17 = vrot.slane %v18319_v11, 1 }
 0x4c3   :  { %10621 = vmatmul.mubr.msk.bf16.gmra.mrb[180].mxu1 %vm830_vm3, %v2114_v50 }
 0x4c4   :  { %10624 = vmatprep.mubr.msk.bf16.mxu1 %vm13708_vm2, %v18206_v12  ;;  %v6470_v50 = vor.u32 %v6469_v57, %v6468_v27  ;;  %v18320_v27 = vld [vmem:[#allocation29_spill] sm:$0xff] }
 0x4c5   :  { %v18321_v14 = vshrl.u32 %v18320_v27, 16 }
 0x4c6   :  { %v6471_v44 = vsel %vm6379_vm7, %v6466_v53, %v6470_v50 }
 0x4c7   :  { %11583 = vmatmul.mubr.msk.bf16.gmra.mrb[72].mxu0 %vm830_vm3, %v6463_v48  ;;  %v18315_v48 = vld [vmem:[#allocation36_spill] sm:$0xff]  ;;  %v6476_v57 = vrot.slane %v18321_v14, 2 }
 0x4c8   :  { %11586 = vmatprep.mubr.msk.bf16.mxu0 %vm13708_vm2, %v18206_v12  ;;  %v2119_v54 = vrot.slane %v18315_v48, 1 }
 0x4ca   :  { %v2120_v51 = vsel %vm2021_vm6, %v2117_v7, %v2119_v54  ;;  %v2122_v7 = vsel %vm2021_vm6, %v2119_v54, %v2121_v17 }
 0x4cb   :  { %10625 = vmatmul.mubr.msk.bf16.gmra.mrb[184].mxu1 %vm830_vm3, %v2116_v8  ;;  %v6473_v8 = vrot.slane %v18318_v58, 3  ;;  %v18324_v58 = vld [vmem:[#allocation31_spill] sm:$0xff] }
 0x4cc   :  { %10628 = vmatprep.mubr.msk.bf16.mxu1 %vm13708_vm2, %v18206_v12 }
 0x4cf   :  { %11587 = vmatmul.mubr.msk.bf16.gmra.mrb[76].mxu0 %vm830_vm3, %v6467_v24  ;;  %v6474_v24 = vor.u32 %v6473_v8, %v6472_v46  ;;  %v2123_v46 = vrot.slane %v18323_v5, 1  ;;  %v18325_v8 = vshrl.u32 %v18324_v58, 16 }
 0x4d0   :  { %11590 = vmatprep.mubr.msk.bf16.mxu0 %vm13708_vm2, %v18206_v12 }
 0x4d1   :  { %v6475_v53 = vsel %vm6379_vm7, %v6470_v50, %v6474_v24  ;;  %v2124_v54 = vsel %vm2021_vm6, %v2121_v17, %v2123_v46 }
 0x4d3   :  { %10629 = vmatmul.mubr.msk.bf16.gmra.mrb[188].mxu1 %vm830_vm3, %v2118_v30  ;;  %v18322_v30 = vshll.u32 %v18320_v27, 16 }
 0x4d4   :  { %10632 = vmatprep.mubr.msk.bf16.mxu1 %vm13708_vm2, %v18206_v12 }
 0x4d7   :  { %11591 = vmatmul.mubr.msk.bf16.gmra.mrb[80].mxu0 %vm830_vm3, %v6471_v44  ;;  %v6477_v44 = vrot.slane %v18322_v30, 3 }
 0x4d8   :  { %11594 = vmatprep.mubr.msk.bf16.mxu0 %vm13708_vm2, %v18206_v12 }
 0x4d9   :  { %v6478_v48 = vor.u32 %v6477_v44, %v6476_v57  ;;  %v18327_v57 = vld [vmem:[#allocation39_spill] sm:$0xff]  ;;  %v18328_v44 = vld [vmem:[#allocation32_spill] sm:$0xff] }
 0x4da   :  { %v2125_v30 = vrot.slane %v18327_v57, 1 }
 0x4db   :  { %10633 = vmatmul.mubr.msk.bf16.gmra.mrb[192].mxu1 %vm830_vm3, %v2120_v51  ;;  %v6479_v50 = vsel %vm6379_vm7, %v6474_v24, %v6478_v48  ;;  %v6480_v51 = vrot.slane %v18325_v8, 2 }
 0x4dc   :  { %10636 = vmatprep.mubr.msk.bf16.mxu1 %vm13708_vm2, %v18206_v12 }
 0x4df   :  { %11595 = vmatmul.mubr.msk.bf16.gmra.mrb[84].mxu0 %vm830_vm3, %v6475_v53  ;;  %v18326_v53 = vshll.u32 %v18324_v58, 16 }
 0x4e0   :  { %11598 = vmatprep.mubr.msk.bf16.mxu0 %vm13708_vm2, %v18206_v12 }
 0x4e1   :  { %v6481_v11 = vrot.slane %v18326_v53, 3  ;;  %v18331_v53 = vld [vmem:[#allocation8_spill] sm:$0xff] }
 0x4e2   :  { %v18124_v17 = vshrl.u32 %v18331_v53, 16 }
 0x4e3   :  { %10637 = vmatmul.mubr.msk.bf16.gmra.mrb[196].mxu1 %vm830_vm3, %v2122_v7  ;;  %v6482_v14 = vor.u32 %v6481_v11, %v6480_v51  ;;  %v18329_v7 = vshrl.u32 %v18328_v44, 16  ;;  %v18121_v51 = vshll.u32 %v18331_v53, 16 }
 0x4e4   :  { %10640 = vmatprep.mubr.msk.bf16.mxu1 %vm13708_vm2, %v18206_v12 }
 0x4e5   :  { %v6483_v24 = vsel %vm6379_vm7, %v6478_v48, %v6482_v14  ;;  %v6484_v5 = vrot.slane %v18329_v7, 2  ;;  %v2126_v48 = vsel %vm2021_vm6, %v2123_v46, %v2125_v30  ;;  %v6489_v57 = vrot.slane %v18121_v51, 3 }
 0x4e6   :  { %v18123_v46 = vshrl.u32 %v15454_v6, 16 }
 0x4e7   :  { %11599 = vmatmul.mubr.msk.bf16.gmra.mrb[88].mxu0 %vm830_vm3, %v6479_v50  ;;  %v18330_v50 = vshll.u32 %v18328_v44, 16 }
 0x4e8   :  { %11602 = vmatprep.mubr.msk.bf16.mxu0 %vm13708_vm2, %v18206_v12 }
 0x4e9   :  { %v6485_v8 = vrot.slane %v18330_v50, 3 }
 0x4eb   :  { %10641 = vmatmul.mubr.msk.bf16.gmra.mrb[200].mxu1 %vm830_vm3, %v2124_v54  ;;  %v6486_v11 = vor.u32 %v6485_v8, %v6484_v5  ;;  %v6488_v54 = vrot.slane %v18124_v17, 2  ;;  %v18122_v5 = vshll.u32 %v15454_v6, 16 }
 0x4ec   :  { %10644 = vmatprep.mubr.msk.bf16.mxu1 %vm13708_vm2, %v18206_v12 }
 0x4ed   :  { %v6490_v7 = vor.u32 %v6489_v57, %v6488_v54  ;;  %v6492_v54 = vrot.slane %v18123_v46, 2  ;;  %v6493_v57 = vrot.slane %v18122_v5, 3  ;;  %v18334_v5 = vld [vmem:[#allocation7_spill] sm:$0xff] }
 0x4ee   :  { %v2918_v46 = vrot.slane %v18334_v5, 3  ;;  %v18125_v5 = vshll.u32 %v15492_v56, 16 }
 0x4ef   :  { %11603 = vmatmul.mubr.msk.bf16.gmra.mrb[92].mxu0 %vm830_vm3, %v6483_v24  ;;  %v6487_v24 = vsel %vm6379_vm7, %v6482_v14, %v6486_v11  ;;  %v6491_v50 = vsel %vm6379_vm7, %v6486_v11, %v6490_v7  ;;  %v18332_v14 = vld [vmem:[#allocation6_spill] sm:$0xff]  ;;  %v6494_v11 = vor.u32 %v6493_v57, %v6492_v54  ;;  %v18128_v57 = vshrl.u32 %v15492_v56, 16 }
 0x4f0   :  { %11606 = vmatprep.mubr.msk.bf16.mxu0 %vm13708_vm2, %v18206_v12  ;;  %v2915_v8 = vrot.slane %v18332_v14, 3  ;;  %v18139_v14 = vshll.u32 %v15473_v22, 16 }
 0x4f3   :  { %10645 = vmatmul.mubr.msk.bf16.gmra.mrb[204].mxu1 %vm830_vm3, %v2126_v48  ;;  %v18333_v48 = vld [vmem:[#allocation5_spill] sm:$0xff] }
 0x4f4   :  { %10648 = vmatprep.mubr.msk.bf16.mxu1 %vm13708_vm2, %v18206_v12  ;;  %v2916_v51 = vrot.slane %v18333_v48, 3  ;;  %v6495_v48 = vsel %vm6379_vm7, %v6490_v7, %v6494_v11 }
 0x4f6   :  { %v2919_v7 = vsel %vm2914_vm8, %v2916_v51, %v2918_v46 }
 0x4f7   :  { %11607 = vmatmul.mubr.msk.bf16.gmra.mrb[96].mxu0 %vm830_vm3, %v6487_v24  ;;  %v18170_v24 = vshrl.u32 %v15473_v22, 16 }
 0x4f8   :  { %11610 = vmatprep.mubr.msk.bf16.mxu0 %vm13708_vm2, %v18206_v12 }
 0x4f9   :  { %v6496_v17 = vrot.slane %v18170_v24, 2 }
 0x4fb   :  { %10649 = vmatmul.mubr.msk.bf16.gmra.mrb[208].mxu1 %vm830_vm3, %v2125_v30  ;;  %v2917_v30 = vsel %vm2914_vm8, %v2915_v8, %v2916_v51  ;;  %v6497_v8 = vrot.slane %v18139_v14, 3 }
 0x4fc   :  { %10654 = vmatprep.mubr.msk.bf16.mxu1 %vm13708_vm2, %v18206_v12 }
 0x4fd   :  { %v6498_v54 = vor.u32 %v6497_v8, %v6496_v17  ;;  %v6501_v17 = vrot.slane %v18125_v5, 3  ;;  %v18127_v8 = vshrl.u32 %v15510_v42, 16 }
 0x4ff   :  { %11611 = vmatmul.mubr.msk.bf16.gmra.mrb[100].mxu0 %vm830_vm3, %v6491_v50  ;;  %v18335_v50 = vld [vmem:[#allocation4_spill] sm:$0xff]  ;;  %v6504_v5 = vrot.slane %v18127_v8, 2  ;;  %v18132_v8 = vshrl.u32 %v15546_v61, 16 }
 0x500   :  { %11614 = vmatprep.mubr.msk.bf16.mxu0 %vm13708_vm2, %v18206_v12 }
 0x503   :  { %10655 = vmatmul.mubr.msk.bf16.vlgmr.msra.gmra.mrb[0].mxu1 %vm830_vm3, %v2917_v30  ;;  %v6499_v30 = vsel %vm6379_vm7, %v6494_v11, %v6498_v54 }
 0x504   :  { %10658 = vmatprep.mubr.msk.bf16.mxu1 %vm13708_vm2, %v18206_v12  ;;  %11937 = vmatpush3.bf16.msra.mxu1 %v18335_v50  ;;  %v16287_v50 = vrot.slane %v13813_v49, 3  ;;  %v18126_v49 = vshll.u32 %v15510_v42, 16 }
 0x506   :  { %v2921_v51 = vsel %vm2914_vm8, %v2918_v46, %v16287_v50  ;;  %v6505_v46 = vrot.slane %v18126_v49, 3 }
 0x507   :  { %11615 = vmatmul.mubr.msk.bf16.gmra.mrb[104].mxu0 %vm830_vm3, %v6495_v48  ;;  %v6500_v48 = vrot.slane %v18128_v57, 2  ;;  %v18131_v57 = vshll.u32 %v15546_v61, 16 }
 0x508   :  { %11618 = vmatprep.mubr.msk.bf16.mxu0 %vm13708_vm2, %v18206_v12 }
 0x509   :  { %v6502_v11 = vor.u32 %v6501_v17, %v6500_v48  ;;  %v18130_v17 = vshrl.u32 %v15528_v31, 16 }
 0x50b   :  { %10659 = vmatmul.mubr.msk.bf16.gmra.mrb[4].mxu1 %vm830_vm3, %v2919_v7  ;;  %v6503_v7 = vsel %vm6379_vm7, %v6498_v54, %v6502_v11  ;;  %v6506_v54 = vor.u32 %v6505_v46, %v6504_v5  ;;  %v6508_v49 = vrot.slane %v18130_v17, 2  ;;  %v18133_v17 = vshll.u32 %v15564_v23, 16 }
 0x50c   :  { %10662 = vmatprep.mubr.msk.bf16.mxu1 %vm13708_vm2, %v18206_v12 }
 0x50f   :  { %11619 = vmatmul.mubr.msk.bf16.gmra.mrb[108].mxu0 %vm830_vm3, %v6499_v30  ;;  %v2922_v30 = vrot.slane %v18222_v41, 3  ;;  %v18129_v41 = vshll.u32 %v15528_v31, 16 }
 0x510   :  { %11622 = vmatprep.mubr.msk.bf16.mxu0 %vm13708_vm2, %v18206_v12 }
 0x511   :  { %v16314_v48 = vsel %vm2914_vm8, %v16287_v50, %v2922_v30  ;;  %v6509_v5 = vrot.slane %v18129_v41, 3  ;;  %v6512_v41 = vrot.slane %v18132_v8, 2  ;;  %v18135_v8 = vshll.u32 %v15582_v26, 16 }
 0x513   :  { %10663 = vmatmul.mubr.msk.bf16.gmra.mrb[8].mxu1 %vm830_vm3, %v2921_v51  ;;  %v6507_v51 = vsel %vm6379_vm7, %v6502_v11, %v6506_v54  ;;  %v6510_v11 = vor.u32 %v6509_v5, %v6508_v49  ;;  %v6513_v49 = vrot.slane %v18131_v57, 3  ;;  %v18134_v5 = vshrl.u32 %v15564_v23, 16 }
 0x514   :  { %10666 = vmatprep.mubr.msk.bf16.mxu1 %vm13708_vm2, %v18206_v12 }
 0x515   :  { %v6516_v57 = vrot.slane %v18134_v5, 2  ;;  %v18137_v5 = vshll.u32 %v15600_v43, 16 }
 0x517   :  { %11623 = vmatmul.mubr.msk.bf16.gmra.mrb[112].mxu0 %vm830_vm3, %v6503_v7  ;;  %v2924_v7 = vrot.slane %v18223_v3, 3  ;;  %v6511_v3 = vsel %vm6379_vm7, %v6506_v54, %v6510_v11  ;;  %v6514_v54 = vor.u32 %v6513_v49, %v6512_v41  ;;  %v6517_v41 = vrot.slane %v18133_v17, 3 }
 0x518   :  { %11626 = vmatprep.mubr.msk.bf16.mxu0 %vm13708_vm2, %v18206_v12  ;;  %v18136_v49 = vshrl.u32 %v15582_v26, 16 }
 0x519   :  { %v16332_v46 = vsel %vm2914_vm8, %v2922_v30, %v2924_v7 }
 0x51a   :  { %v6520_v17 = vrot.slane %v18136_v49, 2  ;;  %v18140_v49 = vshll.u32 %v15618_v15, 16 }
 0x51b   :  { %10667 = vmatmul.mubr.msk.bf16.gmra.mrb[12].mxu1 %vm830_vm3, %v16314_v48 }
 0x51c   :  { %10670 = vmatprep.mubr.msk.bf16.mxu1 %vm13708_vm2, %v18206_v12 }
 0x51f   :  { %11627 = vmatmul.mubr.msk.bf16.gmra.mrb[116].mxu0 %vm830_vm3, %v6507_v51  ;;  %v2926_v51 = vrot.slane %v18259_v18, 3  ;;  %v6515_v18 = vsel %vm6379_vm7, %v6510_v11, %v6514_v54  ;;  %v6518_v11 = vor.u32 %v6517_v41, %v6516_v57  ;;  %v6521_v57 = vrot.slane %v18135_v8, 3 }
 0x520   :  { %11630 = vmatprep.mubr.msk.bf16.mxu0 %vm13708_vm2, %v18206_v12  ;;  %v18138_v41 = vshrl.u32 %v15600_v43, 16 }
 0x521   :  { %v16350_v30 = vsel %vm2914_vm8, %v2924_v7, %v2926_v51 }
 0x522   :  { %v6524_v8 = vrot.slane %v18138_v41, 2 }
 0x523   :  { %10671 = vmatmul.mubr.msk.bf16.gmra.mrb[16].mxu1 %vm830_vm3, %v16332_v46 }
 0x524   :  { %10674 = vmatprep.mubr.msk.bf16.mxu1 %vm13708_vm2, %v18206_v12 }
 0x527   :  { %11631 = vmatmul.mubr.msk.bf16.gmra.mrb[120].mxu0 %vm830_vm3, %v6511_v3  ;;  %v2928_v3 = vrot.slane %v18262_v0, 3  ;;  %v6519_v0 = vsel %vm6379_vm7, %v6514_v54, %v6518_v11  ;;  %v6522_v54 = vor.u32 %v6521_v57, %v6520_v17  ;;  %v6525_v17 = vrot.slane %v18137_v5, 3 }
 0x528   :  { %11634 = vmatprep.mubr.msk.bf16.mxu0 %vm13708_vm2, %v18206_v12  ;;  %v18141_v57 = vshrl.u32 %v15618_v15, 16 }
 0x529   :  { %v16368_v7 = vsel %vm2914_vm8, %v2926_v51, %v2928_v3 }
 0x52a   :  { %v6528_v5 = vrot.slane %v18141_v57, 2  ;;  %v18144_v57 = vshll.u32 %v15654_v13, 16 }
 0x52b   :  { %10675 = vmatmul.mubr.msk.bf16.gmra.mrb[20].mxu1 %vm830_vm3, %v16350_v30 }
 0x52c   :  { %10678 = vmatprep.mubr.msk.bf16.mxu1 %vm13708_vm2, %v18206_v12 }
 0x52f   :  { %11635 = vmatmul.mubr.msk.bf16.gmra.mrb[124].mxu0 %vm830_vm3, %v6515_v18  ;;  %v2930_v18 = vrot.slane %v18265_v60, 3  ;;  %v6523_v60 = vsel %vm6379_vm7, %v6518_v11, %v6522_v54  ;;  %v6526_v11 = vor.u32 %v6525_v17, %v6524_v8  ;;  %v6529_v8 = vrot.slane %v18140_v49, 3  ;;  %v18336_v17 = vld [vmem:[#allocation43_spill] sm:$0xff] }
 0x530   :  { %11638 = vmatprep.mubr.msk.bf16.mxu0 %vm13708_vm2, %v18206_v12  ;;  %v18143_v41 = vshrl.u32 %v18336_v17, 16  ;;  %v18142_v14 = vshll.u32 %v18336_v17, 16 }
 0x531   :  { %v16386_v51 = vsel %vm2914_vm8, %v2928_v3, %v2930_v18 }
 0x532   :  { %v6532_v49 = vrot.slane %v18143_v41, 2  ;;  %v18146_v41 = vshll.u32 %v15678_v63, 16 }
 0x533   :  { %10679 = vmatmul.mubr.msk.bf16.gmra.mrb[24].mxu1 %vm830_vm3, %v16368_v7 }
 0x534   :  { %10682 = vmatprep.mubr.msk.bf16.mxu1 %vm13708_vm2, %v18206_v12 }
 0x537   :  { %11639 = vmatmul.mubr.msk.bf16.gmra.mrb[128].mxu0 %vm830_vm3, %v6519_v0  ;;  %v2932_v0 = vrot.slane %v18268_v20, 3  ;;  %v6527_v20 = vsel %vm6379_vm7, %v6522_v54, %v6526_v11  ;;  %v6530_v54 = vor.u32 %v6529_v8, %v6528_v5  ;;  %v6533_v5 = vrot.slane %v18142_v14, 3 }
 0x538   :  { %11642 = vmatprep.mubr.msk.bf16.mxu0 %vm13708_vm2, %v18206_v12  ;;  %v18145_v8 = vshrl.u32 %v15654_v13, 16 }
 0x539   :  { %v16404_v3 = vsel %vm2914_vm8, %v2930_v18, %v2932_v0 }
 0x53a   :  { %v6536_v14 = vrot.slane %v18145_v8, 2  ;;  %v18148_v8 = vshll.u32 %v15696_v28, 16 }
 0x53b   :  { %10683 = vmatmul.mubr.msk.bf16.gmra.mrb[28].mxu1 %vm830_vm3, %v16386_v51 }
 0x53c   :  { %10686 = vmatprep.mubr.msk.bf16.mxu1 %vm13708_vm2, %v18206_v12 }
 0x53f   :  { %11643 = vmatmul.mubr.msk.bf16.gmra.mrb[132].mxu0 %vm830_vm3, %v6523_v60  ;;  %v2934_v60 = vrot.slane %v18271_v21, 3  ;;  %v6531_v21 = vsel %vm6379_vm7, %v6526_v11, %v6530_v54  ;;  %v6534_v11 = vor.u32 %v6533_v5, %v6532_v49  ;;  %v6537_v49 = vrot.slane %v18144_v57, 3 }
 0x540   :  { %11646 = vmatprep.mubr.msk.bf16.mxu0 %vm13708_vm2, %v18206_v12  ;;  %v18147_v5 = vshrl.u32 %v15678_v63, 16 }
 0x541   :  { %v16422_v18 = vsel %vm2914_vm8, %v2932_v0, %v2934_v60 }
 0x542   :  { %v6540_v57 = vrot.slane %v18147_v5, 2  ;;  %v18150_v5 = vshll.u32 %v15714_v37, 16 }
 0x543   :  { %10687 = vmatmul.mubr.msk.bf16.gmra.mrb[32].mxu1 %vm830_vm3, %v16404_v3 }
 0x544   :  { %10690 = vmatprep.mubr.msk.bf16.mxu1 %vm13708_vm2, %v18206_v12 }
 0x547   :  { %11647 = vmatmul.mubr.msk.bf16.gmra.mrb[136].mxu0 %vm830_vm3, %v6527_v20  ;;  %v2936_v20 = vrot.slane %v18274_v32, 3  ;;  %v6535_v32 = vsel %vm6379_vm7, %v6530_v54, %v6534_v11  ;;  %v6538_v54 = vor.u32 %v6537_v49, %v6536_v14  ;;  %v6541_v14 = vrot.slane %v18146_v41, 3 }
 0x548   :  { %11650 = vmatprep.mubr.msk.bf16.mxu0 %vm13708_vm2, %v18206_v12  ;;  %v18149_v49 = vshrl.u32 %v15696_v28, 16 }
 0x549   :  { %v16440_v0 = vsel %vm2914_vm8, %v2934_v60, %v2936_v20 }
 0x54a   :  { %v6544_v41 = vrot.slane %v18149_v49, 2  ;;  %v18152_v49 = vshll.u32 %v15732_v16, 16 }
 0x54b   :  { %10691 = vmatmul.mubr.msk.bf16.gmra.mrb[36].mxu1 %vm830_vm3, %v16422_v18 }
 0x54c   :  { %10694 = vmatprep.mubr.msk.bf16.mxu1 %vm13708_vm2, %v18206_v12 }
 0x54f   :  { %11651 = vmatmul.mubr.msk.bf16.gmra.mrb[140].mxu0 %vm830_vm3, %v6531_v21  ;;  %v2938_v21 = vrot.slane %v18277_v10, 3  ;;  %v6539_v10 = vsel %vm6379_vm7, %v6534_v11, %v6538_v54  ;;  %v6542_v11 = vor.u32 %v6541_v14, %v6540_v57  ;;  %v6545_v57 = vrot.slane %v18148_v8, 3 }
 0x550   :  { %11654 = vmatprep.mubr.msk.bf16.mxu0 %vm13708_vm2, %v18206_v12  ;;  %v18151_v14 = vshrl.u32 %v15714_v37, 16 }
 0x551   :  { %v16458_v60 = vsel %vm2914_vm8, %v2936_v20, %v2938_v21 }
 0x552   :  { %v6548_v8 = vrot.slane %v18151_v14, 2  ;;  %v18154_v14 = vshll.u32 %v15750_v35, 16 }
 0x553   :  { %10695 = vmatmul.mubr.msk.bf16.gmra.mrb[40].mxu1 %vm830_vm3, %v16440_v0 }
 0x554   :  { %10698 = vmatprep.mubr.msk.bf16.mxu1 %vm13708_vm2, %v18206_v12 }
 0x557   :  { %11655 = vmatmul.mubr.msk.bf16.gmra.mrb[144].mxu0 %vm830_vm3, %v6535_v32  ;;  %v2940_v32 = vrot.slane %v18280_v52, 3  ;;  %v6543_v52 = vsel %vm6379_vm7, %v6538_v54, %v6542_v11  ;;  %v6546_v54 = vor.u32 %v6545_v57, %v6544_v41  ;;  %v6549_v41 = vrot.slane %v18150_v5, 3 }
 0x558   :  { %11658 = vmatprep.mubr.msk.bf16.mxu0 %vm13708_vm2, %v18206_v12  ;;  %v18153_v57 = vshrl.u32 %v15732_v16, 16 }
 0x559   :  { %v16476_v20 = vsel %vm2914_vm8, %v2938_v21, %v2940_v32 }
 0x55a   :  { %v6552_v5 = vrot.slane %v18153_v57, 2  ;;  %v18156_v57 = vshll.u32 %v15768_v25, 16 }
 0x55b   :  { %10699 = vmatmul.mubr.msk.bf16.gmra.mrb[44].mxu1 %vm830_vm3, %v16458_v60 }
 0x55c   :  { %10702 = vmatprep.mubr.msk.bf16.mxu1 %vm13708_vm2, %v18206_v12 }
 0x55f   :  { %11659 = vmatmul.mubr.msk.bf16.gmra.mrb[148].mxu0 %vm830_vm3, %v6539_v10  ;;  %v2942_v10 = vrot.slane %v18283_v59, 3  ;;  %v6547_v59 = vsel %vm6379_vm7, %v6542_v11, %v6546_v54  ;;  %v6550_v11 = vor.u32 %v6549_v41, %v6548_v8  ;;  %v6553_v8 = vrot.slane %v18152_v49, 3 }
 0x560   :  { %11662 = vmatprep.mubr.msk.bf16.mxu0 %vm13708_vm2, %v18206_v12  ;;  %v18155_v41 = vshrl.u32 %v15750_v35, 16 }
 0x561   :  { %v16494_v21 = vsel %vm2914_vm8, %v2940_v32, %v2942_v10 }
 0x562   :  { %v6556_v49 = vrot.slane %v18155_v41, 2  ;;  %v18158_v41 = vshll.u32 %v15786_v40, 16 }
 0x563   :  { %10703 = vmatmul.mubr.msk.bf16.gmra.mrb[48].mxu1 %vm830_vm3, %v16476_v20 }
 0x564   :  { %10706 = vmatprep.mubr.msk.bf16.mxu1 %vm13708_vm2, %v18206_v12 }
 0x567   :  { %11663 = vmatmul.mubr.msk.bf16.gmra.mrb[152].mxu0 %vm830_vm3, %v6543_v52  ;;  %v2944_v52 = vrot.slane %v18286_v47, 3  ;;  %v6551_v47 = vsel %vm6379_vm7, %v6546_v54, %v6550_v11  ;;  %v6554_v54 = vor.u32 %v6553_v8, %v6552_v5  ;;  %v6557_v5 = vrot.slane %v18154_v14, 3 }
 0x568   :  { %11666 = vmatprep.mubr.msk.bf16.mxu0 %vm13708_vm2, %v18206_v12  ;;  %v18157_v8 = vshrl.u32 %v15768_v25, 16 }
 0x569   :  { %v16512_v32 = vsel %vm2914_vm8, %v2942_v10, %v2944_v52 }
 0x56a   :  { %v6560_v14 = vrot.slane %v18157_v8, 2  ;;  %v18160_v8 = vshll.u32 %v15804_v9, 16 }
 0x56b   :  { %10707 = vmatmul.mubr.msk.bf16.gmra.mrb[52].mxu1 %vm830_vm3, %v16494_v21 }
 0x56c   :  { %10710 = vmatprep.mubr.msk.bf16.mxu1 %vm13708_vm2, %v18206_v12 }
 0x56f   :  { %11667 = vmatmul.mubr.msk.bf16.gmra.mrb[156].mxu0 %vm830_vm3, %v6547_v59  ;;  %v2946_v59 = vrot.slane %v18289_v36, 3  ;;  %v6555_v36 = vsel %vm6379_vm7, %v6550_v11, %v6554_v54  ;;  %v6558_v11 = vor.u32 %v6557_v5, %v6556_v49  ;;  %v6561_v49 = vrot.slane %v18156_v57, 3 }
 0x570   :  { %11670 = vmatprep.mubr.msk.bf16.mxu0 %vm13708_vm2, %v18206_v12  ;;  %v18159_v5 = vshrl.u32 %v15786_v40, 16 }
 0x571   :  { %v16530_v10 = vsel %vm2914_vm8, %v2944_v52, %v2946_v59 }
 0x572   :  { %v6564_v57 = vrot.slane %v18159_v5, 2  ;;  %v18162_v5 = vshll.u32 %v15822_v38, 16 }
 0x573   :  { %10711 = vmatmul.mubr.msk.bf16.gmra.mrb[56].mxu1 %vm830_vm3, %v16512_v32 }
 0x574   :  { %10714 = vmatprep.mubr.msk.bf16.mxu1 %vm13708_vm2, %v18206_v12 }
 0x577   :  { %11671 = vmatmul.mubr.msk.bf16.gmra.mrb[160].mxu0 %vm830_vm3, %v6551_v47  ;;  %v2948_v47 = vrot.slane %v18292_v39, 3  ;;  %v6559_v39 = vsel %vm6379_vm7, %v6554_v54, %v6558_v11  ;;  %v6562_v54 = vor.u32 %v6561_v49, %v6560_v14  ;;  %v6565_v14 = vrot.slane %v18158_v41, 3 }
 0x578   :  { %11674 = vmatprep.mubr.msk.bf16.mxu0 %vm13708_vm2, %v18206_v12  ;;  %v18161_v49 = vshrl.u32 %v15804_v9, 16 }
 0x579   :  { %v16548_v52 = vsel %vm2914_vm8, %v2946_v59, %v2948_v47 }
 0x57a   :  { %v6568_v41 = vrot.slane %v18161_v49, 2  ;;  %v18164_v49 = vshll.u32 %v15840_v55, 16 }
 0x57b   :  { %10715 = vmatmul.mubr.msk.bf16.gmra.mrb[60].mxu1 %vm830_vm3, %v16530_v10 }
 0x57c   :  { %10718 = vmatprep.mubr.msk.bf16.mxu1 %vm13708_vm2, %v18206_v12 }
 0x57f   :  { %11675 = vmatmul.mubr.msk.bf16.gmra.mrb[164].mxu0 %vm830_vm3, %v6555_v36  ;;  %v2950_v36 = vrot.slane %v18295_v19, 3  ;;  %v6563_v19 = vsel %vm6379_vm7, %v6558_v11, %v6562_v54  ;;  %v6566_v11 = vor.u32 %v6565_v14, %v6564_v57  ;;  %v6569_v57 = vrot.slane %v18160_v8, 3 }
 0x580   :  { %11678 = vmatprep.mubr.msk.bf16.mxu0 %vm13708_vm2, %v18206_v12  ;;  %v18163_v14 = vshrl.u32 %v15822_v38, 16 }
 0x581   :  { %v16566_v59 = vsel %vm2914_vm8, %v2948_v47, %v2950_v36 }
 0x582   :  { %v6572_v8 = vrot.slane %v18163_v14, 2  ;;  %v18166_v14 = vshll.u32 %v15029_v2, 16 }
 0x583   :  { %10719 = vmatmul.mubr.msk.bf16.gmra.mrb[64].mxu1 %vm830_vm3, %v16548_v52 }
 0x584   :  { %10722 = vmatprep.mubr.msk.bf16.mxu1 %vm13708_vm2, %v18206_v12 }
 0x587   :  { %11679 = vmatmul.mubr.msk.bf16.gmra.mrb[168].mxu0 %vm830_vm3, %v6559_v39  ;;  %v2952_v39 = vrot.slane %v18298_v62, 3  ;;  %v6567_v62 = vsel %vm6379_vm7, %v6562_v54, %v6566_v11  ;;  %v6570_v54 = vor.u32 %v6569_v57, %v6568_v41  ;;  %v6573_v41 = vrot.slane %v18162_v5, 3 }
 0x588   :  { %11682 = vmatprep.mubr.msk.bf16.mxu0 %vm13708_vm2, %v18206_v12  ;;  %v18165_v57 = vshrl.u32 %v15840_v55, 16 }
 0x589   :  { %v16584_v47 = vsel %vm2914_vm8, %v2950_v36, %v2952_v39 }
 0x58a   :  { %v6576_v5 = vrot.slane %v18165_v57, 2  ;;  %v18169_v57 = vshll.u32 %v15860_v29, 16 }
 0x58b   :  { %10723 = vmatmul.mubr.msk.bf16.gmra.mrb[68].mxu1 %vm830_vm3, %v16566_v59 }
 0x58c   :  { %10726 = vmatprep.mubr.msk.bf16.mxu1 %vm13708_vm2, %v18206_v12 }
 0x58f   :  { %11683 = vmatmul.mubr.msk.bf16.gmra.mrb[172].mxu0 %vm830_vm3, %v6563_v19  ;;  %v2954_v19 = vrot.slane %v18301_v45, 3  ;;  %v6571_v45 = vsel %vm6379_vm7, %v6566_v11, %v6570_v54  ;;  %v6574_v11 = vor.u32 %v6573_v41, %v6572_v8  ;;  %v6577_v8 = vrot.slane %v18164_v49, 3 }
 0x590   :  { %11686 = vmatprep.mubr.msk.bf16.mxu0 %vm13708_vm2, %v18206_v12  ;;  %v18168_v41 = vshrl.u32 %v15029_v2, 16 }
 0x591   :  { %v16602_v36 = vsel %vm2914_vm8, %v2952_v39, %v2954_v19 }
 0x592   :  { %v6580_v49 = vrot.slane %v18168_v41, 2 }
 0x593   :  { %10727 = vmatmul.mubr.msk.bf16.gmra.mrb[72].mxu1 %vm830_vm3, %v16584_v47 }
 0x594   :  { %10730 = vmatprep.mubr.msk.bf16.mxu1 %vm13708_vm2, %v18206_v12 }
 0x597   :  { %11687 = vmatmul.mubr.msk.bf16.gmra.mrb[176].mxu0 %vm830_vm3, %v6567_v62  ;;  %v2956_v62 = vrot.slane %v18304_v4, 3  ;;  %v6575_v4 = vsel %vm6379_vm7, %v6570_v54, %v6574_v11  ;;  %v6578_v54 = vor.u32 %v6577_v8, %v6576_v5  ;;  %v6581_v5 = vrot.slane %v18166_v14, 3 }
 0x598   :  { %11690 = vmatprep.mubr.msk.bf16.mxu0 %vm13708_vm2, %v18206_v12  ;;  %v18167_v8 = vshrl.u32 %v15860_v29, 16 }
 0x599   :  { %v16620_v39 = vsel %vm2914_vm8, %v2954_v19, %v2956_v62 }
 0x59a   :  { %v6584_v14 = vrot.slane %v18167_v8, 2 }
 0x59b   :  { %10731 = vmatmul.mubr.msk.bf16.gmra.mrb[76].mxu1 %vm830_vm3, %v16602_v36 }
 0x59c   :  { %10734 = vmatprep.mubr.msk.bf16.mxu1 %vm13708_vm2, %v18206_v12 }
 0x59f   :  { %11691 = vmatmul.mubr.msk.bf16.gmra.mrb[180].mxu0 %vm830_vm3, %v6571_v45  ;;  %v2958_v45 = vrot.slane %v18308_v33, 3  ;;  %v6579_v33 = vsel %vm6379_vm7, %v6574_v11, %v6578_v54  ;;  %v6582_v11 = vor.u32 %v6581_v5, %v6580_v49  ;;  %v6585_v49 = vrot.slane %v18169_v57, 3 }
 0x5a0   :  { %11694 = vmatprep.mubr.msk.bf16.mxu0 %vm13708_vm2, %v18206_v12 }
 0x5a1   :  { %v16638_v19 = vsel %vm2914_vm8, %v2956_v62, %v2958_v45  ;;  %v6586_v5 = vor.u32 %v6585_v49, %v6584_v14  ;;  %v2964_v14 = vrot.slane %v18320_v27, 3 }
 0x5a3   :  { %10735 = vmatmul.mubr.msk.bf16.gmra.mrb[80].mxu1 %vm830_vm3, %v16620_v39  ;;  %v6587_v24 = vsel %vm6379_vm7, %v6582_v11, %v6586_v5 }
 0x5a4   :  { %10738 = vmatprep.mubr.msk.bf16.mxu1 %vm13708_vm2, %v18206_v12 }
 0x5a7   :  { %11695 = vmatmul.mubr.msk.bf16.gmra.mrb[184].mxu0 %vm830_vm3, %v6575_v4  ;;  %v2960_v4 = vrot.slane %v18312_v34, 3  ;;  %v6583_v34 = vsel %vm6379_vm7, %v6578_v54, %v6582_v11 }
 0x5a8   :  { %11698 = vmatprep.mubr.msk.bf16.mxu0 %vm13708_vm2, %v18206_v12 }
 0x5a9   :  { %v16656_v62 = vsel %vm2914_vm8, %v2958_v45, %v2960_v4  ;;  %v133_v45 = vld [vmem:[%s18000_s0 + $0x1c0] sm:$0x7] }
 0x5ab   :  { %10739 = vmatmul.mubr.msk.bf16.gmra.mrb[84].mxu1 %vm830_vm3, %v16638_v19 }
 0x5ac   :  { %10742 = vmatprep.mubr.msk.bf16.mxu1 %vm13708_vm2, %v18206_v12 }
 0x5af   :  { %11699 = vmatmul.mubr.msk.bf16.gmra.mrb[188].mxu0 %vm830_vm3, %v6579_v33  ;;  %v2962_v33 = vrot.slane %v18316_v1, 3  ;;  %v13700_v1 = vld [vmem:[%s18000_s0 + $0x1b4] sm:$0xff]  }
 0x5b0   :  { %11702 = vmatprep.mubr.msk.bf16.mxu0 %vm13708_vm2, %v18206_v12  ;;  %v6589_v8 = vshrl.u32 %v13700_v1, 16  ;;  %v6592_v41 = vshll.u32 %v13700_v1, 16 }
 0x5b1   :  { %v16677_v54 = vsel %vm2914_vm8, %v2960_v4, %v2962_v33 }
 0x5b2   :  { %v6591_v4 = vrot.slane %v6589_v8, 2  ;;  %v6594_v49 = vrot.slane %v6592_v41, 3 }
 0x5b3   :  { %10743 = vmatmul.mubr.msk.bf16.gmra.mrb[88].mxu1 %vm830_vm3, %v16656_v62 }
 0x5b4   :  { %10746 = vmatprep.mubr.msk.bf16.mxu1 %vm13708_vm2, %v18206_v12  ;;  %v6595_v1 = vor.u32 %v6594_v49, %v6591_v4 }
 0x5b6   :  { %v6596_v27 = vsel %vm6379_vm7, %v6586_v5, %v6595_v1 }
 0x5b7   :  { %11703 = vmatmul.mubr.msk.bf16.gmra.mrb[192].mxu0 %vm830_vm3, %v6583_v34  ;;  %v13701_v34 = vld [vmem:[%s18000_s0 + $0x1bc] sm:$0xf] }
 0x5b8   :  { %11706 = vmatprep.mubr.msk.bf16.mxu0 %vm13708_vm2, %v18206_v12  ;;  %v16685_v57 = vcombine.low %v13701_v34, %v133_v45  ;;  %v16697_v45 = vsel %vm2914_vm8, %v2962_v33, %v2964_v14 }
 0x5ba   :  { %18337 = vst [vmem:[#allocation30_spill] sm:$0xff] %v16685_v57  ;;  %v6598_v34 = vshrl.u32 %v16685_v57, 16  ;;  %v6601_v11 = vshll.u32 %v16685_v57, 16  ;;  %v2976_v57 = vrot.slane %v15492_v56, 3 }
 0x5bb   :  { %10747 = vmatmul.mubr.msk.bf16.gmra.mrb[92].mxu1 %vm830_vm3, %v16677_v54 }
 0x5bc   :  { %10750 = vmatprep.mubr.msk.bf16.mxu1 %vm13708_vm2, %v18206_v12  ;;  %v6600_v41 = vrot.slane %v6598_v34, 2  ;;  %v6603_v8 = vrot.slane %v6601_v11, 3 }
 0x5be   :  { %v6604_v4 = vor.u32 %v6603_v8, %v6600_v41 }
 0x5bf   :  { %11707 = vmatmul.mubr.msk.bf16.gmra.mrb[196].mxu0 %vm830_vm3, %v6587_v24  ;;  %v2966_v24 = vrot.slane %v18324_v58, 3  ;;  %v2968_v58 = vrot.slane %v18328_v44, 3  ;;  %v2970_v44 = vrot.slane %v18331_v53, 3 }
 0x5c0   :  { %11710 = vmatprep.mubr.msk.bf16.mxu0 %vm13708_vm2, %v18206_v12  ;;  %v6605_v5 = vsel %vm6379_vm7, %v6595_v1, %v6604_v4  ;;  %v13702_v1 = vld [vmem:[%s18000_s0 + $0x20] sm:$0xf] }
 0x5c1   :  { %v16711_v33 = vsel %vm2914_vm8, %v2964_v14, %v2966_v24  ;;  %v16723_v49 = vsel %vm2914_vm8, %v2966_v24, %v2968_v58  ;;  %v134_v14 = vld [vmem:[%s18000_s0 + $0x1c] sm:$0x8]  ;;  %v16744_v41 = vsel %vm2914_vm8, %v2968_v58, %v2970_v44 }
 0x5c2   :  { %v9413_v34 = vcombine.low %v134_v14, %v13702_v1 }
 0x5c3   :  { %10751 = vmatmul.mubr.msk.bf16.gmra.mrb[96].mxu1 %vm830_vm3, %v16697_v45 }
 0x5c4   :  { %10754 = vmatprep.mubr.msk.bf16.mxu1 %vm13708_vm2, %v18206_v12  ;;  %v7337_v8 = vrot.slane %v9413_v34, 3 }
 0x5c6   :  { %v7338_v14 = vsel %vm2914_vm8, %v7337_v8, %v16287_v50  ;;  %v2974_v50 = vrot.slane %v15473_v22, 3 }
 0x5c7   :  { %11711 = vmatmul.mubr.msk.bf16.gmra.mrb[200].mxu0 %vm830_vm3, %v6596_v27 }
 0x5c8   :  { %11714 = vmatprep.mubr.msk.bf16.mxu0 %vm13708_vm2, %v18206_v12 }
 0x5cb   :  { %10755 = vmatmul.mubr.msk.bf16.gmra.mrb[100].mxu1 %vm830_vm3, %v16711_v33 }
 0x5cc   :  { %10758 = vmatprep.mubr.msk.bf16.mxu1 %vm13708_vm2, %v18206_v12 }
 0x5cf   :  { %11715 = vmatmul.mubr.msk.bf16.gmra.mrb[204].mxu0 %vm830_vm3, %v6605_v5 }
 0x5d0   :  { %11718 = vmatprep.mubr.msk.bf16.mxu0 %vm13708_vm2, %v18206_v12 }
 0x5d3   :  { %10759 = vmatmul.mubr.msk.bf16.gmra.mrb[104].mxu1 %vm830_vm3, %v16723_v49 }
 0x5d4   :  { %10762 = vmatprep.mubr.msk.bf16.mxu1 %vm13708_vm2, %v18206_v12 }
 0x5d6   :  { %v16736_v11 = vpop.f32.mrb[0].mxu1 }
 0x5d7   :  { %11719 = vmatmul.mubr.msk.bf16.gmra.mrb[208].mxu0 %vm830_vm3, %v6604_v4  ;;  %v10656_v27 = vpop.f32.mrb[1].mxu1  ;;  %v2972_v4 = vrot.slane %v15454_v6, 3 }
 0x5d8   :  { %v16739_v24 = vpop.f32.mrb[2].mxu1  ;;  %11724 = vmatprep.mubr.msk.bf16.mxu0 %vm13708_vm2, %v18206_v12 }
 0x5d9   :  { %v10657_v5 = vpop.f32.mrb[3].mxu1  ;;  %v16761_v34 = vsel %vm2914_vm8, %v2970_v44, %v2972_v4  ;;  %v16777_v44 = vsel %vm2914_vm8, %v2972_v4, %v2974_v50  ;;  %v16793_v4 = vsel %vm2914_vm8, %v2974_v50, %v2976_v57 }
 0x5db   :  { %10763 = vmatmul.mubr.msk.bf16.gmra.mrb[108].mxu1 %vm830_vm3, %v16744_v41 }
 0x5dc   :  { %10766 = vmatprep.mubr.msk.bf16.mxu1 %vm13708_vm2, %v18206_v12 }
 0x5de   :  { %v16753_v1 = vpop.f32.mrb[4].mxu1 }
 0x5df   :  { %11725 = vmatmul.mubr.msk.bf16.vlgmr.msra.gmra.mrb[0].mxu0 %vm830_vm3, %v7338_v14  ;;  %v10660_v27 = vpop.f32.mrb[5].mxu1 }
 0x5e0   :  { %v16756_v58 = vpop.f32.mrb[6].mxu1  ;;  %11728 = vmatprep.mubr.msk.bf16.mxu0 %vm13708_vm2, %v18206_v12 }
 0x5e1   :  { %v10661_v5 = vpop.f32.mrb[7].mxu1 }
 0x5e3   :  { %10767 = vmatmul.mubr.msk.bf16.gmra.mrb[112].mxu1 %vm830_vm3, %v16761_v34 }
 0x5e4   :  { %10770 = vmatprep.mubr.msk.bf16.mxu1 %vm13708_vm2, %v18206_v12 }
 0x5e6   :  { %v16768_v8 = vpop.f32.mrb[8].mxu1 }
 0x5e7   :  { %11729 = vmatmul.mubr.msk.bf16.gmra.mrb[4].mxu0 %vm830_vm3, %v16314_v48  ;;  %v10664_v14 = vpop.f32.mrb[9].mxu1 }
 0x5e8   :  { %v16772_v27 = vpop.f32.mrb[10].mxu1  ;;  %11732 = vmatprep.mubr.msk.bf16.mxu0 %vm13708_vm2, %v18206_v12 }
 0x5e9   :  { %18338 = vst [vmem:[#allocation41_spill] sm:$0xff] %v16772_v27  ;;  %v10665_v5 = vpop.f32.mrb[11].mxu1 }
 0x5eb   :  { %10771 = vmatmul.mubr.msk.bf16.gmra.mrb[116].mxu1 %vm830_vm3, %v16777_v44 }
 0x5ec   :  { %10774 = vmatprep.mubr.msk.bf16.mxu1 %vm13708_vm2, %v18206_v12 }
 0x5ee   :  { %v16784_v29 = vpop.f32.mrb[12].mxu1 }
 0x5ef   :  { %18339 = vst [vmem:[#allocation10_spill] sm:$0xff] %v16784_v29  ;;  %11733 = vmatmul.mubr.msk.bf16.gmra.mrb[8].mxu0 %vm830_vm3, %v16332_v46  ;;  %v10668_v48 = vpop.f32.mrb[13].mxu1  ;;  %v2978_v29 = vrot.slane %v15510_v42, 3 }
 0x5f0   :  { %v16788_v14 = vpop.f32.mrb[14].mxu1  ;;  %11736 = vmatprep.mubr.msk.bf16.mxu0 %vm13708_vm2, %v18206_v12 }
 0x5f1   :  { %18340 = vst [vmem:[#allocation11_spill] sm:$0xff] %v16788_v14  ;;  %v10669_v5 = vpop.f32.mrb[15].mxu1  ;;  %v16809_v50 = vsel %vm2914_vm8, %v2976_v57, %v2978_v29 }
 0x5f3   :  { %10775 = vmatmul.mubr.msk.bf16.gmra.mrb[120].mxu1 %vm830_vm3, %v16793_v4 }
 0x5f4   :  { %10778 = vmatprep.mubr.msk.bf16.mxu1 %vm13708_vm2, %v18206_v12 }
 0x5f6   :  { %v16800_v27 = vpop.f32.mrb[16].mxu1 }
 0x5f7   :  { %18341 = vst [vmem:[#allocation12_spill] sm:$0xff] %v16800_v27  ;;  %11737 = vmatmul.mubr.msk.bf16.gmra.mrb[12].mxu0 %vm830_vm3, %v16350_v30  ;;  %v10672_v46 = vpop.f32.mrb[17].mxu1  ;;  %v2980_v27 = vrot.slane %v15528_v31, 3 }
 0x5f8   :  { %v16804_v48 = vpop.f32.mrb[18].mxu1  ;;  %11740 = vmatprep.mubr.msk.bf16.mxu0 %vm13708_vm2, %v18206_v12 }
 0x5f9   :  { %18342 = vst [vmem:[#allocation13_spill] sm:$0xff] %v16804_v48  ;;  %v10673_v5 = vpop.f32.mrb[19].mxu1  ;;  %v16825_v57 = vsel %vm2914_vm8, %v2978_v29, %v2980_v27 }
 0x5fb   :  { %10779 = vmatmul.mubr.msk.bf16.gmra.mrb[124].mxu1 %vm830_vm3, %v16809_v50 }
 0x5fc   :  { %10782 = vmatprep.mubr.msk.bf16.mxu1 %vm13708_vm2, %v18206_v12 }
 0x5fe   :  { %v16816_v14 = vpop.f32.mrb[20].mxu1 }
 0x5ff   :  { %18343 = vst [vmem:[#allocation14_spill] sm:$0xff] %v16816_v14  ;;  %11741 = vmatmul.mubr.msk.bf16.gmra.mrb[16].mxu0 %vm830_vm3, %v16368_v7  ;;  %v10676_v30 = vpop.f32.mrb[21].mxu1  ;;  %v2982_v14 = vrot.slane %v15546_v61, 3 }
 0x600   :  { %v16820_v46 = vpop.f32.mrb[22].mxu1  ;;  %11744 = vmatprep.mubr.msk.bf16.mxu0 %vm13708_vm2, %v18206_v12 }
 0x601   :  { %18344 = vst [vmem:[#allocation15_spill] sm:$0xff] %v16820_v46  ;;  %v10677_v5 = vpop.f32.mrb[23].mxu1  ;;  %v16841_v29 = vsel %vm2914_vm8, %v2980_v27, %v2982_v14 }
 0x603   :  { %10783 = vmatmul.mubr.msk.bf16.gmra.mrb[128].mxu1 %vm830_vm3, %v16825_v57 }
 0x604   :  { %10786 = vmatprep.mubr.msk.bf16.mxu1 %vm13708_vm2, %v18206_v12 }
 0x606   :  { %v16832_v48 = vpop.f32.mrb[24].mxu1 }
 0x607   :  { %18345 = vst [vmem:[#allocation16_spill] sm:$0xff] %v16832_v48  ;;  %11745 = vmatmul.mubr.msk.bf16.gmra.mrb[20].mxu0 %vm830_vm3, %v16386_v51  ;;  %v10680_v7 = vpop.f32.mrb[25].mxu1  ;;  %v2984_v48 = vrot.slane %v15564_v23, 3 }
 0x608   :  { %v16836_v30 = vpop.f32.mrb[26].mxu1  ;;  %11748 = vmatprep.mubr.msk.bf16.mxu0 %vm13708_vm2, %v18206_v12 }
 0x609   :  { %18346 = vst [vmem:[#allocation17_spill] sm:$0xff] %v16836_v30  ;;  %v10681_v5 = vpop.f32.mrb[27].mxu1  ;;  %v16857_v27 = vsel %vm2914_vm8, %v2982_v14, %v2984_v48 }
 0x60b   :  { %10787 = vmatmul.mubr.msk.bf16.gmra.mrb[132].mxu1 %vm830_vm3, %v16841_v29 }
 0x60c   :  { %10790 = vmatprep.mubr.msk.bf16.mxu1 %vm13708_vm2, %v18206_v12 }
 0x60e   :  { %v16848_v46 = vpop.f32.mrb[28].mxu1 }
 0x60f   :  { %18347 = vst [vmem:[#allocation18_spill] sm:$0xff] %v16848_v46  ;;  %11749 = vmatmul.mubr.msk.bf16.gmra.mrb[24].mxu0 %vm830_vm3, %v16404_v3  ;;  %v10684_v51 = vpop.f32.mrb[29].mxu1  ;;  %v2986_v46 = vrot.slane %v15582_v26, 3 }
 0x610   :  { %v16852_v7 = vpop.f32.mrb[30].mxu1  ;;  %11752 = vmatprep.mubr.msk.bf16.mxu0 %vm13708_vm2, %v18206_v12 }
 0x611   :  { %18348 = vst [vmem:[#allocation19_spill] sm:$0xff] %v16852_v7  ;;  %v10685_v5 = vpop.f32.mrb[31].mxu1  ;;  %v16873_v14 = vsel %vm2914_vm8, %v2984_v48, %v2986_v46 }
 0x612   :  { %18351 = vst [vmem:[#allocation22_spill] sm:$0xff] %v16873_v14 }
 0x613   :  { %10791 = vmatmul.mubr.msk.bf16.gmra.mrb[136].mxu1 %vm830_vm3, %v16857_v27 }
 0x614   :  { %10794 = vmatprep.mubr.msk.bf16.mxu1 %vm13708_vm2, %v18206_v12 }
 0x616   :  { %v16864_v30 = vpop.f32.mrb[32].mxu1 }
 0x617   :  { %18349 = vst [vmem:[#allocation20_spill] sm:$0xff] %v16864_v30  ;;  %11753 = vmatmul.mubr.msk.bf16.gmra.mrb[28].mxu0 %vm830_vm3, %v16422_v18  ;;  %v10688_v3 = vpop.f32.mrb[33].mxu1  ;;  %v2988_v30 = vrot.slane %v15600_v43, 3 }
 0x618   :  { %v16868_v51 = vpop.f32.mrb[34].mxu1  ;;  %11756 = vmatprep.mubr.msk.bf16.mxu0 %vm13708_vm2, %v18206_v12 }
 0x619   :  { %18350 = vst [vmem:[#allocation21_spill] sm:$0xff] %v16868_v51  ;;  %v10689_v5 = vpop.f32.mrb[35].mxu1  ;;  %v16889_v48 = vsel %vm2914_vm8, %v2986_v46, %v2988_v30 }
 0x61a   :  { %18354 = vst [vmem:[#allocation25_spill] sm:$0xff] %v16889_v48 }
 0x61b   :  { %10795 = vmatmul.mubr.msk.bf16.gmra.mrb[140].mxu1 %vm830_vm3, %v16873_v14 }
 0x61c   :  { %10798 = vmatprep.mubr.msk.bf16.mxu1 %vm13708_vm2, %v18206_v12 }
 0x61e   :  { %v16880_v7 = vpop.f32.mrb[36].mxu1 }
 0x61f   :  { %18352 = vst [vmem:[#allocation23_spill] sm:$0xff] %v16880_v7  ;;  %11757 = vmatmul.mubr.msk.bf16.gmra.mrb[32].mxu0 %vm830_vm3, %v16440_v0  ;;  %v10692_v18 = vpop.f32.mrb[37].mxu1  ;;  %v2990_v7 = vrot.slane %v15618_v15, 3  ;;  %v18355_v0 = vshrl.u32 %v18331_v53, 16 }
 0x620   :  { %v16884_v3 = vpop.f32.mrb[38].mxu1  ;;  %11760 = vmatprep.mubr.msk.bf16.mxu0 %vm13708_vm2, %v18206_v12 }
 0x621   :  { %18353 = vst [vmem:[#allocation24_spill] sm:$0xff] %v16884_v3  ;;  %v10693_v5 = vpop.f32.mrb[39].mxu1  ;;  %v4006_v18 = vrot.slane %v18355_v0, 3  ;;  %v18356_v3 = vshll.u32 %v18331_v53, 16  ;;  %v2992_v53 = vrot.slane %v18336_v17, 3 }
 0x623   :  { %10799 = vmatmul.mubr.msk.bf16.gmra.mrb[144].mxu1 %vm830_vm3, %v16889_v48  ;;  %v4009_v51 = vrot.slane %v18356_v3, 4  ;;  %v16909_v48 = vsel %vm2914_vm8, %v2988_v30, %v2990_v7 }
 0x624   :  { %10802 = vmatprep.mubr.msk.bf16.mxu1 %vm13708_vm2, %v18206_v12 }
 0x625   :  { %v16911_v14 = vor.u32 %v4009_v51, %v4006_v18  ;;  %v2994_v51 = vrot.slane %v15654_v13, 3 }
 0x626   :  { %v16900_v43 = vpop.f32.mrb[40].mxu1 }
 0x627   :  { %11761 = vmatmul.mubr.msk.bf16.gmra.mrb[36].mxu0 %vm830_vm3, %v16458_v60  ;;  %v10696_v46 = vpop.f32.mrb[41].mxu1 }
 0x628   :  { %v16904_v5 = vpop.f32.mrb[42].mxu1  ;;  %11764 = vmatprep.mubr.msk.bf16.mxu0 %vm13708_vm2, %v18206_v12 }
 0x629   :  { %v10697_v15 = vpop.f32.mrb[43].mxu1 }
 0x62a   :  { %v16927_v15 = vsel %vm2914_vm8, %v2990_v7, %v2992_v53  ;;  %v16943_v7 = vsel %vm2914_vm8, %v2992_v53, %v2994_v51 }
 0x62b   :  { %10803 = vmatmul.mubr.msk.bf16.gmra.mrb[148].mxu1 %vm830_vm3, %v16909_v48 }
 0x62c   :  { %10806 = vmatprep.mubr.msk.bf16.mxu1 %vm13708_vm2, %v18206_v12 }
 0x62e   :  { %v16918_v60 = vpop.f32.mrb[44].mxu1 }
 0x62f   :  { %11765 = vmatmul.mubr.msk.bf16.gmra.mrb[40].mxu0 %vm830_vm3, %v16476_v20  ;;  %v10700_v3 = vpop.f32.mrb[45].mxu1 }
 0x630   :  { %v16922_v0 = vpop.f32.mrb[46].mxu1  ;;  %11768 = vmatprep.mubr.msk.bf16.mxu0 %vm13708_vm2, %v18206_v12 }
 0x631   :  { %v10701_v30 = vpop.f32.mrb[47].mxu1 }
 0x632   :  { %v2996_v30 = vrot.slane %v15678_v63, 3 }
 0x633   :  { %10807 = vmatmul.mubr.msk.bf16.gmra.mrb[152].mxu1 %vm830_vm3, %v16927_v15 }
 0x634   :  { %10810 = vmatprep.mubr.msk.bf16.mxu1 %vm13708_vm2, %v18206_v12  ;;  %v16959_v53 = vsel %vm2914_vm8, %v2994_v51, %v2996_v30 }
 0x636   :  { %v16934_v18 = vpop.f32.mrb[48].mxu1 }
 0x637   :  { %18357 = vst [vmem:[#allocation34_spill] sm:$0xff] %v16934_v18  ;;  %11769 = vmatmul.mubr.msk.bf16.gmra.mrb[44].mxu0 %vm830_vm3, %v16494_v21  ;;  %v10704_v20 = vpop.f32.mrb[49].mxu1 }
 0x638   :  { %v16938_v46 = vpop.f32.mrb[50].mxu1  ;;  %11772 = vmatprep.mubr.msk.bf16.mxu0 %vm13708_vm2, %v18206_v12 }
 0x639   :  { %18358 = vst [vmem:[#allocation26_spill] sm:$0xff] %v16938_v46  ;;  %v10705_v3 = vpop.f32.mrb[51].mxu1 }
 0x63b   :  { %10811 = vmatmul.mubr.msk.bf16.gmra.mrb[156].mxu1 %vm830_vm3, %v16943_v7 }
 0x63c   :  { %10814 = vmatprep.mubr.msk.bf16.mxu1 %vm13708_vm2, %v18206_v12 }
 0x63e   :  { %v16950_v18 = vpop.f32.mrb[52].mxu1 }
 0x63f   :  { %18359 = vst [vmem:[#allocation35_spill] sm:$0xff] %v16950_v18  ;;  %11773 = vmatmul.mubr.msk.bf16.gmra.mrb[48].mxu0 %vm830_vm3, %v16512_v32  ;;  %v10708_v21 = vpop.f32.mrb[53].mxu1  ;;  %v2998_v18 = vrot.slane %v15696_v28, 3 }
 0x640   :  { %v16954_v20 = vpop.f32.mrb[54].mxu1  ;;  %11776 = vmatprep.mubr.msk.bf16.mxu0 %vm13708_vm2, %v18206_v12 }
 0x641   :  { %18360 = vst [vmem:[#allocation27_spill] sm:$0xff] %v16954_v20  ;;  %v10709_v3 = vpop.f32.mrb[55].mxu1  ;;  %v16975_v51 = vsel %vm2914_vm8, %v2996_v30, %v2998_v18 }
 0x643   :  { %10815 = vmatmul.mubr.msk.bf16.gmra.mrb[160].mxu1 %vm830_vm3, %v16959_v53 }
 0x644   :  { %10818 = vmatprep.mubr.msk.bf16.mxu1 %vm13708_vm2, %v18206_v12 }
 0x646   :  { %v16966_v46 = vpop.f32.mrb[56].mxu1 }
 0x647   :  { %18361 = vst [vmem:[#allocation36_spill] sm:$0xff] %v16966_v46  ;;  %11777 = vmatmul.mubr.msk.bf16.gmra.mrb[52].mxu0 %vm830_vm3, %v16530_v10  ;;  %v10712_v32 = vpop.f32.mrb[57].mxu1  ;;  %v3000_v46 = vrot.slane %v15714_v37, 3 }
 0x648   :  { %v16970_v21 = vpop.f32.mrb[58].mxu1  ;;  %11780 = vmatprep.mubr.msk.bf16.mxu0 %vm13708_vm2, %v18206_v12 }
 0x649   :  { %18362 = vst [vmem:[#allocation28_spill] sm:$0xff] %v16970_v21  ;;  %v10713_v3 = vpop.f32.mrb[59].mxu1  ;;  %v16991_v30 = vsel %vm2914_vm8, %v2998_v18, %v3000_v46  ;;  %v3002_v18 = vrot.slane %v15732_v16, 3 }
 0x64a   :  { %v13709_v3 = vmov 0  }
 0x64b   :  { %10819 = vmatmul.mubr.msk.bf16.gmra.mrb[164].mxu1 %vm830_vm3, %v16975_v51  ;;  %8031 = vst [vmem:[%s18001_s3 + $0x8] sm:$0xf] %v13709_v3  ;;  %8029 = vst [vmem:[%s18001_s3] sm:$0xf] %v13709_v3 }
 0x64c   :  { %10822 = vmatprep.mubr.msk.bf16.mxu1 %vm13708_vm2, %v18206_v12  ;;  %8030 = vst [vmem:[%s18001_s3 + $0x4] sm:$0xf] %v13709_v3  ;;  %8032 = vst [vmem:[%s18001_s3 + $0xc] sm:$0xf] %v13709_v3 }
 0x64d   :  { %8033 = vst [vmem:[%s18001_s3 + $0x10] sm:$0xf] %v13709_v3  ;;  %8034 = vst [vmem:[%s18001_s3 + $0x14] sm:$0xf] %v13709_v3 }
 0x64e   :  { %v16982_v20 = vpop.f32.mrb[60].mxu1  ;;  %8035 = vst [vmem:[%s18001_s3 + $0x18] sm:$0xf] %v13709_v3  ;;  %8036 = vst [vmem:[%s18001_s3 + $0x1c] sm:$0xf] %v13709_v3 }
 0x64f   :  { %18363 = vst [vmem:[#allocation37_spill] sm:$0xff] %v16982_v20  ;;  %11781 = vmatmul.mubr.msk.bf16.gmra.mrb[56].mxu0 %vm830_vm3, %v16548_v52  ;;  %v10716_v10 = vpop.f32.mrb[61].mxu1  ;;  %8037 = vst [vmem:[%s18001_s3 + $0x20] sm:$0xf] %v13709_v3 }
 0x650   :  { %v16986_v32 = vpop.f32.mrb[62].mxu1  ;;  %11784 = vmatprep.mubr.msk.bf16.mxu0 %vm13708_vm2, %v18206_v12  ;;  %8038 = vst [vmem:[%s18001_s3 + $0x24] sm:$0xf] %v13709_v3  ;;  %8039 = vst [vmem:[%s18001_s3 + $0x28] sm:$0xf] %v13709_v3 }
 0x651   :  { %18364 = vst [vmem:[#allocation29_spill] sm:$0xff] %v16986_v32  ;;  %8040 = vst [vmem:[%s18001_s3 + $0x2c] sm:$0xf] %v13709_v3  ;;  %v10717_v52 = vpop.f32.mrb[63].mxu1 }
 0x652   :  { %8041 = vst [vmem:[%s18001_s3 + $0x30] sm:$0xf] %v13709_v3  ;;  %8042 = vst [vmem:[%s18001_s3 + $0x34] sm:$0xf] %v13709_v3 }
 0x653   :  { %8043 = vst [vmem:[%s18001_s3 + $0x38] sm:$0xf] %v13709_v3  ;;  %8044 = vst [vmem:[%s18001_s3 + $0x3c] sm:$0xf] %v13709_v3  ;;  %10823 = vmatmul.mubr.msk.bf16.gmra.mrb[168].mxu1 %vm830_vm3, %v16991_v30 }
 0x654   :  { %8045 = vst [vmem:[%s18001_s3 + $0x40] sm:$0xf] %v13709_v3  ;;  %8046 = vst [vmem:[%s18001_s3 + $0x44] sm:$0xf] %v13709_v3  ;;  %10826 = vmatprep.mubr.msk.bf16.mxu1 %vm13708_vm2, %v18206_v12 }
 0x655   :  { %8047 = vst [vmem:[%s18001_s3 + $0x48] sm:$0xf] %v13709_v3  ;;  %8048 = vst [vmem:[%s18001_s3 + $0x4c] sm:$0xf] %v13709_v3 }
 0x656   :  { %8049 = vst [vmem:[%s18001_s3 + $0x50] sm:$0xf] %v13709_v3  ;;  %8050 = vst [vmem:[%s18001_s3 + $0x54] sm:$0xf] %v13709_v3  ;;  %v17100_v10 = vpop.f32.mrb[64].mxu1 }
 0x657   :  { %8051 = vst [vmem:[%s18001_s3 + $0x58] sm:$0xf] %v13709_v3  ;;  %8052 = vst [vmem:[%s18001_s3 + $0x5c] sm:$0xf] %v13709_v3  ;;  %11785 = vmatmul.mubr.msk.bf16.gmra.mrb[60].mxu0 %vm830_vm3, %v16566_v59  ;;  %v10720_v32 = vpop.f32.mrb[65].mxu1 }
 0x658   :  { %8053 = vst [vmem:[%s18001_s3 + $0x60] sm:$0xf] %v13709_v3  ;;  %8054 = vst [vmem:[%s18001_s3 + $0x64] sm:$0xf] %v13709_v3  ;;  %v17104_v20 = vpop.f32.mrb[66].mxu1  ;;  %11788 = vmatprep.mubr.msk.bf16.mxu0 %vm13708_vm2, %v18206_v12 }
 0x659   :  { %8055 = vst [vmem:[%s18001_s3 + $0x68] sm:$0xf] %v13709_v3  ;;  %8056 = vst [vmem:[%s18001_s3 + $0x6c] sm:$0xf] %v13709_v3  ;;  %v10721_v52 = vpop.f32.mrb[67].mxu1 }
 0x65a   :  { %8057 = vst [vmem:[%s18001_s3 + $0x70] sm:$0xf] %v13709_v3  ;;  %8058 = vst [vmem:[%s18001_s3 + $0x74] sm:$0xf] %v13709_v3 }
 0x65b   :  { %8059 = vst [vmem:[%s18001_s3 + $0x78] sm:$0xf] %v13709_v3  ;;  %8060 = vst [vmem:[%s18001_s3 + $0x7c] sm:$0xf] %v13709_v3 }
 0x65c   :  { %8061 = vst [vmem:[%s18001_s3 + $0x80] sm:$0xf] %v13709_v3  ;;  %8062 = vst [vmem:[%s18001_s3 + $0x84] sm:$0xf] %v13709_v3  ;;  %v17109_v3 = vsel %vm2914_vm8, %v3000_v46, %v3002_v18 }
 0x65d   :  { %18365 = vst [vmem:[#allocation38_spill] sm:$0xff] %v17100_v10  ;;  %18366 = vst [vmem:[#allocation31_spill] sm:$0xff] %v17104_v20  ;;  %10827 = vmatmul.mubr.msk.bf16.gmra.mrb[172].mxu1 %vm830_vm3, %v17109_v3  ;;  %v3004_v10 = vrot.slane %v15750_v35, 3 }
 0x65e   :  { %10830 = vmatprep.mubr.msk.bf16.mxu1 %vm13708_vm2, %v18206_v12  ;;  %v17116_v21 = vpop.f32.mrb[68].mxu1 }
 0x65f   :  { %18367 = vst [vmem:[#allocation39_spill] sm:$0xff] %v17116_v21  ;;  %11789 = vmatmul.mubr.msk.bf16.gmra.mrb[64].mxu0 %vm830_vm3, %v16584_v47  ;;  %v10724_v59 = vpop.f32.mrb[69].mxu1  ;;  %v17125_v46 = vsel %vm2914_vm8, %v3002_v18, %v3004_v10  ;;  %v3006_v21 = vrot.slane %v15768_v25, 3 }
 0x660   :  { %v17120_v32 = vpop.f32.mrb[70].mxu1  ;;  %11792 = vmatprep.mubr.msk.bf16.mxu0 %vm13708_vm2, %v18206_v12 }
 0x661   :  { %18368 = vst [vmem:[#allocation32_spill] sm:$0xff] %v17120_v32  ;;  %v10725_v52 = vpop.f32.mrb[71].mxu1  ;;  %v17141_v18 = vsel %vm2914_vm8, %v3004_v10, %v3006_v21 }
 0x665   :  { %10831 = vmatmul.mubr.msk.bf16.gmra.mrb[176].mxu1 %vm830_vm3, %v17125_v46 }
 0x666   :  { %10834 = vmatprep.mubr.msk.bf16.mxu1 %vm13708_vm2, %v18206_v12  ;;  %v17132_v20 = vpop.f32.mrb[72].mxu1 }
 0x667   :  { %18369 = vst [vmem:[#allocation8_spill] sm:$0xff] %v17132_v20  ;;  %11793 = vmatmul.mubr.msk.bf16.gmra.mrb[68].mxu0 %vm830_vm3, %v16602_v36  ;;  %v10728_v47 = vpop.f32.mrb[73].mxu1  ;;  %v3008_v20 = vrot.slane %v15786_v40, 3 }
 0x668   :  { %v17136_v59 = vpop.f32.mrb[74].mxu1  ;;  %11796 = vmatprep.mubr.msk.bf16.mxu0 %vm13708_vm2, %v18206_v12 }
 0x669   :  { %18370 = vst [vmem:[#allocation6_spill] sm:$0xff] %v17136_v59  ;;  %v10729_v52 = vpop.f32.mrb[75].mxu1  ;;  %v17157_v10 = vsel %vm2914_vm8, %v3006_v21, %v3008_v20 }
 0x66d   :  { %10835 = vmatmul.mubr.msk.bf16.gmra.mrb[180].mxu1 %vm830_vm3, %v17141_v18 }
 0x66e   :  { %10838 = vmatprep.mubr.msk.bf16.mxu1 %vm13708_vm2, %v18206_v12  ;;  %v17148_v32 = vpop.f32.mrb[76].mxu1 }
 0x66f   :  { %18371 = vst [vmem:[#allocation5_spill] sm:$0xff] %v17148_v32  ;;  %11797 = vmatmul.mubr.msk.bf16.gmra.mrb[72].mxu0 %vm830_vm3, %v16620_v39  ;;  %v10732_v36 = vpop.f32.mrb[77].mxu1  ;;  %v3010_v32 = vrot.slane %v15804_v9, 3 }
 0x670   :  { %v17152_v47 = vpop.f32.mrb[78].mxu1  ;;  %11800 = vmatprep.mubr.msk.bf16.mxu0 %vm13708_vm2, %v18206_v12 }
 0x671   :  { %18372 = vst [vmem:[#allocation7_spill] sm:$0xff] %v17152_v47  ;;  %v10733_v52 = vpop.f32.mrb[79].mxu1  ;;  %v17173_v21 = vsel %vm2914_vm8, %v3008_v20, %v3010_v32 }
 0x675   :  { %10839 = vmatmul.mubr.msk.bf16.gmra.mrb[184].mxu1 %vm830_vm3, %v17157_v10 }
 0x676   :  { %10842 = vmatprep.mubr.msk.bf16.mxu1 %vm13708_vm2, %v18206_v12  ;;  %v17164_v59 = vpop.f32.mrb[80].mxu1 }
 0x677   :  { %18373 = vst [vmem:[#allocation4_spill] sm:$0xff] %v17164_v59  ;;  %11801 = vmatmul.mubr.msk.bf16.gmra.mrb[76].mxu0 %vm830_vm3, %v16638_v19  ;;  %v10736_v39 = vpop.f32.mrb[81].mxu1  ;;  %v3012_v59 = vrot.slane %v15822_v38, 3 }
 0x678   :  { %v17168_v36 = vpop.f32.mrb[82].mxu1  ;;  %11804 = vmatprep.mubr.msk.bf16.mxu0 %vm13708_vm2, %v18206_v12 }
 0x679   :  { %18374 = vst [vmem:[#allocation43_spill] sm:$0xff] %v17168_v36  ;;  %v10737_v52 = vpop.f32.mrb[83].mxu1  ;;  %v17189_v20 = vsel %vm2914_vm8, %v3010_v32, %v3012_v59 }
 0x67d   :  { %10843 = vmatmul.mubr.msk.bf16.gmra.mrb[188].mxu1 %vm830_vm3, %v17173_v21 }
 0x67e   :  { %10846 = vmatprep.mubr.msk.bf16.mxu1 %vm13708_vm2, %v18206_v12  ;;  %v17180_v47 = vpop.f32.mrb[84].mxu1 }
 0x67f   :  { %18375 = vst [vmem:[#allocation45_spill] sm:$0xff] %v17180_v47  ;;  %11805 = vmatmul.mubr.msk.bf16.gmra.mrb[80].mxu0 %vm830_vm3, %v16656_v62  ;;  %v10740_v19 = vpop.f32.mrb[85].mxu1  ;;  %v3014_v47 = vrot.slane %v15840_v55, 3 }
 0x680   :  { %v17184_v39 = vpop.f32.mrb[86].mxu1  ;;  %11808 = vmatprep.mubr.msk.bf16.mxu0 %vm13708_vm2, %v18206_v12 }
 0x681   :  { %18376 = vst [vmem:[#allocation46_spill] sm:$0xff] %v17184_v39  ;;  %v10741_v52 = vpop.f32.mrb[87].mxu1  ;;  %v17205_v32 = vsel %vm2914_vm8, %v3012_v59, %v3014_v47  ;;  %v13703_v39 = vld [vmem:[%s18000_s0 + $0x1ac] sm:$0xf] }
 0x682   :  { %18379 = vst [vmem:[#allocation49_spill] sm:$0xff] %v17205_v32 }
 0x685   :  { %10847 = vmatmul.mubr.msk.bf16.gmra.mrb[192].mxu1 %vm830_vm3, %v17189_v20 }
 0x686   :  { %10850 = vmatprep.mubr.msk.bf16.mxu1 %vm13708_vm2, %v18206_v12  ;;  %v17196_v36 = vpop.f32.mrb[88].mxu1 }
 0x687   :  { %18377 = vst [vmem:[#allocation47_spill] sm:$0xff] %v17196_v36  ;;  %11809 = vmatmul.mubr.msk.bf16.gmra.mrb[84].mxu0 %vm830_vm3, %v16677_v54  ;;  %v10744_v62 = vpop.f32.mrb[89].mxu1  ;;  %v17212_v36 = vrot.slane %v15029_v2, 3  ;;  %v126_v54 = vld [vmem:[%s18000_s0 + $0x1b0] sm:$0x7] }
 0x688   :  { %v17200_v19 = vpop.f32.mrb[90].mxu1  ;;  %11812 = vmatprep.mubr.msk.bf16.mxu0 %vm13708_vm2, %v18206_v12  ;;  %v9136_v2 = vcombine.low %v13703_v39, %v126_v54 }
 0x689   :  { %18378 = vst [vmem:[#allocation48_spill] sm:$0xff] %v17200_v19  ;;  %v10745_v52 = vpop.f32.mrb[91].mxu1  ;;  %v17227_v19 = vsel %vm2914_vm8, %v3014_v47, %v17212_v36 }
 0x68d   :  { %10851 = vmatmul.mubr.msk.bf16.gmra.mrb[196].mxu1 %vm830_vm3, %v17205_v32 }
 0x68e   :  { %10854 = vmatprep.mubr.msk.bf16.mxu1 %vm13708_vm2, %v18206_v12  ;;  %v17217_v62 = vpop.f32.mrb[92].mxu1 }
 0x68f   :  { %11813 = vmatmul.mubr.msk.bf16.gmra.mrb[88].mxu0 %vm830_vm3, %v16697_v45  ;;  %v10748_v59 = vpop.f32.mrb[93].mxu1  ;;  %v3018_v45 = vrot.slane %v9136_v2, 3 }
 0x690   :  { %v17221_v52 = vpop.f32.mrb[94].mxu1  ;;  %11816 = vmatprep.mubr.msk.bf16.mxu0 %vm13708_vm2, %v18206_v12 }
 0x691   :  { %18380 = vst [vmem:[#allocation50_spill] sm:$0xff] %v17221_v52  ;;  %v10749_v32 = vpop.f32.mrb[95].mxu1  ;;  %v3019_v39 = vsel %vm2914_vm8, %v17212_v36, %v3018_v45 }
 0x695   :  { %10855 = vmatmul.mubr.msk.bf16.gmra.mrb[200].mxu1 %vm830_vm3, %v17227_v19 }
 0x696   :  { %10858 = vmatprep.mubr.msk.bf16.mxu1 %vm13708_vm2, %v18206_v12  ;;  %v17236_v59 = vpop.f32.mrb[96].mxu1 }
 0x697   :  { %11817 = vmatmul.mubr.msk.bf16.gmra.mrb[92].mxu0 %vm830_vm3, %v16711_v33  ;;  %v10752_v47 = vpop.f32.mrb[97].mxu1 }
 0x698   :  { %v17240_v52 = vpop.f32.mrb[98].mxu1  ;;  %11820 = vmatprep.mubr.msk.bf16.mxu0 %vm13708_vm2, %v18206_v12 }
 0x699   :  { %18381 = vst [vmem:[#allocation51_spill] sm:$0xff] %v17240_v52  ;;  %v10753_v32 = vpop.f32.mrb[99].mxu1 }
 0x69d   :  { %10859 = vmatmul.mubr.msk.bf16.gmra.mrb[204].mxu1 %vm830_vm3, %v3019_v39 }
 0x69e   :  { %10862 = vmatprep.mubr.msk.bf16.mxu1 %vm13708_vm2, %v18206_v12  ;;  %v17249_v2 = vpop.f32.mrb[100].mxu1 }
 0x69f   :  { %18382 = vst [vmem:[#allocation52_spill] sm:$0xff] %v17249_v2  ;;  %11821 = vmatmul.mubr.msk.bf16.gmra.mrb[96].mxu0 %vm830_vm3, %v16723_v49  ;;  %v10756_v33 = vpop.f32.mrb[101].mxu1  ;;  %v18386_v49 = vld [vmem:[#allocation33_spill] sm:$0xff] }
 0x6a0   :  { %v17253_v54 = vpop.f32.mrb[102].mxu1  ;;  %11824 = vmatprep.mubr.msk.bf16.mxu0 %vm13708_vm2, %v18206_v12  ;;  %v4011_v33 = vsel %vm3751_vm4, %v18386_v49, %v16911_v14  ;;  %v18389_v49 = vshrl.u32 %v15473_v22, 16 }
 0x6a1   :  { %18383 = vst [vmem:[#allocation53_spill] sm:$0xff] %v17253_v54  ;;  %v10757_v47 = vpop.f32.mrb[103].mxu1  ;;  %v18388_v54 = vshll.u32 %v15454_v6, 16 }
 0x6a3   :  { %v4018_v52 = vrot.slane %v18388_v54, 4  ;;  %v18390_v54 = vshll.u32 %v15473_v22, 16 }
 0x6a5   :  { %10863 = vmatmul.mubr.msk.bf16.gmra.mrb[208].mxu1 %vm830_vm3, %v3018_v45  ;;  %v18387_v45 = vshrl.u32 %v15454_v6, 16  ;;  %v4024_v6 = vrot.slane %v18389_v49, 3 }
 0x6a6   :  { %10976 = vmatprep.mubr.msk.bf16.mxu1 %vm13708_vm2, %v18206_v12  ;;  %v17260_v39 = vpop.f32.mrb[104].mxu1 }
 0x6a7   :  { %18384 = vst [vmem:[#allocation54_spill] sm:$0xff] %v17260_v39  ;;  %11825 = vmatmul.mubr.msk.bf16.gmra.mrb[100].mxu0 %vm830_vm3, %v16744_v41  ;;  %v10760_v32 = vpop.f32.mrb[105].mxu1  ;;  %v4015_v47 = vrot.slane %v18387_v45, 3 }
 0x6a8   :  { %v17264_v2 = vpop.f32.mrb[106].mxu1  ;;  %11828 = vmatprep.mubr.msk.bf16.mxu0 %vm13708_vm2, %v18206_v12 }
 0x6a9   :  { %18385 = vst [vmem:[#allocation55_spill] sm:$0xff] %v17264_v2  ;;  %v10761_v39 = vpop.f32.mrb[107].mxu1  ;;  %v4019_v41 = vor.u32 %v4018_v52, %v4015_v47 }
 0x6aa   :  { %v4027_v39 = vrot.slane %v18390_v54, 4 }
 0x6ab   :  { %v4020_v32 = vsel %vm3751_vm4, %v16911_v14, %v4019_v41 }
 0x6ad   :  { %10977 = vmatmul.mubr.msk.bf16.vlgmr.msra.gmra.mrb[108].mxu1 %vm830_vm3, %v4011_v33 }
 0x6ae   :  { %10980 = vmatprep.mubr.msk.bf16.mxu1 %vm13708_vm2, %v18206_v12 }
 0x6af   :  { %11829 = vmatmul.mubr.msk.bf16.gmra.mrb[104].mxu0 %vm830_vm3, %v16761_v34  ;;  %v4028_v34 = vor.u32 %v4027_v39, %v4024_v6 }
 0x6b0   :  { %11832 = vmatprep.mubr.msk.bf16.mxu0 %vm13708_vm2, %v18206_v12 }
 0x6b1   :  { %v4029_v22 = vsel %vm3751_vm4, %v4019_v41, %v4028_v34 }
 0x6b2   :  { %v7397_v33 = vpop.f32.mrb[0].mxu0 }
 0x6b3   :  { %v11938_v45 = vadd.f32 %v7397_v33, %v16736_v11  ;;  %v11726_v2 = vpop.f32.mrb[1].mxu0  ;;  %v18391_v11 = vshrl.u32 %v15492_v56, 16 }
 0x6b4   :  { %v7400_v52 = vpop.f32.mrb[2].mxu0 }
 0x6b5   :  { %10981 = vmatmul.mubr.msk.bf16.gmra.mrb[112].mxu1 %vm830_vm3, %v4020_v32  ;;  %v11939_v47 = vadd.f32 %v7400_v52, %v16739_v24  ;;  %v11727_v14 = vpop.f32.mrb[3].mxu0  ;;  %v4033_v2 = vrot.slane %v18391_v11, 3  ;;  %v18392_v32 = vshll.u32 %v15492_v56, 16 }
 0x6b6   :  { %10984 = vmatprep.mubr.msk.bf16.mxu1 %vm13708_vm2, %v18206_v12  ;;  %v18394_v14 = vshll.u32 %v15510_v42, 16 }
 0x6b7   :  { %11833 = vmatmul.mubr.msk.bf16.gmra.mrb[108].mxu0 %vm830_vm3, %v16777_v44  ;;  %v4036_v49 = vrot.slane %v18392_v32, 4 }
 0x6b8   :  { %11836 = vmatprep.mubr.msk.bf16.mxu0 %vm13708_vm2, %v18206_v12 }
 0x6b9   :  { %v4037_v44 = vor.u32 %v4036_v49, %v4033_v2  ;;  %v18395_v49 = vld [vmem:[#allocation41_spill] sm:$0xff] }
 0x6ba   :  { %v7405_v54 = vpop.f32.mrb[4].mxu0 }
 0x6bb   :  { %v17303_v6 = vadd.f32 %v7405_v54, %v16753_v1  ;;  %v11730_v24 = vpop.f32.mrb[5].mxu0  ;;  %v4038_v56 = vsel %vm3751_vm4, %v4028_v34, %v4037_v44  ;;  %v18393_v1 = vshrl.u32 %v15510_v42, 16 }
 0x6bc   :  { %v7408_v39 = vpop.f32.mrb[6].mxu0 }
 0x6bd   :  { %10985 = vmatmul.mubr.msk.bf16.gmra.mrb[116].mxu1 %vm830_vm3, %v4029_v22  ;;  %v11941_v41 = vadd.f32 %v7408_v39, %v16756_v58  ;;  %v11731_v33 = vpop.f32.mrb[7].mxu0  ;;  %v4042_v52 = vrot.slane %v18393_v1, 3  ;;  %v4045_v22 = vrot.slane %v18394_v14, 4  ;;  %v18397_v39 = vshll.u32 %v15528_v31, 16 }
 0x6be   :  { %10988 = vmatprep.mubr.msk.bf16.mxu1 %vm13708_vm2, %v18206_v12 }
 0x6bf   :  { %7927 = vst [vmem:[#allocation2 + $0x18] sm:$0xff] %v11941_v41  ;;  %11837 = vmatmul.mubr.msk.bf16.gmra.mrb[112].mxu0 %vm830_vm3, %v16793_v4  ;;  %v4046_v4 = vor.u32 %v4045_v22, %v4042_v52  ;;  %v4054_v41 = vrot.slane %v18397_v39, 4 }
 0x6c0   :  { %11840 = vmatprep.mubr.msk.bf16.mxu0 %vm13708_vm2, %v18206_v12 }
 0x6c1   :  { %v4047_v42 = vsel %vm3751_vm4, %v4037_v44, %v4046_v4  ;;  %v18399_v44 = vld [vmem:[#allocation11_spill] sm:$0xff] }
 0x6c2   :  { %v7413_v11 = vpop.f32.mrb[8].mxu0 }
 0x6c3   :  { %v11942_v2 = vadd.f32 %v7413_v11, %v16768_v8  ;;  %v11734_v58 = vpop.f32.mrb[9].mxu0  ;;  %v18396_v8 = vshrl.u32 %v15528_v31, 16 }
 0x6c4   :  { %v7416_v32 = vpop.f32.mrb[10].mxu0 }
 0x6c5   :  { %10989 = vmatmul.mubr.msk.bf16.gmra.mrb[120].mxu1 %vm830_vm3, %v4038_v56  ;;  %7928 = vst [vmem:[#allocation2 + $0x20] sm:$0xff] %v11942_v2  ;;  %v11943_v34 = vadd.f32 %v7416_v32, %v18395_v49  ;;  %v11735_v54 = vpop.f32.mrb[11].mxu0  ;;  %v4051_v24 = vrot.slane %v18396_v8, 3  ;;  %v18398_v56 = vld [vmem:[#allocation10_spill] sm:$0xff] }
 0x6c6   :  { %10992 = vmatprep.mubr.msk.bf16.mxu1 %vm13708_vm2, %v18206_v12 }
 0x6c7   :  { %7929 = vst [vmem:[#allocation2 + $0x28] sm:$0xff] %v11943_v34  ;;  %11841 = vmatmul.mubr.msk.bf16.gmra.mrb[116].mxu0 %vm830_vm3, %v16809_v50  ;;  %v4055_v50 = vor.u32 %v4054_v41, %v4051_v24  ;;  %v18400_v34 = vshrl.u32 %v15546_v61, 16  ;;  %v18402_v24 = vld [vmem:[#allocation12_spill] sm:$0xff] }
 0x6c8   :  { %11844 = vmatprep.mubr.msk.bf16.mxu0 %vm13708_vm2, %v18206_v12 }
 0x6c9   :  { %v4056_v49 = vsel %vm3751_vm4, %v4046_v4, %v4055_v50  ;;  %v4060_v54 = vrot.slane %v18400_v34, 3 }
 0x6ca   :  { %v7421_v33 = vpop.f32.mrb[12].mxu0 }
 0x6cb   :  { %v11944_v1 = vadd.f32 %v7421_v33, %v18398_v56  ;;  %v11738_v52 = vpop.f32.mrb[13].mxu0  ;;  %v18403_v56 = vld [vmem:[#allocation13_spill] sm:$0xff] }
 0x6cc   :  { %v8068_v14 = vld [vmem:[#allocation2 + $0x1e] sm:$0xff]  ;;  %v7424_v22 = vpop.f32.mrb[14].mxu0  ;;  %v8067_v52 = vld [vmem:[#allocation2 + $0x18] sm:$0xf] }
 0x6cd   :  { %10993 = vmatmul.mubr.msk.bf16.gmra.mrb[124].mxu1 %vm830_vm3, %v4047_v42  ;;  %v8072_v11 = vmax.f32 %v11938_v45, %v8068_v14  ;;  %7930 = vst [vmem:[#allocation2 + $0x30] sm:$0xff] %v11944_v1  ;;  %v11945_v2 = vadd.f32 %v7424_v22, %v18399_v44  ;;  %v11739_v58 = vpop.f32.mrb[15].mxu0  ;;  %v18401_v45 = vshll.u32 %v15546_v61, 16  ;;  %v17355_v22 = vld [vmem:[%s18002_s2] ss:$0 sm:$0xff] }
 0x6ce   :  { %10996 = vmatprep.mubr.msk.bf16.mxu1 %vm13708_vm2, %v18206_v12  ;;  %v8069_v32 = vld [vmem:[#allocation2 + $0x26] sm:$0xff]  ;;  %v18404_v58 = vshrl.u32 %v15564_v23, 16 }
 0x6cf   :  { %8076 = vst [vmem:[#allocation3] sm:$0xff] %v8072_v11  ;;  %v8073_v31 = vmax.f32 %v11939_v47, %v8069_v32  ;;  %7931 = vst [vmem:[#allocation2 + $0x38] sm:$0xff] %v11945_v2  ;;  %11845 = vmatmul.mubr.msk.bf16.gmra.mrb[120].mxu0 %vm830_vm3, %v16825_v57  ;;  %v4063_v42 = vrot.slane %v18401_v45, 4 }
 0x6d0   :  { %11848 = vmatprep.mubr.msk.bf16.mxu0 %vm13708_vm2, %v18206_v12  ;;  %v4069_v32 = vrot.slane %v18404_v58, 3 }
 0x6d1   :  { %8077 = vst [vmem:[#allocation3 + $0x8] sm:$0xff] %v8073_v31  ;;  %v4064_v33 = vor.u32 %v4063_v42, %v4060_v54  ;;  %v18405_v31 = vshll.u32 %v15564_v23, 16  ;;  %v18406_v42 = vld [vmem:[#allocation14_spill] sm:$0xff] }
 0x6d2   :  { %v7429_v8 = vpop.f32.mrb[16].mxu0 }
 0x6d3   :  { %v11946_v39 = vadd.f32 %v7429_v8, %v18402_v24  ;;  %v11742_v47 = vpop.f32.mrb[17].mxu0 }
 0x6d4   :  { %v8070_v41 = vld [vmem:[#allocation2 + $0x2e] sm:$0xff]  ;;  %v7432_v57 = vpop.f32.mrb[18].mxu0  ;;  %v18407_v47 = vld [vmem:[#allocation15_spill] sm:$0xff] }
 0x6d5   :  { %10997 = vmatmul.mubr.msk.bf16.gmra.mrb[128].mxu1 %vm830_vm3, %v4056_v49  ;;  %v8074_v4 = vmax.f32 %v17303_v6, %v8070_v41  ;;  %7932 = vst [vmem:[#allocation2 + $0x40] sm:$0xff] %v11946_v39  ;;  %v11947_v1 = vadd.f32 %v7432_v57, %v18403_v56  ;;  %v11743_v61 = vpop.f32.mrb[19].mxu0  ;;  %v4065_v6 = vsel %vm3751_vm4, %v4055_v50, %v4064_v33  ;;  %v4072_v49 = vrot.slane %v18405_v31, 4  ;;  %v18410_v31 = vld [vmem:[#allocation16_spill] sm:$0xff] }
 0x6d6   :  { %11000 = vmatprep.mubr.msk.bf16.mxu1 %vm13708_vm2, %v18206_v12  ;;  %v8071_v14 = vld [vmem:[#allocation2 + $0x36] sm:$0xf] }
 0x6d7   :  { %8078 = vst [vmem:[#allocation3 + $0x10] sm:$0xff] %v8074_v4  ;;  %v8075_v11 = vmax.f32 %v8067_v52, %v8071_v14  ;;  %7933 = vst [vmem:[#allocation2 + $0x48] sm:$0xff] %v11947_v1  ;;  %11849 = vmatmul.mubr.msk.bf16.gmra.mrb[124].mxu0 %vm830_vm3, %v16841_v29  ;;  %v4073_v50 = vor.u32 %v4072_v49, %v4069_v32  ;;  %v18408_v4 = vshrl.u32 %v15582_v26, 16  ;;  %v18409_v1 = vshll.u32 %v15582_v26, 16 }
 0x6d8   :  { %v8080_v44 = vld [vmem:[#allocation3] ss:$2 sm:$0xff]  ;;  %v8084_v2 = vld [vmem:[#allocation3 + $0x1] ss:$2 sm:$0xff]  ;;  %11852 = vmatprep.mubr.msk.bf16.mxu0 %vm13708_vm2, %v18206_v12 }
 0x6d9   :  { %v8087_v34 = vmax.f32 %v8080_v44, %v8084_v2  ;;  %8079 = vst [vmem:[#allocation3 + $0x18] sm:$0xf] %v8075_v11  ;;  %v4078_v56 = vrot.slane %v18408_v4, 3  ;;  %v4081_v61 = vrot.slane %v18409_v1, 4  ;;  %v4074_v11 = vsel %vm3751_vm4, %v4064_v33, %v4073_v50  ;;  %v8129_v33 = vld [vmem:[%s18001_s3 + $0x8] sm:$0xf] }
 0x6da   :  { %v7437_v54 = vpop.f32.mrb[20].mxu0  ;;  %v18415_v4 = vld [vmem:[#allocation9_spill] sm:$0xff] }
 0x6db   :  { %v8095_v45 = vadd.f32 %v17355_v22, %v8087_v34  ;;  %v11948_v29 = vadd.f32 %v7437_v54, %v18406_v42  ;;  %v11746_v8 = vpop.f32.mrb[21].mxu0 }
 0x6dc   :  { %v7440_v24 = vpop.f32.mrb[22].mxu0  ;;  %v18413_v8 = vld [vmem:[#allocation17_spill] sm:$0xff] }
 0x6dd   :  { %11001 = vmatmul.mubr.msk.bf16.gmra.mrb[132].mxu1 %vm830_vm3, %v4065_v6  ;;  %v8097_v39 = vmax.f32 %v8095_v45, 0.0  ;;  %7934 = vst [vmem:[#allocation2 + $0x50] sm:$0xff] %v11948_v29  ;;  %v11949_v23 = vadd.f32 %v7440_v24, %v18407_v47  ;;  %v11747_v41 = vpop.f32.mrb[23].mxu0  ;;  %v4082_v45 = vor.u32 %v4081_v61, %v4078_v56  ;;  %v18416_v56 = vshrl.u32 %v18415_v4, 16 }
 0x6de   :  { %11004 = vmatprep.mubr.msk.bf16.mxu1 %vm13708_vm2, %v18206_v12  ;;  %v18414_v41 = vld [vmem:[#allocation22_spill] sm:$0xff]  ;;  %v18417_v61 = vshll.u32 %v18415_v4, 16 }
 0x6df   :  { %v9496_v57 = vpack.c.bf16 %v8097_v39, %v8097_v39  ;;  %7935 = vst [vmem:[#allocation2 + $0x58] sm:$0xff] %v11949_v23  ;;  %11853 = vmatmul.mubr.msk.bf16.gmra.mrb[128].mxu0 %vm830_vm3, %v16857_v27  ;;  %v4087_v1 = vrot.slane %v18416_v56, 3  ;;  %v18424_v56 = vld [vmem:[#allocation25_spill] sm:$0xff] }
 0x6e0   :  { %v8082_v52 = vld [vmem:[#allocation3 + $0x10] ss:$2 sm:$0x3f]  ;;  %v8086_v14 = vld [vmem:[#allocation3 + $0x11] ss:$2 sm:$0x3f]  ;;  %11856 = vmatprep.mubr.msk.bf16.mxu0 %vm13708_vm2, %v18206_v12 }
 0x6e1   :  { %v8109_v44 = vshrl.u32 %v9496_v57, 16  ;;  %v8088_v2 = vmax.f32 %v8082_v52, %v8086_v14  ;;  %v8112_v27 = vshll.u32 %v9496_v57, 16  ;;  %v4083_v57 = vsel %vm3751_vm4, %v4073_v50, %v4082_v45 }
 0x6e2   :  { %v7445_v6 = vpop.f32.mrb[24].mxu0  ;;  %v4090_v52 = vrot.slane %v18417_v61, 4 }
 0x6e3   :  { %v8111_v58 = vrot.slane %v8109_v44, 7  ;;  %v8096_v32 = vadd.f32 %v17355_v22, %v8088_v2  ;;  %v11950_v49 = vadd.f32 %v7445_v6, %v18410_v31  ;;  %v11750_v26 = vpop.f32.mrb[25].mxu0  ;;  %v18418_v6 = vld [vmem:[#allocation18_spill] sm:$0xff] }
 0x6e4   :  { %v7448_v54 = vpop.f32.mrb[26].mxu0  ;;  %v8137_v31 = vld [vmem:[#allocation2 + $0x3c] sm:$0xff] }
 0x6e5   :  { %11005 = vmatmul.mubr.msk.bf16.gmra.mrb[136].mxu1 %vm830_vm3, %v4074_v11  ;;  %v8114_v42 = vor.u32 %v8112_v27, %v8111_v58  ;;  %v8098_v29 = vmax.f32 %v8096_v32, 0.0  ;;  %7936 = vst [vmem:[#allocation2 + $0x60] sm:$0xff] %v11950_v49  ;;  %v11951_v24 = vadd.f32 %v7448_v54, %v18413_v8  ;;  %v11751_v39 = vpop.f32.mrb[27].mxu0  ;;  %v8115_v54 = vrot.slane %v8111_v58, 4  ;;  %v8134_v8 = vld [vmem:[%s18001_s3 + $0xc] sm:$0xf] }
 0x6e6   :  { %11008 = vmatprep.mubr.msk.bf16.mxu1 %vm13708_vm2, %v18206_v12  ;;  %v18423_v39 = vld [vmem:[#allocation19_spill] sm:$0xff] }
 0x6e7   :  { %v8130_v47 = vsel %vm17385_vm11, %v8114_v42, %v8129_v33  ;;  %v9497_v23 = vpack.c.bf16 %v8098_v29, %v8098_v29  ;;  %7937 = vst [vmem:[#allocation2 + $0x68] sm:$0xff] %v11951_v24  ;;  %11857 = vmatmul.mubr.msk.bf16.gmra.mrb[132].mxu0 %vm830_vm3, %v18414_v41  ;;  %v4091_v33 = vor.u32 %v4090_v52, %v4087_v1  ;;  %v8138_v41 = vld [vmem:[#allocation2 + $0x44] sm:$0xff]  ;;  %v18425_v52 = vld [vmem:[#allocation42_spill] sm:$0xff] }
 0x6e8   :  { %8131 = vst [vmem:[%s18001_s3 + $0x8] sm:$0xf] %v8130_v47  ;;  %11860 = vmatprep.mubr.msk.bf16.mxu0 %vm13708_vm2, %v18206_v12 }
 0x6e9   :  { %v8117_v14 = vshrl.u32 %v9497_v23, 16  ;;  %v8120_v2 = vshll.u32 %v9497_v23, 16  ;;  %v4092_v61 = vsel %vm3751_vm4, %v4082_v45, %v4091_v33  ;;  %v8140_v45 = vld [vmem:[#allocation2 + $0x54] sm:$0xf] }
 0x6ea   :  { %v7453_v11 = vpop.f32.mrb[28].mxu0 }
 0x6eb   :  { %v8119_v44 = vrot.slane %v8117_v14, 7  ;;  %v11952_v27 = vadd.f32 %v7453_v11, %v18418_v6  ;;  %v11754_v32 = vpop.f32.mrb[29].mxu0  ;;  %v18426_v14 = vshrl.u32 %v18425_v52, 16 }
 0x6ec   :  { %v8141_v49 = vld [vmem:[#allocation2 + $0x5a] sm:$0xff]  ;;  %v7456_v26 = vpop.f32.mrb[30].mxu0  ;;  %v18428_v32 = vld [vmem:[#allocation20_spill] sm:$0xff] }
 0x6ed   :  { %11009 = vmatmul.mubr.msk.bf16.gmra.mrb[140].mxu1 %vm830_vm3, %v4083_v57  ;;  %v8122_v29 = vor.u32 %v8120_v2, %v8119_v44  ;;  %v8145_v24 = vmax.f32 %v8137_v31, %v8141_v49  ;;  %7938 = vst [vmem:[#allocation2 + $0x70] sm:$0xff] %v11952_v27  ;;  %v17426_v47 = vadd.f32 %v7456_v26, %v18423_v39  ;;  %v11755_v23 = vpop.f32.mrb[31].mxu0  ;;  %v4096_v11 = vrot.slane %v18426_v14, 3  ;;  %v8139_v27 = vld [vmem:[#allocation2 + $0x4c] sm:$0xff] }
 0x6ee   :  { %11012 = vmatprep.mubr.msk.bf16.mxu1 %vm13708_vm2, %v18206_v12  ;;  %v8142_v57 = vld [vmem:[#allocation2 + $0x62] sm:$0xff]  ;;  %v18427_v44 = vshll.u32 %v18425_v52, 16  ;;  %v18429_v23 = vld [vmem:[#allocation21_spill] sm:$0xff]  ;;  %v18431_v52 = vshll.u32 %v18336_v17, 16 }
 0x6ef   :  { %v8123_v58 = vsel %vm17411_vm15, %v8115_v54, %v8122_v29  ;;  %8149 = vst [vmem:[#allocation3] sm:$0xff] %v8145_v24  ;;  %v8146_v4 = vmax.f32 %v8138_v41, %v8142_v57  ;;  %11861 = vmatmul.mubr.msk.bf16.gmra.mrb[136].mxu0 %vm830_vm3, %v18424_v56 }
 0x6f0   :  { %v8135_v1 = vsel %vm17418_vm0, %v8123_v58, %v8134_v8  ;;  %11864 = vmatprep.mubr.msk.bf16.mxu0 %vm13708_vm2, %v18206_v12  ;;  %v4099_v2 = vrot.slane %v18427_v44, 4  ;;  %v4108_v14 = vrot.slane %v18431_v52, 4 }
 0x6f1   :  { %8136 = vst [vmem:[%s18001_s3 + $0xc] sm:$0xf] %v8135_v1  ;;  %8150 = vst [vmem:[#allocation3 + $0x8] sm:$0xff] %v8146_v4  ;;  %v18430_v1 = vshrl.u32 %v18336_v17, 16 }
 0x6f2   :  { %v7461_v6 = vpop.f32.mrb[32].mxu0  ;;  %v4100_v8 = vor.u32 %v4099_v2, %v4096_v11 }
 0x6f3   :  { %v17445_v31 = vadd.f32 %v7461_v6, %v18428_v32  ;;  %v11758_v49 = vpop.f32.mrb[33].mxu0  ;;  %v18432_v6 = vld [vmem:[#allocation23_spill] sm:$0xff] }
 0x6f4   :  { %v8143_v26 = vld [vmem:[#allocation2 + $0x6a] sm:$0xff]  ;;  %v8144_v54 = vld [vmem:[#allocation2 + $0x72] sm:$0xf]  ;;  %v7464_v29 = vpop.f32.mrb[34].mxu0  ;;  %v4101_v56 = vsel %vm3751_vm4, %v4091_v33, %v4100_v8 }
 0x6f5   :  { %11013 = vmatmul.mubr.msk.bf16.gmra.mrb[144].mxu1 %vm830_vm3, %v4092_v61  ;;  %v8147_v24 = vmax.f32 %v8139_v27, %v8143_v26  ;;  %v8148_v39 = vmax.f32 %v8140_v45, %v8144_v54  ;;  %v17451_v41 = vadd.f32 %v7464_v29, %v18429_v23  ;;  %v11759_v57 = vpop.f32.mrb[35].mxu0  ;;  %v4105_v61 = vrot.slane %v18430_v1, 3  ;;  %v18433_v45 = vld [vmem:[#allocation24_spill] sm:$0xff] }
 0x6f6   :  { %11016 = vmatprep.mubr.msk.bf16.mxu1 %vm13708_vm2, %v18206_v12  ;;  %v18434_v57 = vshrl.u32 %v15654_v13, 16 }
 0x6f7   :  { %8151 = vst [vmem:[#allocation3 + $0x10] sm:$0xff] %v8147_v24  ;;  %8152 = vst [vmem:[#allocation3 + $0x18] sm:$0xf] %v8148_v39  ;;  %11865 = vmatmul.mubr.msk.bf16.gmra.mrb[140].mxu0 %vm830_vm3, %v16909_v48  ;;  %v4109_v33 = vor.u32 %v4108_v14, %v4105_v61 }
 0x6f8   :  { %v8153_v58 = vld [vmem:[#allocation3] ss:$2 sm:$0xff]  ;;  %v8155_v4 = vld [vmem:[#allocation3 + $0x1] ss:$2 sm:$0xff]  ;;  %11868 = vmatprep.mubr.msk.bf16.mxu0 %vm13708_vm2, %v18206_v12 }
 0x6f9   :  { %v8157_v11 = vmax.f32 %v8153_v58, %v8155_v4  ;;  %v4110_v23 = vsel %vm3751_vm4, %v4100_v8, %v4109_v33  ;;  %v4114_v58 = vrot.slane %v18434_v57, 3  ;;  %v18435_v4 = vshll.u32 %v15654_v13, 16  ;;  %v8187_v8 = vld [vmem:[%s18001_s3 + $0x10] sm:$0xf] }
 0x6fa   :  { %v7469_v44 = vpop.f32.mrb[36].mxu0 }
 0x6fb   :  { %v8159_v2 = vadd.f32 %v17355_v22, %v8157_v11  ;;  %v11956_v27 = vadd.f32 %v7469_v44, %v18432_v6  ;;  %v11762_v48 = vpop.f32.mrb[37].mxu0 }
 0x6fc   :  { %v7472_v32 = vpop.f32.mrb[38].mxu0 }
 0x6fd   :  { %11017 = vmatmul.mubr.msk.bf16.gmra.mrb[148].mxu1 %vm830_vm3, %v4101_v56  ;;  %v8161_v49 = vmax.f32 %v8159_v2, 0.0  ;;  %7942 = vst [vmem:[#allocation2 + $0x90] sm:$0xff] %v11956_v27  ;;  %v11957_v26 = vadd.f32 %v7472_v32, %v18433_v45  ;;  %v11763_v17 = vpop.f32.mrb[39].mxu0  ;;  %v4117_v56 = vrot.slane %v18435_v4, 4  ;;  %v8190_v4 = vld [vmem:[%s18001_s3 + $0x14] sm:$0xf] }
 0x6fe   :  { %11020 = vmatprep.mubr.msk.bf16.mxu1 %vm13708_vm2, %v18206_v12  ;;  %v8154_v54 = vld [vmem:[#allocation3 + $0x10] ss:$2 sm:$0x3f]  ;;  %v8156_v29 = vld [vmem:[#allocation3 + $0x11] ss:$2 sm:$0x3f] }
 0x6ff   :  { %v9498_v24 = vpack.c.bf16 %v8161_v49, %v8161_v49  ;;  %v8158_v39 = vmax.f32 %v8154_v54, %v8156_v29  ;;  %7943 = vst [vmem:[#allocation2 + $0x98] sm:$0xff] %v11957_v26  ;;  %11869 = vmatmul.mubr.msk.bf16.gmra.mrb[144].mxu0 %vm830_vm3, %v16927_v15  ;;  %v4118_v13 = vor.u32 %v4117_v56, %v4114_v58  ;;  %v18436_v54 = vshrl.u32 %v15678_v63, 16 }
 0x700   :  { %11872 = vmatprep.mubr.msk.bf16.mxu0 %vm13708_vm2, %v18206_v12 }
 0x701   :  { %v8170_v1 = vshrl.u32 %v9498_v24, 16  ;;  %v8160_v61 = vadd.f32 %v17355_v22, %v8158_v39  ;;  %v8173_v11 = vshll.u32 %v9498_v24, 16  ;;  %v4123_v29 = vrot.slane %v18436_v54, 3 }
 0x702   :  { %v7477_v52 = vpop.f32.mrb[40].mxu0  ;;  %v18437_v24 = vshll.u32 %v15678_v63, 16 }
 0x703   :  { %v8172_v14 = vrot.slane %v8170_v1, 7  ;;  %v8162_v44 = vmax.f32 %v8160_v61, 0.0  ;;  %v11958_v15 = vadd.f32 %v7477_v52, %v16900_v43  ;;  %v11766_v2 = vpop.f32.mrb[41].mxu0 }
 0x704   :  { %v7480_v6 = vpop.f32.mrb[42].mxu0  ;;  %v4126_v39 = vrot.slane %v18437_v24, 4 }
 0x705   :  { %11021 = vmatmul.mubr.msk.bf16.gmra.mrb[152].mxu1 %vm830_vm3, %v4110_v23  ;;  %v8175_v27 = vor.u32 %v8173_v11, %v8172_v14  ;;  %v9499_v48 = vpack.c.bf16 %v8162_v44, %v8162_v44  ;;  %7944 = vst [vmem:[#allocation2 + $0xa0] sm:$0xff] %v11958_v15  ;;  %v11959_v32 = vadd.f32 %v7480_v6, %v16904_v5  ;;  %v11767_v49 = vpop.f32.mrb[43].mxu0  ;;  %v18439_v6 = vshll.u32 %v15696_v28, 16 }
 0x706   :  { %11024 = vmatprep.mubr.msk.bf16.mxu1 %vm13708_vm2, %v18206_v12  ;;  %v8197_v45 = vld [vmem:[#allocation2 + $0x96] sm:$0xff]  ;;  %v4119_v5 = vsel %vm3751_vm4, %v4109_v33, %v4118_v13  ;;  %v4127_v63 = vor.u32 %v4126_v39, %v4123_v29 }
 0x707   :  { %v8188_v43 = vsel %vm17385_vm11, %v8175_v27, %v8187_v8  ;;  %v8178_v26 = vshrl.u32 %v9499_v48, 16  ;;  %v8201_v17 = vmax.f32 %v17426_v47, %v8197_v45  ;;  %7945 = vst [vmem:[#allocation2 + $0xa8] sm:$0xff] %v11959_v32  ;;  %11873 = vmatmul.mubr.msk.bf16.gmra.mrb[148].mxu0 %vm830_vm3, %v16943_v7  ;;  %v8181_v23 = vshll.u32 %v9499_v48, 16  ;;  %v18440_v32 = vld [vmem:[#allocation34_spill] sm:$0xff]  ;;  %v8196_v45 = vld [vmem:[#allocation2 + $0x90] sm:$0xf] }
 0x708   :  { %8189 = vst [vmem:[%s18001_s3 + $0x10] sm:$0xf] %v8188_v43  ;;  %11876 = vmatprep.mubr.msk.bf16.mxu0 %vm13708_vm2, %v18206_v12  ;;  %v8176_v7 = vrot.slane %v8172_v14, 4  ;;  %v4135_v27 = vrot.slane %v18439_v6, 4  ;;  %v18447_v6 = vshll.u32 %v15732_v16, 16 }
 0x709   :  { %v8180_v47 = vrot.slane %v8178_v26, 7  ;;  %8205 = vst [vmem:[#allocation3] sm:$0xff] %v8201_v17  ;;  %v18441_v17 = vld [vmem:[#allocation26_spill] sm:$0xff] }
 0x70a   :  { %v7485_v57 = vpop.f32.mrb[44].mxu0 }
 0x70b   :  { %v8183_v58 = vor.u32 %v8181_v23, %v8180_v47  ;;  %v11960_v56 = vadd.f32 %v7485_v57, %v16918_v60  ;;  %v11770_v1 = vpop.f32.mrb[45].mxu0  ;;  %v18442_v47 = vshrl.u32 %v15714_v37, 16  ;;  %v18443_v57 = vshll.u32 %v15714_v37, 16 }
 0x70c   :  { %v8198_v33 = vld [vmem:[#allocation2 + $0x9e] sm:$0xff]  ;;  %v7488_v61 = vpop.f32.mrb[46].mxu0 }
 0x70d   :  { %11025 = vmatmul.mubr.msk.bf16.gmra.mrb[156].mxu1 %vm830_vm3, %v4119_v5  ;;  %v8184_v52 = vsel %vm17411_vm15, %v8176_v7, %v8183_v58  ;;  %v8202_v14 = vmax.f32 %v17445_v31, %v8198_v33  ;;  %7946 = vst [vmem:[#allocation2 + $0xb0] sm:$0xff] %v11960_v56  ;;  %v11961_v11 = vadd.f32 %v7488_v61, %v16922_v0  ;;  %v11771_v44 = vpop.f32.mrb[47].mxu0  ;;  %v18438_v31 = vshrl.u32 %v15696_v28, 16  ;;  %v18444_v1 = vld [vmem:[#allocation35_spill] sm:$0xff] }
 0x70e   :  { %11028 = vmatprep.mubr.msk.bf16.mxu1 %vm13708_vm2, %v18206_v12  ;;  %v8191_v60 = vsel %vm17418_vm0, %v8184_v52, %v8190_v4  ;;  %v8199_v15 = vld [vmem:[#allocation2 + $0xa6] sm:$0xff]  ;;  %v4128_v0 = vsel %vm3751_vm4, %v4118_v13, %v4127_v63  ;;  %v4141_v23 = vrot.slane %v18442_v47, 3  ;;  %v4144_v7 = vrot.slane %v18443_v57, 4 }
 0x70f   :  { %8192 = vst [vmem:[%s18001_s3 + $0x14] sm:$0xf] %v8191_v60  ;;  %8206 = vst [vmem:[#allocation3 + $0x8] sm:$0xff] %v8202_v14  ;;  %v8203_v2 = vmax.f32 %v17451_v41, %v8199_v15  ;;  %11877 = vmatmul.mubr.msk.bf16.gmra.mrb[152].mxu0 %vm830_vm3, %v16959_v53  ;;  %v4132_v8 = vrot.slane %v18438_v31, 3  ;;  %v18445_v14 = vld [vmem:[#allocation27_spill] sm:$0xff]  ;;  %v18446_v31 = vshrl.u32 %v15732_v16, 16 }
 0x710   :  { %7947 = vst [vmem:[#allocation2 + $0xb8] sm:$0xff] %v11961_v11  ;;  %11880 = vmatprep.mubr.msk.bf16.mxu0 %vm13708_vm2, %v18206_v12 }
 0x711   :  { %8207 = vst [vmem:[#allocation3 + $0x10] sm:$0xff] %v8203_v2  ;;  %v4136_v13 = vor.u32 %v4135_v27, %v4132_v8  ;;  %v4150_v8 = vrot.slane %v18446_v31, 3  ;;  %v4153_v27 = vrot.slane %v18447_v6, 4 }
 0x712   :  { %v7493_v48 = vpop.f32.mrb[48].mxu0 }
 0x713   :  { %v11962_v49 = vadd.f32 %v7493_v48, %v18440_v32  ;;  %v11774_v41 = vpop.f32.mrb[49].mxu0  ;;  %v4137_v39 = vsel %vm3751_vm4, %v4127_v63, %v4136_v13  ;;  %v4145_v63 = vor.u32 %v4144_v7, %v4141_v23  ;;  %v4154_v16 = vor.u32 %v4153_v27, %v4150_v8  ;;  %v18453_v8 = vld [vmem:[#allocation29_spill] sm:$0xff] }
 0x714   :  { %v8200_v53 = vld [vmem:[#allocation2 + $0xae] sm:$0xf]  ;;  %v7496_v43 = vpop.f32.mrb[50].mxu0  ;;  %v8243_v41 = vld [vmem:[%s18001_s3 + $0x18] sm:$0xf] }
 0x715   :  { %11029 = vmatmul.mubr.msk.bf16.gmra.mrb[160].mxu1 %vm830_vm3, %v4128_v0  ;;  %v8204_v26 = vmax.f32 %v8196_v45, %v8200_v53  ;;  %7948 = vst [vmem:[#allocation2 + $0xc0] sm:$0xff] %v11962_v49  ;;  %v11963_v5 = vadd.f32 %v7496_v43, %v18441_v17  ;;  %v11775_v28 = vpop.f32.mrb[51].mxu0  ;;  %v4146_v0 = vsel %vm3751_vm4, %v4136_v13, %v4145_v63  ;;  %v18448_v43 = vld [vmem:[#allocation36_spill] sm:$0xff] }
 0x716   :  { %11032 = vmatprep.mubr.msk.bf16.mxu1 %vm13708_vm2, %v18206_v12  ;;  %v8209_v54 = vld [vmem:[#allocation3] ss:$2 sm:$0xff]  ;;  %v8211_v29 = vld [vmem:[#allocation3 + $0x1] ss:$2 sm:$0xff]  ;;  %v4155_v7 = vsel %vm3751_vm4, %v4145_v63, %v4154_v16 }
 0x717   :  { %v8213_v24 = vmax.f32 %v8209_v54, %v8211_v29  ;;  %8208 = vst [vmem:[#allocation3 + $0x18] sm:$0xf] %v8204_v26  ;;  %7949 = vst [vmem:[#allocation2 + $0xc8] sm:$0xff] %v11963_v5  ;;  %11881 = vmatmul.mubr.msk.bf16.gmra.mrb[156].mxu0 %vm830_vm3, %v16975_v51  ;;  %v18449_v54 = vld [vmem:[#allocation28_spill] sm:$0xff] }
 0x718   :  { %11884 = vmatprep.mubr.msk.bf16.mxu0 %vm13708_vm2, %v18206_v12 }
 0x719   :  { %v8215_v58 = vadd.f32 %v17355_v22, %v8213_v24 }
 0x71a   :  { %v7501_v4 = vpop.f32.mrb[52].mxu0 }
 0x71b   :  { %v8217_v56 = vmax.f32 %v8215_v58, 0.0  ;;  %v11964_v33 = vadd.f32 %v7501_v4, %v18444_v1  ;;  %v11778_v61 = vpop.f32.mrb[53].mxu0  ;;  %v18450_v58 = vshrl.u32 %v15750_v35, 16 }
 0x71c   :  { %v7504_v51 = vpop.f32.mrb[54].mxu0 }
 0x71d   :  { %11033 = vmatmul.mubr.msk.bf16.gmra.mrb[164].mxu1 %vm830_vm3, %v4137_v39  ;;  %v9500_v52 = vpack.c.bf16 %v8217_v56, %v8217_v56  ;;  %7950 = vst [vmem:[#allocation2 + $0xd0] sm:$0xff] %v11964_v33  ;;  %v11965_v11 = vadd.f32 %v7504_v51, %v18445_v14  ;;  %v11779_v37 = vpop.f32.mrb[55].mxu0  ;;  %v8249_v39 = vld [vmem:[#allocation2 + $0xb4] sm:$0xff]  ;;  %v4159_v4 = vrot.slane %v18450_v58, 3  ;;  %v18451_v56 = vshll.u32 %v15750_v35, 16 }
 0x71e   :  { %11036 = vmatprep.mubr.msk.bf16.mxu1 %vm13708_vm2, %v18206_v12  ;;  %v8210_v44 = vld [vmem:[#allocation3 + $0x10] ss:$2 sm:$0x3f]  ;;  %v8212_v60 = vld [vmem:[#allocation3 + $0x11] ss:$2 sm:$0x3f] }
 0x71f   :  { %v8226_v15 = vshrl.u32 %v9500_v52, 16  ;;  %v8214_v2 = vmax.f32 %v8210_v44, %v8212_v60  ;;  %7951 = vst [vmem:[#allocation2 + $0xd8] sm:$0xff] %v11965_v11  ;;  %11885 = vmatmul.mubr.msk.bf16.gmra.mrb[160].mxu0 %vm830_vm3, %v16991_v30  ;;  %v8229_v32 = vshll.u32 %v9500_v52, 16  ;;  %v4162_v1 = vrot.slane %v18451_v56, 4  ;;  %v18452_v11 = vld [vmem:[#allocation37_spill] sm:$0xff]  ;;  %v8250_v44 = vld [vmem:[#allocation2 + $0xbc] sm:$0xff] }
 0x720   :  { %11888 = vmatprep.mubr.msk.bf16.mxu0 %vm13708_vm2, %v18206_v12 }
 0x721   :  { %v8228_v48 = vrot.slane %v8226_v15, 7  ;;  %v8216_v49 = vadd.f32 %v17355_v22, %v8214_v2  ;;  %v4163_v15 = vor.u32 %v4162_v1, %v4159_v4  ;;  %v18459_v4 = vshll.u32 %v15786_v40, 16 }
 0x722   :  { %v7509_v30 = vpop.f32.mrb[56].mxu0 }
 0x723   :  { %v8231_v45 = vor.u32 %v8229_v32, %v8228_v48  ;;  %v8218_v53 = vmax.f32 %v8216_v49, 0.0  ;;  %v11966_v26 = vadd.f32 %v7509_v30, %v18448_v43  ;;  %v11782_v13 = vpop.f32.mrb[57].mxu0  ;;  %v8232_v52 = vrot.slane %v8228_v48, 4  ;;  %v8252_v32 = vld [vmem:[#allocation2 + $0xcc] sm:$0xf] }
 0x724   :  { %v7512_v17 = vpop.f32.mrb[58].mxu0  ;;  %v18454_v43 = vshrl.u32 %v15768_v25, 16  ;;  %v18455_v13 = vshll.u32 %v15768_v25, 16  ;;  %v4180_v56 = vrot.slane %v18459_v4, 4 }
 0x725   :  { %11037 = vmatmul.mubr.msk.bf16.gmra.mrb[168].mxu1 %vm830_vm3, %v4146_v0  ;;  %v8244_v5 = vsel %vm17385_vm11, %v8231_v45, %v8243_v41  ;;  %v9501_v28 = vpack.c.bf16 %v8218_v53, %v8218_v53  ;;  %7952 = vst [vmem:[#allocation2 + $0xe0] sm:$0xff] %v11966_v26  ;;  %v11967_v29 = vadd.f32 %v7512_v17, %v18449_v54  ;;  %v11783_v24 = vpop.f32.mrb[59].mxu0  ;;  %v8251_v0 = vld [vmem:[#allocation2 + $0xc4] sm:$0xff] }
 0x726   :  { %11040 = vmatprep.mubr.msk.bf16.mxu1 %vm13708_vm2, %v18206_v12  ;;  %8245 = vst [vmem:[%s18001_s3 + $0x18] sm:$0xf] %v8244_v5  ;;  %v8253_v47 = vld [vmem:[#allocation2 + $0xd2] sm:$0xff]  ;;  %v4164_v53 = vsel %vm3751_vm4, %v4154_v16, %v4163_v15  ;;  %v4168_v26 = vrot.slane %v18454_v43, 3  ;;  %v4171_v17 = vrot.slane %v18455_v13, 4  ;;  %v18457_v24 = vld [vmem:[#allocation31_spill] sm:$0xff] }
 0x727   :  { %v8234_v23 = vshrl.u32 %v9501_v28, 16  ;;  %v8257_v57 = vmax.f32 %v8249_v39, %v8253_v47  ;;  %7953 = vst [vmem:[#allocation2 + $0xe8] sm:$0xff] %v11967_v29  ;;  %11889 = vmatmul.mubr.msk.bf16.gmra.mrb[164].mxu0 %vm830_vm3, %v17109_v3  ;;  %v8237_v61 = vshll.u32 %v9501_v28, 16  ;;  %v8246_v3 = vld [vmem:[%s18001_s3 + $0x1c] sm:$0xf] }
 0x728   :  { %11892 = vmatprep.mubr.msk.bf16.mxu0 %vm13708_vm2, %v18206_v12  ;;  %v18456_v28 = vld [vmem:[#allocation38_spill] sm:$0xff]  ;;  %v4172_v16 = vor.u32 %v4171_v17, %v4168_v26  ;;  %v8299_v26 = vld [vmem:[%s18001_s3 + $0x20] sm:$0xf] }
 0x729   :  { %v8236_v33 = vrot.slane %v8234_v23, 7  ;;  %8261 = vst [vmem:[#allocation3] sm:$0xff] %v8257_v57 }
 0x72a   :  { %v7517_v51 = vpop.f32.mrb[60].mxu0 }
 0x72b   :  { %v8239_v14 = vor.u32 %v8237_v61, %v8236_v33  ;;  %v17583_v37 = vadd.f32 %v7517_v51, %v18452_v11  ;;  %v11786_v63 = vpop.f32.mrb[61].mxu0  ;;  %v4173_v61 = vsel %vm3751_vm4, %v4163_v15, %v4172_v16  ;;  %v18460_v11 = vld [vmem:[#allocation39_spill] sm:$0xff]  ;;  %v18461_v15 = vld [vmem:[#allocation32_spill] sm:$0xff] }
 0x72c   :  { %v8254_v60 = vld [vmem:[#allocation2 + $0xda] sm:$0xff]  ;;  %v7520_v35 = vpop.f32.mrb[62].mxu0 }
 0x72d   :  { %11041 = vmatmul.mubr.msk.bf16.gmra.mrb[172].mxu1 %vm830_vm3, %v4155_v7  ;;  %v8240_v2 = vsel %vm17411_vm15, %v8232_v52, %v8239_v14  ;;  %v8258_v31 = vmax.f32 %v8250_v44, %v8254_v60  ;;  %v17591_v6 = vadd.f32 %v7520_v35, %v18453_v8  ;;  %v11787_v27 = vpop.f32.mrb[63].mxu0  ;;  %v18458_v7 = vshrl.u32 %v15786_v40, 16 }
 0x72e   :  { %11044 = vmatprep.mubr.msk.bf16.mxu1 %vm13708_vm2, %v18206_v12  ;;  %v8247_v48 = vsel %vm17418_vm0, %v8240_v2, %v8246_v3  ;;  %v8255_v49 = vld [vmem:[#allocation2 + $0xe2] sm:$0xff]  ;;  %v8256_v41 = vld [vmem:[#allocation2 + $0xea] sm:$0xf] }
 0x72f   :  { %8248 = vst [vmem:[%s18001_s3 + $0x1c] sm:$0xf] %v8247_v48  ;;  %8262 = vst [vmem:[#allocation3 + $0x8] sm:$0xff] %v8258_v31  ;;  %v8259_v30 = vmax.f32 %v8251_v0, %v8255_v49  ;;  %v8260_v45 = vmax.f32 %v8252_v32, %v8256_v41  ;;  %11893 = vmatmul.mubr.msk.bf16.gmra.mrb[168].mxu0 %vm830_vm3, %v17125_v46  ;;  %v4177_v58 = vrot.slane %v18458_v7, 3  ;;  %v18462_v32 = vshrl.u32 %v15804_v9, 16  ;;  %v18465_v7 = vld [vmem:[#allocation6_spill] sm:$0xff] }
 0x730   :  { %11896 = vmatprep.mubr.msk.bf16.mxu0 %vm13708_vm2, %v18206_v12  ;;  %v18463_v41 = vshll.u32 %v15804_v9, 16 }
 0x731   :  { %8263 = vst [vmem:[#allocation3 + $0x10] sm:$0xff] %v8259_v30  ;;  %8264 = vst [vmem:[#allocation3 + $0x18] sm:$0xf] %v8260_v45  ;;  %v4181_v60 = vor.u32 %v4180_v56, %v4177_v58  ;;  %v4186_v49 = vrot.slane %v18462_v32, 3 }
 0x732   :  { %v7525_v5 = vpop.f32.mrb[64].mxu0  ;;  %v4189_v30 = vrot.slane %v18463_v41, 4 }
 0x733   :  { %v17608_v54 = vadd.f32 %v7525_v5, %v18456_v28  ;;  %v11790_v29 = vpop.f32.mrb[65].mxu0  ;;  %v4182_v48 = vsel %vm3751_vm4, %v4172_v16, %v4181_v60  ;;  %v18464_v28 = vld [vmem:[#allocation8_spill] sm:$0xff] }
 0x734   :  { %v7528_v46 = vpop.f32.mrb[66].mxu0 }
 0x735   :  { %11045 = vmatmul.mubr.msk.bf16.gmra.mrb[176].mxu1 %vm830_vm3, %v4164_v53  ;;  %v11971_v39 = vadd.f32 %v7528_v46, %v18457_v24  ;;  %v11791_v47 = vpop.f32.mrb[67].mxu0 }
 0x736   :  { %11048 = vmatprep.mubr.msk.bf16.mxu1 %vm13708_vm2, %v18206_v12  ;;  %v8265_v23 = vld [vmem:[#allocation3] ss:$2 sm:$0xff]  ;;  %v8267_v25 = vld [vmem:[#allocation3 + $0x1] ss:$2 sm:$0xff] }
 0x737   :  { %v8269_v57 = vmax.f32 %v8265_v23, %v8267_v25  ;;  %7957 = vst [vmem:[#allocation2 + $0x108] sm:$0xff] %v11971_v39  ;;  %11897 = vmatmul.mubr.msk.bf16.gmra.mrb[172].mxu0 %vm830_vm3, %v17141_v18  ;;  %v4190_v39 = vor.u32 %v4189_v30, %v4186_v49  ;;  %v8302_v25 = vld [vmem:[%s18001_s3 + $0x24] sm:$0xf]  ;;  %v18471_v49 = vshll.u32 %v15840_v55, 16 }
 0x738   :  { %v8266_v1 = vld [vmem:[#allocation3 + $0x10] ss:$2 sm:$0x3f]  ;;  %v8268_v33 = vld [vmem:[#allocation3 + $0x11] ss:$2 sm:$0x3f]  ;;  %11900 = vmatprep.mubr.msk.bf16.mxu0 %vm13708_vm2, %v18206_v12 }
 0x739   :  { %v8271_v51 = vadd.f32 %v17355_v22, %v8269_v57  ;;  %v8270_v52 = vmax.f32 %v8266_v1, %v8268_v33  ;;  %v4207_v41 = vrot.slane %v18471_v49, 4 }
 0x73a   :  { %v7533_v14 = vpop.f32.mrb[68].mxu0 }
 0x73b   :  { %v8273_v3 = vmax.f32 %v8271_v51, 0.0  ;;  %v8272_v18 = vadd.f32 %v17355_v22, %v8270_v52  ;;  %v11972_v63 = vadd.f32 %v7533_v14, %v18460_v11  ;;  %v11794_v44 = vpop.f32.mrb[69].mxu0  ;;  %v18466_v51 = vshrl.u32 %v15822_v38, 16 }
 0x73c   :  { %v7536_v40 = vpop.f32.mrb[70].mxu0  ;;  %v18467_v14 = vshll.u32 %v15822_v38, 16 }
 0x73d   :  { %11049 = vmatmul.mubr.msk.bf16.gmra.mrb[180].mxu1 %vm830_vm3, %v4173_v61  ;;  %v9502_v35 = vpack.c.bf16 %v8273_v3, %v8273_v3  ;;  %v8274_v2 = vmax.f32 %v8272_v18, 0.0  ;;  %7958 = vst [vmem:[#allocation2 + $0x110] sm:$0xff] %v11972_v63  ;;  %v11973_v0 = vadd.f32 %v7536_v40, %v18461_v15  ;;  %v11795_v31 = vpop.f32.mrb[71].mxu0  ;;  %v4191_v61 = vsel %vm3751_vm4, %v4181_v60, %v4190_v39  ;;  %v18469_v60 = vld [vmem:[#allocation7_spill] sm:$0xff] }
 0x73e   :  { %11052 = vmatprep.mubr.msk.bf16.mxu1 %vm13708_vm2, %v18206_v12  ;;  %v4195_v52 = vrot.slane %v18466_v51, 3  ;;  %v4198_v3 = vrot.slane %v18467_v14, 4  ;;  %v8308_v15 = vld [vmem:[#allocation2 + $0x108] sm:$0xf] }
 0x73f   :  { %v8282_v8 = vshrl.u32 %v9502_v35, 16  ;;  %v9503_v27 = vpack.c.bf16 %v8274_v2, %v8274_v2  ;;  %7959 = vst [vmem:[#allocation2 + $0x118] sm:$0xff] %v11973_v0  ;;  %11901 = vmatmul.mubr.msk.bf16.gmra.mrb[176].mxu0 %vm830_vm3, %v17157_v10  ;;  %v8285_v53 = vshll.u32 %v9502_v35, 16 }
 0x740   :  { %11904 = vmatprep.mubr.msk.bf16.mxu0 %vm13708_vm2, %v18206_v12  ;;  %v4199_v40 = vor.u32 %v4198_v3, %v4195_v52  ;;  %v8355_v52 = vld [vmem:[%s18001_s3 + $0x28] sm:$0xf] }
 0x741   :  { %v8284_v45 = vrot.slane %v8282_v8, 7  ;;  %v8290_v43 = vshrl.u32 %v9503_v27, 16  ;;  %v8293_v5 = vshll.u32 %v9503_v27, 16 }
 0x742   :  { %v7541_v13 = vpop.f32.mrb[72].mxu0 }
 0x743   :  { %v8287_v10 = vor.u32 %v8285_v53, %v8284_v45  ;;  %v8292_v17 = vrot.slane %v8290_v43, 7  ;;  %v11974_v29 = vadd.f32 %v7541_v13, %v18464_v28  ;;  %v11798_v46 = vpop.f32.mrb[73].mxu0  ;;  %v8288_v16 = vrot.slane %v8284_v45, 4  ;;  %v18472_v43 = vld [vmem:[#allocation4_spill] sm:$0xff] }
 0x744   :  { %v8309_v24 = vld [vmem:[#allocation2 + $0x10e] sm:$0xff]  ;;  %v7544_v9 = vpop.f32.mrb[74].mxu0 }
 0x745   :  { %11053 = vmatmul.mubr.msk.bf16.gmra.mrb[184].mxu1 %vm830_vm3, %v4182_v48  ;;  %v8300_v47 = vsel %vm17385_vm11, %v8287_v10, %v8299_v26  ;;  %v8295_v23 = vor.u32 %v8293_v5, %v8292_v17  ;;  %v8313_v57 = vmax.f32 %v17583_v37, %v8309_v24  ;;  %7960 = vst [vmem:[#allocation2 + $0x120] sm:$0xff] %v11974_v29  ;;  %v11799_v4 = vpop.f32.mrb[75].mxu0  ;;  %v18473_v5 = vld [vmem:[#allocation43_spill] sm:$0xff]  ;;  %v18474_v46 = vld [vmem:[#allocation49_spill] sm:$0xff] }
 0x746   :  { %11056 = vmatprep.mubr.msk.bf16.mxu1 %vm13708_vm2, %v18206_v12  ;;  %v11975_v58 = vadd.f32 %v7544_v9, %v18465_v7  ;;  %8301 = vst [vmem:[%s18001_s3 + $0x20] sm:$0xf] %v8300_v47  ;;  %v8310_v56 = vld [vmem:[#allocation2 + $0x116] sm:$0xff]  ;;  %v4200_v48 = vsel %vm3751_vm4, %v4190_v39, %v4199_v40 }
 0x747   :  { %v8296_v1 = vsel %vm17411_vm15, %v8288_v16, %v8295_v23  ;;  %8317 = vst [vmem:[#allocation3] sm:$0xff] %v8313_v57  ;;  %v8314_v33 = vmax.f32 %v17591_v6, %v8310_v56  ;;  %11905 = vmatmul.mubr.msk.bf16.gmra.mrb[180].mxu0 %vm830_vm3, %v17173_v21  ;;  %v18468_v6 = vld [vmem:[#allocation5_spill] sm:$0xff]  ;;  %v18475_v16 = vld [vmem:[#allocation40_spill] sm:$0xff] }
 0x748   :  { %7961 = vst [vmem:[#allocation2 + $0x128] sm:$0xff] %v11975_v58  ;;  %v8303_v37 = vsel %vm17418_vm0, %v8296_v1, %v8302_v25  ;;  %11908 = vmatprep.mubr.msk.bf16.mxu0 %vm13708_vm2, %v18206_v12  ;;  %v18476_v24 = vshrl.u32 %v18475_v16, 16  ;;  %v18477_v39 = vshll.u32 %v18475_v16, 16 }
 0x749   :  { %8304 = vst [vmem:[%s18001_s3 + $0x24] sm:$0xf] %v8303_v37  ;;  %8318 = vst [vmem:[#allocation3 + $0x8] sm:$0xff] %v8314_v33  ;;  %v18478_v37 = vld [vmem:[#allocation45_spill] sm:$0xff] }
 0x74a   :  { %v7549_v21 = vpop.f32.mrb[76].mxu0  ;;  %v4213_v9 = vrot.slane %v18476_v24, 3  ;;  %v4216_v47 = vrot.slane %v18477_v39, 4  ;;  %v13704_v24 = vld [vmem:[%s18000_s0 + $0x1b4] sm:$0xff]  }
 0x74b   :  { %v11976_v18 = vadd.f32 %v7549_v21, %v18468_v6  ;;  %v11802_v11 = vpop.f32.mrb[77].mxu0 }
 0x74c   :  { %v8311_v63 = vld [vmem:[#allocation2 + $0x11e] sm:$0xff]  ;;  %v7552_v44 = vpop.f32.mrb[78].mxu0  ;;  %v4217_v3 = vor.u32 %v4216_v47, %v4213_v9  ;;  %v7341_v9 = vrot.slane %v13704_v24, 3 }
 0x74d   :  { %11057 = vmatmul.mubr.msk.bf16.gmra.mrb[188].mxu1 %vm830_vm3, %v4191_v61  ;;  %v8315_v38 = vmax.f32 %v17608_v54, %v8311_v63  ;;  %7962 = vst [vmem:[#allocation2 + $0x130] sm:$0xff] %v11976_v18  ;;  %v11977_v35 = vadd.f32 %v7552_v44, %v18469_v60  ;;  %v11803_v2 = vpop.f32.mrb[79].mxu0  ;;  %v18470_v54 = vshrl.u32 %v15840_v55, 16  ;;  %v18479_v18 = vld [vmem:[#allocation46_spill] sm:$0xff] }
 0x74e   :  { %11060 = vmatprep.mubr.msk.bf16.mxu1 %vm13708_vm2, %v18206_v12 }
 0x74f   :  { %v8312_v0 = vld [vmem:[#allocation2 + $0x126] sm:$0xf]  ;;  %8319 = vst [vmem:[#allocation3 + $0x10] sm:$0xff] %v8315_v38  ;;  %7963 = vst [vmem:[#allocation2 + $0x138] sm:$0xff] %v11977_v35  ;;  %11909 = vmatmul.mubr.msk.bf16.gmra.mrb[184].mxu0 %vm830_vm3, %v17189_v20  ;;  %v4204_v32 = vrot.slane %v18470_v54, 3 }
 0x750   :  { %v8316_v31 = vmax.f32 %v8308_v15, %v8312_v0  ;;  %v8321_v8 = vld [vmem:[#allocation3] ss:$2 sm:$0xff]  ;;  %v8323_v27 = vld [vmem:[#allocation3 + $0x1] ss:$2 sm:$0xff]  ;;  %11912 = vmatprep.mubr.msk.bf16.mxu0 %vm13708_vm2, %v18206_v12 }
 0x751   :  { %v8325_v30 = vmax.f32 %v8321_v8, %v8323_v27  ;;  %v4208_v10 = vor.u32 %v4207_v41, %v4204_v32  ;;  %v18480_v38 = vld [vmem:[#allocation44_spill] sm:$0xff] }
 0x752   :  { %8320 = vst [vmem:[#allocation3 + $0x18] sm:$0xf] %v8316_v31  ;;  %v7557_v45 = vpop.f32.mrb[80].mxu0  ;;  %v7339_v60 = vrot.slane %v18480_v38, 3  ;;  %v18481_v35 = vshrl.u32 %v18480_v38, 16  ;;  %v18482_v15 = vshll.u32 %v18480_v38, 16 }
 0x753   :  { %v8327_v53 = vadd.f32 %v17355_v22, %v8325_v30  ;;  %v11978_v20 = vadd.f32 %v7557_v45, %v18472_v43  ;;  %v11806_v26 = vpop.f32.mrb[81].mxu0  ;;  %v4209_v57 = vsel %vm3751_vm4, %v4199_v40, %v4208_v10  ;;  %v4218_v40 = vsel %vm3751_vm4, %v4208_v10, %v4217_v3  ;;  %v18484_v10 = vld [vmem:[#allocation48_spill] sm:$0xff] }
 0x754   :  { %v7560_v13 = vpop.f32.mrb[82].mxu0  ;;  %v4222_v2 = vrot.slane %v18481_v35, 3  ;;  %v4225_v0 = vrot.slane %v18482_v15, 4  ;;  %v8361_v49 = vld [vmem:[#allocation2 + $0x12c] sm:$0xff]  ;;  %v7340_v45 = vsel %vm2914_vm8, %v17212_v36, %v7339_v60 }
 0x755   :  { %11061 = vmatmul.mubr.msk.bf16.gmra.mrb[192].mxu1 %vm830_vm3, %v4200_v48  ;;  %v8329_v17 = vmax.f32 %v8327_v53, 0.0  ;;  %7964 = vst [vmem:[#allocation2 + $0x140] sm:$0xff] %v11978_v20  ;;  %v11979_v55 = vadd.f32 %v7560_v13, %v18473_v5  ;;  %v11807_v28 = vpop.f32.mrb[83].mxu0  ;;  %v18483_v48 = vld [vmem:[#allocation47_spill] sm:$0xff]  ;;  %v8358_v26 = vld [vmem:[%s18001_s3 + $0x2c] sm:$0xf] }
 0x756   :  { %11064 = vmatprep.mubr.msk.bf16.mxu1 %vm13708_vm2, %v18206_v12  ;;  %v4226_v53 = vor.u32 %v4225_v0, %v4222_v2 }
 0x757   :  { %v9504_v29 = vpack.c.bf16 %v8329_v17, %v8329_v17  ;;  %7965 = vst [vmem:[#allocation2 + $0x148] sm:$0xff] %v11979_v55  ;;  %11913 = vmatmul.mubr.msk.bf16.gmra.mrb[188].mxu0 %vm830_vm3, %v18474_v46  ;;  %v8362_v55 = vld [vmem:[#allocation2 + $0x134] sm:$0xff] }
 0x758   :  { %11916 = vmatprep.mubr.msk.bf16.mxu0 %vm13708_vm2, %v18206_v12  ;;  %v4227_v16 = vsel %vm3751_vm4, %v4217_v3, %v4226_v53 }
 0x759   :  { %v8322_v23 = vld [vmem:[#allocation3 + $0x10] ss:$2 sm:$0x3f]  ;;  %v8324_v25 = vld [vmem:[#allocation3 + $0x11] ss:$2 sm:$0x3f] }
 0x75a   :  { %v8338_v7 = vshrl.u32 %v9504_v29, 16  ;;  %v8326_v58 = vmax.f32 %v8322_v23, %v8324_v25  ;;  %v7565_v4 = vpop.f32.mrb[84].mxu0  ;;  %v8341_v1 = vshll.u32 %v9504_v29, 16 }
 0x75b   :  { %v11980_v61 = vadd.f32 %v7565_v4, %v18478_v37  ;;  %v11810_v51 = vpop.f32.mrb[85].mxu0  ;;  %v18485_v37 = vld [vmem:[#allocation50_spill] sm:$0xff] }
 0x75c   :  { %v8340_v56 = vrot.slane %v8338_v7, 7  ;;  %v8328_v33 = vadd.f32 %v17355_v22, %v8326_v58  ;;  %v7568_v14 = vpop.f32.mrb[86].mxu0  ;;  %v8363_v47 = vld [vmem:[#allocation2 + $0x13c] sm:$0xff] }
 0x75d   :  { %11065 = vmatmul.mubr.msk.bf16.gmra.mrb[196].mxu1 %vm830_vm3, %v4209_v57  ;;  %7966 = vst [vmem:[#allocation2 + $0x150] sm:$0xff] %v11980_v61  ;;  %v11981_v11 = vadd.f32 %v7568_v14, %v18479_v18  ;;  %v11811_v22 = vpop.f32.mrb[87].mxu0  ;;  %v8364_v57 = vld [vmem:[#allocation2 + $0x144] sm:$0xf]  ;;  %v18486_v14 = vld [vmem:[#allocation30_spill] sm:$0xff] }
 0x75e   :  { %11068 = vmatprep.mubr.msk.bf16.mxu1 %vm13708_vm2, %v18206_v12  ;;  %v8343_v21 = vor.u32 %v8341_v1, %v8340_v56  ;;  %v8330_v6 = vmax.f32 %v8328_v33, 0.0  ;;  %v8344_v43 = vrot.slane %v8340_v56, 4  ;;  %v7342_v56 = vsel %vm2914_vm8, %v7339_v60, %v7341_v9  ;;  %v17770_v18 = vld [vmem:[%s18002_s2] ss:$0 sm:$0xff] }
 0x75f   :  { %7967 = vst [vmem:[#allocation2 + $0x158] sm:$0xff] %v11981_v11  ;;  %11917 = vmatmul.mubr.msk.bf16.gmra.mrb[192].mxu0 %vm830_vm3, %v17227_v19  ;;  %v7343_v3 = vrot.slane %v18486_v14, 3  ;;  %v18487_v60 = vld [vmem:[#allocation51_spill] sm:$0xff] }
 0x760   :  { %v8356_v63 = vsel %vm17385_vm11, %v8343_v21, %v8355_v52  ;;  %v9505_v44 = vpack.c.bf16 %v8330_v6, %v8330_v6  ;;  %11920 = vmatprep.mubr.msk.bf16.mxu0 %vm13708_vm2, %v18206_v12 }
 0x761   :  { %8357 = vst [vmem:[%s18001_s3 + $0x28] sm:$0xf] %v8356_v63 }
 0x762   :  { %v8346_v31 = vshrl.u32 %v9505_v44, 16  ;;  %v7573_v8 = vpop.f32.mrb[88].mxu0  ;;  %v8349_v27 = vshll.u32 %v9505_v44, 16 }
 0x763   :  { %v11982_v54 = vadd.f32 %v7573_v8, %v18483_v48  ;;  %v11814_v32 = vpop.f32.mrb[89].mxu0 }
 0x764   :  { %v8348_v19 = vrot.slane %v8346_v31, 7  ;;  %v8365_v41 = vld [vmem:[#allocation2 + $0x14a] sm:$0xff]  ;;  %v7576_v30 = vpop.f32.mrb[90].mxu0 }
 0x765   :  { %11069 = vmatmul.mubr.msk.bf16.gmra.mrb[200].mxu1 %vm830_vm3, %v4218_v40  ;;  %v8369_v13 = vmax.f32 %v8361_v49, %v8365_v41  ;;  %7968 = vst [vmem:[#allocation2 + $0x160] sm:$0xff] %v11982_v54  ;;  %v17737_v17 = vadd.f32 %v7576_v30, %v18484_v10  ;;  %v11815_v5 = vpop.f32.mrb[91].mxu0  ;;  %v7344_v40 = vsel %vm2914_vm8, %v7341_v9, %v7343_v3  ;;  %v18488_v49 = vld [vmem:[#allocation52_spill] sm:$0xff] }
 0x766   :  { %11072 = vmatprep.mubr.msk.bf16.mxu1 %vm13708_vm2, %v18206_v12  ;;  %v8351_v20 = vor.u32 %v8349_v27, %v8348_v19  ;;  %v8366_v28 = vld [vmem:[#allocation2 + $0x152] sm:$0xff] }
 0x767   :  { %8373 = vst [vmem:[#allocation3] sm:$0xff] %v8369_v13  ;;  %v8370_v29 = vmax.f32 %v8362_v55, %v8366_v28  ;;  %11921 = vmatmul.mubr.msk.bf16.gmra.mrb[196].mxu0 %vm830_vm3, %v7340_v45  ;;  %v8411_v45 = vld [vmem:[%s18001_s3 + $0x30] sm:$0xf] }
 0x768   :  { %v8352_v36 = vsel %vm17411_vm15, %v8344_v43, %v8351_v20  ;;  %11924 = vmatprep.mubr.msk.bf16.mxu0 %vm13708_vm2, %v18206_v12 }
 0x769   :  { %v8359_v46 = vsel %vm17418_vm0, %v8352_v36, %v8358_v26  ;;  %8374 = vst [vmem:[#allocation3 + $0x8] sm:$0xff] %v8370_v29  ;;  %v18489_v26 = vld [vmem:[#allocation53_spill] sm:$0xff] }
 0x76a   :  { %8360 = vst [vmem:[%s18001_s3 + $0x2c] sm:$0xf] %v8359_v46  ;;  %v7581_v39 = vpop.f32.mrb[92].mxu0 }
 0x76b   :  { %v17754_v23 = vadd.f32 %v7581_v39, %v17217_v62  ;;  %v11818_v25 = vpop.f32.mrb[93].mxu0 }
 0x76c   :  { %v8367_v7 = vld [vmem:[#allocation2 + $0x15a] sm:$0xff]  ;;  %v8368_v58 = vld [vmem:[#allocation2 + $0x162] sm:$0xf]  ;;  %v7584_v4 = vpop.f32.mrb[94].mxu0 }
 0x76d   :  { %11073 = vmatmul.mubr.msk.bf16.gmra.mrb[204].mxu1 %vm830_vm3, %v4227_v16  ;;  %v8371_v1 = vmax.f32 %v8363_v47, %v8367_v7  ;;  %v8372_v33 = vmax.f32 %v8364_v57, %v8368_v58  ;;  %v17761_v61 = vadd.f32 %v7584_v4, %v18485_v37  ;;  %v11819_v51 = vpop.f32.mrb[95].mxu0  ;;  %v18490_v57 = vld [vmem:[#allocation54_spill] sm:$0xff]  ;;  %v18491_v37 = vld [vmem:[#allocation55_spill] sm:$0xff] }
 0x76e   :  { %11076 = vmatprep.mubr.msk.bf16.mxu1 %vm13708_vm2, %v18206_v12 }
 0x76f   :  { %8375 = vst [vmem:[#allocation3 + $0x10] sm:$0xff] %v8371_v1  ;;  %8376 = vst [vmem:[#allocation3 + $0x18] sm:$0xf] %v8372_v33  ;;  %11925 = vmatmul.mubr.msk.bf16.gmra.mrb[200].mxu0 %vm830_vm3, %v7342_v56 }
 0x770   :  { %v8377_v62 = vld [vmem:[#allocation3] ss:$2 sm:$0xff]  ;;  %v8379_v52 = vld [vmem:[#allocation3 + $0x1] ss:$2 sm:$0xff]  ;;  %11928 = vmatprep.mubr.msk.bf16.mxu0 %vm13708_vm2, %v18206_v12 }
 0x771   :  { %v8381_v21 = vmax.f32 %v8377_v62, %v8379_v52 }
 0x772   :  { %v7589_v6 = vpop.f32.mrb[96].mxu0 }
 0x773   :  { %v8383_v11 = vadd.f32 %v17770_v18, %v8381_v21  ;;  %v11986_v22 = vadd.f32 %v7589_v6, %v17236_v59  ;;  %v11822_v63 = vpop.f32.mrb[97].mxu0 }
 0x774   :  { %v7592_v44 = vpop.f32.mrb[98].mxu0 }
 0x775   :  { %11077 = vmatmul.mubr.msk.bf16.gmra.mrb[208].mxu1 %vm830_vm3, %v4226_v53  ;;  %v8385_v38 = vmax.f32 %v8383_v11, 0.0  ;;  %7972 = vst [vmem:[#allocation2 + $0x180] sm:$0xff] %v11986_v22  ;;  %v11987_v35 = vadd.f32 %v7592_v44, %v18487_v60  ;;  %v11823_v2 = vpop.f32.mrb[99].mxu0 }
 0x776   :  { %v8378_v15 = vld [vmem:[#allocation3 + $0x10] ss:$2 sm:$0x3f]  ;;  %v8380_v0 = vld [vmem:[#allocation3 + $0x11] ss:$2 sm:$0x3f] }
 0x777   :  { %v9506_v31 = vpack.c.bf16 %v8385_v38, %v8385_v38  ;;  %v8382_v8 = vmax.f32 %v8378_v15, %v8380_v0  ;;  %7973 = vst [vmem:[#allocation2 + $0x188] sm:$0xff] %v11987_v35  ;;  %11929 = vmatmul.mubr.msk.bf16.gmra.mrb[204].mxu0 %vm830_vm3, %v7344_v40 }
 0x778   :  { %11932 = vmatprep.mubr.msk.bf16.mxu0 %vm13708_vm2, %v18206_v12 }
 0x779   :  { %v8394_v59 = vshrl.u32 %v9506_v31, 16  ;;  %v8384_v19 = vadd.f32 %v17770_v18, %v8382_v8  ;;  %v8397_v54 = vshll.u32 %v9506_v31, 16 }
 0x77a   :  { %v7597_v27 = vpop.f32.mrb[100].mxu0 }
 0x77b   :  { %v8396_v48 = vrot.slane %v8394_v59, 7  ;;  %v8386_v32 = vmax.f32 %v8384_v19, 0.0  ;;  %v11988_v41 = vadd.f32 %v7597_v27, %v18488_v49  ;;  %v11826_v30 = vpop.f32.mrb[101].mxu0 }
 0x77c   :  { %v7600_v53 = vpop.f32.mrb[102].mxu0  ;;  %v8420_v40 = vld [vmem:[#allocation2 + $0x180] sm:$0xf] }
 0x77d   :  { %v8399_v43 = vor.u32 %v8397_v54, %v8396_v48  ;;  %v9507_v20 = vpack.c.bf16 %v8386_v32, %v8386_v32  ;;  %7974 = vst [vmem:[#allocation2 + $0x190] sm:$0xff] %v11988_v41  ;;  %v11989_v12 = vadd.f32 %v7600_v53, %v18489_v26  ;;  %v11827_v13 = vpop.f32.mrb[103].mxu0  ;;  %v8400_v47 = vrot.slane %v8396_v48, 4 }
 0x77e   :  { %v8421_v10 = vld [vmem:[#allocation2 + $0x186] sm:$0xff] }
 0x77f   :  { %v8412_v55 = vsel %vm17385_vm11, %v8399_v43, %v8411_v45  ;;  %v8402_v28 = vshrl.u32 %v9507_v20, 16  ;;  %v8425_v36 = vmax.f32 %v17737_v17, %v8421_v10  ;;  %7975 = vst [vmem:[#allocation2 + $0x198] sm:$0xff] %v11989_v12  ;;  %11933 = vmatmul.mubr.msk.bf16.gmra.mrb[208].mxu0 %vm830_vm3, %v7343_v3  ;;  %v8405_v24 = vshll.u32 %v9507_v20, 16  ;;  %v8414_v17 = vld [vmem:[%s18001_s3 + $0x34] sm:$0xf] }
 0x780   :  { %v4640_v5 = vpop.f32.mrb[108].mxu1  ;;  %8413 = vst [vmem:[%s18001_s3 + $0x30] sm:$0xf] %v8412_v55 }
 0x781   :  { %v10978_v29 = vpop.f32.mrb[109].mxu1  ;;  %v8404_v16 = vrot.slane %v8402_v28, 7  ;;  %8429 = vst [vmem:[#allocation3] sm:$0xff] %v8425_v36 }
 0x782   :  { %v4643_v46 = vpop.f32.mrb[110].mxu1  ;;  %v7605_v39 = vpop.f32.mrb[104].mxu0 }
 0x783   :  { %v10979_v9 = vpop.f32.mrb[111].mxu1  ;;  %v8407_v25 = vor.u32 %v8405_v24, %v8404_v16  ;;  %v11990_v7 = vadd.f32 %v7605_v39, %v18490_v57  ;;  %v11830_v58 = vpop.f32.mrb[105].mxu0 }
 0x784   :  { %v8422_v4 = vld [vmem:[#allocation2 + $0x18e] sm:$0xff]  ;;  %v7608_v56 = vpop.f32.mrb[106].mxu0 }
 0x785   :  { %v8408_v1 = vsel %vm17411_vm15, %v8400_v47, %v8407_v25  ;;  %v8426_v33 = vmax.f32 %v17754_v23, %v8422_v4  ;;  %7976 = vst [vmem:[#allocation2 + $0x1a0] sm:$0xff] %v11990_v7  ;;  %v11991_v51 = vadd.f32 %v7608_v56, %v18491_v37  ;;  %v11831_v62 = vpop.f32.mrb[107].mxu0 }
 0x786   :  { %v8415_v52 = vsel %vm17418_vm0, %v8408_v1, %v8414_v17  ;;  %v8423_v14 = vld [vmem:[#allocation2 + $0x196] sm:$0xff] }
 0x787   :  { %8416 = vst [vmem:[%s18001_s3 + $0x34] sm:$0xf] %v8415_v52  ;;  %8430 = vst [vmem:[#allocation3 + $0x8] sm:$0xff] %v8426_v33  ;;  %v8427_v21 = vmax.f32 %v17761_v61, %v8423_v14 }
 0x788   :  { %v4648_v3 = vpop.f32.mrb[112].mxu1  ;;  %7977 = vst [vmem:[#allocation2 + $0x1a8] sm:$0xff] %v11991_v51 }
 0x789   :  { %v10982_v6 = vpop.f32.mrb[113].mxu1  ;;  %8431 = vst [vmem:[#allocation3 + $0x10] sm:$0xff] %v8427_v21 }
 0x78a   :  { %v4651_v11 = vpop.f32.mrb[114].mxu1  ;;  %v7613_v22 = vpop.f32.mrb[108].mxu0 }
 0x78b   :  { %v10983_v23 = vpop.f32.mrb[115].mxu1  ;;  %v11992_v63 = vadd.f32 %v7613_v22, %v4640_v5  ;;  %v11834_v44 = vpop.f32.mrb[109].mxu0  ;;  %v8470_v22 = vld [vmem:[%s18001_s3 + $0x3c] sm:$0xf] }
 0x78c   :  { %v8424_v38 = vld [vmem:[#allocation2 + $0x19e] sm:$0xf]  ;;  %v7616_v60 = vpop.f32.mrb[110].mxu0 }
 0x78d   :  { %v8428_v35 = vmax.f32 %v8420_v40, %v8424_v38  ;;  %7978 = vst [vmem:[#allocation2 + $0x1b0] sm:$0xff] %v11992_v63  ;;  %v11993_v2 = vadd.f32 %v7616_v60, %v4643_v46  ;;  %v11835_v15 = vpop.f32.mrb[111].mxu0  ;;  %v8467_v46 = vld [vmem:[%s18001_s3 + $0x38] sm:$0xf] }
 0x78e   :  { %v8433_v0 = vld [vmem:[#allocation3] ss:$2 sm:$0xff]  ;;  %v8435_v31 = vld [vmem:[#allocation3 + $0x1] ss:$2 sm:$0xff] }
 0x78f   :  { %v8437_v59 = vmax.f32 %v8433_v0, %v8435_v31  ;;  %8432 = vst [vmem:[#allocation3 + $0x18] sm:$0xf] %v8428_v35  ;;  %7979 = vst [vmem:[#allocation2 + $0x1b8] sm:$0xff] %v11993_v2  ;;  %v8473_v56 = vld [vmem:[#allocation2 + $0x1a4] sm:$0xff] }
 0x790   :  { %v4656_v8 = vpop.f32.mrb[116].mxu1 }
 0x791   :  { %v10986_v61 = vpop.f32.mrb[117].mxu1  ;;  %v8439_v27 = vadd.f32 %v17770_v18, %v8437_v59 }
 0x792   :  { %v4659_v19 = vpop.f32.mrb[118].mxu1  ;;  %v7621_v54 = vpop.f32.mrb[112].mxu0 }
 0x793   :  { %v10987_v48 = vpop.f32.mrb[119].mxu1  ;;  %v8441_v32 = vmax.f32 %v8439_v27, 0.0  ;;  %v11994_v49 = vadd.f32 %v7621_v54, %v4648_v3  ;;  %v11838_v41 = vpop.f32.mrb[113].mxu0 }
 0x794   :  { %v7624_v30 = vpop.f32.mrb[114].mxu0  ;;  %v8474_v40 = vld [vmem:[#allocation2 + $0x1ac] sm:$0xff] }
 0x795   :  { %v9508_v45 = vpack.c.bf16 %v8441_v32, %v8441_v32  ;;  %7980 = vst [vmem:[#allocation2 + $0x1c0] sm:$0xff] %v11994_v49  ;;  %v11995_v53 = vadd.f32 %v7624_v30, %v4651_v11  ;;  %v11839_v43 = vpop.f32.mrb[115].mxu0 }
 0x796   :  { %v8434_v20 = vld [vmem:[#allocation3 + $0x10] ss:$2 sm:$0x3f]  ;;  %v8436_v26 = vld [vmem:[#allocation3 + $0x11] ss:$2 sm:$0x3f] }
 0x797   :  { %v8450_v12 = vshrl.u32 %v9508_v45, 16  ;;  %v8438_v13 = vmax.f32 %v8434_v20, %v8436_v26  ;;  %7981 = vst [vmem:[#allocation2 + $0x1c8] sm:$0xff] %v11995_v53  ;;  %v8453_v28 = vshll.u32 %v9508_v45, 16  ;;  %v8475_v2 = vld [vmem:[#allocation2 + $0x1b4] sm:$0xff]  ;;  %v8476_v59 = vld [vmem:[#allocation2 + $0x1bc] sm:$0xf] }
 0x798   :  { %v4664_v10 = vpop.f32.mrb[120].mxu1 }
 0x799   :  { %v10990_v5 = vpop.f32.mrb[121].mxu1  ;;  %v8452_v55 = vrot.slane %v8450_v12, 7  ;;  %v8440_v36 = vadd.f32 %v17770_v18, %v8438_v13 }
 0x79a   :  { %v4667_v29 = vpop.f32.mrb[122].mxu1  ;;  %v7629_v16 = vpop.f32.mrb[116].mxu0 }
 0x79b   :  { %v10991_v24 = vpop.f32.mrb[123].mxu1  ;;  %v8455_v9 = vor.u32 %v8453_v28, %v8452_v55  ;;  %v8442_v39 = vmax.f32 %v8440_v36, 0.0  ;;  %v11996_v47 = vadd.f32 %v7629_v16, %v4656_v8  ;;  %v11842_v25 = vpop.f32.mrb[117].mxu0  ;;  %v8456_v11 = vrot.slane %v8452_v55, 4 }
 0x79c   :  { %v7632_v17 = vpop.f32.mrb[118].mxu0 }
 0x79d   :  { %v8468_v57 = vsel %vm17385_vm11, %v8455_v9, %v8467_v46  ;;  %v9509_v7 = vpack.c.bf16 %v8442_v39, %v8442_v39  ;;  %7982 = vst [vmem:[#allocation2 + $0x1d0] sm:$0xff] %v11996_v47  ;;  %v11997_v58 = vadd.f32 %v7632_v17, %v4659_v19  ;;  %v11843_v4 = vpop.f32.mrb[119].mxu0 }
 0x79e   :  { %8469 = vst [vmem:[%s18001_s3 + $0x38] sm:$0xf] %v8468_v57  ;;  %v8477_v1 = vld [vmem:[#allocation2 + $0x1c2] sm:$0xff] }
 0x79f   :  { %v8458_v37 = vshrl.u32 %v9509_v7, 16  ;;  %v8481_v51 = vmax.f32 %v8473_v56, %v8477_v1  ;;  %7983 = vst [vmem:[#allocation2 + $0x1d8] sm:$0xff] %v11997_v58  ;;  %v8461_v3 = vshll.u32 %v9509_v7, 16 }
 0x7a0   :  { %v4672_v33 = vpop.f32.mrb[124].mxu1 }
 0x7a1   :  { %v10994_v62 = vpop.f32.mrb[125].mxu1  ;;  %v8460_v14 = vrot.slane %v8458_v37, 7  ;;  %8485 = vst [vmem:[#allocation3] sm:$0xff] %v8481_v51 }
 0x7a2   :  { %v4675_v52 = vpop.f32.mrb[126].mxu1  ;;  %v7637_v6 = vpop.f32.mrb[120].mxu0 }
 0x7a3   :  { %v10995_v21 = vpop.f32.mrb[127].mxu1  ;;  %v8463_v23 = vor.u32 %v8461_v3, %v8460_v14  ;;  %v17820_v63 = vadd.f32 %v7637_v6, %v4664_v10  ;;  %v11846_v44 = vpop.f32.mrb[121].mxu0  ;;  %v8523_v6 = vld [vmem:[%s18001_s3 + $0x40] sm:$0xf] }
 0x7a4   :  { %v8478_v38 = vld [vmem:[#allocation2 + $0x1ca] sm:$0xff]  ;;  %v7640_v60 = vpop.f32.mrb[122].mxu0 }
 0x7a5   :  { %v8464_v35 = vsel %vm17411_vm15, %v8456_v11, %v8463_v23  ;;  %v8482_v15 = vmax.f32 %v8474_v40, %v8478_v38  ;;  %v17824_v0 = vadd.f32 %v7640_v60, %v4667_v29  ;;  %v11847_v31 = vpop.f32.mrb[123].mxu0 }
 0x7a6   :  { %v8471_v8 = vsel %vm17418_vm0, %v8464_v35, %v8470_v22  ;;  %v8479_v61 = vld [vmem:[#allocation2 + $0x1d2] sm:$0xff]  ;;  %v8480_v19 = vld [vmem:[#allocation2 + $0x1da] sm:$0xf] }
 0x7a7   :  { %8472 = vst [vmem:[%s18001_s3 + $0x3c] sm:$0xf] %v8471_v8  ;;  %8486 = vst [vmem:[#allocation3 + $0x8] sm:$0xff] %v8482_v15  ;;  %v8483_v48 = vmax.f32 %v8475_v2, %v8479_v61  ;;  %v8484_v54 = vmax.f32 %v8476_v59, %v8480_v19  ;;  %v8526_v8 = vld [vmem:[%s18001_s3 + $0x44] sm:$0xf] }
 0x7a8   :  { %v4680_v27 = vpop.f32.mrb[128].mxu1 }
 0x7a9   :  { %v10998_v32 = vpop.f32.mrb[129].mxu1  ;;  %8487 = vst [vmem:[#allocation3 + $0x10] sm:$0xff] %v8483_v48  ;;  %8488 = vst [vmem:[#allocation3 + $0x18] sm:$0xf] %v8484_v54 }
 0x7aa   :  { %v4683_v49 = vpop.f32.mrb[130].mxu1  ;;  %v7645_v30 = vpop.f32.mrb[124].mxu0 }
 0x7ab   :  { %v10999_v41 = vpop.f32.mrb[131].mxu1  ;;  %v17831_v45 = vadd.f32 %v7645_v30, %v4672_v33  ;;  %v11850_v53 = vpop.f32.mrb[125].mxu0 }
 0x7ac   :  { %v7648_v43 = vpop.f32.mrb[126].mxu0 }
 0x7ad   :  { %v12001_v20 = vadd.f32 %v7648_v43, %v4675_v52  ;;  %v11851_v26 = vpop.f32.mrb[127].mxu0 }
 0x7ae   :  { %v8489_v12 = vld [vmem:[#allocation3] ss:$2 sm:$0xff]  ;;  %v8491_v13 = vld [vmem:[#allocation3 + $0x1] ss:$2 sm:$0xff] }
 0x7af   :  { %v8493_v5 = vmax.f32 %v8489_v12, %v8491_v13  ;;  %7987 = vst [vmem:[#allocation2 + $0x1f8] sm:$0xff] %v12001_v20 }
 0x7b0   :  { %v4688_v10 = vpop.f32.mrb[132].mxu1  ;;  %v8490_v28 = vld [vmem:[#allocation3 + $0x10] ss:$2 sm:$0x3f] }
 0x7b1   :  { %v11002_v55 = vpop.f32.mrb[133].mxu1  ;;  %v8492_v36 = vld [vmem:[#allocation3 + $0x11] ss:$2 sm:$0x3f]  ;;  %v8495_v29 = vadd.f32 %v17770_v18, %v8493_v5 }
 0x7b2   :  { %v8494_v46 = vmax.f32 %v8490_v28, %v8492_v36  ;;  %v4691_v16 = vpop.f32.mrb[134].mxu1  ;;  %v7653_v24 = vpop.f32.mrb[128].mxu0 }
 0x7b3   :  { %v11003_v9 = vpop.f32.mrb[135].mxu1  ;;  %v8497_v39 = vmax.f32 %v8495_v29, 0.0  ;;  %v12002_v25 = vadd.f32 %v7653_v24, %v4680_v27  ;;  %v11854_v17 = vpop.f32.mrb[129].mxu0 }
 0x7b4   :  { %v8496_v47 = vadd.f32 %v17770_v18, %v8494_v46  ;;  %v7656_v57 = vpop.f32.mrb[130].mxu0 }
 0x7b5   :  { %v9510_v7 = vpack.c.bf16 %v8497_v39, %v8497_v39  ;;  %7988 = vst [vmem:[#allocation2 + $0x200] sm:$0xff] %v12002_v25  ;;  %v12003_v4 = vadd.f32 %v7656_v57, %v4683_v49  ;;  %v11855_v56 = vpop.f32.mrb[131].mxu0 }
 0x7b6   :  { %v8498_v58 = vmax.f32 %v8496_v47, 0.0  ;;  %v8532_v5 = vld [vmem:[#allocation2 + $0x1f8] sm:$0xf] }
 0x7b7   :  { %v8506_v33 = vshrl.u32 %v9510_v7, 16  ;;  %7989 = vst [vmem:[#allocation2 + $0x208] sm:$0xff] %v12003_v4  ;;  %v8509_v14 = vshll.u32 %v9510_v7, 16 }
 0x7b8   :  { %v4696_v1 = vpop.f32.mrb[136].mxu1  ;;  %v9511_v37 = vpack.c.bf16 %v8498_v58, %v8498_v58 }
 0x7b9   :  { %v11006_v51 = vpop.f32.mrb[137].mxu1  ;;  %v8508_v52 = vrot.slane %v8506_v33, 7 }
 0x7ba   :  { %v4699_v62 = vpop.f32.mrb[138].mxu1  ;;  %v8514_v3 = vshrl.u32 %v9511_v37, 16  ;;  %v7661_v11 = vpop.f32.mrb[132].mxu0  ;;  %v8517_v44 = vshll.u32 %v9511_v37, 16 }
 0x7bb   :  { %v11007_v21 = vpop.f32.mrb[139].mxu1  ;;  %v8511_v23 = vor.u32 %v8509_v14, %v8508_v52  ;;  %v12004_v40 = vadd.f32 %v7661_v11, %v4688_v10  ;;  %v11858_v38 = vpop.f32.mrb[133].mxu0  ;;  %v8512_v60 = vrot.slane %v8508_v52, 4 }
 0x7bc   :  { %v8516_v22 = vrot.slane %v8514_v3, 7  ;;  %v8533_v35 = vld [vmem:[#allocation2 + $0x1fe] sm:$0xff]  ;;  %v7664_v2 = vpop.f32.mrb[134].mxu0 }
 0x7bd   :  { %v8524_v15 = vsel %vm17385_vm11, %v8511_v23, %v8523_v6  ;;  %v8537_v59 = vmax.f32 %v17820_v63, %v8533_v35  ;;  %7990 = vst [vmem:[#allocation2 + $0x210] sm:$0xff] %v12004_v40  ;;  %v12005_v61 = vadd.f32 %v7664_v2, %v4691_v16  ;;  %v11859_v19 = vpop.f32.mrb[135].mxu0  ;;  %v8579_v40 = vld [vmem:[%s18001_s3 + $0x48] sm:$0xf] }
 0x7be   :  { %v8519_v31 = vor.u32 %v8517_v44, %v8516_v22  ;;  %8525 = vst [vmem:[%s18001_s3 + $0x40] sm:$0xf] %v8524_v15  ;;  %v8534_v27 = vld [vmem:[#allocation2 + $0x206] sm:$0xff] }
 0x7bf   :  { %8541 = vst [vmem:[#allocation3] sm:$0xff] %v8537_v59  ;;  %v8538_v32 = vmax.f32 %v17824_v0, %v8534_v27  ;;  %7991 = vst [vmem:[#allocation2 + $0x218] sm:$0xff] %v12005_v61 }
 0x7c0   :  { %v4704_v48 = vpop.f32.mrb[140].mxu1  ;;  %v8520_v54 = vsel %vm17411_vm15, %v8512_v60, %v8519_v31 }
 0x7c1   :  { %v11010_v49 = vpop.f32.mrb[141].mxu1  ;;  %v8527_v63 = vsel %vm17418_vm0, %v8520_v54, %v8526_v8  ;;  %8542 = vst [vmem:[#allocation3 + $0x8] sm:$0xff] %v8538_v32 }
 0x7c2   :  { %v4707_v41 = vpop.f32.mrb[142].mxu1  ;;  %8528 = vst [vmem:[%s18001_s3 + $0x44] sm:$0xf] %v8527_v63  ;;  %v7669_v53 = vpop.f32.mrb[136].mxu0 }
 0x7c3   :  { %v11011_v30 = vpop.f32.mrb[143].mxu1  ;;  %v12006_v43 = vadd.f32 %v7669_v53, %v4696_v1  ;;  %v11862_v20 = vpop.f32.mrb[137].mxu0 }
 0x7c4   :  { %v8535_v26 = vld [vmem:[#allocation2 + $0x20e] sm:$0xff]  ;;  %v7672_v12 = vpop.f32.mrb[138].mxu0 }
 0x7c5   :  { %v8539_v13 = vmax.f32 %v17831_v45, %v8535_v26  ;;  %7992 = vst [vmem:[#allocation2 + $0x220] sm:$0xff] %v12006_v43  ;;  %v12007_v0 = vadd.f32 %v7672_v12, %v4699_v62  ;;  %v11863_v10 = vpop.f32.mrb[139].mxu0  ;;  %v8582_v12 = vld [vmem:[%s18001_s3 + $0x4c] sm:$0xf] }
 0x7c6   :  { %v8536_v55 = vld [vmem:[#allocation2 + $0x216] sm:$0xf] }
 0x7c7   :  { %8543 = vst [vmem:[#allocation3 + $0x10] sm:$0xff] %v8539_v13  ;;  %v8540_v36 = vmax.f32 %v8532_v5, %v8536_v55  ;;  %7993 = vst [vmem:[#allocation2 + $0x228] sm:$0xff] %v12007_v0 }
 0x7c8   :  { %v4712_v28 = vpop.f32.mrb[144].mxu1  ;;  %v8545_v46 = vld [vmem:[#allocation3] ss:$2 sm:$0xff]  ;;  %v8547_v16 = vld [vmem:[#allocation3 + $0x1] ss:$2 sm:$0xff] }
 0x7c9   :  { %v11014_v29 = vpop.f32.mrb[145].mxu1  ;;  %v8549_v9 = vmax.f32 %v8545_v46, %v8547_v16  ;;  %8544 = vst [vmem:[#allocation3 + $0x18] sm:$0xf] %v8540_v36 }
 0x7ca   :  { %v4715_v24 = vpop.f32.mrb[146].mxu1  ;;  %v7677_v47 = vpop.f32.mrb[140].mxu0 }
 0x7cb   :  { %v11015_v39 = vpop.f32.mrb[147].mxu1  ;;  %v8551_v25 = vadd.f32 %v17770_v18, %v8549_v9  ;;  %v12008_v45 = vadd.f32 %v7677_v47, %v4704_v48  ;;  %v11866_v17 = vpop.f32.mrb[141].mxu0 }
 0x7cc   :  { %v7680_v57 = vpop.f32.mrb[142].mxu0  ;;  %v8585_v30 = vld [vmem:[#allocation2 + $0x21c] sm:$0xff] }
 0x7cd   :  { %v8553_v7 = vmax.f32 %v8551_v25, 0.0  ;;  %7994 = vst [vmem:[#allocation2 + $0x230] sm:$0xff] %v12008_v45  ;;  %v12009_v58 = vadd.f32 %v7680_v57, %v4707_v41  ;;  %v11867_v4 = vpop.f32.mrb[143].mxu0 }
 0x7ce   :  { %v8586_v5 = vld [vmem:[#allocation2 + $0x224] sm:$0xff] }
 0x7cf   :  { %v9512_v1 = vpack.c.bf16 %v8553_v7, %v8553_v7  ;;  %7995 = vst [vmem:[#allocation2 + $0x238] sm:$0xff] %v12009_v58 }
 0x7d0   :  { %v4720_v56 = vpop.f32.mrb[148].mxu1  ;;  %v8546_v37 = vld [vmem:[#allocation3 + $0x10] ss:$2 sm:$0x3f] }
 0x7d1   :  { %v11018_v33 = vpop.f32.mrb[149].mxu1  ;;  %v8548_v51 = vld [vmem:[#allocation3 + $0x11] ss:$2 sm:$0x3f]  ;;  %v8562_v62 = vshrl.u32 %v9512_v1, 16  ;;  %v8565_v11 = vshll.u32 %v9512_v1, 16 }
 0x7d2   :  { %v8550_v52 = vmax.f32 %v8546_v37, %v8548_v51  ;;  %v4723_v14 = vpop.f32.mrb[150].mxu1  ;;  %v7685_v3 = vpop.f32.mrb[144].mxu0 }
 0x7d3   :  { %v11019_v21 = vpop.f32.mrb[151].mxu1  ;;  %v8564_v6 = vrot.slane %v8562_v62, 7  ;;  %v12010_v22 = vadd.f32 %v7685_v3, %v4712_v28  ;;  %v11870_v44 = vpop.f32.mrb[145].mxu0 }
 0x7d4   :  { %v8552_v23 = vadd.f32 %v17770_v18, %v8550_v52  ;;  %v7688_v38 = vpop.f32.mrb[146].mxu0  ;;  %v8587_v47 = vld [vmem:[#allocation2 + $0x22c] sm:$0xff]  ;;  %v8588_v17 = vld [vmem:[#allocation2 + $0x234] sm:$0xf] }
 0x7d5   :  { %v8567_v60 = vor.u32 %v8565_v11, %v8564_v6  ;;  %7996 = vst [vmem:[#allocation2 + $0x240] sm:$0xff] %v12010_v22  ;;  %v12011_v2 = vadd.f32 %v7688_v38, %v4715_v24  ;;  %v11871_v15 = vpop.f32.mrb[147].mxu0  ;;  %v8568_v20 = vrot.slane %v8564_v6, 4 }
 0x7d6   :  { %v8554_v35 = vmax.f32 %v8552_v23, 0.0 }
 0x7d7   :  { %v8580_v8 = vsel %vm17385_vm11, %v8567_v60, %v8579_v40  ;;  %7997 = vst [vmem:[#allocation2 + $0x248] sm:$0xff] %v12011_v2 }
 0x7d8   :  { %v4728_v31 = vpop.f32.mrb[152].mxu1  ;;  %v9513_v59 = vpack.c.bf16 %v8554_v35, %v8554_v35  ;;  %8581 = vst [vmem:[%s18001_s3 + $0x48] sm:$0xf] %v8580_v8 }
 0x7d9   :  { %v11022_v61 = vpop.f32.mrb[153].mxu1 }
 0x7da   :  { %v4731_v19 = vpop.f32.mrb[154].mxu1  ;;  %v8570_v27 = vshrl.u32 %v9513_v59, 16  ;;  %v7693_v54 = vpop.f32.mrb[148].mxu0  ;;  %v8573_v49 = vshll.u32 %v9513_v59, 16 }
 0x7db   :  { %v11023_v48 = vpop.f32.mrb[155].mxu1  ;;  %v12012_v63 = vadd.f32 %v7693_v54, %v4720_v56  ;;  %v11874_v41 = vpop.f32.mrb[149].mxu0 }
 0x7dc   :  { %v8572_v32 = vrot.slane %v8570_v27, 7  ;;  %v8589_v53 = vld [vmem:[#allocation2 + $0x23a] sm:$0xff]  ;;  %v7696_v43 = vpop.f32.mrb[150].mxu0 }
 0x7dd   :  { %v8593_v13 = vmax.f32 %v8585_v30, %v8589_v53  ;;  %7998 = vst [vmem:[#allocation2 + $0x250] sm:$0xff] %v12012_v63  ;;  %v17869_v0 = vadd.f32 %v7696_v43, %v4723_v14  ;;  %v11875_v10 = vpop.f32.mrb[151].mxu0  ;;  %v8635_v53 = vld [vmem:[%s18001_s3 + $0x50] sm:$0xf] }
 0x7de   :  { %v8575_v26 = vor.u32 %v8573_v49, %v8572_v32  ;;  %v8590_v55 = vld [vmem:[#allocation2 + $0x242] sm:$0xff] }
 0x7df   :  { %8597 = vst [vmem:[#allocation3] sm:$0xff] %v8593_v13  ;;  %v8594_v29 = vmax.f32 %v8586_v5, %v8590_v55 }
 0x7e0   :  { %v4736_v28 = vpop.f32.mrb[156].mxu1  ;;  %v8576_v36 = vsel %vm17411_vm15, %v8568_v20, %v8575_v26 }
 0x7e1   :  { %v11026_v46 = vpop.f32.mrb[157].mxu1  ;;  %v8583_v16 = vsel %vm17418_vm0, %v8576_v36, %v8582_v12  ;;  %8598 = vst [vmem:[#allocation3 + $0x8] sm:$0xff] %v8594_v29 }
 0x7e2   :  { %v4739_v24 = vpop.f32.mrb[158].mxu1  ;;  %8584 = vst [vmem:[%s18001_s3 + $0x4c] sm:$0xf] %v8583_v16  ;;  %v7701_v39 = vpop.f32.mrb[152].mxu0 }
 0x7e3   :  { %v11027_v9 = vpop.f32.mrb[159].mxu1  ;;  %v17878_v25 = vadd.f32 %v7701_v39, %v4728_v31  ;;  %v11878_v45 = vpop.f32.mrb[153].mxu0 }
 0x7e4   :  { %v8591_v57 = vld [vmem:[#allocation2 + $0x24a] sm:$0xff]  ;;  %v8592_v7 = vld [vmem:[#allocation2 + $0x252] sm:$0xf]  ;;  %v7704_v58 = vpop.f32.mrb[154].mxu0 }
 0x7e5   :  { %v8595_v4 = vmax.f32 %v8587_v47, %v8591_v57  ;;  %v8596_v56 = vmax.f32 %v8588_v17, %v8592_v7  ;;  %v17880_v1 = vadd.f32 %v7704_v58, %v4731_v19  ;;  %v11879_v33 = vpop.f32.mrb[155].mxu0  ;;  %v8638_v17 = vld [vmem:[%s18001_s3 + $0x54] sm:$0xf] }
 0x7e7   :  { %8599 = vst [vmem:[#allocation3 + $0x10] sm:$0xff] %v8595_v4  ;;  %8600 = vst [vmem:[#allocation3 + $0x18] sm:$0xf] %v8596_v56 }
 0x7e8   :  { %v4744_v37 = vpop.f32.mrb[160].mxu1  ;;  %v8601_v62 = vld [vmem:[#allocation3] ss:$2 sm:$0xff]  ;;  %v8603_v52 = vld [vmem:[#allocation3 + $0x1] ss:$2 sm:$0xff] }
 0x7e9   :  { %v11030_v51 = vpop.f32.mrb[161].mxu1  ;;  %v8605_v3 = vmax.f32 %v8601_v62, %v8603_v52 }
 0x7ea   :  { %v4747_v14 = vpop.f32.mrb[162].mxu1  ;;  %v7709_v6 = vpop.f32.mrb[156].mxu0 }
 0x7eb   :  { %v11031_v21 = vpop.f32.mrb[163].mxu1  ;;  %v8607_v11 = vadd.f32 %v17770_v18, %v8605_v3  ;;  %v12016_v23 = vadd.f32 %v7709_v6, %v4736_v28  ;;  %v11882_v22 = vpop.f32.mrb[157].mxu0 }
 0x7ec   :  { %v7712_v44 = vpop.f32.mrb[158].mxu0 }
 0x7ed   :  { %v8609_v40 = vmax.f32 %v8607_v11, 0.0  ;;  %8002 = vst [vmem:[#allocation2 + $0x270] sm:$0xff] %v12016_v23  ;;  %v12017_v38 = vadd.f32 %v7712_v44, %v4739_v24  ;;  %v11883_v60 = vpop.f32.mrb[159].mxu0 }
 0x7ee   :  { %v8602_v35 = vld [vmem:[#allocation3 + $0x10] ss:$2 sm:$0x3f]  ;;  %v8604_v2 = vld [vmem:[#allocation3 + $0x11] ss:$2 sm:$0x3f] }
 0x7ef   :  { %v9514_v15 = vpack.c.bf16 %v8609_v40, %v8609_v40  ;;  %v8606_v31 = vmax.f32 %v8602_v35, %v8604_v2  ;;  %8003 = vst [vmem:[#allocation2 + $0x278] sm:$0xff] %v12017_v38 }
 0x7f0   :  { %v4752_v8 = vpop.f32.mrb[164].mxu1 }
 0x7f1   :  { %v11034_v59 = vpop.f32.mrb[165].mxu1  ;;  %v8618_v61 = vshrl.u32 %v9514_v15, 16  ;;  %v8608_v19 = vadd.f32 %v17770_v18, %v8606_v31  ;;  %v8621_v49 = vshll.u32 %v9514_v15, 16 }
 0x7f2   :  { %v4755_v27 = vpop.f32.mrb[166].mxu1  ;;  %v7717_v48 = vpop.f32.mrb[160].mxu0 }
 0x7f3   :  { %v11035_v54 = vpop.f32.mrb[167].mxu1  ;;  %v8620_v32 = vrot.slane %v8618_v61, 7  ;;  %v8610_v63 = vmax.f32 %v8608_v19, 0.0  ;;  %v12018_v41 = vadd.f32 %v7717_v48, %v4744_v37  ;;  %v11886_v30 = vpop.f32.mrb[161].mxu0 }
 0x7f4   :  { %v7720_v43 = vpop.f32.mrb[162].mxu0  ;;  %v8644_v22 = vld [vmem:[#allocation2 + $0x270] sm:$0xf] }
 0x7f5   :  { %v8623_v20 = vor.u32 %v8621_v49, %v8620_v32  ;;  %v9515_v26 = vpack.c.bf16 %v8610_v63, %v8610_v63  ;;  %8004 = vst [vmem:[#allocation2 + $0x280] sm:$0xff] %v12018_v41  ;;  %v12019_v12 = vadd.f32 %v7720_v43, %v4747_v14  ;;  %v11887_v13 = vpop.f32.mrb[163].mxu0  ;;  %v8624_v47 = vrot.slane %v8620_v32, 4 }
 0x7f6   :  { %v8645_v10 = vld [vmem:[#allocation2 + $0x276] sm:$0xff] }
 0x7f7   :  { %v8636_v55 = vsel %vm17385_vm11, %v8623_v20, %v8635_v53  ;;  %v8626_v28 = vshrl.u32 %v9515_v26, 16  ;;  %v8649_v36 = vmax.f32 %v17869_v0, %v8645_v10  ;;  %8005 = vst [vmem:[#allocation2 + $0x288] sm:$0xff] %v12019_v12  ;;  %v8629_v24 = vshll.u32 %v9515_v26, 16 }
 0x7f8   :  { %v4760_v5 = vpop.f32.mrb[168].mxu1  ;;  %8637 = vst [vmem:[%s18001_s3 + $0x50] sm:$0xf] %v8636_v55 }
 0x7f9   :  { %v11038_v29 = vpop.f32.mrb[169].mxu1  ;;  %v8628_v16 = vrot.slane %v8626_v28, 7  ;;  %8653 = vst [vmem:[#allocation3] sm:$0xff] %v8649_v36  ;;  %v8691_v36 = vld [vmem:[%s18001_s3 + $0x58] sm:$0xf] }
 0x7fa   :  { %v4763_v46 = vpop.f32.mrb[170].mxu1  ;;  %v7725_v39 = vpop.f32.mrb[164].mxu0 }
 0x7fb   :  { %v11039_v9 = vpop.f32.mrb[171].mxu1  ;;  %v8631_v45 = vor.u32 %v8629_v24, %v8628_v16  ;;  %v12020_v57 = vadd.f32 %v7725_v39, %v4752_v8  ;;  %v11890_v0 = vpop.f32.mrb[165].mxu0 }
 0x7fc   :  { %v8646_v7 = vld [vmem:[#allocation2 + $0x27e] sm:$0xff]  ;;  %v7728_v58 = vpop.f32.mrb[166].mxu0 }
 0x7fd   :  { %v8632_v4 = vsel %vm17411_vm15, %v8624_v47, %v8631_v45  ;;  %v8650_v56 = vmax.f32 %v17878_v25, %v8646_v7  ;;  %8006 = vst [vmem:[#allocation2 + $0x290] sm:$0xff] %v12020_v57  ;;  %v12021_v33 = vadd.f32 %v7728_v58, %v4755_v27  ;;  %v11891_v37 = vpop.f32.mrb[167].mxu0 }
 0x7fe   :  { %v8639_v51 = vsel %vm17418_vm0, %v8632_v4, %v8638_v17  ;;  %v8647_v62 = vld [vmem:[#allocation2 + $0x286] sm:$0xff] }
 0x7ff   :  { %8640 = vst [vmem:[%s18001_s3 + $0x54] sm:$0xf] %v8639_v51  ;;  %8654 = vst [vmem:[#allocation3 + $0x8] sm:$0xff] %v8650_v56  ;;  %v8651_v14 = vmax.f32 %v17880_v1, %v8647_v62 }
 0x800   :  { %v4768_v52 = vpop.f32.mrb[172].mxu1  ;;  %8007 = vst [vmem:[#allocation2 + $0x298] sm:$0xff] %v12021_v33 }
 0x801   :  { %v11042_v3 = vpop.f32.mrb[173].mxu1  ;;  %8655 = vst [vmem:[#allocation3 + $0x10] sm:$0xff] %v8651_v14 }
 0x802   :  { %v4771_v21 = vpop.f32.mrb[174].mxu1  ;;  %v7733_v6 = vpop.f32.mrb[168].mxu0 }
 0x803   :  { %v11043_v25 = vpop.f32.mrb[175].mxu1  ;;  %v12022_v11 = vadd.f32 %v7733_v6, %v4760_v5  ;;  %v11894_v23 = vpop.f32.mrb[169].mxu0 }
 0x804   :  { %v8648_v44 = vld [vmem:[#allocation2 + $0x28e] sm:$0xf]  ;;  %v7736_v40 = vpop.f32.mrb[170].mxu0  ;;  %v8694_v25 = vld [vmem:[%s18001_s3 + $0x5c] sm:$0xf] }
 0x805   :  { %v8652_v38 = vmax.f32 %v8644_v22, %v8648_v44  ;;  %8008 = vst [vmem:[#allocation2 + $0x2a0] sm:$0xff] %v12022_v11  ;;  %v12023_v60 = vadd.f32 %v7736_v40, %v4763_v46  ;;  %v11895_v35 = vpop.f32.mrb[171].mxu0 }
 0x806   :  { %v8657_v2 = vld [vmem:[#allocation3] ss:$2 sm:$0xff]  ;;  %v8659_v15 = vld [vmem:[#allocation3 + $0x1] ss:$2 sm:$0xff] }
 0x807   :  { %v8661_v8 = vmax.f32 %v8657_v2, %v8659_v15  ;;  %8656 = vst [vmem:[#allocation3 + $0x18] sm:$0xf] %v8652_v38  ;;  %8009 = vst [vmem:[#allocation2 + $0x2a8] sm:$0xff] %v12023_v60 }
 0x808   :  { %v4776_v31 = vpop.f32.mrb[176].mxu1 }
 0x809   :  { %v11046_v1 = vpop.f32.mrb[177].mxu1  ;;  %v8663_v61 = vadd.f32 %v17770_v18, %v8661_v8 }
 0x80a   :  { %v4779_v59 = vpop.f32.mrb[178].mxu1  ;;  %v7741_v27 = vpop.f32.mrb[172].mxu0 }
 0x80b   :  { %v11047_v19 = vpop.f32.mrb[179].mxu1  ;;  %v8665_v48 = vmax.f32 %v8663_v61, 0.0  ;;  %v12024_v54 = vadd.f32 %v7741_v27, %v4768_v52  ;;  %v11898_v32 = vpop.f32.mrb[173].mxu0 }
 0x80c   :  { %v7744_v49 = vpop.f32.mrb[174].mxu0  ;;  %v8698_v23 = vld [vmem:[#allocation2 + $0x29c] sm:$0xff] }
 0x80d   :  { %v9516_v63 = vpack.c.bf16 %v8665_v48, %v8665_v48  ;;  %8010 = vst [vmem:[#allocation2 + $0x2b0] sm:$0xff] %v12024_v54  ;;  %v12025_v41 = vadd.f32 %v7744_v49, %v4771_v21  ;;  %v11899_v30 = vpop.f32.mrb[175].mxu0 }
 0x80e   :  { %v8658_v53 = vld [vmem:[#allocation3 + $0x10] ss:$2 sm:$0x3f]  ;;  %v8660_v43 = vld [vmem:[#allocation3 + $0x11] ss:$2 sm:$0x3f] }
 0x80f   :  { %v8674_v20 = vshrl.u32 %v9516_v63, 16  ;;  %v8662_v26 = vmax.f32 %v8658_v53, %v8660_v43  ;;  %8011 = vst [vmem:[#allocation2 + $0x2b8] sm:$0xff] %v12025_v41  ;;  %v8677_v5 = vshll.u32 %v9516_v63, 16  ;;  %v8699_v38 = vld [vmem:[#allocation2 + $0x2a4] sm:$0xff] }
 0x810   :  { %v4784_v12 = vpop.f32.mrb[180].mxu1 }
 0x811   :  { %v11050_v13 = vpop.f32.mrb[181].mxu1  ;;  %v8676_v10 = vrot.slane %v8674_v20, 7  ;;  %v8664_v55 = vadd.f32 %v17770_v18, %v8662_v26  ;;  %v8697_v18 = vld [vmem:[#allocation2 + $0x294] sm:$0xff] }
 0x812   :  { %v4787_v28 = vpop.f32.mrb[182].mxu1  ;;  %v7749_v29 = vpop.f32.mrb[176].mxu0 }
 0x813   :  { %v11051_v46 = vpop.f32.mrb[183].mxu1  ;;  %v8679_v16 = vor.u32 %v8677_v5, %v8676_v10  ;;  %v8666_v24 = vmax.f32 %v8664_v55, 0.0  ;;  %v12026_v9 = vadd.f32 %v7749_v29, %v4776_v31  ;;  %v11902_v39 = vpop.f32.mrb[177].mxu0  ;;  %v8680_v3 = vrot.slane %v8676_v10, 4  ;;  %v8700_v31 = vld [vmem:[#allocation2 + $0x2ac] sm:$0xf] }
 0x814   :  { %v7752_v47 = vpop.f32.mrb[178].mxu0  ;;  %v17934_v55 = vld [vmem:[%s18002_s2] ss:$0 sm:$0xff] }
 0x815   :  { %v8692_v45 = vsel %vm17385_vm11, %v8679_v16, %v8691_v36  ;;  %v9517_v17 = vpack.c.bf16 %v8666_v24, %v8666_v24  ;;  %8012 = vst [vmem:[#allocation2 + $0x2c0] sm:$0xff] %v12026_v9  ;;  %v12027_v57 = vadd.f32 %v7752_v47, %v4779_v59  ;;  %v11903_v0 = vpop.f32.mrb[179].mxu0 }
 0x816   :  { %8693 = vst [vmem:[%s18001_s3 + $0x58] sm:$0xf] %v8692_v45  ;;  %v8701_v7 = vld [vmem:[#allocation2 + $0x2b2] sm:$0xff] }
 0x817   :  { %v8682_v4 = vshrl.u32 %v9517_v17, 16  ;;  %v8705_v56 = vmax.f32 %v8697_v18, %v8701_v7  ;;  %8013 = vst [vmem:[#allocation2 + $0x2c8] sm:$0xff] %v12027_v57  ;;  %v8685_v62 = vshll.u32 %v9517_v17, 16 }
 0x818   :  { %v4792_v58 = vpop.f32.mrb[184].mxu1 }
 0x819   :  { %v11054_v33 = vpop.f32.mrb[185].mxu1  ;;  %v8684_v51 = vrot.slane %v8682_v4, 7  ;;  %8709 = vst [vmem:[#allocation3] sm:$0xff] %v8705_v56 }
 0x81a   :  { %v4795_v37 = vpop.f32.mrb[186].mxu1  ;;  %v7757_v14 = vpop.f32.mrb[180].mxu0 }
 0x81b   :  { %v11055_v52 = vpop.f32.mrb[187].mxu1  ;;  %v8687_v21 = vor.u32 %v8685_v62, %v8684_v51  ;;  %v17918_v6 = vadd.f32 %v7757_v14, %v4784_v12  ;;  %v11906_v11 = vpop.f32.mrb[181].mxu0  ;;  %v8747_v14 = vld [vmem:[%s18001_s3 + $0x60] sm:$0xf] }
 0x81c   :  { %v8702_v22 = vld [vmem:[#allocation2 + $0x2ba] sm:$0xff]  ;;  %v7760_v44 = vpop.f32.mrb[182].mxu0 }
 0x81d   :  { %v8688_v40 = vsel %vm17411_vm15, %v8680_v3, %v8687_v21  ;;  %v8706_v60 = vmax.f32 %v8698_v23, %v8702_v22  ;;  %v17922_v35 = vadd.f32 %v7760_v44, %v4787_v28  ;;  %v11907_v2 = vpop.f32.mrb[183].mxu0 }
 0x81e   :  { %v8695_v15 = vsel %vm17418_vm0, %v8688_v40, %v8694_v25  ;;  %v8703_v8 = vld [vmem:[#allocation2 + $0x2c2] sm:$0xff]  ;;  %v8704_v1 = vld [vmem:[#allocation2 + $0x2ca] sm:$0xf] }
 0x81f   :  { %8696 = vst [vmem:[%s18001_s3 + $0x5c] sm:$0xf] %v8695_v15  ;;  %8710 = vst [vmem:[#allocation3 + $0x8] sm:$0xff] %v8706_v60  ;;  %v8707_v61 = vmax.f32 %v8699_v38, %v8703_v8  ;;  %v8708_v19 = vmax.f32 %v8700_v31, %v8704_v1  ;;  %v8750_v15 = vld [vmem:[%s18001_s3 + $0x64] sm:$0xf] }
 0x820   :  { %v4800_v59 = vpop.f32.mrb[188].mxu1 }
 0x821   :  { %v11058_v27 = vpop.f32.mrb[189].mxu1  ;;  %8711 = vst [vmem:[#allocation3 + $0x10] sm:$0xff] %v8707_v61  ;;  %8712 = vst [vmem:[#allocation3 + $0x18] sm:$0xf] %v8708_v19 }
 0x822   :  { %v4803_v48 = vpop.f32.mrb[190].mxu1  ;;  %v7765_v32 = vpop.f32.mrb[184].mxu0 }
 0x823   :  { %v11059_v54 = vpop.f32.mrb[191].mxu1  ;;  %v17929_v49 = vadd.f32 %v7765_v32, %v4792_v58  ;;  %v11910_v63 = vpop.f32.mrb[185].mxu0 }
 0x824   :  { %v7768_v41 = vpop.f32.mrb[186].mxu0 }
 0x825   :  { %v12031_v30 = vadd.f32 %v7768_v41, %v4795_v37  ;;  %v11911_v53 = vpop.f32.mrb[187].mxu0 }
 0x826   :  { %v8713_v43 = vld [vmem:[#allocation3] ss:$2 sm:$0xff]  ;;  %v8715_v20 = vld [vmem:[#allocation3 + $0x1] ss:$2 sm:$0xff] }
 0x827   :  { %v8717_v12 = vmax.f32 %v8713_v43, %v8715_v20  ;;  %8017 = vst [vmem:[#allocation2 + $0x2e8] sm:$0xff] %v12031_v30 }
 0x828   :  { %v4808_v26 = vpop.f32.mrb[192].mxu1  ;;  %v8714_v10 = vld [vmem:[#allocation3 + $0x10] ss:$2 sm:$0x3f] }
 0x829   :  { %v11062_v13 = vpop.f32.mrb[193].mxu1  ;;  %v8716_v5 = vld [vmem:[#allocation3 + $0x11] ss:$2 sm:$0x3f]  ;;  %v8719_v28 = vadd.f32 %v17934_v55, %v8717_v12 }
 0x82a   :  { %v8718_v36 = vmax.f32 %v8714_v10, %v8716_v5  ;;  %v4811_v29 = vpop.f32.mrb[194].mxu1  ;;  %v7773_v46 = vpop.f32.mrb[188].mxu0 }
 0x82b   :  { %v11063_v16 = vpop.f32.mrb[195].mxu1  ;;  %v8721_v24 = vmax.f32 %v8719_v28, 0.0  ;;  %v12032_v39 = vadd.f32 %v7773_v46, %v4800_v59  ;;  %v11914_v47 = vpop.f32.mrb[189].mxu0 }
 0x82c   :  { %v8720_v9 = vadd.f32 %v17934_v55, %v8718_v36  ;;  %v7776_v45 = vpop.f32.mrb[190].mxu0 }
 0x82d   :  { %v9518_v17 = vpack.c.bf16 %v8721_v24, %v8721_v24  ;;  %8018 = vst [vmem:[#allocation2 + $0x2f0] sm:$0xff] %v12032_v39  ;;  %v12033_v0 = vadd.f32 %v7776_v45, %v4803_v48  ;;  %v11915_v18 = vpop.f32.mrb[191].mxu0 }
 0x82e   :  { %v8722_v57 = vmax.f32 %v8720_v9, 0.0  ;;  %v8756_v12 = vld [vmem:[#allocation2 + $0x2e8] sm:$0xf] }
 0x82f   :  { %v8730_v58 = vshrl.u32 %v9518_v17, 16  ;;  %8019 = vst [vmem:[#allocation2 + $0x2f8] sm:$0xff] %v12033_v0  ;;  %v8733_v51 = vshll.u32 %v9518_v17, 16 }
 0x830   :  { %v4816_v7 = vpop.f32.mrb[196].mxu1  ;;  %v9519_v4 = vpack.c.bf16 %v8722_v57, %v8722_v57 }
 0x831   :  { %v11066_v56 = vpop.f32.mrb[197].mxu1  ;;  %v8732_v37 = vrot.slane %v8730_v58, 7 }
 0x832   :  { %v4819_v33 = vpop.f32.mrb[198].mxu1  ;;  %v8738_v62 = vshrl.u32 %v9519_v4, 16  ;;  %v7781_v3 = vpop.f32.mrb[192].mxu0  ;;  %v8741_v11 = vshll.u32 %v9519_v4, 16 }
 0x833   :  { %v11067_v52 = vpop.f32.mrb[199].mxu1  ;;  %v8735_v21 = vor.u32 %v8733_v51, %v8732_v37  ;;  %v12034_v23 = vadd.f32 %v7781_v3, %v4808_v26  ;;  %v11918_v22 = vpop.f32.mrb[193].mxu0  ;;  %v8736_v44 = vrot.slane %v8732_v37, 4 }
 0x834   :  { %v8740_v25 = vrot.slane %v8738_v62, 7  ;;  %v8757_v40 = vld [vmem:[#allocation2 + $0x2ee] sm:$0xff]  ;;  %v7784_v38 = vpop.f32.mrb[194].mxu0 }
 0x835   :  { %v8748_v60 = vsel %vm17385_vm11, %v8735_v21, %v8747_v14  ;;  %v8761_v31 = vmax.f32 %v17918_v6, %v8757_v40  ;;  %8020 = vst [vmem:[#allocation2 + $0x300] sm:$0xff] %v12034_v23  ;;  %v12035_v8 = vadd.f32 %v7784_v38, %v4811_v29  ;;  %v11919_v1 = vpop.f32.mrb[195].mxu0  ;;  %v8803_v23 = vld [vmem:[%s18001_s3 + $0x68] sm:$0xf] }
 0x836   :  { %v8743_v2 = vor.u32 %v8741_v11, %v8740_v25  ;;  %8749 = vst [vmem:[%s18001_s3 + $0x60] sm:$0xf] %v8748_v60  ;;  %v8758_v59 = vld [vmem:[#allocation2 + $0x2f6] sm:$0xff] }
 0x837   :  { %8765 = vst [vmem:[#allocation3] sm:$0xff] %v8761_v31  ;;  %v8762_v27 = vmax.f32 %v17922_v35, %v8758_v59  ;;  %8021 = vst [vmem:[#allocation2 + $0x308] sm:$0xff] %v12035_v8 }
 0x838   :  { %v4824_v61 = vpop.f32.mrb[200].mxu1  ;;  %v8744_v19 = vsel %vm17411_vm15, %v8736_v44, %v8743_v2 }
 0x839   :  { %v11070_v48 = vpop.f32.mrb[201].mxu1  ;;  %v8751_v6 = vsel %vm17418_vm0, %v8744_v19, %v8750_v15  ;;  %8766 = vst [vmem:[#allocation3 + $0x8] sm:$0xff] %v8762_v27 }
 0x83a   :  { %v4827_v54 = vpop.f32.mrb[202].mxu1  ;;  %8752 = vst [vmem:[%s18001_s3 + $0x64] sm:$0xf] %v8751_v6  ;;  %v7789_v63 = vpop.f32.mrb[196].mxu0 }
 0x83b   :  { %v11071_v32 = vpop.f32.mrb[203].mxu1  ;;  %v12036_v41 = vadd.f32 %v7789_v63, %v4816_v7  ;;  %v11922_v30 = vpop.f32.mrb[197].mxu0  ;;  %v8806_v63 = vld [vmem:[%s18001_s3 + $0x6c] sm:$0xf] }
 0x83c   :  { %v8759_v53 = vld [vmem:[#allocation2 + $0x2fe] sm:$0xff]  ;;  %v7792_v43 = vpop.f32.mrb[198].mxu0 }
 0x83d   :  { %v8763_v20 = vmax.f32 %v17929_v49, %v8759_v53  ;;  %8022 = vst [vmem:[#allocation2 + $0x310] sm:$0xff] %v12036_v41  ;;  %v12037_v35 = vadd.f32 %v7792_v43, %v4819_v33  ;;  %v11923_v26 = vpop.f32.mrb[199].mxu0 }
 0x83e   :  { %v8760_v13 = vld [vmem:[#allocation2 + $0x306] sm:$0xf] }
 0x83f   :  { %8767 = vst [vmem:[#allocation3 + $0x10] sm:$0xff] %v8763_v20  ;;  %v8764_v5 = vmax.f32 %v8756_v12, %v8760_v13  ;;  %8023 = vst [vmem:[#allocation2 + $0x318] sm:$0xff] %v12037_v35 }
 0x840   :  { %v4832_v10 = vpop.f32.mrb[204].mxu1  ;;  %v8769_v36 = vld [vmem:[#allocation3] ss:$2 sm:$0xff]  ;;  %v8771_v29 = vld [vmem:[#allocation3 + $0x1] ss:$2 sm:$0xff] }
 0x841   :  { %v11074_v28 = vpop.f32.mrb[205].mxu1  ;;  %v8773_v16 = vmax.f32 %v8769_v36, %v8771_v29  ;;  %8768 = vst [vmem:[#allocation3 + $0x18] sm:$0xf] %v8764_v5 }
 0x842   :  { %v4835_v46 = vpop.f32.mrb[206].mxu1  ;;  %v7797_v9 = vpop.f32.mrb[200].mxu0 }
 0x843   :  { %v11075_v24 = vpop.f32.mrb[207].mxu1  ;;  %v8775_v39 = vadd.f32 %v17934_v55, %v8773_v16  ;;  %v12038_v49 = vadd.f32 %v7797_v9, %v4824_v61  ;;  %v11926_v47 = vpop.f32.mrb[201].mxu0 }
 0x844   :  { %v7800_v45 = vpop.f32.mrb[202].mxu0  ;;  %v8809_v27 = vld [vmem:[#allocation2 + $0x30c] sm:$0xff] }
 0x845   :  { %v8777_v17 = vmax.f32 %v8775_v39, 0.0  ;;  %8024 = vst [vmem:[#allocation2 + $0x320] sm:$0xff] %v12038_v49  ;;  %v12039_v57 = vadd.f32 %v7800_v45, %v4827_v54  ;;  %v11927_v0 = vpop.f32.mrb[203].mxu0 }
 0x846   :  { %v8810_v53 = vld [vmem:[#allocation2 + $0x314] sm:$0xff] }
 0x847   :  { %v9520_v7 = vpack.c.bf16 %v8777_v17, %v8777_v17  ;;  %8025 = vst [vmem:[#allocation2 + $0x328] sm:$0xff] %v12039_v57 }
 0x848   :  { %v4840_v18 = vpop.f32.mrb[208].mxu1  ;;  %v8770_v4 = vld [vmem:[#allocation3 + $0x10] ss:$2 sm:$0x3f] }
 0x849   :  { %v11078_v58 = vpop.f32.mrb[209].mxu1  ;;  %v8772_v56 = vld [vmem:[#allocation3 + $0x11] ss:$2 sm:$0x3f]  ;;  %v8786_v33 = vshrl.u32 %v9520_v7, 16  ;;  %v8789_v3 = vshll.u32 %v9520_v7, 16 }
 0x84a   :  { %v8774_v37 = vmax.f32 %v8770_v4, %v8772_v56  ;;  %v4843_v51 = vpop.f32.mrb[210].mxu1  ;;  %v7805_v62 = vpop.f32.mrb[204].mxu0  ;;  %v8859_v58 = vld [vmem:[%s18001_s3 + $0x70] sm:$0xf] }
 0x84b   :  { %v11079_v52 = vpop.f32.mrb[211].mxu1  ;;  %v8788_v14 = vrot.slane %v8786_v33, 7  ;;  %v12040_v25 = vadd.f32 %v7805_v62, %v4832_v10  ;;  %v11930_v11 = vpop.f32.mrb[205].mxu0 }
 0x84c   :  { %v8776_v21 = vadd.f32 %v17934_v55, %v8774_v37  ;;  %v7808_v22 = vpop.f32.mrb[206].mxu0  ;;  %v8811_v12 = vld [vmem:[#allocation2 + $0x31c] sm:$0xff]  ;;  %v8812_v13 = vld [vmem:[#allocation2 + $0x324] sm:$0xf] }
 0x84d   :  { %v8791_v44 = vor.u32 %v8789_v3, %v8788_v14  ;;  %8026 = vst [vmem:[#allocation2 + $0x330] sm:$0xff] %v12040_v25  ;;  %v12041_v38 = vadd.f32 %v7808_v22, %v4835_v46  ;;  %v11931_v60 = vpop.f32.mrb[207].mxu0  ;;  %v8792_v54 = vrot.slane %v8788_v14, 4  ;;  %v8862_v14 = vld [vmem:[%s18001_s3 + $0x74] sm:$0xf] }
 0x84e   :  { %v8778_v40 = vmax.f32 %v8776_v21, 0.0 }
 0x84f   :  { %v8804_v2 = vsel %vm17385_vm11, %v8791_v44, %v8803_v23  ;;  %8027 = vst [vmem:[#allocation2 + $0x338] sm:$0xff] %v12041_v38 }
 0x850   :  { %v9521_v15 = vpack.c.bf16 %v8778_v40, %v8778_v40  ;;  %8805 = vst [vmem:[%s18001_s3 + $0x68] sm:$0xf] %v8804_v2 }
 0x852   :  { %v8794_v31 = vshrl.u32 %v9521_v15, 16  ;;  %v7813_v8 = vpop.f32.mrb[208].mxu0  ;;  %v8797_v59 = vshll.u32 %v9521_v15, 16 }
 0x853   :  { %v12042_v61 = vadd.f32 %v7813_v8, %v4840_v18  ;;  %v11934_v19 = vpop.f32.mrb[209].mxu0 }
 0x854   :  { %v8796_v1 = vrot.slane %v8794_v31, 7  ;;  %v8813_v48 = vld [vmem:[#allocation2 + $0x32a] sm:$0xff]  ;;  %v7816_v6 = vpop.f32.mrb[210].mxu0 }
 0x855   :  { %v8817_v41 = vmax.f32 %v8809_v27, %v8813_v48  ;;  %8028 = vst [vmem:[#allocation2 + $0x340] sm:$0xff] %v12042_v61  ;;  %v11935_v30 = vpop.f32.mrb[211].mxu0 }
 0x856   :  { %v8799_v32 = vor.u32 %v8797_v59, %v8796_v1  ;;  %v8814_v43 = vld [vmem:[#allocation2 + $0x332] sm:$0xff] }
 0x857   :  { %8821 = vst [vmem:[#allocation3] sm:$0xff] %v8817_v41  ;;  %v8818_v35 = vmax.f32 %v8810_v53, %v8814_v43 }
 0x858   :  { %v8800_v20 = vsel %vm17411_vm15, %v8792_v54, %v8799_v32 }
 0x859   :  { %v8807_v26 = vsel %vm17418_vm0, %v8800_v20, %v8806_v63  ;;  %8822 = vst [vmem:[#allocation3 + $0x8] sm:$0xff] %v8818_v35 }
 0x85a   :  { %8808 = vst [vmem:[%s18001_s3 + $0x6c] sm:$0xf] %v8807_v26 }
 0x85c   :  { %v8815_v10 = vld [vmem:[#allocation2 + $0x33a] sm:$0xff]  ;;  %v8816_v5 = vld [vmem:[#allocation2 + $0x342] sm:$0xf] }
 0x85d   :  { %v8819_v28 = vmax.f32 %v8811_v12, %v8815_v10  ;;  %v8820_v36 = vmax.f32 %v8812_v13, %v8816_v5 }
 0x85f   :  { %8823 = vst [vmem:[#allocation3 + $0x10] sm:$0xff] %v8819_v28  ;;  %8824 = vst [vmem:[#allocation3 + $0x18] sm:$0xf] %v8820_v36 }
 0x860   :  { %v8825_v29 = vld [vmem:[#allocation3] ss:$2 sm:$0xff]  ;;  %v8827_v46 = vld [vmem:[#allocation3 + $0x1] ss:$2 sm:$0xff] }
 0x861   :  { %v8829_v16 = vmax.f32 %v8825_v29, %v8827_v46 }
 0x863   :  { %v8831_v24 = vadd.f32 %v17934_v55, %v8829_v16 }
 0x865   :  { %v8833_v9 = vmax.f32 %v8831_v24, 0.0 }
 0x866   :  { %v8826_v39 = vld [vmem:[#allocation3 + $0x10] ss:$2 sm:$0x3f]  ;;  %v8828_v49 = vld [vmem:[#allocation3 + $0x11] ss:$2 sm:$0x3f] }
 0x867   :  { %v9522_v47 = vpack.c.bf16 %v8833_v9, %v8833_v9  ;;  %v8830_v45 = vmax.f32 %v8826_v39, %v8828_v49 }
 0x869   :  { %v8842_v17 = vshrl.u32 %v9522_v47, 16  ;;  %v8832_v57 = vadd.f32 %v17934_v55, %v8830_v45  ;;  %v8845_v18 = vshll.u32 %v9522_v47, 16 }
 0x86b   :  { %v8844_v0 = vrot.slane %v8842_v17, 7  ;;  %v8834_v7 = vmax.f32 %v8832_v57, 0.0 }
 0x86d   :  { %v8847_v4 = vor.u32 %v8845_v18, %v8844_v0  ;;  %v9523_v56 = vpack.c.bf16 %v8834_v7, %v8834_v7  ;;  %v8848_v55 = vrot.slane %v8844_v0, 4 }
 0x86f   :  { %v8860_v33 = vsel %vm17385_vm11, %v8847_v4, %v8859_v58  ;;  %v8850_v37 = vshrl.u32 %v9523_v56, 16  ;;  %v8853_v62 = vshll.u32 %v9523_v56, 16 }
 0x870   :  { %8861 = vst [vmem:[%s18001_s3 + $0x70] sm:$0xf] %v8860_v33 }
 0x871   :  { %v8852_v51 = vrot.slane %v8850_v37, 7 }
 0x873   :  { %v8855_v52 = vor.u32 %v8853_v62, %v8852_v51 }
 0x875   :  { %v8856_v3 = vsel %vm17411_vm15, %v8848_v55, %v8855_v52 }
 0x876   :  { %v8863_v34 = vsel %vm17418_vm0, %v8856_v3, %v8862_v14 }
 0x877   :  { %8864 = vst [vmem:[%s18001_s3 + $0x74] sm:$0xf] %v8863_v34 }

</bundles_post_ra>
